<compile_context>
chip_gen: v7x
topology: tpu7x:2x2x1
jax: 0.10.0
libtpu: 0.0.40
codegen_flags: <defaults>
</compile_context>

<pallas_src>
import functools
import math

import jax
import jax.numpy as jnp
from jax.experimental import pallas as pl
from jax.experimental.pallas import tpu as pltpu

# ---- hyperparameters (mirroring the PyTorch script) ----
N_EMBD = 64
N_HEAD = 4
N_LAYER = 2
FF_MULT = 4
MAX_LENGTH = 10            # input_block_size / output_block_size
DECODER_BLOCK_SIZE = 10
SOS_TOKEN = 0

V_PAD = 128                # lane-dense padded lm_head width
NEG_BIG = -1e9             # additive mask value / pad-column bias (exp underflows to exactly 0)


# ------------------------- fused kernel -------------------------

def _fused_kernel(
    # token ids
    idx_ref, dectgt_ref,
    # embedding tables
    emb_in_tok_ref, emb_out_tok_ref, emb_in_pos_ref,
    # encoder weights (stacked over layers)
    enc_ln_ref, enc_wqkv_ref, enc_wo_ref, enc_w1_ref, enc_w2_ref,
    # decoder weights (stacked over layers; qkv/wo also stacked over {self, cross})
    dec_ln_ref, dec_wqkv_ref, dec_wo_ref, dec_w1_ref, dec_w2_ref,
    # head
    lnf_ref, lm_ref,
    # outputs
    logits_ref, loss_ref,
    *, num_heads, n_layer, t_enc, t_dec):

    f32 = jnp.float32
    D = emb_in_tok_ref.shape[1]
    Hf = enc_w1_ref.shape[2]
    Ne = idx_ref.shape[0]
    Nd = dectgt_ref.shape[0]
    hs = D // num_heads
    scale = 1.0 / math.sqrt(D)          # torch uses C ** -0.5 with C = n_embd

    # ---------------- helpers ----------------
    def fdiv_floor(x, t):
        # floor(x / t) via float math (exact for the tiny integer ranges here);
        # avoids vector integer division.
        return jnp.floor(x * (1.0 / t))

    def block_bias(nq, nk, tq, tk, causal):
        # Additive attention-mask bias for the (B*T, D) flattened layout:
        # rows/cols attend only within the same batch block (and causally if requested).
        r = jax.lax.broadcasted_iota(jnp.int32, (nq, nk), 0).astype(f32)
        c = jax.lax.broadcasted_iota(jnp.int32, (nq, nk), 1).astype(f32)
        rb = fdiv_floor(r, tq)
        cb = fdiv_floor(c, tk)
        keep = rb == cb
        if causal:
            keep = keep & ((c - cb * tk) <= (r - rb * tq))
        return jnp.where(keep, 0.0, NEG_BIG)

    def tok_embed(ids, table):
        # ids: (N, 1) int32; table: (V, D).  One-hot matmul gather (MXU, no XLA gather op).
        cols = jax.lax.broadcasted_iota(jnp.int32, (ids.shape[0], table.shape[0]), 1)
        oh = (cols == ids).astype(f32)
        return jnp.dot(oh, table, preferred_element_type=f32)

    def pos_embed(n, t, table):
        # position of flattened row i is (i mod t); one-hot matmul against the pos table.
        r = jax.lax.broadcasted_iota(jnp.int32, (n, table.shape[0]), 0).astype(f32)
        c = jax.lax.broadcasted_iota(jnp.int32, (n, table.shape[0]), 1).astype(f32)
        p = r - fdiv_floor(r, t) * t
        oh = (c == p).astype(f32)
        return jnp.dot(oh, table, preferred_element_type=f32)

    def layernorm(x, g, b, eps=1e-5):
        mu = jnp.mean(x, axis=-1, keepdims=True)
        var = jnp.mean((x - mu) ** 2, axis=-1, keepdims=True)
        return (x - mu) * jax.lax.rsqrt(var + eps) * g + b

    def mha_core(q, k, v, wo, bo, bias):
        # q already scaled.  Per-head: NT matmul (no materialized transpose) + softmax + PV matmul.
        outs = []
        for h in range(num_heads):
            sl = slice(h * hs, (h + 1) * hs)
            s = jax.lax.dot_general(q[:, sl], k[:, sl],
                                    dimension_numbers=(((1,), (1,)), ((), ())),
                                    preferred_element_type=f32) + bias
            s = s - jnp.max(s, axis=-1, keepdims=True)
            e = jnp.exp(s)
            p = e * pl.reciprocal(jnp.sum(e, axis=-1, keepdims=True), approx=True)
            outs.append(jnp.dot(p, v[:, sl], preferred_element_type=f32))
        o = jnp.concatenate(outs, axis=-1)               # lane-concat heads -> (Nq, D)
        return jnp.dot(o, wo, preferred_element_type=f32) + bo   # single output projection

    def self_attn(x, wqkv, wo, bo, bias):
        qkv = jnp.dot(x, wqkv, preferred_element_type=f32)        # fused QKV: (N, 3D)
        q = qkv[:, :D] * scale
        return mha_core(q, qkv[:, D:2 * D], qkv[:, 2 * D:], wo, bo, bias)

    def cross_attn(q_in, kv_in, wkvq, wo, bo, bias):
        # slab layout: [wk | wv | wq] so both matmul operands start on 128-lane boundaries.
        kv = jnp.dot(kv_in, wkvq[:, :2 * D], preferred_element_type=f32)   # fused KV: (Nk, 2D)
        q = jnp.dot(q_in, wkvq[:, 2 * D:], preferred_element_type=f32) * scale
        return mha_core(q, kv[:, :D], kv[:, D:], wo, bo, bias)

    def ffwd(x, w1b, w2b):
        # w1b: (D+1, Hf)  rows 0..D-1 = W1, row D = b1 ;  w2b: (Hf+1, D) likewise.
        h = jnp.maximum(jnp.dot(x, w1b[:D], preferred_element_type=f32) + w1b[D:], 0.0)
        return jnp.dot(h, w2b[:Hf], preferred_element_type=f32) + w2b[Hf:]

    # ---------------- masks (hoisted, built once) ----------------
    enc_bias = block_bias(Ne, Ne, t_enc, t_enc, causal=False)
    dec_bias = block_bias(Nd, Nd, t_dec, t_dec, causal=True)
    cross_bias = block_bias(Nd, Ne, t_dec, t_enc, causal=False)

    # ---------------- embeddings (in-kernel one-hot gathers) ----------------
    # NOTE: torch uses the *input* position embedding table for the decoder too.
    in_tok = emb_in_tok_ref[...]
    out_tok = emb_out_tok_ref[...]
    in_pos = emb_in_pos_ref[...]
    x = tok_embed(idx_ref[...], in_tok) + pos_embed(Ne, t_enc, in_pos)          # (Ne, D)
    y = tok_embed(dectgt_ref[:, 0:1], out_tok) + pos_embed(Nd, t_dec, in_pos)   # (Nd, D)

    # ---------------- encoder: x += sa(ln1(x)); x += ffwd(ln2(x)) ----------------
    for l in range(n_layer):
        ln = enc_ln_ref[l]                      # (5, D): ln1_g, ln1_b, ln2_g, ln2_b, attn_bo
        h1 = layernorm(x, ln[0:1], ln[1:2])
        x = x + self_attn(h1, enc_wqkv_ref[l], enc_wo_ref[l], ln[4:5], enc_bias)
        h2 = layernorm(x, ln[2:3], ln[3:4])
        x = x + ffwd(h2, enc_w1_ref[l], enc_w2_ref[l])
    enc_out = x

    # ------- decoder: y += sa(ln1(y)); y += ca(ln2(enc), ln3(y)); y += ffwd(ln4(y)) -------
    for l in range(n_layer):
        ln = dec_ln_ref[l]      # (10, D): ln1_g,b, ln2_g,b, ln3_g,b, ln4_g,b, sa_bo, ca_bo
        h1 = layernorm(y, ln[0:1], ln[1:2])
        y = y + self_attn(h1, dec_wqkv_ref[2 * l], dec_wo_ref[2 * l], ln[8:9], dec_bias)
        q_in = layernorm(y, ln[4:5], ln[5:6])           # ln3(decoder state)  -> queries
        kv_in = layernorm(enc_out, ln[2:3], ln[3:4])    # ln2(encoder output) -> keys/values
        y = y + cross_attn(q_in, kv_in, dec_wqkv_ref[2 * l + 1], dec_wo_ref[2 * l + 1],
                           ln[9:10], cross_bias)
        h2 = layernorm(y, ln[6:7], ln[7:8])
        y = y + ffwd(h2, dec_w1_ref[l], dec_w2_ref[l])

    # ---------------- final LN + lane-dense (padded) lm_head ----------------
    lnf = lnf_ref[...]                                   # (2, D)
    hf = layernorm(y, lnf[0:1], lnf[1:2])
    lm = lm_ref[...]                                     # (D+1, 128): rows 0..D-1 = W, row D = bias
    logits = jnp.dot(hf, lm[:D], preferred_element_type=f32) + lm[D:]
    logits_ref[...] = logits                             # full-lane (128) unmasked store

    # ---------------- fused mean cross-entropy ----------------
    m = jnp.max(logits, axis=-1, keepdims=True)
    lse = m + jnp.log(jnp.sum(jnp.exp(logits - m), axis=-1, keepdims=True))
    cols = jax.lax.broadcasted_iota(jnp.int32, logits.shape, 1)
    tgt = dectgt_ref[:, 1:2]                             # (Nd, 1) int32
    tgt_logit = jnp.sum(jnp.where(cols == tgt, logits, 0.0), axis=-1, keepdims=True)
    loss_ref[0] = jnp.mean(lse - tgt_logit)


# ------------------------- parameters (packed slabs) -------------------------

def make_params(key, in_vocab, out_vocab, in_block, out_block):
    D, Hf, L = N_EMBD, FF_MULT * N_EMBD, N_LAYER
    keys = iter(jax.random.split(key, 96))

    def nrm(shape, scale=0.02):
        return (scale * jax.random.normal(next(keys), shape)).astype(jnp.float32)

    def qkv_slab():     # self-attention slab: [wq | wk | wv]   (D, 3D)
        return jnp.concatenate([nrm((D, D)), nrm((D, D)), nrm((D, D))], axis=1)

    def kvq_slab():     # cross-attention slab: [wk | wv | wq]  (D, 3D)
        return jnp.concatenate([nrm((D, D)), nrm((D, D)), nrm((D, D))], axis=1)

    ones = jnp.ones((1, D), jnp.float32)
    zeros = jnp.zeros((1, D), jnp.float32)

    enc_ln = jnp.tile(jnp.concatenate([ones, zeros, ones, zeros, zeros], 0)[None], (L, 1, 1))
    dec_ln = jnp.tile(jnp.concatenate([ones, zeros] * 4 + [zeros, zeros], 0)[None], (L, 1, 1))

    enc_wqkv = jnp.stack([qkv_slab() for _ in range(L)])                      # (L, D, 3D)
    enc_wo = nrm((L, D, D))
    enc_w1 = jnp.concatenate([nrm((L, D, Hf)), jnp.zeros((L, 1, Hf), jnp.float32)], axis=1)
    enc_w2 = jnp.concatenate([nrm((L, Hf, D)), jnp.zeros((L, 1, D), jnp.float32)], axis=1)

    dec_wqkv = jnp.stack([s for _ in range(L) for s in (qkv_slab(), kvq_slab())])   # (2L, D, 3D)
    dec_wo = nrm((2 * L, D, D))
    dec_w1 = jnp.concatenate([nrm((L, D, Hf)), jnp.zeros((L, 1, Hf), jnp.float32)], axis=1)
    dec_w2 = jnp.concatenate([nrm((L, Hf, D)), jnp.zeros((L, 1, D), jnp.float32)], axis=1)

    lnf = jnp.concatenate([ones, zeros], 0)                                   # (2, D)

    lm_w = nrm((D, out_vocab))
    lm = jnp.zeros((D + 1, V_PAD), jnp.float32)
    lm = lm.at[:D, :out_vocab].set(lm_w)
    lm = lm.at[D, :].set(NEG_BIG)                    # pad-column bias: exp underflows to 0
    lm = lm.at[D, :out_vocab].set(0.0)

    return dict(
        emb_in_tok=nrm((in_vocab, D), 1.0),
        emb_in_pos=nrm((in_block, D), 1.0),
        emb_out_tok=nrm((out_vocab, D), 1.0),
        # NOTE: torch's output_position_embedding_table is defined but never used by forward().
        enc_ln=enc_ln, enc_wqkv=enc_wqkv, enc_wo=enc_wo, enc_w1=enc_w1, enc_w2=enc_w2,
        dec_ln=dec_ln, dec_wqkv=dec_wqkv, dec_wo=dec_wo, dec_w1=dec_w1, dec_w2=dec_w2,
        lnf=lnf, lm=lm,
    )


# ------------------------- model forward (training mode) -------------------------

def transformer_forward(params, idx, targets):
    """Mirrors TransformerTranslation.forward(idx, targets) in training mode.

    Returns (logits of shape (B*T_d, V_out), scalar mean cross-entropy loss).
    """
    B, T_e = idx.shape
    T_d = targets.shape[1]
    V = params['emb_out_tok'].shape[0]

    # tiny integer prep (decoder teacher-forcing shift); activations are built inside the kernel
    idx2 = idx.reshape(B * T_e, 1).astype(jnp.int32)
    sos = jnp.full((B, 1), SOS_TOKEN, dtype=jnp.int32)
    dec_tokens = jnp.concatenate([sos, targets[:, :-1].astype(jnp.int32)], axis=1)
    dectgt = jnp.stack([dec_tokens.reshape(-1), targets.reshape(-1).astype(jnp.int32)], axis=1)

    kern = functools.partial(_fused_kernel, num_heads=N_HEAD, n_layer=N_LAYER,
                             t_enc=T_e, t_dec=T_d)

    vspec = pl.BlockSpec(memory_space=pltpu.MemorySpace.VMEM)
    inputs = (
        idx2, dectgt,
        params['emb_in_tok'], params['emb_out_tok'], params['emb_in_pos'],
        params['enc_ln'], params['enc_wqkv'], params['enc_wo'], params['enc_w1'], params['enc_w2'],
        params['dec_ln'], params['dec_wqkv'], params['dec_wo'], params['dec_w1'], params['dec_w2'],
        params['lnf'], params['lm'],
    )

    logits_pad, loss = pl.pallas_call(
        kern,
        out_shape=(jax.ShapeDtypeStruct((B * T_d, V_PAD), jnp.float32),
                   jax.ShapeDtypeStruct((1,), jnp.float32)),
        in_specs=[vspec] * len(inputs),
        out_specs=(vspec, pl.BlockSpec(memory_space=pltpu.MemorySpace.SMEM)),
    )(*inputs)

    return logits_pad[:, :V], loss[0]


# ------------------------- main -------------------------

if __name__ == "__main__":
    key = jax.random.PRNGKey(0)
    k_params, k_idx, k_tgt = jax.random.split(key, 3)

    IN_VOCAB, OUT_VOCAB = 20, 24
    B, T_e, T_d = 2, 8, 8                      # T_e <= MAX_LENGTH, T_d <= decoder_block_size

    params = make_params(k_params, IN_VOCAB, OUT_VOCAB, MAX_LENGTH, MAX_LENGTH)
    idx = jax.random.randint(k_idx, (B, T_e), 0, IN_VOCAB, dtype=jnp.int32)
    targets = jax.random.randint(k_tgt, (B, T_d), 0, OUT_VOCAB, dtype=jnp.int32)

    fwd = jax.jit(transformer_forward)
    logits, loss = fwd(params, idx, targets)
    jax.block_until_ready((logits, loss))

    assert logits.shape == (B * T_d, OUT_VOCAB)
    assert loss.shape == ()
    assert bool(jnp.isfinite(loss))
    print("KERNEL_OK")
</pallas_src>

<mosaic_0001>
module attributes {stable_mosaic.version = 11 : i64} {
  func.func @_fused_kernel(%arg0: memref<16x1xi32, #tpu.memory_space<vmem>>, %arg1: memref<16x2xi32, #tpu.memory_space<vmem>>, %arg2: memref<20x64xf32, #tpu.memory_space<vmem>>, %arg3: memref<24x64xf32, #tpu.memory_space<vmem>>, %arg4: memref<10x64xf32, #tpu.memory_space<vmem>>, %arg5: memref<2x5x64xf32, #tpu.memory_space<vmem>>, %arg6: memref<2x64x192xf32, #tpu.memory_space<vmem>>, %arg7: memref<2x64x64xf32, #tpu.memory_space<vmem>>, %arg8: memref<2x65x256xf32, #tpu.memory_space<vmem>>, %arg9: memref<2x257x64xf32, #tpu.memory_space<vmem>>, %arg10: memref<2x10x64xf32, #tpu.memory_space<vmem>>, %arg11: memref<4x64x192xf32, #tpu.memory_space<vmem>>, %arg12: memref<4x64x64xf32, #tpu.memory_space<vmem>>, %arg13: memref<2x65x256xf32, #tpu.memory_space<vmem>>, %arg14: memref<2x257x64xf32, #tpu.memory_space<vmem>>, %arg15: memref<2x64xf32, #tpu.memory_space<vmem>>, %arg16: memref<65x128xf32, #tpu.memory_space<vmem>>, %arg17: memref<16x128xf32, #tpu.memory_space<vmem>>, %arg18: memref<1xf32, #tpu.memory_space<smem>>) attributes {dimension_semantics = [], scalar_prefetch = 0 : i64, scratch_operands = 0 : i64, tpu.core_type = #tpu.core_type<tc>} {
    %0 = tpu.iota {dimensions = array<i32: 0>} : vector<16x16xi32>
    %1 = arith.sitofp %0 : vector<16x16xi32> to vector<16x16xf32>
    %2 = tpu.iota {dimensions = array<i32: 1>} : vector<16x16xi32>
    %3 = arith.sitofp %2 : vector<16x16xi32> to vector<16x16xf32>
    %cst = arith.constant 1.250000e-01 : f32
    %4 = vector.broadcast %cst : f32 to vector<16x16xf32>
    %5 = arith.mulf %1, %4 : vector<16x16xf32>
    %6 = math.floor %5 : vector<16x16xf32>
    %cst_0 = arith.constant 1.250000e-01 : f32
    %7 = vector.broadcast %cst_0 : f32 to vector<16x16xf32>
    %8 = arith.mulf %3, %7 : vector<16x16xf32>
    %9 = math.floor %8 : vector<16x16xf32>
    %10 = arith.cmpf oeq, %6, %9 : vector<16x16xf32>
    %cst_1 = arith.constant 0.000000e+00 : f32
    %cst_2 = arith.constant -1.000000e+09 : f32
    %11 = vector.broadcast %cst_1 : f32 to vector<16x16xf32>
    %12 = vector.broadcast %cst_2 : f32 to vector<16x16xf32>
    %13 = arith.select %10, %11, %12 : vector<16x16xi1>, vector<16x16xf32>
    %14 = tpu.iota {dimensions = array<i32: 0>} : vector<16x16xi32>
    %15 = arith.sitofp %14 : vector<16x16xi32> to vector<16x16xf32>
    %16 = tpu.iota {dimensions = array<i32: 1>} : vector<16x16xi32>
    %17 = arith.sitofp %16 : vector<16x16xi32> to vector<16x16xf32>
    %cst_3 = arith.constant 1.250000e-01 : f32
    %18 = vector.broadcast %cst_3 : f32 to vector<16x16xf32>
    %19 = arith.mulf %15, %18 : vector<16x16xf32>
    %20 = math.floor %19 : vector<16x16xf32>
    %cst_4 = arith.constant 1.250000e-01 : f32
    %21 = vector.broadcast %cst_4 : f32 to vector<16x16xf32>
    %22 = arith.mulf %17, %21 : vector<16x16xf32>
    %23 = math.floor %22 : vector<16x16xf32>
    %24 = arith.cmpf oeq, %20, %23 : vector<16x16xf32>
    %cst_5 = arith.constant 8.000000e+00 : f32
    %25 = vector.broadcast %cst_5 : f32 to vector<16x16xf32>
    %26 = arith.mulf %23, %25 : vector<16x16xf32>
    %27 = arith.subf %17, %26 : vector<16x16xf32>
    %cst_6 = arith.constant 8.000000e+00 : f32
    %28 = vector.broadcast %cst_6 : f32 to vector<16x16xf32>
    %29 = arith.mulf %20, %28 : vector<16x16xf32>
    %30 = arith.subf %15, %29 : vector<16x16xf32>
    %31 = arith.cmpf ole, %27, %30 : vector<16x16xf32>
    %32 = arith.andi %24, %31 : vector<16x16xi1>
    %cst_7 = arith.constant 0.000000e+00 : f32
    %cst_8 = arith.constant -1.000000e+09 : f32
    %33 = vector.broadcast %cst_7 : f32 to vector<16x16xf32>
    %34 = vector.broadcast %cst_8 : f32 to vector<16x16xf32>
    %35 = arith.select %32, %33, %34 : vector<16x16xi1>, vector<16x16xf32>
    %36 = tpu.iota {dimensions = array<i32: 0>} : vector<16x16xi32>
    %37 = arith.sitofp %36 : vector<16x16xi32> to vector<16x16xf32>
    %38 = tpu.iota {dimensions = array<i32: 1>} : vector<16x16xi32>
    %39 = arith.sitofp %38 : vector<16x16xi32> to vector<16x16xf32>
    %cst_9 = arith.constant 1.250000e-01 : f32
    %40 = vector.broadcast %cst_9 : f32 to vector<16x16xf32>
    %41 = arith.mulf %37, %40 : vector<16x16xf32>
    %42 = math.floor %41 : vector<16x16xf32>
    %cst_10 = arith.constant 1.250000e-01 : f32
    %43 = vector.broadcast %cst_10 : f32 to vector<16x16xf32>
    %44 = arith.mulf %39, %43 : vector<16x16xf32>
    %45 = math.floor %44 : vector<16x16xf32>
    %46 = arith.cmpf oeq, %42, %45 : vector<16x16xf32>
    %cst_11 = arith.constant 0.000000e+00 : f32
    %cst_12 = arith.constant -1.000000e+09 : f32
    %47 = vector.broadcast %cst_11 : f32 to vector<16x16xf32>
    %48 = vector.broadcast %cst_12 : f32 to vector<16x16xf32>
    %49 = arith.select %46, %47, %48 : vector<16x16xi1>, vector<16x16xf32>
    %c0 = arith.constant 0 : index
    %c0_13 = arith.constant 0 : index
    %50 = vector.load %arg2[%c0, %c0_13] : memref<20x64xf32, #tpu.memory_space<vmem>>, vector<20x64xf32>
    %c0_14 = arith.constant 0 : index
    %c0_15 = arith.constant 0 : index
    %51 = vector.load %arg3[%c0_14, %c0_15] : memref<24x64xf32, #tpu.memory_space<vmem>>, vector<24x64xf32>
    %c0_16 = arith.constant 0 : index
    %c0_17 = arith.constant 0 : index
    %52 = vector.load %arg4[%c0_16, %c0_17] : memref<10x64xf32, #tpu.memory_space<vmem>>, vector<10x64xf32>
    %c0_18 = arith.constant 0 : index
    %c0_19 = arith.constant 0 : index
    %53 = vector.load %arg0[%c0_18, %c0_19] : memref<16x1xi32, #tpu.memory_space<vmem>>, vector<16x1xi32>
    %54 = tpu.iota {dimensions = array<i32: 1>} : vector<16x20xi32>
    %55 = vector.broadcast %53 : vector<16x1xi32> to vector<16x20xi32>
    %56 = arith.cmpi eq, %54, %55 : vector<16x20xi32>
    %57 = arith.extui %56 : vector<16x20xi1> to vector<16x20xi32>
    %58 = arith.sitofp %57 : vector<16x20xi32> to vector<16x20xf32>
    %cst_20 = arith.constant dense<0.000000e+00> : vector<16x64xf32>
    %59 = tpu.matmul %58, %50, %cst_20 {dimension_numbers = #tpu.dot_dimension_numbers<[1], [0], [0], [1], [0, 0, 1, 1], [], []>} : vector<16x20xf32>, vector<20x64xf32>, vector<16x64xf32> -> vector<16x64xf32>
    %60 = tpu.iota {dimensions = array<i32: 0>} : vector<16x10xi32>
    %61 = arith.sitofp %60 : vector<16x10xi32> to vector<16x10xf32>
    %62 = tpu.iota {dimensions = array<i32: 1>} : vector<16x10xi32>
    %63 = arith.sitofp %62 : vector<16x10xi32> to vector<16x10xf32>
    %cst_21 = arith.constant 1.250000e-01 : f32
    %64 = vector.broadcast %cst_21 : f32 to vector<16x10xf32>
    %65 = arith.mulf %61, %64 : vector<16x10xf32>
    %66 = math.floor %65 : vector<16x10xf32>
    %cst_22 = arith.constant 8.000000e+00 : f32
    %67 = vector.broadcast %cst_22 : f32 to vector<16x10xf32>
    %68 = arith.mulf %66, %67 : vector<16x10xf32>
    %69 = arith.subf %61, %68 : vector<16x10xf32>
    %70 = arith.cmpf oeq, %63, %69 : vector<16x10xf32>
    %71 = arith.extui %70 : vector<16x10xi1> to vector<16x10xi32>
    %72 = arith.sitofp %71 : vector<16x10xi32> to vector<16x10xf32>
    %cst_23 = arith.constant dense<0.000000e+00> : vector<16x64xf32>
    %73 = tpu.matmul %72, %52, %cst_23 {dimension_numbers = #tpu.dot_dimension_numbers<[1], [0], [0], [1], [0, 0, 1, 1], [], []>} : vector<16x10xf32>, vector<10x64xf32>, vector<16x64xf32> -> vector<16x64xf32>
    %74 = arith.addf %59, %73 : vector<16x64xf32>
    %c0_24 = arith.constant 0 : index
    %c0_25 = arith.constant 0 : index
    %75 = vector.load %arg1[%c0_24, %c0_25] : memref<16x2xi32, #tpu.memory_space<vmem>>, vector<16x1xi32>
    %76 = tpu.iota {dimensions = array<i32: 1>} : vector<16x24xi32>
    %77 = vector.broadcast %75 : vector<16x1xi32> to vector<16x24xi32>
    %78 = arith.cmpi eq, %76, %77 : vector<16x24xi32>
    %79 = arith.extui %78 : vector<16x24xi1> to vector<16x24xi32>
    %80 = arith.sitofp %79 : vector<16x24xi32> to vector<16x24xf32>
    %cst_26 = arith.constant dense<0.000000e+00> : vector<16x64xf32>
    %81 = tpu.matmul %80, %51, %cst_26 {dimension_numbers = #tpu.dot_dimension_numbers<[1], [0], [0], [1], [0, 0, 1, 1], [], []>} : vector<16x24xf32>, vector<24x64xf32>, vector<16x64xf32> -> vector<16x64xf32>
    %82 = tpu.iota {dimensions = array<i32: 0>} : vector<16x10xi32>
    %83 = arith.sitofp %82 : vector<16x10xi32> to vector<16x10xf32>
    %84 = tpu.iota {dimensions = array<i32: 1>} : vector<16x10xi32>
    %85 = arith.sitofp %84 : vector<16x10xi32> to vector<16x10xf32>
    %cst_27 = arith.constant 1.250000e-01 : f32
    %86 = vector.broadcast %cst_27 : f32 to vector<16x10xf32>
    %87 = arith.mulf %83, %86 : vector<16x10xf32>
    %88 = math.floor %87 : vector<16x10xf32>
    %cst_28 = arith.constant 8.000000e+00 : f32
    %89 = vector.broadcast %cst_28 : f32 to vector<16x10xf32>
    %90 = arith.mulf %88, %89 : vector<16x10xf32>
    %91 = arith.subf %83, %90 : vector<16x10xf32>
    %92 = arith.cmpf oeq, %85, %91 : vector<16x10xf32>
    %93 = arith.extui %92 : vector<16x10xi1> to vector<16x10xi32>
    %94 = arith.sitofp %93 : vector<16x10xi32> to vector<16x10xf32>
    %cst_29 = arith.constant dense<0.000000e+00> : vector<16x64xf32>
    %95 = tpu.matmul %94, %52, %cst_29 {dimension_numbers = #tpu.dot_dimension_numbers<[1], [0], [0], [1], [0, 0, 1, 1], [], []>} : vector<16x10xf32>, vector<10x64xf32>, vector<16x64xf32> -> vector<16x64xf32>
    %96 = arith.addf %81, %95 : vector<16x64xf32>
    %c0_30 = arith.constant 0 : index
    %c0_31 = arith.constant 0 : index
    %c0_32 = arith.constant 0 : index
    %97 = vector.load %arg5[%c0_30, %c0_31, %c0_32] : memref<2x5x64xf32, #tpu.memory_space<vmem>>, vector<1x5x64xf32>
    %98 = vector.shape_cast %97 : vector<1x5x64xf32> to vector<5x64xf32>
    %99 = vector.extract_strided_slice %98 {offsets = [0, 0], sizes = [1, 64], strides = [1, 1]} : vector<5x64xf32> to vector<1x64xf32>
    %100 = vector.extract_strided_slice %98 {offsets = [1, 0], sizes = [1, 64], strides = [1, 1]} : vector<5x64xf32> to vector<1x64xf32>
    %cst_33 = arith.constant dense<0.000000e+00> : vector<16xf32>
    %101 = vector.multi_reduction <add>, %74, %cst_33 [1] : vector<16x64xf32> to vector<16xf32>
    %102 = vector.shape_cast %101 : vector<16xf32> to vector<16x1xf32>
    %cst_34 = arith.constant 6.400000e+01 : f32
    %103 = vector.broadcast %cst_34 : f32 to vector<16x1xf32>
    %104 = arith.divf %102, %103 : vector<16x1xf32>
    %105 = vector.broadcast %104 : vector<16x1xf32> to vector<16x64xf32>
    %106 = arith.subf %74, %105 : vector<16x64xf32>
    %107 = arith.mulf %106, %106 : vector<16x64xf32>
    %cst_35 = arith.constant dense<0.000000e+00> : vector<16xf32>
    %108 = vector.multi_reduction <add>, %107, %cst_35 [1] : vector<16x64xf32> to vector<16xf32>
    %109 = vector.shape_cast %108 : vector<16xf32> to vector<16x1xf32>
    %cst_36 = arith.constant 6.400000e+01 : f32
    %110 = vector.broadcast %cst_36 : f32 to vector<16x1xf32>
    %111 = arith.divf %109, %110 : vector<16x1xf32>
    %112 = vector.broadcast %104 : vector<16x1xf32> to vector<16x64xf32>
    %113 = arith.subf %74, %112 : vector<16x64xf32>
    %cst_37 = arith.constant 9.99999974E-6 : f32
    %114 = vector.broadcast %cst_37 : f32 to vector<16x1xf32>
    %115 = arith.addf %111, %114 : vector<16x1xf32>
    %116 = math.rsqrt %115 : vector<16x1xf32>
    %117 = vector.broadcast %116 : vector<16x1xf32> to vector<16x64xf32>
    %118 = arith.mulf %113, %117 : vector<16x64xf32>
    %119 = vector.broadcast %99 : vector<1x64xf32> to vector<16x64xf32>
    %120 = arith.mulf %118, %119 : vector<16x64xf32>
    %121 = vector.broadcast %100 : vector<1x64xf32> to vector<16x64xf32>
    %122 = arith.addf %120, %121 : vector<16x64xf32>
    %c0_38 = arith.constant 0 : index
    %c0_39 = arith.constant 0 : index
    %c0_40 = arith.constant 0 : index
    %123 = vector.load %arg6[%c0_38, %c0_39, %c0_40] : memref<2x64x192xf32, #tpu.memory_space<vmem>>, vector<1x64x192xf32>
    %124 = vector.shape_cast %123 : vector<1x64x192xf32> to vector<64x192xf32>
    %c0_41 = arith.constant 0 : index
    %c0_42 = arith.constant 0 : index
    %c0_43 = arith.constant 0 : index
    %125 = vector.load %arg7[%c0_41, %c0_42, %c0_43] : memref<2x64x64xf32, #tpu.memory_space<vmem>>, vector<1x64x64xf32>
    %126 = vector.shape_cast %125 : vector<1x64x64xf32> to vector<64x64xf32>
    %127 = vector.extract_strided_slice %98 {offsets = [4, 0], sizes = [1, 64], strides = [1, 1]} : vector<5x64xf32> to vector<1x64xf32>
    %cst_44 = arith.constant dense<0.000000e+00> : vector<16x192xf32>
    %128 = tpu.matmul %122, %124, %cst_44 {dimension_numbers = #tpu.dot_dimension_numbers<[1], [0], [0], [1], [0, 0, 1, 1], [], []>} : vector<16x64xf32>, vector<64x192xf32>, vector<16x192xf32> -> vector<16x192xf32>
    %129 = vector.extract_strided_slice %128 {offsets = [0, 0], sizes = [16, 64], strides = [1, 1]} : vector<16x192xf32> to vector<16x64xf32>
    %cst_45 = arith.constant 1.250000e-01 : f32
    %130 = vector.broadcast %cst_45 : f32 to vector<16x64xf32>
    %131 = arith.mulf %129, %130 : vector<16x64xf32>
    %132 = vector.extract_strided_slice %128 {offsets = [0, 64], sizes = [16, 64], strides = [1, 1]} : vector<16x192xf32> to vector<16x64xf32>
    %133 = vector.extract_strided_slice %128 {offsets = [0, 128], sizes = [16, 64], strides = [1, 1]} : vector<16x192xf32> to vector<16x64xf32>
    %134 = vector.extract_strided_slice %131 {offsets = [0, 0], sizes = [16, 16], strides = [1, 1]} : vector<16x64xf32> to vector<16x16xf32>
    %135 = vector.extract_strided_slice %132 {offsets = [0, 0], sizes = [16, 16], strides = [1, 1]} : vector<16x64xf32> to vector<16x16xf32>
    %cst_46 = arith.constant dense<0.000000e+00> : vector<16x16xf32>
    %136 = tpu.matmul %134, %135, %cst_46 {dimension_numbers = #tpu.dot_dimension_numbers<[1], [1], [0], [0], [0, 0, 1, 0], [], []>} : vector<16x16xf32>, vector<16x16xf32>, vector<16x16xf32> -> vector<16x16xf32>
    %137 = arith.addf %136, %13 : vector<16x16xf32>
    %cst_47 = arith.constant dense<0xFF800000> : vector<16xf32>
    %138 = vector.multi_reduction <maximumf>, %137, %cst_47 [1] : vector<16x16xf32> to vector<16xf32>
    %139 = vector.shape_cast %138 : vector<16xf32> to vector<16x1xf32>
    %140 = vector.broadcast %139 : vector<16x1xf32> to vector<16x16xf32>
    %141 = arith.subf %137, %140 : vector<16x16xf32>
    %142 = math.exp %141 : vector<16x16xf32>
    %cst_48 = arith.constant dense<0.000000e+00> : vector<16xf32>
    %143 = vector.multi_reduction <add>, %142, %cst_48 [1] : vector<16x16xf32> to vector<16xf32>
    %144 = vector.shape_cast %143 : vector<16xf32> to vector<16x1xf32>
    %145 = tpu.reciprocal %144 {approx = true} : vector<16x1xf32> -> vector<16x1xf32>
    %146 = vector.broadcast %145 : vector<16x1xf32> to vector<16x16xf32>
    %147 = arith.mulf %142, %146 : vector<16x16xf32>
    %148 = vector.extract_strided_slice %133 {offsets = [0, 0], sizes = [16, 16], strides = [1, 1]} : vector<16x64xf32> to vector<16x16xf32>
    %cst_49 = arith.constant dense<0.000000e+00> : vector<16x16xf32>
    %149 = tpu.matmul %147, %148, %cst_49 {dimension_numbers = #tpu.dot_dimension_numbers<[1], [0], [0], [1], [0, 0, 1, 1], [], []>} : vector<16x16xf32>, vector<16x16xf32>, vector<16x16xf32> -> vector<16x16xf32>
    %150 = vector.extract_strided_slice %131 {offsets = [0, 16], sizes = [16, 16], strides = [1, 1]} : vector<16x64xf32> to vector<16x16xf32>
    %151 = vector.extract_strided_slice %132 {offsets = [0, 16], sizes = [16, 16], strides = [1, 1]} : vector<16x64xf32> to vector<16x16xf32>
    %cst_50 = arith.constant dense<0.000000e+00> : vector<16x16xf32>
    %152 = tpu.matmul %150, %151, %cst_50 {dimension_numbers = #tpu.dot_dimension_numbers<[1], [1], [0], [0], [0, 0, 1, 0], [], []>} : vector<16x16xf32>, vector<16x16xf32>, vector<16x16xf32> -> vector<16x16xf32>
    %153 = arith.addf %152, %13 : vector<16x16xf32>
    %cst_51 = arith.constant dense<0xFF800000> : vector<16xf32>
    %154 = vector.multi_reduction <maximumf>, %153, %cst_51 [1] : vector<16x16xf32> to vector<16xf32>
    %155 = vector.shape_cast %154 : vector<16xf32> to vector<16x1xf32>
    %156 = vector.broadcast %155 : vector<16x1xf32> to vector<16x16xf32>
    %157 = arith.subf %153, %156 : vector<16x16xf32>
    %158 = math.exp %157 : vector<16x16xf32>
    %cst_52 = arith.constant dense<0.000000e+00> : vector<16xf32>
    %159 = vector.multi_reduction <add>, %158, %cst_52 [1] : vector<16x16xf32> to vector<16xf32>
    %160 = vector.shape_cast %159 : vector<16xf32> to vector<16x1xf32>
    %161 = tpu.reciprocal %160 {approx = true} : vector<16x1xf32> -> vector<16x1xf32>
    %162 = vector.broadcast %161 : vector<16x1xf32> to vector<16x16xf32>
    %163 = arith.mulf %158, %162 : vector<16x16xf32>
    %164 = vector.extract_strided_slice %133 {offsets = [0, 16], sizes = [16, 16], strides = [1, 1]} : vector<16x64xf32> to vector<16x16xf32>
    %cst_53 = arith.constant dense<0.000000e+00> : vector<16x16xf32>
    %165 = tpu.matmul %163, %164, %cst_53 {dimension_numbers = #tpu.dot_dimension_numbers<[1], [0], [0], [1], [0, 0, 1, 1], [], []>} : vector<16x16xf32>, vector<16x16xf32>, vector<16x16xf32> -> vector<16x16xf32>
    %166 = vector.extract_strided_slice %131 {offsets = [0, 32], sizes = [16, 16], strides = [1, 1]} : vector<16x64xf32> to vector<16x16xf32>
    %167 = vector.extract_strided_slice %132 {offsets = [0, 32], sizes = [16, 16], strides = [1, 1]} : vector<16x64xf32> to vector<16x16xf32>
    %cst_54 = arith.constant dense<0.000000e+00> : vector<16x16xf32>
    %168 = tpu.matmul %166, %167, %cst_54 {dimension_numbers = #tpu.dot_dimension_numbers<[1], [1], [0], [0], [0, 0, 1, 0], [], []>} : vector<16x16xf32>, vector<16x16xf32>, vector<16x16xf32> -> vector<16x16xf32>
    %169 = arith.addf %168, %13 : vector<16x16xf32>
    %cst_55 = arith.constant dense<0xFF800000> : vector<16xf32>
    %170 = vector.multi_reduction <maximumf>, %169, %cst_55 [1] : vector<16x16xf32> to vector<16xf32>
    %171 = vector.shape_cast %170 : vector<16xf32> to vector<16x1xf32>
    %172 = vector.broadcast %171 : vector<16x1xf32> to vector<16x16xf32>
    %173 = arith.subf %169, %172 : vector<16x16xf32>
    %174 = math.exp %173 : vector<16x16xf32>
    %cst_56 = arith.constant dense<0.000000e+00> : vector<16xf32>
    %175 = vector.multi_reduction <add>, %174, %cst_56 [1] : vector<16x16xf32> to vector<16xf32>
    %176 = vector.shape_cast %175 : vector<16xf32> to vector<16x1xf32>
    %177 = tpu.reciprocal %176 {approx = true} : vector<16x1xf32> -> vector<16x1xf32>
    %178 = vector.broadcast %177 : vector<16x1xf32> to vector<16x16xf32>
    %179 = arith.mulf %174, %178 : vector<16x16xf32>
    %180 = vector.extract_strided_slice %133 {offsets = [0, 32], sizes = [16, 16], strides = [1, 1]} : vector<16x64xf32> to vector<16x16xf32>
    %cst_57 = arith.constant dense<0.000000e+00> : vector<16x16xf32>
    %181 = tpu.matmul %179, %180, %cst_57 {dimension_numbers = #tpu.dot_dimension_numbers<[1], [0], [0], [1], [0, 0, 1, 1], [], []>} : vector<16x16xf32>, vector<16x16xf32>, vector<16x16xf32> -> vector<16x16xf32>
    %182 = vector.extract_strided_slice %131 {offsets = [0, 48], sizes = [16, 16], strides = [1, 1]} : vector<16x64xf32> to vector<16x16xf32>
    %183 = vector.extract_strided_slice %132 {offsets = [0, 48], sizes = [16, 16], strides = [1, 1]} : vector<16x64xf32> to vector<16x16xf32>
    %cst_58 = arith.constant dense<0.000000e+00> : vector<16x16xf32>
    %184 = tpu.matmul %182, %183, %cst_58 {dimension_numbers = #tpu.dot_dimension_numbers<[1], [1], [0], [0], [0, 0, 1, 0], [], []>} : vector<16x16xf32>, vector<16x16xf32>, vector<16x16xf32> -> vector<16x16xf32>
    %185 = arith.addf %184, %13 : vector<16x16xf32>
    %cst_59 = arith.constant dense<0xFF800000> : vector<16xf32>
    %186 = vector.multi_reduction <maximumf>, %185, %cst_59 [1] : vector<16x16xf32> to vector<16xf32>
    %187 = vector.shape_cast %186 : vector<16xf32> to vector<16x1xf32>
    %188 = vector.broadcast %187 : vector<16x1xf32> to vector<16x16xf32>
    %189 = arith.subf %185, %188 : vector<16x16xf32>
    %190 = math.exp %189 : vector<16x16xf32>
    %cst_60 = arith.constant dense<0.000000e+00> : vector<16xf32>
    %191 = vector.multi_reduction <add>, %190, %cst_60 [1] : vector<16x16xf32> to vector<16xf32>
    %192 = vector.shape_cast %191 : vector<16xf32> to vector<16x1xf32>
    %193 = tpu.reciprocal %192 {approx = true} : vector<16x1xf32> -> vector<16x1xf32>
    %194 = vector.broadcast %193 : vector<16x1xf32> to vector<16x16xf32>
    %195 = arith.mulf %190, %194 : vector<16x16xf32>
    %196 = vector.extract_strided_slice %133 {offsets = [0, 48], sizes = [16, 16], strides = [1, 1]} : vector<16x64xf32> to vector<16x16xf32>
    %cst_61 = arith.constant dense<0.000000e+00> : vector<16x16xf32>
    %197 = tpu.matmul %195, %196, %cst_61 {dimension_numbers = #tpu.dot_dimension_numbers<[1], [0], [0], [1], [0, 0, 1, 1], [], []>} : vector<16x16xf32>, vector<16x16xf32>, vector<16x16xf32> -> vector<16x16xf32>
    %198 = tpu.concatenate %149, %165, %181, %197 in 1 : vector<16x16xf32>, vector<16x16xf32>, vector<16x16xf32>, vector<16x16xf32> -> vector<16x64xf32>
    %cst_62 = arith.constant dense<0.000000e+00> : vector<16x64xf32>
    %199 = tpu.matmul %198, %126, %cst_62 {dimension_numbers = #tpu.dot_dimension_numbers<[1], [0], [0], [1], [0, 0, 1, 1], [], []>} : vector<16x64xf32>, vector<64x64xf32>, vector<16x64xf32> -> vector<16x64xf32>
    %200 = vector.broadcast %127 : vector<1x64xf32> to vector<16x64xf32>
    %201 = arith.addf %199, %200 : vector<16x64xf32>
    %202 = arith.addf %74, %201 : vector<16x64xf32>
    %203 = vector.extract_strided_slice %98 {offsets = [2, 0], sizes = [1, 64], strides = [1, 1]} : vector<5x64xf32> to vector<1x64xf32>
    %204 = vector.extract_strided_slice %98 {offsets = [3, 0], sizes = [1, 64], strides = [1, 1]} : vector<5x64xf32> to vector<1x64xf32>
    %cst_63 = arith.constant dense<0.000000e+00> : vector<16xf32>
    %205 = vector.multi_reduction <add>, %202, %cst_63 [1] : vector<16x64xf32> to vector<16xf32>
    %206 = vector.shape_cast %205 : vector<16xf32> to vector<16x1xf32>
    %cst_64 = arith.constant 6.400000e+01 : f32
    %207 = vector.broadcast %cst_64 : f32 to vector<16x1xf32>
    %208 = arith.divf %206, %207 : vector<16x1xf32>
    %209 = vector.broadcast %208 : vector<16x1xf32> to vector<16x64xf32>
    %210 = arith.subf %202, %209 : vector<16x64xf32>
    %211 = arith.mulf %210, %210 : vector<16x64xf32>
    %cst_65 = arith.constant dense<0.000000e+00> : vector<16xf32>
    %212 = vector.multi_reduction <add>, %211, %cst_65 [1] : vector<16x64xf32> to vector<16xf32>
    %213 = vector.shape_cast %212 : vector<16xf32> to vector<16x1xf32>
    %cst_66 = arith.constant 6.400000e+01 : f32
    %214 = vector.broadcast %cst_66 : f32 to vector<16x1xf32>
    %215 = arith.divf %213, %214 : vector<16x1xf32>
    %216 = vector.broadcast %208 : vector<16x1xf32> to vector<16x64xf32>
    %217 = arith.subf %202, %216 : vector<16x64xf32>
    %cst_67 = arith.constant 9.99999974E-6 : f32
    %218 = vector.broadcast %cst_67 : f32 to vector<16x1xf32>
    %219 = arith.addf %215, %218 : vector<16x1xf32>
    %220 = math.rsqrt %219 : vector<16x1xf32>
    %221 = vector.broadcast %220 : vector<16x1xf32> to vector<16x64xf32>
    %222 = arith.mulf %217, %221 : vector<16x64xf32>
    %223 = vector.broadcast %203 : vector<1x64xf32> to vector<16x64xf32>
    %224 = arith.mulf %222, %223 : vector<16x64xf32>
    %225 = vector.broadcast %204 : vector<1x64xf32> to vector<16x64xf32>
    %226 = arith.addf %224, %225 : vector<16x64xf32>
    %c0_68 = arith.constant 0 : index
    %c0_69 = arith.constant 0 : index
    %c0_70 = arith.constant 0 : index
    %227 = vector.load %arg8[%c0_68, %c0_69, %c0_70] : memref<2x65x256xf32, #tpu.memory_space<vmem>>, vector<1x65x256xf32>
    %228 = vector.shape_cast %227 : vector<1x65x256xf32> to vector<65x256xf32>
    %c0_71 = arith.constant 0 : index
    %c0_72 = arith.constant 0 : index
    %c0_73 = arith.constant 0 : index
    %229 = vector.load %arg9[%c0_71, %c0_72, %c0_73] : memref<2x257x64xf32, #tpu.memory_space<vmem>>, vector<1x257x64xf32>
    %230 = vector.shape_cast %229 : vector<1x257x64xf32> to vector<257x64xf32>
    %231 = vector.extract_strided_slice %228 {offsets = [0, 0], sizes = [64, 256], strides = [1, 1]} : vector<65x256xf32> to vector<64x256xf32>
    %cst_74 = arith.constant dense<0.000000e+00> : vector<16x256xf32>
    %232 = tpu.matmul %226, %231, %cst_74 {dimension_numbers = #tpu.dot_dimension_numbers<[1], [0], [0], [1], [0, 0, 1, 1], [], []>} : vector<16x64xf32>, vector<64x256xf32>, vector<16x256xf32> -> vector<16x256xf32>
    %233 = vector.extract_strided_slice %228 {offsets = [64, 0], sizes = [1, 256], strides = [1, 1]} : vector<65x256xf32> to vector<1x256xf32>
    %234 = vector.broadcast %233 : vector<1x256xf32> to vector<16x256xf32>
    %235 = arith.addf %232, %234 : vector<16x256xf32>
    %cst_75 = arith.constant 0.000000e+00 : f32
    %236 = vector.broadcast %cst_75 : f32 to vector<16x256xf32>
    %237 = arith.maximumf %235, %236 : vector<16x256xf32>
    %238 = vector.extract_strided_slice %230 {offsets = [0, 0], sizes = [256, 64], strides = [1, 1]} : vector<257x64xf32> to vector<256x64xf32>
    %cst_76 = arith.constant dense<0.000000e+00> : vector<16x64xf32>
    %239 = tpu.matmul %237, %238, %cst_76 {dimension_numbers = #tpu.dot_dimension_numbers<[1], [0], [0], [1], [0, 0, 1, 1], [], []>} : vector<16x256xf32>, vector<256x64xf32>, vector<16x64xf32> -> vector<16x64xf32>
    %240 = vector.extract_strided_slice %230 {offsets = [256, 0], sizes = [1, 64], strides = [1, 1]} : vector<257x64xf32> to vector<1x64xf32>
    %241 = vector.broadcast %240 : vector<1x64xf32> to vector<16x64xf32>
    %242 = arith.addf %239, %241 : vector<16x64xf32>
    %243 = arith.addf %202, %242 : vector<16x64xf32>
    %c1 = arith.constant 1 : index
    %c0_77 = arith.constant 0 : index
    %c0_78 = arith.constant 0 : index
    %244 = vector.load %arg5[%c1, %c0_77, %c0_78] : memref<2x5x64xf32, #tpu.memory_space<vmem>>, vector<1x5x64xf32>
    %245 = vector.shape_cast %244 : vector<1x5x64xf32> to vector<5x64xf32>
    %246 = vector.extract_strided_slice %245 {offsets = [0, 0], sizes = [1, 64], strides = [1, 1]} : vector<5x64xf32> to vector<1x64xf32>
    %247 = vector.extract_strided_slice %245 {offsets = [1, 0], sizes = [1, 64], strides = [1, 1]} : vector<5x64xf32> to vector<1x64xf32>
    %cst_79 = arith.constant dense<0.000000e+00> : vector<16xf32>
    %248 = vector.multi_reduction <add>, %243, %cst_79 [1] : vector<16x64xf32> to vector<16xf32>
    %249 = vector.shape_cast %248 : vector<16xf32> to vector<16x1xf32>
    %cst_80 = arith.constant 6.400000e+01 : f32
    %250 = vector.broadcast %cst_80 : f32 to vector<16x1xf32>
    %251 = arith.divf %249, %250 : vector<16x1xf32>
    %252 = vector.broadcast %251 : vector<16x1xf32> to vector<16x64xf32>
    %253 = arith.subf %243, %252 : vector<16x64xf32>
    %254 = arith.mulf %253, %253 : vector<16x64xf32>
    %cst_81 = arith.constant dense<0.000000e+00> : vector<16xf32>
    %255 = vector.multi_reduction <add>, %254, %cst_81 [1] : vector<16x64xf32> to vector<16xf32>
    %256 = vector.shape_cast %255 : vector<16xf32> to vector<16x1xf32>
    %cst_82 = arith.constant 6.400000e+01 : f32
    %257 = vector.broadcast %cst_82 : f32 to vector<16x1xf32>
    %258 = arith.divf %256, %257 : vector<16x1xf32>
    %259 = vector.broadcast %251 : vector<16x1xf32> to vector<16x64xf32>
    %260 = arith.subf %243, %259 : vector<16x64xf32>
    %cst_83 = arith.constant 9.99999974E-6 : f32
    %261 = vector.broadcast %cst_83 : f32 to vector<16x1xf32>
    %262 = arith.addf %258, %261 : vector<16x1xf32>
    %263 = math.rsqrt %262 : vector<16x1xf32>
    %264 = vector.broadcast %263 : vector<16x1xf32> to vector<16x64xf32>
    %265 = arith.mulf %260, %264 : vector<16x64xf32>
    %266 = vector.broadcast %246 : vector<1x64xf32> to vector<16x64xf32>
    %267 = arith.mulf %265, %266 : vector<16x64xf32>
    %268 = vector.broadcast %247 : vector<1x64xf32> to vector<16x64xf32>
    %269 = arith.addf %267, %268 : vector<16x64xf32>
    %c1_84 = arith.constant 1 : index
    %c0_85 = arith.constant 0 : index
    %c0_86 = arith.constant 0 : index
    %270 = vector.load %arg6[%c1_84, %c0_85, %c0_86] : memref<2x64x192xf32, #tpu.memory_space<vmem>>, vector<1x64x192xf32>
    %271 = vector.shape_cast %270 : vector<1x64x192xf32> to vector<64x192xf32>
    %c1_87 = arith.constant 1 : index
    %c0_88 = arith.constant 0 : index
    %c0_89 = arith.constant 0 : index
    %272 = vector.load %arg7[%c1_87, %c0_88, %c0_89] : memref<2x64x64xf32, #tpu.memory_space<vmem>>, vector<1x64x64xf32>
    %273 = vector.shape_cast %272 : vector<1x64x64xf32> to vector<64x64xf32>
    %274 = vector.extract_strided_slice %245 {offsets = [4, 0], sizes = [1, 64], strides = [1, 1]} : vector<5x64xf32> to vector<1x64xf32>
    %cst_90 = arith.constant dense<0.000000e+00> : vector<16x192xf32>
    %275 = tpu.matmul %269, %271, %cst_90 {dimension_numbers = #tpu.dot_dimension_numbers<[1], [0], [0], [1], [0, 0, 1, 1], [], []>} : vector<16x64xf32>, vector<64x192xf32>, vector<16x192xf32> -> vector<16x192xf32>
    %276 = vector.extract_strided_slice %275 {offsets = [0, 0], sizes = [16, 64], strides = [1, 1]} : vector<16x192xf32> to vector<16x64xf32>
    %cst_91 = arith.constant 1.250000e-01 : f32
    %277 = vector.broadcast %cst_91 : f32 to vector<16x64xf32>
    %278 = arith.mulf %276, %277 : vector<16x64xf32>
    %279 = vector.extract_strided_slice %275 {offsets = [0, 64], sizes = [16, 64], strides = [1, 1]} : vector<16x192xf32> to vector<16x64xf32>
    %280 = vector.extract_strided_slice %275 {offsets = [0, 128], sizes = [16, 64], strides = [1, 1]} : vector<16x192xf32> to vector<16x64xf32>
    %281 = vector.extract_strided_slice %278 {offsets = [0, 0], sizes = [16, 16], strides = [1, 1]} : vector<16x64xf32> to vector<16x16xf32>
    %282 = vector.extract_strided_slice %279 {offsets = [0, 0], sizes = [16, 16], strides = [1, 1]} : vector<16x64xf32> to vector<16x16xf32>
    %cst_92 = arith.constant dense<0.000000e+00> : vector<16x16xf32>
    %283 = tpu.matmul %281, %282, %cst_92 {dimension_numbers = #tpu.dot_dimension_numbers<[1], [1], [0], [0], [0, 0, 1, 0], [], []>} : vector<16x16xf32>, vector<16x16xf32>, vector<16x16xf32> -> vector<16x16xf32>
    %284 = arith.addf %283, %13 : vector<16x16xf32>
    %cst_93 = arith.constant dense<0xFF800000> : vector<16xf32>
    %285 = vector.multi_reduction <maximumf>, %284, %cst_93 [1] : vector<16x16xf32> to vector<16xf32>
    %286 = vector.shape_cast %285 : vector<16xf32> to vector<16x1xf32>
    %287 = vector.broadcast %286 : vector<16x1xf32> to vector<16x16xf32>
    %288 = arith.subf %284, %287 : vector<16x16xf32>
    %289 = math.exp %288 : vector<16x16xf32>
    %cst_94 = arith.constant dense<0.000000e+00> : vector<16xf32>
    %290 = vector.multi_reduction <add>, %289, %cst_94 [1] : vector<16x16xf32> to vector<16xf32>
    %291 = vector.shape_cast %290 : vector<16xf32> to vector<16x1xf32>
    %292 = tpu.reciprocal %291 {approx = true} : vector<16x1xf32> -> vector<16x1xf32>
    %293 = vector.broadcast %292 : vector<16x1xf32> to vector<16x16xf32>
    %294 = arith.mulf %289, %293 : vector<16x16xf32>
    %295 = vector.extract_strided_slice %280 {offsets = [0, 0], sizes = [16, 16], strides = [1, 1]} : vector<16x64xf32> to vector<16x16xf32>
    %cst_95 = arith.constant dense<0.000000e+00> : vector<16x16xf32>
    %296 = tpu.matmul %294, %295, %cst_95 {dimension_numbers = #tpu.dot_dimension_numbers<[1], [0], [0], [1], [0, 0, 1, 1], [], []>} : vector<16x16xf32>, vector<16x16xf32>, vector<16x16xf32> -> vector<16x16xf32>
    %297 = vector.extract_strided_slice %278 {offsets = [0, 16], sizes = [16, 16], strides = [1, 1]} : vector<16x64xf32> to vector<16x16xf32>
    %298 = vector.extract_strided_slice %279 {offsets = [0, 16], sizes = [16, 16], strides = [1, 1]} : vector<16x64xf32> to vector<16x16xf32>
    %cst_96 = arith.constant dense<0.000000e+00> : vector<16x16xf32>
    %299 = tpu.matmul %297, %298, %cst_96 {dimension_numbers = #tpu.dot_dimension_numbers<[1], [1], [0], [0], [0, 0, 1, 0], [], []>} : vector<16x16xf32>, vector<16x16xf32>, vector<16x16xf32> -> vector<16x16xf32>
    %300 = arith.addf %299, %13 : vector<16x16xf32>
    %cst_97 = arith.constant dense<0xFF800000> : vector<16xf32>
    %301 = vector.multi_reduction <maximumf>, %300, %cst_97 [1] : vector<16x16xf32> to vector<16xf32>
    %302 = vector.shape_cast %301 : vector<16xf32> to vector<16x1xf32>
    %303 = vector.broadcast %302 : vector<16x1xf32> to vector<16x16xf32>
    %304 = arith.subf %300, %303 : vector<16x16xf32>
    %305 = math.exp %304 : vector<16x16xf32>
    %cst_98 = arith.constant dense<0.000000e+00> : vector<16xf32>
    %306 = vector.multi_reduction <add>, %305, %cst_98 [1] : vector<16x16xf32> to vector<16xf32>
    %307 = vector.shape_cast %306 : vector<16xf32> to vector<16x1xf32>
    %308 = tpu.reciprocal %307 {approx = true} : vector<16x1xf32> -> vector<16x1xf32>
    %309 = vector.broadcast %308 : vector<16x1xf32> to vector<16x16xf32>
    %310 = arith.mulf %305, %309 : vector<16x16xf32>
    %311 = vector.extract_strided_slice %280 {offsets = [0, 16], sizes = [16, 16], strides = [1, 1]} : vector<16x64xf32> to vector<16x16xf32>
    %cst_99 = arith.constant dense<0.000000e+00> : vector<16x16xf32>
    %312 = tpu.matmul %310, %311, %cst_99 {dimension_numbers = #tpu.dot_dimension_numbers<[1], [0], [0], [1], [0, 0, 1, 1], [], []>} : vector<16x16xf32>, vector<16x16xf32>, vector<16x16xf32> -> vector<16x16xf32>
    %313 = vector.extract_strided_slice %278 {offsets = [0, 32], sizes = [16, 16], strides = [1, 1]} : vector<16x64xf32> to vector<16x16xf32>
    %314 = vector.extract_strided_slice %279 {offsets = [0, 32], sizes = [16, 16], strides = [1, 1]} : vector<16x64xf32> to vector<16x16xf32>
    %cst_100 = arith.constant dense<0.000000e+00> : vector<16x16xf32>
    %315 = tpu.matmul %313, %314, %cst_100 {dimension_numbers = #tpu.dot_dimension_numbers<[1], [1], [0], [0], [0, 0, 1, 0], [], []>} : vector<16x16xf32>, vector<16x16xf32>, vector<16x16xf32> -> vector<16x16xf32>
    %316 = arith.addf %315, %13 : vector<16x16xf32>
    %cst_101 = arith.constant dense<0xFF800000> : vector<16xf32>
    %317 = vector.multi_reduction <maximumf>, %316, %cst_101 [1] : vector<16x16xf32> to vector<16xf32>
    %318 = vector.shape_cast %317 : vector<16xf32> to vector<16x1xf32>
    %319 = vector.broadcast %318 : vector<16x1xf32> to vector<16x16xf32>
    %320 = arith.subf %316, %319 : vector<16x16xf32>
    %321 = math.exp %320 : vector<16x16xf32>
    %cst_102 = arith.constant dense<0.000000e+00> : vector<16xf32>
    %322 = vector.multi_reduction <add>, %321, %cst_102 [1] : vector<16x16xf32> to vector<16xf32>
    %323 = vector.shape_cast %322 : vector<16xf32> to vector<16x1xf32>
    %324 = tpu.reciprocal %323 {approx = true} : vector<16x1xf32> -> vector<16x1xf32>
    %325 = vector.broadcast %324 : vector<16x1xf32> to vector<16x16xf32>
    %326 = arith.mulf %321, %325 : vector<16x16xf32>
    %327 = vector.extract_strided_slice %280 {offsets = [0, 32], sizes = [16, 16], strides = [1, 1]} : vector<16x64xf32> to vector<16x16xf32>
    %cst_103 = arith.constant dense<0.000000e+00> : vector<16x16xf32>
    %328 = tpu.matmul %326, %327, %cst_103 {dimension_numbers = #tpu.dot_dimension_numbers<[1], [0], [0], [1], [0, 0, 1, 1], [], []>} : vector<16x16xf32>, vector<16x16xf32>, vector<16x16xf32> -> vector<16x16xf32>
    %329 = vector.extract_strided_slice %278 {offsets = [0, 48], sizes = [16, 16], strides = [1, 1]} : vector<16x64xf32> to vector<16x16xf32>
    %330 = vector.extract_strided_slice %279 {offsets = [0, 48], sizes = [16, 16], strides = [1, 1]} : vector<16x64xf32> to vector<16x16xf32>
    %cst_104 = arith.constant dense<0.000000e+00> : vector<16x16xf32>
    %331 = tpu.matmul %329, %330, %cst_104 {dimension_numbers = #tpu.dot_dimension_numbers<[1], [1], [0], [0], [0, 0, 1, 0], [], []>} : vector<16x16xf32>, vector<16x16xf32>, vector<16x16xf32> -> vector<16x16xf32>
    %332 = arith.addf %331, %13 : vector<16x16xf32>
    %cst_105 = arith.constant dense<0xFF800000> : vector<16xf32>
    %333 = vector.multi_reduction <maximumf>, %332, %cst_105 [1] : vector<16x16xf32> to vector<16xf32>
    %334 = vector.shape_cast %333 : vector<16xf32> to vector<16x1xf32>
    %335 = vector.broadcast %334 : vector<16x1xf32> to vector<16x16xf32>
    %336 = arith.subf %332, %335 : vector<16x16xf32>
    %337 = math.exp %336 : vector<16x16xf32>
    %cst_106 = arith.constant dense<0.000000e+00> : vector<16xf32>
    %338 = vector.multi_reduction <add>, %337, %cst_106 [1] : vector<16x16xf32> to vector<16xf32>
    %339 = vector.shape_cast %338 : vector<16xf32> to vector<16x1xf32>
    %340 = tpu.reciprocal %339 {approx = true} : vector<16x1xf32> -> vector<16x1xf32>
    %341 = vector.broadcast %340 : vector<16x1xf32> to vector<16x16xf32>
    %342 = arith.mulf %337, %341 : vector<16x16xf32>
    %343 = vector.extract_strided_slice %280 {offsets = [0, 48], sizes = [16, 16], strides = [1, 1]} : vector<16x64xf32> to vector<16x16xf32>
    %cst_107 = arith.constant dense<0.000000e+00> : vector<16x16xf32>
    %344 = tpu.matmul %342, %343, %cst_107 {dimension_numbers = #tpu.dot_dimension_numbers<[1], [0], [0], [1], [0, 0, 1, 1], [], []>} : vector<16x16xf32>, vector<16x16xf32>, vector<16x16xf32> -> vector<16x16xf32>
    %345 = tpu.concatenate %296, %312, %328, %344 in 1 : vector<16x16xf32>, vector<16x16xf32>, vector<16x16xf32>, vector<16x16xf32> -> vector<16x64xf32>
    %cst_108 = arith.constant dense<0.000000e+00> : vector<16x64xf32>
    %346 = tpu.matmul %345, %273, %cst_108 {dimension_numbers = #tpu.dot_dimension_numbers<[1], [0], [0], [1], [0, 0, 1, 1], [], []>} : vector<16x64xf32>, vector<64x64xf32>, vector<16x64xf32> -> vector<16x64xf32>
    %347 = vector.broadcast %274 : vector<1x64xf32> to vector<16x64xf32>
    %348 = arith.addf %346, %347 : vector<16x64xf32>
    %349 = arith.addf %243, %348 : vector<16x64xf32>
    %350 = vector.extract_strided_slice %245 {offsets = [2, 0], sizes = [1, 64], strides = [1, 1]} : vector<5x64xf32> to vector<1x64xf32>
    %351 = vector.extract_strided_slice %245 {offsets = [3, 0], sizes = [1, 64], strides = [1, 1]} : vector<5x64xf32> to vector<1x64xf32>
    %cst_109 = arith.constant dense<0.000000e+00> : vector<16xf32>
    %352 = vector.multi_reduction <add>, %349, %cst_109 [1] : vector<16x64xf32> to vector<16xf32>
    %353 = vector.shape_cast %352 : vector<16xf32> to vector<16x1xf32>
    %cst_110 = arith.constant 6.400000e+01 : f32
    %354 = vector.broadcast %cst_110 : f32 to vector<16x1xf32>
    %355 = arith.divf %353, %354 : vector<16x1xf32>
    %356 = vector.broadcast %355 : vector<16x1xf32> to vector<16x64xf32>
    %357 = arith.subf %349, %356 : vector<16x64xf32>
    %358 = arith.mulf %357, %357 : vector<16x64xf32>
    %cst_111 = arith.constant dense<0.000000e+00> : vector<16xf32>
    %359 = vector.multi_reduction <add>, %358, %cst_111 [1] : vector<16x64xf32> to vector<16xf32>
    %360 = vector.shape_cast %359 : vector<16xf32> to vector<16x1xf32>
    %cst_112 = arith.constant 6.400000e+01 : f32
    %361 = vector.broadcast %cst_112 : f32 to vector<16x1xf32>
    %362 = arith.divf %360, %361 : vector<16x1xf32>
    %363 = vector.broadcast %355 : vector<16x1xf32> to vector<16x64xf32>
    %364 = arith.subf %349, %363 : vector<16x64xf32>
    %cst_113 = arith.constant 9.99999974E-6 : f32
    %365 = vector.broadcast %cst_113 : f32 to vector<16x1xf32>
    %366 = arith.addf %362, %365 : vector<16x1xf32>
    %367 = math.rsqrt %366 : vector<16x1xf32>
    %368 = vector.broadcast %367 : vector<16x1xf32> to vector<16x64xf32>
    %369 = arith.mulf %364, %368 : vector<16x64xf32>
    %370 = vector.broadcast %350 : vector<1x64xf32> to vector<16x64xf32>
    %371 = arith.mulf %369, %370 : vector<16x64xf32>
    %372 = vector.broadcast %351 : vector<1x64xf32> to vector<16x64xf32>
    %373 = arith.addf %371, %372 : vector<16x64xf32>
    %c1_114 = arith.constant 1 : index
    %c0_115 = arith.constant 0 : index
    %c0_116 = arith.constant 0 : index
    %374 = vector.load %arg8[%c1_114, %c0_115, %c0_116] : memref<2x65x256xf32, #tpu.memory_space<vmem>>, vector<1x65x256xf32>
    %375 = vector.shape_cast %374 : vector<1x65x256xf32> to vector<65x256xf32>
    %c1_117 = arith.constant 1 : index
    %c0_118 = arith.constant 0 : index
    %c0_119 = arith.constant 0 : index
    %376 = vector.load %arg9[%c1_117, %c0_118, %c0_119] : memref<2x257x64xf32, #tpu.memory_space<vmem>>, vector<1x257x64xf32>
    %377 = vector.shape_cast %376 : vector<1x257x64xf32> to vector<257x64xf32>
    %378 = vector.extract_strided_slice %375 {offsets = [0, 0], sizes = [64, 256], strides = [1, 1]} : vector<65x256xf32> to vector<64x256xf32>
    %cst_120 = arith.constant dense<0.000000e+00> : vector<16x256xf32>
    %379 = tpu.matmul %373, %378, %cst_120 {dimension_numbers = #tpu.dot_dimension_numbers<[1], [0], [0], [1], [0, 0, 1, 1], [], []>} : vector<16x64xf32>, vector<64x256xf32>, vector<16x256xf32> -> vector<16x256xf32>
    %380 = vector.extract_strided_slice %375 {offsets = [64, 0], sizes = [1, 256], strides = [1, 1]} : vector<65x256xf32> to vector<1x256xf32>
    %381 = vector.broadcast %380 : vector<1x256xf32> to vector<16x256xf32>
    %382 = arith.addf %379, %381 : vector<16x256xf32>
    %cst_121 = arith.constant 0.000000e+00 : f32
    %383 = vector.broadcast %cst_121 : f32 to vector<16x256xf32>
    %384 = arith.maximumf %382, %383 : vector<16x256xf32>
    %385 = vector.extract_strided_slice %377 {offsets = [0, 0], sizes = [256, 64], strides = [1, 1]} : vector<257x64xf32> to vector<256x64xf32>
    %cst_122 = arith.constant dense<0.000000e+00> : vector<16x64xf32>
    %386 = tpu.matmul %384, %385, %cst_122 {dimension_numbers = #tpu.dot_dimension_numbers<[1], [0], [0], [1], [0, 0, 1, 1], [], []>} : vector<16x256xf32>, vector<256x64xf32>, vector<16x64xf32> -> vector<16x64xf32>
    %387 = vector.extract_strided_slice %377 {offsets = [256, 0], sizes = [1, 64], strides = [1, 1]} : vector<257x64xf32> to vector<1x64xf32>
    %388 = vector.broadcast %387 : vector<1x64xf32> to vector<16x64xf32>
    %389 = arith.addf %386, %388 : vector<16x64xf32>
    %390 = arith.addf %349, %389 : vector<16x64xf32>
    %c0_123 = arith.constant 0 : index
    %c0_124 = arith.constant 0 : index
    %c0_125 = arith.constant 0 : index
    %391 = vector.load %arg10[%c0_123, %c0_124, %c0_125] : memref<2x10x64xf32, #tpu.memory_space<vmem>>, vector<1x10x64xf32>
    %392 = vector.shape_cast %391 : vector<1x10x64xf32> to vector<10x64xf32>
    %393 = vector.extract_strided_slice %392 {offsets = [0, 0], sizes = [1, 64], strides = [1, 1]} : vector<10x64xf32> to vector<1x64xf32>
    %394 = vector.extract_strided_slice %392 {offsets = [1, 0], sizes = [1, 64], strides = [1, 1]} : vector<10x64xf32> to vector<1x64xf32>
    %cst_126 = arith.constant dense<0.000000e+00> : vector<16xf32>
    %395 = vector.multi_reduction <add>, %96, %cst_126 [1] : vector<16x64xf32> to vector<16xf32>
    %396 = vector.shape_cast %395 : vector<16xf32> to vector<16x1xf32>
    %cst_127 = arith.constant 6.400000e+01 : f32
    %397 = vector.broadcast %cst_127 : f32 to vector<16x1xf32>
    %398 = arith.divf %396, %397 : vector<16x1xf32>
    %399 = vector.broadcast %398 : vector<16x1xf32> to vector<16x64xf32>
    %400 = arith.subf %96, %399 : vector<16x64xf32>
    %401 = arith.mulf %400, %400 : vector<16x64xf32>
    %cst_128 = arith.constant dense<0.000000e+00> : vector<16xf32>
    %402 = vector.multi_reduction <add>, %401, %cst_128 [1] : vector<16x64xf32> to vector<16xf32>
    %403 = vector.shape_cast %402 : vector<16xf32> to vector<16x1xf32>
    %cst_129 = arith.constant 6.400000e+01 : f32
    %404 = vector.broadcast %cst_129 : f32 to vector<16x1xf32>
    %405 = arith.divf %403, %404 : vector<16x1xf32>
    %406 = vector.broadcast %398 : vector<16x1xf32> to vector<16x64xf32>
    %407 = arith.subf %96, %406 : vector<16x64xf32>
    %cst_130 = arith.constant 9.99999974E-6 : f32
    %408 = vector.broadcast %cst_130 : f32 to vector<16x1xf32>
    %409 = arith.addf %405, %408 : vector<16x1xf32>
    %410 = math.rsqrt %409 : vector<16x1xf32>
    %411 = vector.broadcast %410 : vector<16x1xf32> to vector<16x64xf32>
    %412 = arith.mulf %407, %411 : vector<16x64xf32>
    %413 = vector.broadcast %393 : vector<1x64xf32> to vector<16x64xf32>
    %414 = arith.mulf %412, %413 : vector<16x64xf32>
    %415 = vector.broadcast %394 : vector<1x64xf32> to vector<16x64xf32>
    %416 = arith.addf %414, %415 : vector<16x64xf32>
    %c0_131 = arith.constant 0 : index
    %c0_132 = arith.constant 0 : index
    %c0_133 = arith.constant 0 : index
    %417 = vector.load %arg11[%c0_131, %c0_132, %c0_133] : memref<4x64x192xf32, #tpu.memory_space<vmem>>, vector<1x64x192xf32>
    %418 = vector.shape_cast %417 : vector<1x64x192xf32> to vector<64x192xf32>
    %c0_134 = arith.constant 0 : index
    %c0_135 = arith.constant 0 : index
    %c0_136 = arith.constant 0 : index
    %419 = vector.load %arg12[%c0_134, %c0_135, %c0_136] : memref<4x64x64xf32, #tpu.memory_space<vmem>>, vector<1x64x64xf32>
    %420 = vector.shape_cast %419 : vector<1x64x64xf32> to vector<64x64xf32>
    %421 = vector.extract_strided_slice %392 {offsets = [8, 0], sizes = [1, 64], strides = [1, 1]} : vector<10x64xf32> to vector<1x64xf32>
    %cst_137 = arith.constant dense<0.000000e+00> : vector<16x192xf32>
    %422 = tpu.matmul %416, %418, %cst_137 {dimension_numbers = #tpu.dot_dimension_numbers<[1], [0], [0], [1], [0, 0, 1, 1], [], []>} : vector<16x64xf32>, vector<64x192xf32>, vector<16x192xf32> -> vector<16x192xf32>
    %423 = vector.extract_strided_slice %422 {offsets = [0, 0], sizes = [16, 64], strides = [1, 1]} : vector<16x192xf32> to vector<16x64xf32>
    %cst_138 = arith.constant 1.250000e-01 : f32
    %424 = vector.broadcast %cst_138 : f32 to vector<16x64xf32>
    %425 = arith.mulf %423, %424 : vector<16x64xf32>
    %426 = vector.extract_strided_slice %422 {offsets = [0, 64], sizes = [16, 64], strides = [1, 1]} : vector<16x192xf32> to vector<16x64xf32>
    %427 = vector.extract_strided_slice %422 {offsets = [0, 128], sizes = [16, 64], strides = [1, 1]} : vector<16x192xf32> to vector<16x64xf32>
    %428 = vector.extract_strided_slice %425 {offsets = [0, 0], sizes = [16, 16], strides = [1, 1]} : vector<16x64xf32> to vector<16x16xf32>
    %429 = vector.extract_strided_slice %426 {offsets = [0, 0], sizes = [16, 16], strides = [1, 1]} : vector<16x64xf32> to vector<16x16xf32>
    %cst_139 = arith.constant dense<0.000000e+00> : vector<16x16xf32>
    %430 = tpu.matmul %428, %429, %cst_139 {dimension_numbers = #tpu.dot_dimension_numbers<[1], [1], [0], [0], [0, 0, 1, 0], [], []>} : vector<16x16xf32>, vector<16x16xf32>, vector<16x16xf32> -> vector<16x16xf32>
    %431 = arith.addf %430, %35 : vector<16x16xf32>
    %cst_140 = arith.constant dense<0xFF800000> : vector<16xf32>
    %432 = vector.multi_reduction <maximumf>, %431, %cst_140 [1] : vector<16x16xf32> to vector<16xf32>
    %433 = vector.shape_cast %432 : vector<16xf32> to vector<16x1xf32>
    %434 = vector.broadcast %433 : vector<16x1xf32> to vector<16x16xf32>
    %435 = arith.subf %431, %434 : vector<16x16xf32>
    %436 = math.exp %435 : vector<16x16xf32>
    %cst_141 = arith.constant dense<0.000000e+00> : vector<16xf32>
    %437 = vector.multi_reduction <add>, %436, %cst_141 [1] : vector<16x16xf32> to vector<16xf32>
    %438 = vector.shape_cast %437 : vector<16xf32> to vector<16x1xf32>
    %439 = tpu.reciprocal %438 {approx = true} : vector<16x1xf32> -> vector<16x1xf32>
    %440 = vector.broadcast %439 : vector<16x1xf32> to vector<16x16xf32>
    %441 = arith.mulf %436, %440 : vector<16x16xf32>
    %442 = vector.extract_strided_slice %427 {offsets = [0, 0], sizes = [16, 16], strides = [1, 1]} : vector<16x64xf32> to vector<16x16xf32>
    %cst_142 = arith.constant dense<0.000000e+00> : vector<16x16xf32>
    %443 = tpu.matmul %441, %442, %cst_142 {dimension_numbers = #tpu.dot_dimension_numbers<[1], [0], [0], [1], [0, 0, 1, 1], [], []>} : vector<16x16xf32>, vector<16x16xf32>, vector<16x16xf32> -> vector<16x16xf32>
    %444 = vector.extract_strided_slice %425 {offsets = [0, 16], sizes = [16, 16], strides = [1, 1]} : vector<16x64xf32> to vector<16x16xf32>
    %445 = vector.extract_strided_slice %426 {offsets = [0, 16], sizes = [16, 16], strides = [1, 1]} : vector<16x64xf32> to vector<16x16xf32>
    %cst_143 = arith.constant dense<0.000000e+00> : vector<16x16xf32>
    %446 = tpu.matmul %444, %445, %cst_143 {dimension_numbers = #tpu.dot_dimension_numbers<[1], [1], [0], [0], [0, 0, 1, 0], [], []>} : vector<16x16xf32>, vector<16x16xf32>, vector<16x16xf32> -> vector<16x16xf32>
    %447 = arith.addf %446, %35 : vector<16x16xf32>
    %cst_144 = arith.constant dense<0xFF800000> : vector<16xf32>
    %448 = vector.multi_reduction <maximumf>, %447, %cst_144 [1] : vector<16x16xf32> to vector<16xf32>
    %449 = vector.shape_cast %448 : vector<16xf32> to vector<16x1xf32>
    %450 = vector.broadcast %449 : vector<16x1xf32> to vector<16x16xf32>
    %451 = arith.subf %447, %450 : vector<16x16xf32>
    %452 = math.exp %451 : vector<16x16xf32>
    %cst_145 = arith.constant dense<0.000000e+00> : vector<16xf32>
    %453 = vector.multi_reduction <add>, %452, %cst_145 [1] : vector<16x16xf32> to vector<16xf32>
    %454 = vector.shape_cast %453 : vector<16xf32> to vector<16x1xf32>
    %455 = tpu.reciprocal %454 {approx = true} : vector<16x1xf32> -> vector<16x1xf32>
    %456 = vector.broadcast %455 : vector<16x1xf32> to vector<16x16xf32>
    %457 = arith.mulf %452, %456 : vector<16x16xf32>
    %458 = vector.extract_strided_slice %427 {offsets = [0, 16], sizes = [16, 16], strides = [1, 1]} : vector<16x64xf32> to vector<16x16xf32>
    %cst_146 = arith.constant dense<0.000000e+00> : vector<16x16xf32>
    %459 = tpu.matmul %457, %458, %cst_146 {dimension_numbers = #tpu.dot_dimension_numbers<[1], [0], [0], [1], [0, 0, 1, 1], [], []>} : vector<16x16xf32>, vector<16x16xf32>, vector<16x16xf32> -> vector<16x16xf32>
    %460 = vector.extract_strided_slice %425 {offsets = [0, 32], sizes = [16, 16], strides = [1, 1]} : vector<16x64xf32> to vector<16x16xf32>
    %461 = vector.extract_strided_slice %426 {offsets = [0, 32], sizes = [16, 16], strides = [1, 1]} : vector<16x64xf32> to vector<16x16xf32>
    %cst_147 = arith.constant dense<0.000000e+00> : vector<16x16xf32>
    %462 = tpu.matmul %460, %461, %cst_147 {dimension_numbers = #tpu.dot_dimension_numbers<[1], [1], [0], [0], [0, 0, 1, 0], [], []>} : vector<16x16xf32>, vector<16x16xf32>, vector<16x16xf32> -> vector<16x16xf32>
    %463 = arith.addf %462, %35 : vector<16x16xf32>
    %cst_148 = arith.constant dense<0xFF800000> : vector<16xf32>
    %464 = vector.multi_reduction <maximumf>, %463, %cst_148 [1] : vector<16x16xf32> to vector<16xf32>
    %465 = vector.shape_cast %464 : vector<16xf32> to vector<16x1xf32>
    %466 = vector.broadcast %465 : vector<16x1xf32> to vector<16x16xf32>
    %467 = arith.subf %463, %466 : vector<16x16xf32>
    %468 = math.exp %467 : vector<16x16xf32>
    %cst_149 = arith.constant dense<0.000000e+00> : vector<16xf32>
    %469 = vector.multi_reduction <add>, %468, %cst_149 [1] : vector<16x16xf32> to vector<16xf32>
    %470 = vector.shape_cast %469 : vector<16xf32> to vector<16x1xf32>
    %471 = tpu.reciprocal %470 {approx = true} : vector<16x1xf32> -> vector<16x1xf32>
    %472 = vector.broadcast %471 : vector<16x1xf32> to vector<16x16xf32>
    %473 = arith.mulf %468, %472 : vector<16x16xf32>
    %474 = vector.extract_strided_slice %427 {offsets = [0, 32], sizes = [16, 16], strides = [1, 1]} : vector<16x64xf32> to vector<16x16xf32>
    %cst_150 = arith.constant dense<0.000000e+00> : vector<16x16xf32>
    %475 = tpu.matmul %473, %474, %cst_150 {dimension_numbers = #tpu.dot_dimension_numbers<[1], [0], [0], [1], [0, 0, 1, 1], [], []>} : vector<16x16xf32>, vector<16x16xf32>, vector<16x16xf32> -> vector<16x16xf32>
    %476 = vector.extract_strided_slice %425 {offsets = [0, 48], sizes = [16, 16], strides = [1, 1]} : vector<16x64xf32> to vector<16x16xf32>
    %477 = vector.extract_strided_slice %426 {offsets = [0, 48], sizes = [16, 16], strides = [1, 1]} : vector<16x64xf32> to vector<16x16xf32>
    %cst_151 = arith.constant dense<0.000000e+00> : vector<16x16xf32>
    %478 = tpu.matmul %476, %477, %cst_151 {dimension_numbers = #tpu.dot_dimension_numbers<[1], [1], [0], [0], [0, 0, 1, 0], [], []>} : vector<16x16xf32>, vector<16x16xf32>, vector<16x16xf32> -> vector<16x16xf32>
    %479 = arith.addf %478, %35 : vector<16x16xf32>
    %cst_152 = arith.constant dense<0xFF800000> : vector<16xf32>
    %480 = vector.multi_reduction <maximumf>, %479, %cst_152 [1] : vector<16x16xf32> to vector<16xf32>
    %481 = vector.shape_cast %480 : vector<16xf32> to vector<16x1xf32>
    %482 = vector.broadcast %481 : vector<16x1xf32> to vector<16x16xf32>
    %483 = arith.subf %479, %482 : vector<16x16xf32>
    %484 = math.exp %483 : vector<16x16xf32>
    %cst_153 = arith.constant dense<0.000000e+00> : vector<16xf32>
    %485 = vector.multi_reduction <add>, %484, %cst_153 [1] : vector<16x16xf32> to vector<16xf32>
    %486 = vector.shape_cast %485 : vector<16xf32> to vector<16x1xf32>
    %487 = tpu.reciprocal %486 {approx = true} : vector<16x1xf32> -> vector<16x1xf32>
    %488 = vector.broadcast %487 : vector<16x1xf32> to vector<16x16xf32>
    %489 = arith.mulf %484, %488 : vector<16x16xf32>
    %490 = vector.extract_strided_slice %427 {offsets = [0, 48], sizes = [16, 16], strides = [1, 1]} : vector<16x64xf32> to vector<16x16xf32>
    %cst_154 = arith.constant dense<0.000000e+00> : vector<16x16xf32>
    %491 = tpu.matmul %489, %490, %cst_154 {dimension_numbers = #tpu.dot_dimension_numbers<[1], [0], [0], [1], [0, 0, 1, 1], [], []>} : vector<16x16xf32>, vector<16x16xf32>, vector<16x16xf32> -> vector<16x16xf32>
    %492 = tpu.concatenate %443, %459, %475, %491 in 1 : vector<16x16xf32>, vector<16x16xf32>, vector<16x16xf32>, vector<16x16xf32> -> vector<16x64xf32>
    %cst_155 = arith.constant dense<0.000000e+00> : vector<16x64xf32>
    %493 = tpu.matmul %492, %420, %cst_155 {dimension_numbers = #tpu.dot_dimension_numbers<[1], [0], [0], [1], [0, 0, 1, 1], [], []>} : vector<16x64xf32>, vector<64x64xf32>, vector<16x64xf32> -> vector<16x64xf32>
    %494 = vector.broadcast %421 : vector<1x64xf32> to vector<16x64xf32>
    %495 = arith.addf %493, %494 : vector<16x64xf32>
    %496 = arith.addf %96, %495 : vector<16x64xf32>
    %497 = vector.extract_strided_slice %392 {offsets = [4, 0], sizes = [1, 64], strides = [1, 1]} : vector<10x64xf32> to vector<1x64xf32>
    %498 = vector.extract_strided_slice %392 {offsets = [5, 0], sizes = [1, 64], strides = [1, 1]} : vector<10x64xf32> to vector<1x64xf32>
    %cst_156 = arith.constant dense<0.000000e+00> : vector<16xf32>
    %499 = vector.multi_reduction <add>, %496, %cst_156 [1] : vector<16x64xf32> to vector<16xf32>
    %500 = vector.shape_cast %499 : vector<16xf32> to vector<16x1xf32>
    %cst_157 = arith.constant 6.400000e+01 : f32
    %501 = vector.broadcast %cst_157 : f32 to vector<16x1xf32>
    %502 = arith.divf %500, %501 : vector<16x1xf32>
    %503 = vector.broadcast %502 : vector<16x1xf32> to vector<16x64xf32>
    %504 = arith.subf %496, %503 : vector<16x64xf32>
    %505 = arith.mulf %504, %504 : vector<16x64xf32>
    %cst_158 = arith.constant dense<0.000000e+00> : vector<16xf32>
    %506 = vector.multi_reduction <add>, %505, %cst_158 [1] : vector<16x64xf32> to vector<16xf32>
    %507 = vector.shape_cast %506 : vector<16xf32> to vector<16x1xf32>
    %cst_159 = arith.constant 6.400000e+01 : f32
    %508 = vector.broadcast %cst_159 : f32 to vector<16x1xf32>
    %509 = arith.divf %507, %508 : vector<16x1xf32>
    %510 = vector.broadcast %502 : vector<16x1xf32> to vector<16x64xf32>
    %511 = arith.subf %496, %510 : vector<16x64xf32>
    %cst_160 = arith.constant 9.99999974E-6 : f32
    %512 = vector.broadcast %cst_160 : f32 to vector<16x1xf32>
    %513 = arith.addf %509, %512 : vector<16x1xf32>
    %514 = math.rsqrt %513 : vector<16x1xf32>
    %515 = vector.broadcast %514 : vector<16x1xf32> to vector<16x64xf32>
    %516 = arith.mulf %511, %515 : vector<16x64xf32>
    %517 = vector.broadcast %497 : vector<1x64xf32> to vector<16x64xf32>
    %518 = arith.mulf %516, %517 : vector<16x64xf32>
    %519 = vector.broadcast %498 : vector<1x64xf32> to vector<16x64xf32>
    %520 = arith.addf %518, %519 : vector<16x64xf32>
    %521 = vector.extract_strided_slice %392 {offsets = [2, 0], sizes = [1, 64], strides = [1, 1]} : vector<10x64xf32> to vector<1x64xf32>
    %522 = vector.extract_strided_slice %392 {offsets = [3, 0], sizes = [1, 64], strides = [1, 1]} : vector<10x64xf32> to vector<1x64xf32>
    %cst_161 = arith.constant dense<0.000000e+00> : vector<16xf32>
    %523 = vector.multi_reduction <add>, %390, %cst_161 [1] : vector<16x64xf32> to vector<16xf32>
    %524 = vector.shape_cast %523 : vector<16xf32> to vector<16x1xf32>
    %cst_162 = arith.constant 6.400000e+01 : f32
    %525 = vector.broadcast %cst_162 : f32 to vector<16x1xf32>
    %526 = arith.divf %524, %525 : vector<16x1xf32>
    %527 = vector.broadcast %526 : vector<16x1xf32> to vector<16x64xf32>
    %528 = arith.subf %390, %527 : vector<16x64xf32>
    %529 = arith.mulf %528, %528 : vector<16x64xf32>
    %cst_163 = arith.constant dense<0.000000e+00> : vector<16xf32>
    %530 = vector.multi_reduction <add>, %529, %cst_163 [1] : vector<16x64xf32> to vector<16xf32>
    %531 = vector.shape_cast %530 : vector<16xf32> to vector<16x1xf32>
    %cst_164 = arith.constant 6.400000e+01 : f32
    %532 = vector.broadcast %cst_164 : f32 to vector<16x1xf32>
    %533 = arith.divf %531, %532 : vector<16x1xf32>
    %534 = vector.broadcast %526 : vector<16x1xf32> to vector<16x64xf32>
    %535 = arith.subf %390, %534 : vector<16x64xf32>
    %cst_165 = arith.constant 9.99999974E-6 : f32
    %536 = vector.broadcast %cst_165 : f32 to vector<16x1xf32>
    %537 = arith.addf %533, %536 : vector<16x1xf32>
    %538 = math.rsqrt %537 : vector<16x1xf32>
    %539 = vector.broadcast %538 : vector<16x1xf32> to vector<16x64xf32>
    %540 = arith.mulf %535, %539 : vector<16x64xf32>
    %541 = vector.broadcast %521 : vector<1x64xf32> to vector<16x64xf32>
    %542 = arith.mulf %540, %541 : vector<16x64xf32>
    %543 = vector.broadcast %522 : vector<1x64xf32> to vector<16x64xf32>
    %544 = arith.addf %542, %543 : vector<16x64xf32>
    %c1_166 = arith.constant 1 : index
    %c0_167 = arith.constant 0 : index
    %c0_168 = arith.constant 0 : index
    %545 = vector.load %arg11[%c1_166, %c0_167, %c0_168] : memref<4x64x192xf32, #tpu.memory_space<vmem>>, vector<1x64x192xf32>
    %546 = vector.shape_cast %545 : vector<1x64x192xf32> to vector<64x192xf32>
    %c1_169 = arith.constant 1 : index
    %c0_170 = arith.constant 0 : index
    %c0_171 = arith.constant 0 : index
    %547 = vector.load %arg12[%c1_169, %c0_170, %c0_171] : memref<4x64x64xf32, #tpu.memory_space<vmem>>, vector<1x64x64xf32>
    %548 = vector.shape_cast %547 : vector<1x64x64xf32> to vector<64x64xf32>
    %549 = vector.extract_strided_slice %392 {offsets = [9, 0], sizes = [1, 64], strides = [1, 1]} : vector<10x64xf32> to vector<1x64xf32>
    %550 = vector.extract_strided_slice %546 {offsets = [0, 0], sizes = [64, 128], strides = [1, 1]} : vector<64x192xf32> to vector<64x128xf32>
    %cst_172 = arith.constant dense<0.000000e+00> : vector<16x128xf32>
    %551 = tpu.matmul %544, %550, %cst_172 {dimension_numbers = #tpu.dot_dimension_numbers<[1], [0], [0], [1], [0, 0, 1, 1], [], []>} : vector<16x64xf32>, vector<64x128xf32>, vector<16x128xf32> -> vector<16x128xf32>
    %552 = vector.extract_strided_slice %546 {offsets = [0, 128], sizes = [64, 64], strides = [1, 1]} : vector<64x192xf32> to vector<64x64xf32>
    %cst_173 = arith.constant dense<0.000000e+00> : vector<16x64xf32>
    %553 = tpu.matmul %520, %552, %cst_173 {dimension_numbers = #tpu.dot_dimension_numbers<[1], [0], [0], [1], [0, 0, 1, 1], [], []>} : vector<16x64xf32>, vector<64x64xf32>, vector<16x64xf32> -> vector<16x64xf32>
    %cst_174 = arith.constant 1.250000e-01 : f32
    %554 = vector.broadcast %cst_174 : f32 to vector<16x64xf32>
    %555 = arith.mulf %553, %554 : vector<16x64xf32>
    %556 = vector.extract_strided_slice %551 {offsets = [0, 0], sizes = [16, 64], strides = [1, 1]} : vector<16x128xf32> to vector<16x64xf32>
    %557 = vector.extract_strided_slice %551 {offsets = [0, 64], sizes = [16, 64], strides = [1, 1]} : vector<16x128xf32> to vector<16x64xf32>
    %558 = vector.extract_strided_slice %555 {offsets = [0, 0], sizes = [16, 16], strides = [1, 1]} : vector<16x64xf32> to vector<16x16xf32>
    %559 = vector.extract_strided_slice %556 {offsets = [0, 0], sizes = [16, 16], strides = [1, 1]} : vector<16x64xf32> to vector<16x16xf32>
    %cst_175 = arith.constant dense<0.000000e+00> : vector<16x16xf32>
    %560 = tpu.matmul %558, %559, %cst_175 {dimension_numbers = #tpu.dot_dimension_numbers<[1], [1], [0], [0], [0, 0, 1, 0], [], []>} : vector<16x16xf32>, vector<16x16xf32>, vector<16x16xf32> -> vector<16x16xf32>
    %561 = arith.addf %560, %49 : vector<16x16xf32>
    %cst_176 = arith.constant dense<0xFF800000> : vector<16xf32>
    %562 = vector.multi_reduction <maximumf>, %561, %cst_176 [1] : vector<16x16xf32> to vector<16xf32>
    %563 = vector.shape_cast %562 : vector<16xf32> to vector<16x1xf32>
    %564 = vector.broadcast %563 : vector<16x1xf32> to vector<16x16xf32>
    %565 = arith.subf %561, %564 : vector<16x16xf32>
    %566 = math.exp %565 : vector<16x16xf32>
    %cst_177 = arith.constant dense<0.000000e+00> : vector<16xf32>
    %567 = vector.multi_reduction <add>, %566, %cst_177 [1] : vector<16x16xf32> to vector<16xf32>
    %568 = vector.shape_cast %567 : vector<16xf32> to vector<16x1xf32>
    %569 = tpu.reciprocal %568 {approx = true} : vector<16x1xf32> -> vector<16x1xf32>
    %570 = vector.broadcast %569 : vector<16x1xf32> to vector<16x16xf32>
    %571 = arith.mulf %566, %570 : vector<16x16xf32>
    %572 = vector.extract_strided_slice %557 {offsets = [0, 0], sizes = [16, 16], strides = [1, 1]} : vector<16x64xf32> to vector<16x16xf32>
    %cst_178 = arith.constant dense<0.000000e+00> : vector<16x16xf32>
    %573 = tpu.matmul %571, %572, %cst_178 {dimension_numbers = #tpu.dot_dimension_numbers<[1], [0], [0], [1], [0, 0, 1, 1], [], []>} : vector<16x16xf32>, vector<16x16xf32>, vector<16x16xf32> -> vector<16x16xf32>
    %574 = vector.extract_strided_slice %555 {offsets = [0, 16], sizes = [16, 16], strides = [1, 1]} : vector<16x64xf32> to vector<16x16xf32>
    %575 = vector.extract_strided_slice %556 {offsets = [0, 16], sizes = [16, 16], strides = [1, 1]} : vector<16x64xf32> to vector<16x16xf32>
    %cst_179 = arith.constant dense<0.000000e+00> : vector<16x16xf32>
    %576 = tpu.matmul %574, %575, %cst_179 {dimension_numbers = #tpu.dot_dimension_numbers<[1], [1], [0], [0], [0, 0, 1, 0], [], []>} : vector<16x16xf32>, vector<16x16xf32>, vector<16x16xf32> -> vector<16x16xf32>
    %577 = arith.addf %576, %49 : vector<16x16xf32>
    %cst_180 = arith.constant dense<0xFF800000> : vector<16xf32>
    %578 = vector.multi_reduction <maximumf>, %577, %cst_180 [1] : vector<16x16xf32> to vector<16xf32>
    %579 = vector.shape_cast %578 : vector<16xf32> to vector<16x1xf32>
    %580 = vector.broadcast %579 : vector<16x1xf32> to vector<16x16xf32>
    %581 = arith.subf %577, %580 : vector<16x16xf32>
    %582 = math.exp %581 : vector<16x16xf32>
    %cst_181 = arith.constant dense<0.000000e+00> : vector<16xf32>
    %583 = vector.multi_reduction <add>, %582, %cst_181 [1] : vector<16x16xf32> to vector<16xf32>
    %584 = vector.shape_cast %583 : vector<16xf32> to vector<16x1xf32>
    %585 = tpu.reciprocal %584 {approx = true} : vector<16x1xf32> -> vector<16x1xf32>
    %586 = vector.broadcast %585 : vector<16x1xf32> to vector<16x16xf32>
    %587 = arith.mulf %582, %586 : vector<16x16xf32>
    %588 = vector.extract_strided_slice %557 {offsets = [0, 16], sizes = [16, 16], strides = [1, 1]} : vector<16x64xf32> to vector<16x16xf32>
    %cst_182 = arith.constant dense<0.000000e+00> : vector<16x16xf32>
    %589 = tpu.matmul %587, %588, %cst_182 {dimension_numbers = #tpu.dot_dimension_numbers<[1], [0], [0], [1], [0, 0, 1, 1], [], []>} : vector<16x16xf32>, vector<16x16xf32>, vector<16x16xf32> -> vector<16x16xf32>
    %590 = vector.extract_strided_slice %555 {offsets = [0, 32], sizes = [16, 16], strides = [1, 1]} : vector<16x64xf32> to vector<16x16xf32>
    %591 = vector.extract_strided_slice %556 {offsets = [0, 32], sizes = [16, 16], strides = [1, 1]} : vector<16x64xf32> to vector<16x16xf32>
    %cst_183 = arith.constant dense<0.000000e+00> : vector<16x16xf32>
    %592 = tpu.matmul %590, %591, %cst_183 {dimension_numbers = #tpu.dot_dimension_numbers<[1], [1], [0], [0], [0, 0, 1, 0], [], []>} : vector<16x16xf32>, vector<16x16xf32>, vector<16x16xf32> -> vector<16x16xf32>
    %593 = arith.addf %592, %49 : vector<16x16xf32>
    %cst_184 = arith.constant dense<0xFF800000> : vector<16xf32>
    %594 = vector.multi_reduction <maximumf>, %593, %cst_184 [1] : vector<16x16xf32> to vector<16xf32>
    %595 = vector.shape_cast %594 : vector<16xf32> to vector<16x1xf32>
    %596 = vector.broadcast %595 : vector<16x1xf32> to vector<16x16xf32>
    %597 = arith.subf %593, %596 : vector<16x16xf32>
    %598 = math.exp %597 : vector<16x16xf32>
    %cst_185 = arith.constant dense<0.000000e+00> : vector<16xf32>
    %599 = vector.multi_reduction <add>, %598, %cst_185 [1] : vector<16x16xf32> to vector<16xf32>
    %600 = vector.shape_cast %599 : vector<16xf32> to vector<16x1xf32>
    %601 = tpu.reciprocal %600 {approx = true} : vector<16x1xf32> -> vector<16x1xf32>
    %602 = vector.broadcast %601 : vector<16x1xf32> to vector<16x16xf32>
    %603 = arith.mulf %598, %602 : vector<16x16xf32>
    %604 = vector.extract_strided_slice %557 {offsets = [0, 32], sizes = [16, 16], strides = [1, 1]} : vector<16x64xf32> to vector<16x16xf32>
    %cst_186 = arith.constant dense<0.000000e+00> : vector<16x16xf32>
    %605 = tpu.matmul %603, %604, %cst_186 {dimension_numbers = #tpu.dot_dimension_numbers<[1], [0], [0], [1], [0, 0, 1, 1], [], []>} : vector<16x16xf32>, vector<16x16xf32>, vector<16x16xf32> -> vector<16x16xf32>
    %606 = vector.extract_strided_slice %555 {offsets = [0, 48], sizes = [16, 16], strides = [1, 1]} : vector<16x64xf32> to vector<16x16xf32>
    %607 = vector.extract_strided_slice %556 {offsets = [0, 48], sizes = [16, 16], strides = [1, 1]} : vector<16x64xf32> to vector<16x16xf32>
    %cst_187 = arith.constant dense<0.000000e+00> : vector<16x16xf32>
    %608 = tpu.matmul %606, %607, %cst_187 {dimension_numbers = #tpu.dot_dimension_numbers<[1], [1], [0], [0], [0, 0, 1, 0], [], []>} : vector<16x16xf32>, vector<16x16xf32>, vector<16x16xf32> -> vector<16x16xf32>
    %609 = arith.addf %608, %49 : vector<16x16xf32>
    %cst_188 = arith.constant dense<0xFF800000> : vector<16xf32>
    %610 = vector.multi_reduction <maximumf>, %609, %cst_188 [1] : vector<16x16xf32> to vector<16xf32>
    %611 = vector.shape_cast %610 : vector<16xf32> to vector<16x1xf32>
    %612 = vector.broadcast %611 : vector<16x1xf32> to vector<16x16xf32>
    %613 = arith.subf %609, %612 : vector<16x16xf32>
    %614 = math.exp %613 : vector<16x16xf32>
    %cst_189 = arith.constant dense<0.000000e+00> : vector<16xf32>
    %615 = vector.multi_reduction <add>, %614, %cst_189 [1] : vector<16x16xf32> to vector<16xf32>
    %616 = vector.shape_cast %615 : vector<16xf32> to vector<16x1xf32>
    %617 = tpu.reciprocal %616 {approx = true} : vector<16x1xf32> -> vector<16x1xf32>
    %618 = vector.broadcast %617 : vector<16x1xf32> to vector<16x16xf32>
    %619 = arith.mulf %614, %618 : vector<16x16xf32>
    %620 = vector.extract_strided_slice %557 {offsets = [0, 48], sizes = [16, 16], strides = [1, 1]} : vector<16x64xf32> to vector<16x16xf32>
    %cst_190 = arith.constant dense<0.000000e+00> : vector<16x16xf32>
    %621 = tpu.matmul %619, %620, %cst_190 {dimension_numbers = #tpu.dot_dimension_numbers<[1], [0], [0], [1], [0, 0, 1, 1], [], []>} : vector<16x16xf32>, vector<16x16xf32>, vector<16x16xf32> -> vector<16x16xf32>
    %622 = tpu.concatenate %573, %589, %605, %621 in 1 : vector<16x16xf32>, vector<16x16xf32>, vector<16x16xf32>, vector<16x16xf32> -> vector<16x64xf32>
    %cst_191 = arith.constant dense<0.000000e+00> : vector<16x64xf32>
    %623 = tpu.matmul %622, %548, %cst_191 {dimension_numbers = #tpu.dot_dimension_numbers<[1], [0], [0], [1], [0, 0, 1, 1], [], []>} : vector<16x64xf32>, vector<64x64xf32>, vector<16x64xf32> -> vector<16x64xf32>
    %624 = vector.broadcast %549 : vector<1x64xf32> to vector<16x64xf32>
    %625 = arith.addf %623, %624 : vector<16x64xf32>
    %626 = arith.addf %496, %625 : vector<16x64xf32>
    %627 = vector.extract_strided_slice %392 {offsets = [6, 0], sizes = [1, 64], strides = [1, 1]} : vector<10x64xf32> to vector<1x64xf32>
    %628 = vector.extract_strided_slice %392 {offsets = [7, 0], sizes = [1, 64], strides = [1, 1]} : vector<10x64xf32> to vector<1x64xf32>
    %cst_192 = arith.constant dense<0.000000e+00> : vector<16xf32>
    %629 = vector.multi_reduction <add>, %626, %cst_192 [1] : vector<16x64xf32> to vector<16xf32>
    %630 = vector.shape_cast %629 : vector<16xf32> to vector<16x1xf32>
    %cst_193 = arith.constant 6.400000e+01 : f32
    %631 = vector.broadcast %cst_193 : f32 to vector<16x1xf32>
    %632 = arith.divf %630, %631 : vector<16x1xf32>
    %633 = vector.broadcast %632 : vector<16x1xf32> to vector<16x64xf32>
    %634 = arith.subf %626, %633 : vector<16x64xf32>
    %635 = arith.mulf %634, %634 : vector<16x64xf32>
    %cst_194 = arith.constant dense<0.000000e+00> : vector<16xf32>
    %636 = vector.multi_reduction <add>, %635, %cst_194 [1] : vector<16x64xf32> to vector<16xf32>
    %637 = vector.shape_cast %636 : vector<16xf32> to vector<16x1xf32>
    %cst_195 = arith.constant 6.400000e+01 : f32
    %638 = vector.broadcast %cst_195 : f32 to vector<16x1xf32>
    %639 = arith.divf %637, %638 : vector<16x1xf32>
    %640 = vector.broadcast %632 : vector<16x1xf32> to vector<16x64xf32>
    %641 = arith.subf %626, %640 : vector<16x64xf32>
    %cst_196 = arith.constant 9.99999974E-6 : f32
    %642 = vector.broadcast %cst_196 : f32 to vector<16x1xf32>
    %643 = arith.addf %639, %642 : vector<16x1xf32>
    %644 = math.rsqrt %643 : vector<16x1xf32>
    %645 = vector.broadcast %644 : vector<16x1xf32> to vector<16x64xf32>
    %646 = arith.mulf %641, %645 : vector<16x64xf32>
    %647 = vector.broadcast %627 : vector<1x64xf32> to vector<16x64xf32>
    %648 = arith.mulf %646, %647 : vector<16x64xf32>
    %649 = vector.broadcast %628 : vector<1x64xf32> to vector<16x64xf32>
    %650 = arith.addf %648, %649 : vector<16x64xf32>
    %c0_197 = arith.constant 0 : index
    %c0_198 = arith.constant 0 : index
    %c0_199 = arith.constant 0 : index
    %651 = vector.load %arg13[%c0_197, %c0_198, %c0_199] : memref<2x65x256xf32, #tpu.memory_space<vmem>>, vector<1x65x256xf32>
    %652 = vector.shape_cast %651 : vector<1x65x256xf32> to vector<65x256xf32>
    %c0_200 = arith.constant 0 : index
    %c0_201 = arith.constant 0 : index
    %c0_202 = arith.constant 0 : index
    %653 = vector.load %arg14[%c0_200, %c0_201, %c0_202] : memref<2x257x64xf32, #tpu.memory_space<vmem>>, vector<1x257x64xf32>
    %654 = vector.shape_cast %653 : vector<1x257x64xf32> to vector<257x64xf32>
    %655 = vector.extract_strided_slice %652 {offsets = [0, 0], sizes = [64, 256], strides = [1, 1]} : vector<65x256xf32> to vector<64x256xf32>
    %cst_203 = arith.constant dense<0.000000e+00> : vector<16x256xf32>
    %656 = tpu.matmul %650, %655, %cst_203 {dimension_numbers = #tpu.dot_dimension_numbers<[1], [0], [0], [1], [0, 0, 1, 1], [], []>} : vector<16x64xf32>, vector<64x256xf32>, vector<16x256xf32> -> vector<16x256xf32>
    %657 = vector.extract_strided_slice %652 {offsets = [64, 0], sizes = [1, 256], strides = [1, 1]} : vector<65x256xf32> to vector<1x256xf32>
    %658 = vector.broadcast %657 : vector<1x256xf32> to vector<16x256xf32>
    %659 = arith.addf %656, %658 : vector<16x256xf32>
    %cst_204 = arith.constant 0.000000e+00 : f32
    %660 = vector.broadcast %cst_204 : f32 to vector<16x256xf32>
    %661 = arith.maximumf %659, %660 : vector<16x256xf32>
    %662 = vector.extract_strided_slice %654 {offsets = [0, 0], sizes = [256, 64], strides = [1, 1]} : vector<257x64xf32> to vector<256x64xf32>
    %cst_205 = arith.constant dense<0.000000e+00> : vector<16x64xf32>
    %663 = tpu.matmul %661, %662, %cst_205 {dimension_numbers = #tpu.dot_dimension_numbers<[1], [0], [0], [1], [0, 0, 1, 1], [], []>} : vector<16x256xf32>, vector<256x64xf32>, vector<16x64xf32> -> vector<16x64xf32>
    %664 = vector.extract_strided_slice %654 {offsets = [256, 0], sizes = [1, 64], strides = [1, 1]} : vector<257x64xf32> to vector<1x64xf32>
    %665 = vector.broadcast %664 : vector<1x64xf32> to vector<16x64xf32>
    %666 = arith.addf %663, %665 : vector<16x64xf32>
    %667 = arith.addf %626, %666 : vector<16x64xf32>
    %c1_206 = arith.constant 1 : index
    %c0_207 = arith.constant 0 : index
    %c0_208 = arith.constant 0 : index
    %668 = vector.load %arg10[%c1_206, %c0_207, %c0_208] : memref<2x10x64xf32, #tpu.memory_space<vmem>>, vector<1x10x64xf32>
    %669 = vector.shape_cast %668 : vector<1x10x64xf32> to vector<10x64xf32>
    %670 = vector.extract_strided_slice %669 {offsets = [0, 0], sizes = [1, 64], strides = [1, 1]} : vector<10x64xf32> to vector<1x64xf32>
    %671 = vector.extract_strided_slice %669 {offsets = [1, 0], sizes = [1, 64], strides = [1, 1]} : vector<10x64xf32> to vector<1x64xf32>
    %cst_209 = arith.constant dense<0.000000e+00> : vector<16xf32>
    %672 = vector.multi_reduction <add>, %667, %cst_209 [1] : vector<16x64xf32> to vector<16xf32>
    %673 = vector.shape_cast %672 : vector<16xf32> to vector<16x1xf32>
    %cst_210 = arith.constant 6.400000e+01 : f32
    %674 = vector.broadcast %cst_210 : f32 to vector<16x1xf32>
    %675 = arith.divf %673, %674 : vector<16x1xf32>
    %676 = vector.broadcast %675 : vector<16x1xf32> to vector<16x64xf32>
    %677 = arith.subf %667, %676 : vector<16x64xf32>
    %678 = arith.mulf %677, %677 : vector<16x64xf32>
    %cst_211 = arith.constant dense<0.000000e+00> : vector<16xf32>
    %679 = vector.multi_reduction <add>, %678, %cst_211 [1] : vector<16x64xf32> to vector<16xf32>
    %680 = vector.shape_cast %679 : vector<16xf32> to vector<16x1xf32>
    %cst_212 = arith.constant 6.400000e+01 : f32
    %681 = vector.broadcast %cst_212 : f32 to vector<16x1xf32>
    %682 = arith.divf %680, %681 : vector<16x1xf32>
    %683 = vector.broadcast %675 : vector<16x1xf32> to vector<16x64xf32>
    %684 = arith.subf %667, %683 : vector<16x64xf32>
    %cst_213 = arith.constant 9.99999974E-6 : f32
    %685 = vector.broadcast %cst_213 : f32 to vector<16x1xf32>
    %686 = arith.addf %682, %685 : vector<16x1xf32>
    %687 = math.rsqrt %686 : vector<16x1xf32>
    %688 = vector.broadcast %687 : vector<16x1xf32> to vector<16x64xf32>
    %689 = arith.mulf %684, %688 : vector<16x64xf32>
    %690 = vector.broadcast %670 : vector<1x64xf32> to vector<16x64xf32>
    %691 = arith.mulf %689, %690 : vector<16x64xf32>
    %692 = vector.broadcast %671 : vector<1x64xf32> to vector<16x64xf32>
    %693 = arith.addf %691, %692 : vector<16x64xf32>
    %c2 = arith.constant 2 : index
    %c0_214 = arith.constant 0 : index
    %c0_215 = arith.constant 0 : index
    %694 = vector.load %arg11[%c2, %c0_214, %c0_215] : memref<4x64x192xf32, #tpu.memory_space<vmem>>, vector<1x64x192xf32>
    %695 = vector.shape_cast %694 : vector<1x64x192xf32> to vector<64x192xf32>
    %c2_216 = arith.constant 2 : index
    %c0_217 = arith.constant 0 : index
    %c0_218 = arith.constant 0 : index
    %696 = vector.load %arg12[%c2_216, %c0_217, %c0_218] : memref<4x64x64xf32, #tpu.memory_space<vmem>>, vector<1x64x64xf32>
    %697 = vector.shape_cast %696 : vector<1x64x64xf32> to vector<64x64xf32>
    %698 = vector.extract_strided_slice %669 {offsets = [8, 0], sizes = [1, 64], strides = [1, 1]} : vector<10x64xf32> to vector<1x64xf32>
    %cst_219 = arith.constant dense<0.000000e+00> : vector<16x192xf32>
    %699 = tpu.matmul %693, %695, %cst_219 {dimension_numbers = #tpu.dot_dimension_numbers<[1], [0], [0], [1], [0, 0, 1, 1], [], []>} : vector<16x64xf32>, vector<64x192xf32>, vector<16x192xf32> -> vector<16x192xf32>
    %700 = vector.extract_strided_slice %699 {offsets = [0, 0], sizes = [16, 64], strides = [1, 1]} : vector<16x192xf32> to vector<16x64xf32>
    %cst_220 = arith.constant 1.250000e-01 : f32
    %701 = vector.broadcast %cst_220 : f32 to vector<16x64xf32>
    %702 = arith.mulf %700, %701 : vector<16x64xf32>
    %703 = vector.extract_strided_slice %699 {offsets = [0, 64], sizes = [16, 64], strides = [1, 1]} : vector<16x192xf32> to vector<16x64xf32>
    %704 = vector.extract_strided_slice %699 {offsets = [0, 128], sizes = [16, 64], strides = [1, 1]} : vector<16x192xf32> to vector<16x64xf32>
    %705 = vector.extract_strided_slice %702 {offsets = [0, 0], sizes = [16, 16], strides = [1, 1]} : vector<16x64xf32> to vector<16x16xf32>
    %706 = vector.extract_strided_slice %703 {offsets = [0, 0], sizes = [16, 16], strides = [1, 1]} : vector<16x64xf32> to vector<16x16xf32>
    %cst_221 = arith.constant dense<0.000000e+00> : vector<16x16xf32>
    %707 = tpu.matmul %705, %706, %cst_221 {dimension_numbers = #tpu.dot_dimension_numbers<[1], [1], [0], [0], [0, 0, 1, 0], [], []>} : vector<16x16xf32>, vector<16x16xf32>, vector<16x16xf32> -> vector<16x16xf32>
    %708 = arith.addf %707, %35 : vector<16x16xf32>
    %cst_222 = arith.constant dense<0xFF800000> : vector<16xf32>
    %709 = vector.multi_reduction <maximumf>, %708, %cst_222 [1] : vector<16x16xf32> to vector<16xf32>
    %710 = vector.shape_cast %709 : vector<16xf32> to vector<16x1xf32>
    %711 = vector.broadcast %710 : vector<16x1xf32> to vector<16x16xf32>
    %712 = arith.subf %708, %711 : vector<16x16xf32>
    %713 = math.exp %712 : vector<16x16xf32>
    %cst_223 = arith.constant dense<0.000000e+00> : vector<16xf32>
    %714 = vector.multi_reduction <add>, %713, %cst_223 [1] : vector<16x16xf32> to vector<16xf32>
    %715 = vector.shape_cast %714 : vector<16xf32> to vector<16x1xf32>
    %716 = tpu.reciprocal %715 {approx = true} : vector<16x1xf32> -> vector<16x1xf32>
    %717 = vector.broadcast %716 : vector<16x1xf32> to vector<16x16xf32>
    %718 = arith.mulf %713, %717 : vector<16x16xf32>
    %719 = vector.extract_strided_slice %704 {offsets = [0, 0], sizes = [16, 16], strides = [1, 1]} : vector<16x64xf32> to vector<16x16xf32>
    %cst_224 = arith.constant dense<0.000000e+00> : vector<16x16xf32>
    %720 = tpu.matmul %718, %719, %cst_224 {dimension_numbers = #tpu.dot_dimension_numbers<[1], [0], [0], [1], [0, 0, 1, 1], [], []>} : vector<16x16xf32>, vector<16x16xf32>, vector<16x16xf32> -> vector<16x16xf32>
    %721 = vector.extract_strided_slice %702 {offsets = [0, 16], sizes = [16, 16], strides = [1, 1]} : vector<16x64xf32> to vector<16x16xf32>
    %722 = vector.extract_strided_slice %703 {offsets = [0, 16], sizes = [16, 16], strides = [1, 1]} : vector<16x64xf32> to vector<16x16xf32>
    %cst_225 = arith.constant dense<0.000000e+00> : vector<16x16xf32>
    %723 = tpu.matmul %721, %722, %cst_225 {dimension_numbers = #tpu.dot_dimension_numbers<[1], [1], [0], [0], [0, 0, 1, 0], [], []>} : vector<16x16xf32>, vector<16x16xf32>, vector<16x16xf32> -> vector<16x16xf32>
    %724 = arith.addf %723, %35 : vector<16x16xf32>
    %cst_226 = arith.constant dense<0xFF800000> : vector<16xf32>
    %725 = vector.multi_reduction <maximumf>, %724, %cst_226 [1] : vector<16x16xf32> to vector<16xf32>
    %726 = vector.shape_cast %725 : vector<16xf32> to vector<16x1xf32>
    %727 = vector.broadcast %726 : vector<16x1xf32> to vector<16x16xf32>
    %728 = arith.subf %724, %727 : vector<16x16xf32>
    %729 = math.exp %728 : vector<16x16xf32>
    %cst_227 = arith.constant dense<0.000000e+00> : vector<16xf32>
    %730 = vector.multi_reduction <add>, %729, %cst_227 [1] : vector<16x16xf32> to vector<16xf32>
    %731 = vector.shape_cast %730 : vector<16xf32> to vector<16x1xf32>
    %732 = tpu.reciprocal %731 {approx = true} : vector<16x1xf32> -> vector<16x1xf32>
    %733 = vector.broadcast %732 : vector<16x1xf32> to vector<16x16xf32>
    %734 = arith.mulf %729, %733 : vector<16x16xf32>
    %735 = vector.extract_strided_slice %704 {offsets = [0, 16], sizes = [16, 16], strides = [1, 1]} : vector<16x64xf32> to vector<16x16xf32>
    %cst_228 = arith.constant dense<0.000000e+00> : vector<16x16xf32>
    %736 = tpu.matmul %734, %735, %cst_228 {dimension_numbers = #tpu.dot_dimension_numbers<[1], [0], [0], [1], [0, 0, 1, 1], [], []>} : vector<16x16xf32>, vector<16x16xf32>, vector<16x16xf32> -> vector<16x16xf32>
    %737 = vector.extract_strided_slice %702 {offsets = [0, 32], sizes = [16, 16], strides = [1, 1]} : vector<16x64xf32> to vector<16x16xf32>
    %738 = vector.extract_strided_slice %703 {offsets = [0, 32], sizes = [16, 16], strides = [1, 1]} : vector<16x64xf32> to vector<16x16xf32>
    %cst_229 = arith.constant dense<0.000000e+00> : vector<16x16xf32>
    %739 = tpu.matmul %737, %738, %cst_229 {dimension_numbers = #tpu.dot_dimension_numbers<[1], [1], [0], [0], [0, 0, 1, 0], [], []>} : vector<16x16xf32>, vector<16x16xf32>, vector<16x16xf32> -> vector<16x16xf32>
    %740 = arith.addf %739, %35 : vector<16x16xf32>
    %cst_230 = arith.constant dense<0xFF800000> : vector<16xf32>
    %741 = vector.multi_reduction <maximumf>, %740, %cst_230 [1] : vector<16x16xf32> to vector<16xf32>
    %742 = vector.shape_cast %741 : vector<16xf32> to vector<16x1xf32>
    %743 = vector.broadcast %742 : vector<16x1xf32> to vector<16x16xf32>
    %744 = arith.subf %740, %743 : vector<16x16xf32>
    %745 = math.exp %744 : vector<16x16xf32>
    %cst_231 = arith.constant dense<0.000000e+00> : vector<16xf32>
    %746 = vector.multi_reduction <add>, %745, %cst_231 [1] : vector<16x16xf32> to vector<16xf32>
    %747 = vector.shape_cast %746 : vector<16xf32> to vector<16x1xf32>
    %748 = tpu.reciprocal %747 {approx = true} : vector<16x1xf32> -> vector<16x1xf32>
    %749 = vector.broadcast %748 : vector<16x1xf32> to vector<16x16xf32>
    %750 = arith.mulf %745, %749 : vector<16x16xf32>
    %751 = vector.extract_strided_slice %704 {offsets = [0, 32], sizes = [16, 16], strides = [1, 1]} : vector<16x64xf32> to vector<16x16xf32>
    %cst_232 = arith.constant dense<0.000000e+00> : vector<16x16xf32>
    %752 = tpu.matmul %750, %751, %cst_232 {dimension_numbers = #tpu.dot_dimension_numbers<[1], [0], [0], [1], [0, 0, 1, 1], [], []>} : vector<16x16xf32>, vector<16x16xf32>, vector<16x16xf32> -> vector<16x16xf32>
    %753 = vector.extract_strided_slice %702 {offsets = [0, 48], sizes = [16, 16], strides = [1, 1]} : vector<16x64xf32> to vector<16x16xf32>
    %754 = vector.extract_strided_slice %703 {offsets = [0, 48], sizes = [16, 16], strides = [1, 1]} : vector<16x64xf32> to vector<16x16xf32>
    %cst_233 = arith.constant dense<0.000000e+00> : vector<16x16xf32>
    %755 = tpu.matmul %753, %754, %cst_233 {dimension_numbers = #tpu.dot_dimension_numbers<[1], [1], [0], [0], [0, 0, 1, 0], [], []>} : vector<16x16xf32>, vector<16x16xf32>, vector<16x16xf32> -> vector<16x16xf32>
    %756 = arith.addf %755, %35 : vector<16x16xf32>
    %cst_234 = arith.constant dense<0xFF800000> : vector<16xf32>
    %757 = vector.multi_reduction <maximumf>, %756, %cst_234 [1] : vector<16x16xf32> to vector<16xf32>
    %758 = vector.shape_cast %757 : vector<16xf32> to vector<16x1xf32>
    %759 = vector.broadcast %758 : vector<16x1xf32> to vector<16x16xf32>
    %760 = arith.subf %756, %759 : vector<16x16xf32>
    %761 = math.exp %760 : vector<16x16xf32>
    %cst_235 = arith.constant dense<0.000000e+00> : vector<16xf32>
    %762 = vector.multi_reduction <add>, %761, %cst_235 [1] : vector<16x16xf32> to vector<16xf32>
    %763 = vector.shape_cast %762 : vector<16xf32> to vector<16x1xf32>
    %764 = tpu.reciprocal %763 {approx = true} : vector<16x1xf32> -> vector<16x1xf32>
    %765 = vector.broadcast %764 : vector<16x1xf32> to vector<16x16xf32>
    %766 = arith.mulf %761, %765 : vector<16x16xf32>
    %767 = vector.extract_strided_slice %704 {offsets = [0, 48], sizes = [16, 16], strides = [1, 1]} : vector<16x64xf32> to vector<16x16xf32>
    %cst_236 = arith.constant dense<0.000000e+00> : vector<16x16xf32>
    %768 = tpu.matmul %766, %767, %cst_236 {dimension_numbers = #tpu.dot_dimension_numbers<[1], [0], [0], [1], [0, 0, 1, 1], [], []>} : vector<16x16xf32>, vector<16x16xf32>, vector<16x16xf32> -> vector<16x16xf32>
    %769 = tpu.concatenate %720, %736, %752, %768 in 1 : vector<16x16xf32>, vector<16x16xf32>, vector<16x16xf32>, vector<16x16xf32> -> vector<16x64xf32>
    %cst_237 = arith.constant dense<0.000000e+00> : vector<16x64xf32>
    %770 = tpu.matmul %769, %697, %cst_237 {dimension_numbers = #tpu.dot_dimension_numbers<[1], [0], [0], [1], [0, 0, 1, 1], [], []>} : vector<16x64xf32>, vector<64x64xf32>, vector<16x64xf32> -> vector<16x64xf32>
    %771 = vector.broadcast %698 : vector<1x64xf32> to vector<16x64xf32>
    %772 = arith.addf %770, %771 : vector<16x64xf32>
    %773 = arith.addf %667, %772 : vector<16x64xf32>
    %774 = vector.extract_strided_slice %669 {offsets = [4, 0], sizes = [1, 64], strides = [1, 1]} : vector<10x64xf32> to vector<1x64xf32>
    %775 = vector.extract_strided_slice %669 {offsets = [5, 0], sizes = [1, 64], strides = [1, 1]} : vector<10x64xf32> to vector<1x64xf32>
    %cst_238 = arith.constant dense<0.000000e+00> : vector<16xf32>
    %776 = vector.multi_reduction <add>, %773, %cst_238 [1] : vector<16x64xf32> to vector<16xf32>
    %777 = vector.shape_cast %776 : vector<16xf32> to vector<16x1xf32>
    %cst_239 = arith.constant 6.400000e+01 : f32
    %778 = vector.broadcast %cst_239 : f32 to vector<16x1xf32>
    %779 = arith.divf %777, %778 : vector<16x1xf32>
    %780 = vector.broadcast %779 : vector<16x1xf32> to vector<16x64xf32>
    %781 = arith.subf %773, %780 : vector<16x64xf32>
    %782 = arith.mulf %781, %781 : vector<16x64xf32>
    %cst_240 = arith.constant dense<0.000000e+00> : vector<16xf32>
    %783 = vector.multi_reduction <add>, %782, %cst_240 [1] : vector<16x64xf32> to vector<16xf32>
    %784 = vector.shape_cast %783 : vector<16xf32> to vector<16x1xf32>
    %cst_241 = arith.constant 6.400000e+01 : f32
    %785 = vector.broadcast %cst_241 : f32 to vector<16x1xf32>
    %786 = arith.divf %784, %785 : vector<16x1xf32>
    %787 = vector.broadcast %779 : vector<16x1xf32> to vector<16x64xf32>
    %788 = arith.subf %773, %787 : vector<16x64xf32>
    %cst_242 = arith.constant 9.99999974E-6 : f32
    %789 = vector.broadcast %cst_242 : f32 to vector<16x1xf32>
    %790 = arith.addf %786, %789 : vector<16x1xf32>
    %791 = math.rsqrt %790 : vector<16x1xf32>
    %792 = vector.broadcast %791 : vector<16x1xf32> to vector<16x64xf32>
    %793 = arith.mulf %788, %792 : vector<16x64xf32>
    %794 = vector.broadcast %774 : vector<1x64xf32> to vector<16x64xf32>
    %795 = arith.mulf %793, %794 : vector<16x64xf32>
    %796 = vector.broadcast %775 : vector<1x64xf32> to vector<16x64xf32>
    %797 = arith.addf %795, %796 : vector<16x64xf32>
    %798 = vector.extract_strided_slice %669 {offsets = [2, 0], sizes = [1, 64], strides = [1, 1]} : vector<10x64xf32> to vector<1x64xf32>
    %799 = vector.extract_strided_slice %669 {offsets = [3, 0], sizes = [1, 64], strides = [1, 1]} : vector<10x64xf32> to vector<1x64xf32>
    %cst_243 = arith.constant dense<0.000000e+00> : vector<16xf32>
    %800 = vector.multi_reduction <add>, %390, %cst_243 [1] : vector<16x64xf32> to vector<16xf32>
    %801 = vector.shape_cast %800 : vector<16xf32> to vector<16x1xf32>
    %cst_244 = arith.constant 6.400000e+01 : f32
    %802 = vector.broadcast %cst_244 : f32 to vector<16x1xf32>
    %803 = arith.divf %801, %802 : vector<16x1xf32>
    %804 = vector.broadcast %803 : vector<16x1xf32> to vector<16x64xf32>
    %805 = arith.subf %390, %804 : vector<16x64xf32>
    %806 = arith.mulf %805, %805 : vector<16x64xf32>
    %cst_245 = arith.constant dense<0.000000e+00> : vector<16xf32>
    %807 = vector.multi_reduction <add>, %806, %cst_245 [1] : vector<16x64xf32> to vector<16xf32>
    %808 = vector.shape_cast %807 : vector<16xf32> to vector<16x1xf32>
    %cst_246 = arith.constant 6.400000e+01 : f32
    %809 = vector.broadcast %cst_246 : f32 to vector<16x1xf32>
    %810 = arith.divf %808, %809 : vector<16x1xf32>
    %811 = vector.broadcast %803 : vector<16x1xf32> to vector<16x64xf32>
    %812 = arith.subf %390, %811 : vector<16x64xf32>
    %cst_247 = arith.constant 9.99999974E-6 : f32
    %813 = vector.broadcast %cst_247 : f32 to vector<16x1xf32>
    %814 = arith.addf %810, %813 : vector<16x1xf32>
    %815 = math.rsqrt %814 : vector<16x1xf32>
    %816 = vector.broadcast %815 : vector<16x1xf32> to vector<16x64xf32>
    %817 = arith.mulf %812, %816 : vector<16x64xf32>
    %818 = vector.broadcast %798 : vector<1x64xf32> to vector<16x64xf32>
    %819 = arith.mulf %817, %818 : vector<16x64xf32>
    %820 = vector.broadcast %799 : vector<1x64xf32> to vector<16x64xf32>
    %821 = arith.addf %819, %820 : vector<16x64xf32>
    %c3 = arith.constant 3 : index
    %c0_248 = arith.constant 0 : index
    %c0_249 = arith.constant 0 : index
    %822 = vector.load %arg11[%c3, %c0_248, %c0_249] : memref<4x64x192xf32, #tpu.memory_space<vmem>>, vector<1x64x192xf32>
    %823 = vector.shape_cast %822 : vector<1x64x192xf32> to vector<64x192xf32>
    %c3_250 = arith.constant 3 : index
    %c0_251 = arith.constant 0 : index
    %c0_252 = arith.constant 0 : index
    %824 = vector.load %arg12[%c3_250, %c0_251, %c0_252] : memref<4x64x64xf32, #tpu.memory_space<vmem>>, vector<1x64x64xf32>
    %825 = vector.shape_cast %824 : vector<1x64x64xf32> to vector<64x64xf32>
    %826 = vector.extract_strided_slice %669 {offsets = [9, 0], sizes = [1, 64], strides = [1, 1]} : vector<10x64xf32> to vector<1x64xf32>
    %827 = vector.extract_strided_slice %823 {offsets = [0, 0], sizes = [64, 128], strides = [1, 1]} : vector<64x192xf32> to vector<64x128xf32>
    %cst_253 = arith.constant dense<0.000000e+00> : vector<16x128xf32>
    %828 = tpu.matmul %821, %827, %cst_253 {dimension_numbers = #tpu.dot_dimension_numbers<[1], [0], [0], [1], [0, 0, 1, 1], [], []>} : vector<16x64xf32>, vector<64x128xf32>, vector<16x128xf32> -> vector<16x128xf32>
    %829 = vector.extract_strided_slice %823 {offsets = [0, 128], sizes = [64, 64], strides = [1, 1]} : vector<64x192xf32> to vector<64x64xf32>
    %cst_254 = arith.constant dense<0.000000e+00> : vector<16x64xf32>
    %830 = tpu.matmul %797, %829, %cst_254 {dimension_numbers = #tpu.dot_dimension_numbers<[1], [0], [0], [1], [0, 0, 1, 1], [], []>} : vector<16x64xf32>, vector<64x64xf32>, vector<16x64xf32> -> vector<16x64xf32>
    %cst_255 = arith.constant 1.250000e-01 : f32
    %831 = vector.broadcast %cst_255 : f32 to vector<16x64xf32>
    %832 = arith.mulf %830, %831 : vector<16x64xf32>
    %833 = vector.extract_strided_slice %828 {offsets = [0, 0], sizes = [16, 64], strides = [1, 1]} : vector<16x128xf32> to vector<16x64xf32>
    %834 = vector.extract_strided_slice %828 {offsets = [0, 64], sizes = [16, 64], strides = [1, 1]} : vector<16x128xf32> to vector<16x64xf32>
    %835 = vector.extract_strided_slice %832 {offsets = [0, 0], sizes = [16, 16], strides = [1, 1]} : vector<16x64xf32> to vector<16x16xf32>
    %836 = vector.extract_strided_slice %833 {offsets = [0, 0], sizes = [16, 16], strides = [1, 1]} : vector<16x64xf32> to vector<16x16xf32>
    %cst_256 = arith.constant dense<0.000000e+00> : vector<16x16xf32>
    %837 = tpu.matmul %835, %836, %cst_256 {dimension_numbers = #tpu.dot_dimension_numbers<[1], [1], [0], [0], [0, 0, 1, 0], [], []>} : vector<16x16xf32>, vector<16x16xf32>, vector<16x16xf32> -> vector<16x16xf32>
    %838 = arith.addf %837, %49 : vector<16x16xf32>
    %cst_257 = arith.constant dense<0xFF800000> : vector<16xf32>
    %839 = vector.multi_reduction <maximumf>, %838, %cst_257 [1] : vector<16x16xf32> to vector<16xf32>
    %840 = vector.shape_cast %839 : vector<16xf32> to vector<16x1xf32>
    %841 = vector.broadcast %840 : vector<16x1xf32> to vector<16x16xf32>
    %842 = arith.subf %838, %841 : vector<16x16xf32>
    %843 = math.exp %842 : vector<16x16xf32>
    %cst_258 = arith.constant dense<0.000000e+00> : vector<16xf32>
    %844 = vector.multi_reduction <add>, %843, %cst_258 [1] : vector<16x16xf32> to vector<16xf32>
    %845 = vector.shape_cast %844 : vector<16xf32> to vector<16x1xf32>
    %846 = tpu.reciprocal %845 {approx = true} : vector<16x1xf32> -> vector<16x1xf32>
    %847 = vector.broadcast %846 : vector<16x1xf32> to vector<16x16xf32>
    %848 = arith.mulf %843, %847 : vector<16x16xf32>
    %849 = vector.extract_strided_slice %834 {offsets = [0, 0], sizes = [16, 16], strides = [1, 1]} : vector<16x64xf32> to vector<16x16xf32>
    %cst_259 = arith.constant dense<0.000000e+00> : vector<16x16xf32>
    %850 = tpu.matmul %848, %849, %cst_259 {dimension_numbers = #tpu.dot_dimension_numbers<[1], [0], [0], [1], [0, 0, 1, 1], [], []>} : vector<16x16xf32>, vector<16x16xf32>, vector<16x16xf32> -> vector<16x16xf32>
    %851 = vector.extract_strided_slice %832 {offsets = [0, 16], sizes = [16, 16], strides = [1, 1]} : vector<16x64xf32> to vector<16x16xf32>
    %852 = vector.extract_strided_slice %833 {offsets = [0, 16], sizes = [16, 16], strides = [1, 1]} : vector<16x64xf32> to vector<16x16xf32>
    %cst_260 = arith.constant dense<0.000000e+00> : vector<16x16xf32>
    %853 = tpu.matmul %851, %852, %cst_260 {dimension_numbers = #tpu.dot_dimension_numbers<[1], [1], [0], [0], [0, 0, 1, 0], [], []>} : vector<16x16xf32>, vector<16x16xf32>, vector<16x16xf32> -> vector<16x16xf32>
    %854 = arith.addf %853, %49 : vector<16x16xf32>
    %cst_261 = arith.constant dense<0xFF800000> : vector<16xf32>
    %855 = vector.multi_reduction <maximumf>, %854, %cst_261 [1] : vector<16x16xf32> to vector<16xf32>
    %856 = vector.shape_cast %855 : vector<16xf32> to vector<16x1xf32>
    %857 = vector.broadcast %856 : vector<16x1xf32> to vector<16x16xf32>
    %858 = arith.subf %854, %857 : vector<16x16xf32>
    %859 = math.exp %858 : vector<16x16xf32>
    %cst_262 = arith.constant dense<0.000000e+00> : vector<16xf32>
    %860 = vector.multi_reduction <add>, %859, %cst_262 [1] : vector<16x16xf32> to vector<16xf32>
    %861 = vector.shape_cast %860 : vector<16xf32> to vector<16x1xf32>
    %862 = tpu.reciprocal %861 {approx = true} : vector<16x1xf32> -> vector<16x1xf32>
    %863 = vector.broadcast %862 : vector<16x1xf32> to vector<16x16xf32>
    %864 = arith.mulf %859, %863 : vector<16x16xf32>
    %865 = vector.extract_strided_slice %834 {offsets = [0, 16], sizes = [16, 16], strides = [1, 1]} : vector<16x64xf32> to vector<16x16xf32>
    %cst_263 = arith.constant dense<0.000000e+00> : vector<16x16xf32>
    %866 = tpu.matmul %864, %865, %cst_263 {dimension_numbers = #tpu.dot_dimension_numbers<[1], [0], [0], [1], [0, 0, 1, 1], [], []>} : vector<16x16xf32>, vector<16x16xf32>, vector<16x16xf32> -> vector<16x16xf32>
    %867 = vector.extract_strided_slice %832 {offsets = [0, 32], sizes = [16, 16], strides = [1, 1]} : vector<16x64xf32> to vector<16x16xf32>
    %868 = vector.extract_strided_slice %833 {offsets = [0, 32], sizes = [16, 16], strides = [1, 1]} : vector<16x64xf32> to vector<16x16xf32>
    %cst_264 = arith.constant dense<0.000000e+00> : vector<16x16xf32>
    %869 = tpu.matmul %867, %868, %cst_264 {dimension_numbers = #tpu.dot_dimension_numbers<[1], [1], [0], [0], [0, 0, 1, 0], [], []>} : vector<16x16xf32>, vector<16x16xf32>, vector<16x16xf32> -> vector<16x16xf32>
    %870 = arith.addf %869, %49 : vector<16x16xf32>
    %cst_265 = arith.constant dense<0xFF800000> : vector<16xf32>
    %871 = vector.multi_reduction <maximumf>, %870, %cst_265 [1] : vector<16x16xf32> to vector<16xf32>
    %872 = vector.shape_cast %871 : vector<16xf32> to vector<16x1xf32>
    %873 = vector.broadcast %872 : vector<16x1xf32> to vector<16x16xf32>
    %874 = arith.subf %870, %873 : vector<16x16xf32>
    %875 = math.exp %874 : vector<16x16xf32>
    %cst_266 = arith.constant dense<0.000000e+00> : vector<16xf32>
    %876 = vector.multi_reduction <add>, %875, %cst_266 [1] : vector<16x16xf32> to vector<16xf32>
    %877 = vector.shape_cast %876 : vector<16xf32> to vector<16x1xf32>
    %878 = tpu.reciprocal %877 {approx = true} : vector<16x1xf32> -> vector<16x1xf32>
    %879 = vector.broadcast %878 : vector<16x1xf32> to vector<16x16xf32>
    %880 = arith.mulf %875, %879 : vector<16x16xf32>
    %881 = vector.extract_strided_slice %834 {offsets = [0, 32], sizes = [16, 16], strides = [1, 1]} : vector<16x64xf32> to vector<16x16xf32>
    %cst_267 = arith.constant dense<0.000000e+00> : vector<16x16xf32>
    %882 = tpu.matmul %880, %881, %cst_267 {dimension_numbers = #tpu.dot_dimension_numbers<[1], [0], [0], [1], [0, 0, 1, 1], [], []>} : vector<16x16xf32>, vector<16x16xf32>, vector<16x16xf32> -> vector<16x16xf32>
    %883 = vector.extract_strided_slice %832 {offsets = [0, 48], sizes = [16, 16], strides = [1, 1]} : vector<16x64xf32> to vector<16x16xf32>
    %884 = vector.extract_strided_slice %833 {offsets = [0, 48], sizes = [16, 16], strides = [1, 1]} : vector<16x64xf32> to vector<16x16xf32>
    %cst_268 = arith.constant dense<0.000000e+00> : vector<16x16xf32>
    %885 = tpu.matmul %883, %884, %cst_268 {dimension_numbers = #tpu.dot_dimension_numbers<[1], [1], [0], [0], [0, 0, 1, 0], [], []>} : vector<16x16xf32>, vector<16x16xf32>, vector<16x16xf32> -> vector<16x16xf32>
    %886 = arith.addf %885, %49 : vector<16x16xf32>
    %cst_269 = arith.constant dense<0xFF800000> : vector<16xf32>
    %887 = vector.multi_reduction <maximumf>, %886, %cst_269 [1] : vector<16x16xf32> to vector<16xf32>
    %888 = vector.shape_cast %887 : vector<16xf32> to vector<16x1xf32>
    %889 = vector.broadcast %888 : vector<16x1xf32> to vector<16x16xf32>
    %890 = arith.subf %886, %889 : vector<16x16xf32>
    %891 = math.exp %890 : vector<16x16xf32>
    %cst_270 = arith.constant dense<0.000000e+00> : vector<16xf32>
    %892 = vector.multi_reduction <add>, %891, %cst_270 [1] : vector<16x16xf32> to vector<16xf32>
    %893 = vector.shape_cast %892 : vector<16xf32> to vector<16x1xf32>
    %894 = tpu.reciprocal %893 {approx = true} : vector<16x1xf32> -> vector<16x1xf32>
    %895 = vector.broadcast %894 : vector<16x1xf32> to vector<16x16xf32>
    %896 = arith.mulf %891, %895 : vector<16x16xf32>
    %897 = vector.extract_strided_slice %834 {offsets = [0, 48], sizes = [16, 16], strides = [1, 1]} : vector<16x64xf32> to vector<16x16xf32>
    %cst_271 = arith.constant dense<0.000000e+00> : vector<16x16xf32>
    %898 = tpu.matmul %896, %897, %cst_271 {dimension_numbers = #tpu.dot_dimension_numbers<[1], [0], [0], [1], [0, 0, 1, 1], [], []>} : vector<16x16xf32>, vector<16x16xf32>, vector<16x16xf32> -> vector<16x16xf32>
    %899 = tpu.concatenate %850, %866, %882, %898 in 1 : vector<16x16xf32>, vector<16x16xf32>, vector<16x16xf32>, vector<16x16xf32> -> vector<16x64xf32>
    %cst_272 = arith.constant dense<0.000000e+00> : vector<16x64xf32>
    %900 = tpu.matmul %899, %825, %cst_272 {dimension_numbers = #tpu.dot_dimension_numbers<[1], [0], [0], [1], [0, 0, 1, 1], [], []>} : vector<16x64xf32>, vector<64x64xf32>, vector<16x64xf32> -> vector<16x64xf32>
    %901 = vector.broadcast %826 : vector<1x64xf32> to vector<16x64xf32>
    %902 = arith.addf %900, %901 : vector<16x64xf32>
    %903 = arith.addf %773, %902 : vector<16x64xf32>
    %904 = vector.extract_strided_slice %669 {offsets = [6, 0], sizes = [1, 64], strides = [1, 1]} : vector<10x64xf32> to vector<1x64xf32>
    %905 = vector.extract_strided_slice %669 {offsets = [7, 0], sizes = [1, 64], strides = [1, 1]} : vector<10x64xf32> to vector<1x64xf32>
    %cst_273 = arith.constant dense<0.000000e+00> : vector<16xf32>
    %906 = vector.multi_reduction <add>, %903, %cst_273 [1] : vector<16x64xf32> to vector<16xf32>
    %907 = vector.shape_cast %906 : vector<16xf32> to vector<16x1xf32>
    %cst_274 = arith.constant 6.400000e+01 : f32
    %908 = vector.broadcast %cst_274 : f32 to vector<16x1xf32>
    %909 = arith.divf %907, %908 : vector<16x1xf32>
    %910 = vector.broadcast %909 : vector<16x1xf32> to vector<16x64xf32>
    %911 = arith.subf %903, %910 : vector<16x64xf32>
    %912 = arith.mulf %911, %911 : vector<16x64xf32>
    %cst_275 = arith.constant dense<0.000000e+00> : vector<16xf32>
    %913 = vector.multi_reduction <add>, %912, %cst_275 [1] : vector<16x64xf32> to vector<16xf32>
    %914 = vector.shape_cast %913 : vector<16xf32> to vector<16x1xf32>
    %cst_276 = arith.constant 6.400000e+01 : f32
    %915 = vector.broadcast %cst_276 : f32 to vector<16x1xf32>
    %916 = arith.divf %914, %915 : vector<16x1xf32>
    %917 = vector.broadcast %909 : vector<16x1xf32> to vector<16x64xf32>
    %918 = arith.subf %903, %917 : vector<16x64xf32>
    %cst_277 = arith.constant 9.99999974E-6 : f32
    %919 = vector.broadcast %cst_277 : f32 to vector<16x1xf32>
    %920 = arith.addf %916, %919 : vector<16x1xf32>
    %921 = math.rsqrt %920 : vector<16x1xf32>
    %922 = vector.broadcast %921 : vector<16x1xf32> to vector<16x64xf32>
    %923 = arith.mulf %918, %922 : vector<16x64xf32>
    %924 = vector.broadcast %904 : vector<1x64xf32> to vector<16x64xf32>
    %925 = arith.mulf %923, %924 : vector<16x64xf32>
    %926 = vector.broadcast %905 : vector<1x64xf32> to vector<16x64xf32>
    %927 = arith.addf %925, %926 : vector<16x64xf32>
    %c1_278 = arith.constant 1 : index
    %c0_279 = arith.constant 0 : index
    %c0_280 = arith.constant 0 : index
    %928 = vector.load %arg13[%c1_278, %c0_279, %c0_280] : memref<2x65x256xf32, #tpu.memory_space<vmem>>, vector<1x65x256xf32>
    %929 = vector.shape_cast %928 : vector<1x65x256xf32> to vector<65x256xf32>
    %c1_281 = arith.constant 1 : index
    %c0_282 = arith.constant 0 : index
    %c0_283 = arith.constant 0 : index
    %930 = vector.load %arg14[%c1_281, %c0_282, %c0_283] : memref<2x257x64xf32, #tpu.memory_space<vmem>>, vector<1x257x64xf32>
    %931 = vector.shape_cast %930 : vector<1x257x64xf32> to vector<257x64xf32>
    %932 = vector.extract_strided_slice %929 {offsets = [0, 0], sizes = [64, 256], strides = [1, 1]} : vector<65x256xf32> to vector<64x256xf32>
    %cst_284 = arith.constant dense<0.000000e+00> : vector<16x256xf32>
    %933 = tpu.matmul %927, %932, %cst_284 {dimension_numbers = #tpu.dot_dimension_numbers<[1], [0], [0], [1], [0, 0, 1, 1], [], []>} : vector<16x64xf32>, vector<64x256xf32>, vector<16x256xf32> -> vector<16x256xf32>
    %934 = vector.extract_strided_slice %929 {offsets = [64, 0], sizes = [1, 256], strides = [1, 1]} : vector<65x256xf32> to vector<1x256xf32>
    %935 = vector.broadcast %934 : vector<1x256xf32> to vector<16x256xf32>
    %936 = arith.addf %933, %935 : vector<16x256xf32>
    %cst_285 = arith.constant 0.000000e+00 : f32
    %937 = vector.broadcast %cst_285 : f32 to vector<16x256xf32>
    %938 = arith.maximumf %936, %937 : vector<16x256xf32>
    %939 = vector.extract_strided_slice %931 {offsets = [0, 0], sizes = [256, 64], strides = [1, 1]} : vector<257x64xf32> to vector<256x64xf32>
    %cst_286 = arith.constant dense<0.000000e+00> : vector<16x64xf32>
    %940 = tpu.matmul %938, %939, %cst_286 {dimension_numbers = #tpu.dot_dimension_numbers<[1], [0], [0], [1], [0, 0, 1, 1], [], []>} : vector<16x256xf32>, vector<256x64xf32>, vector<16x64xf32> -> vector<16x64xf32>
    %941 = vector.extract_strided_slice %931 {offsets = [256, 0], sizes = [1, 64], strides = [1, 1]} : vector<257x64xf32> to vector<1x64xf32>
    %942 = vector.broadcast %941 : vector<1x64xf32> to vector<16x64xf32>
    %943 = arith.addf %940, %942 : vector<16x64xf32>
    %944 = arith.addf %903, %943 : vector<16x64xf32>
    %c0_287 = arith.constant 0 : index
    %c0_288 = arith.constant 0 : index
    %945 = vector.load %arg15[%c0_287, %c0_288] : memref<2x64xf32, #tpu.memory_space<vmem>>, vector<2x64xf32>
    %946 = vector.extract_strided_slice %945 {offsets = [0, 0], sizes = [1, 64], strides = [1, 1]} : vector<2x64xf32> to vector<1x64xf32>
    %947 = vector.extract_strided_slice %945 {offsets = [1, 0], sizes = [1, 64], strides = [1, 1]} : vector<2x64xf32> to vector<1x64xf32>
    %cst_289 = arith.constant dense<0.000000e+00> : vector<16xf32>
    %948 = vector.multi_reduction <add>, %944, %cst_289 [1] : vector<16x64xf32> to vector<16xf32>
    %949 = vector.shape_cast %948 : vector<16xf32> to vector<16x1xf32>
    %cst_290 = arith.constant 6.400000e+01 : f32
    %950 = vector.broadcast %cst_290 : f32 to vector<16x1xf32>
    %951 = arith.divf %949, %950 : vector<16x1xf32>
    %952 = vector.broadcast %951 : vector<16x1xf32> to vector<16x64xf32>
    %953 = arith.subf %944, %952 : vector<16x64xf32>
    %954 = arith.mulf %953, %953 : vector<16x64xf32>
    %cst_291 = arith.constant dense<0.000000e+00> : vector<16xf32>
    %955 = vector.multi_reduction <add>, %954, %cst_291 [1] : vector<16x64xf32> to vector<16xf32>
    %956 = vector.shape_cast %955 : vector<16xf32> to vector<16x1xf32>
    %cst_292 = arith.constant 6.400000e+01 : f32
    %957 = vector.broadcast %cst_292 : f32 to vector<16x1xf32>
    %958 = arith.divf %956, %957 : vector<16x1xf32>
    %959 = vector.broadcast %951 : vector<16x1xf32> to vector<16x64xf32>
    %960 = arith.subf %944, %959 : vector<16x64xf32>
    %cst_293 = arith.constant 9.99999974E-6 : f32
    %961 = vector.broadcast %cst_293 : f32 to vector<16x1xf32>
    %962 = arith.addf %958, %961 : vector<16x1xf32>
    %963 = math.rsqrt %962 : vector<16x1xf32>
    %964 = vector.broadcast %963 : vector<16x1xf32> to vector<16x64xf32>
    %965 = arith.mulf %960, %964 : vector<16x64xf32>
    %966 = vector.broadcast %946 : vector<1x64xf32> to vector<16x64xf32>
    %967 = arith.mulf %965, %966 : vector<16x64xf32>
    %968 = vector.broadcast %947 : vector<1x64xf32> to vector<16x64xf32>
    %969 = arith.addf %967, %968 : vector<16x64xf32>
    %c0_294 = arith.constant 0 : index
    %c0_295 = arith.constant 0 : index
    %970 = vector.load %arg16[%c0_294, %c0_295] : memref<65x128xf32, #tpu.memory_space<vmem>>, vector<65x128xf32>
    %971 = vector.extract_strided_slice %970 {offsets = [0, 0], sizes = [64, 128], strides = [1, 1]} : vector<65x128xf32> to vector<64x128xf32>
    %cst_296 = arith.constant dense<0.000000e+00> : vector<16x128xf32>
    %972 = tpu.matmul %969, %971, %cst_296 {dimension_numbers = #tpu.dot_dimension_numbers<[1], [0], [0], [1], [0, 0, 1, 1], [], []>} : vector<16x64xf32>, vector<64x128xf32>, vector<16x128xf32> -> vector<16x128xf32>
    %973 = vector.extract_strided_slice %970 {offsets = [64, 0], sizes = [1, 128], strides = [1, 1]} : vector<65x128xf32> to vector<1x128xf32>
    %974 = vector.broadcast %973 : vector<1x128xf32> to vector<16x128xf32>
    %975 = arith.addf %972, %974 : vector<16x128xf32>
    %c0_297 = arith.constant 0 : index
    %c0_298 = arith.constant 0 : index
    %976 = vector.load %arg17[%c0_297, %c0_298] : memref<16x128xf32, #tpu.memory_space<vmem>>, vector<16x128xf32>
    tpu.vector_store %arg17[%c0_297, %c0_298], %975 {strides = array<i32>} : memref<16x128xf32, #tpu.memory_space<vmem>>, vector<16x128xf32>,
    %cst_299 = arith.constant dense<0xFF800000> : vector<16xf32>
    %977 = vector.multi_reduction <maximumf>, %975, %cst_299 [1] : vector<16x128xf32> to vector<16xf32>
    %978 = vector.shape_cast %977 : vector<16xf32> to vector<16x1xf32>
    %979 = vector.broadcast %978 : vector<16x1xf32> to vector<16x128xf32>
    %980 = arith.subf %975, %979 : vector<16x128xf32>
    %981 = math.exp %980 : vector<16x128xf32>
    %cst_300 = arith.constant dense<0.000000e+00> : vector<16xf32>
    %982 = vector.multi_reduction <add>, %981, %cst_300 [1] : vector<16x128xf32> to vector<16xf32>
    %983 = vector.shape_cast %982 : vector<16xf32> to vector<16x1xf32>
    %984 = math.log %983 : vector<16x1xf32>
    %985 = arith.addf %978, %984 : vector<16x1xf32>
    %986 = tpu.iota {dimensions = array<i32: 1>} : vector<16x128xi32>
    %c0_301 = arith.constant 0 : index
    %c1_302 = arith.constant 1 : index
    %987 = vector.load %arg1[%c0_301, %c1_302] : memref<16x2xi32, #tpu.memory_space<vmem>>, vector<16x1xi32>
    %988 = vector.broadcast %987 : vector<16x1xi32> to vector<16x128xi32>
    %989 = arith.cmpi eq, %986, %988 : vector<16x128xi32>
    %cst_303 = arith.constant 0.000000e+00 : f32
    %990 = vector.broadcast %cst_303 : f32 to vector<16x128xf32>
    %991 = arith.select %989, %975, %990 : vector<16x128xi1>, vector<16x128xf32>
    %cst_304 = arith.constant dense<0.000000e+00> : vector<16xf32>
    %992 = vector.multi_reduction <add>, %991, %cst_304 [1] : vector<16x128xf32> to vector<16xf32>
    %993 = vector.shape_cast %992 : vector<16xf32> to vector<16x1xf32>
    %994 = arith.subf %985, %993 : vector<16x1xf32>
    %995 = vector.shape_cast %994 : vector<16x1xf32> to vector<1x16x1xf32>
    %cst_305 = arith.constant dense<0.000000e+00> : vector<1xf32>
    %996 = vector.multi_reduction <add>, %995, %cst_305 [1, 2] : vector<1x16x1xf32> to vector<1xf32>
    %997 = vector.shape_cast %996 : vector<1xf32> to vector<1x1x1xf32>
    %998 = vector.extract %997[0, 0, 0] : f32 from vector<1x1x1xf32>
    %cst_306 = arith.constant 1.600000e+01 : f32
    %999 = arith.divf %998, %cst_306 : f32
    %c0_307 = arith.constant 0 : index
    %1000 = memref.load %arg18[%c0_307] : memref<1xf32, #tpu.memory_space<smem>>
    memref.store %999, %arg18[%c0_307] : memref<1xf32, #tpu.memory_space<smem>>
    return
  }
}

</mosaic_0001>

<bundles_post_ra>
// kernel: transformer_forward.1
= control target key start
LH: loop header
LB: loop body
LE: loop exit
PB: predicated region body
PF: predicated region fallthrough
CT: control target
= control target key end

     0   :  { %s13267_s0 = inlined_call_operand.vmem [shape: s32[16,1], index: 0, kind: input, shape index: {}]   ;;  %s13268_s1 = inlined_call_operand.vmem [shape: s32[16,2], index: 1, kind: input, shape index: {}]   ;;  %s13269_s2 = inlined_call_operand.vmem [shape: f32[20,64], index: 2, kind: input, shape index: {}]   ;;  %s13270_s3 = inlined_call_operand.vmem [shape: f32[24,64], index: 3, kind: input, shape index: {}]   ;;  %s13271_s4 = inlined_call_operand.vmem [shape: f32[10,64], index: 4, kind: input, shape index: {}]   ;;  %s13272_s5 = inlined_call_operand.vmem [shape: f32[2,5,64], index: 5, kind: input, shape index: {}]   ;;  %s13273_s6 = inlined_call_operand.vmem [shape: f32[2,64,192], index: 6, kind: input, shape index: {}]   ;;  %s13274_s7 = inlined_call_operand.vmem [shape: f32[2,64,64], index: 7, kind: input, shape index: {}]   ;;  %s13275_s8 = inlined_call_operand.vmem [shape: f32[2,65,256], index: 8, kind: input, shape index: {}]   ;;  %s13276_s9 = inlined_call_operand.vmem [shape: f32[2,257,64], index: 9, kind: input, shape index: {}]   ;;  %s13277_s10 = inlined_call_operand.vmem [shape: f32[2,10,64], index: 10, kind: input, shape index: {}]   ;;  %s13278_s11 = inlined_call_operand.vmem [shape: f32[4,64,192], index: 11, kind: input, shape index: {}]   ;;  %s13279_s12 = inlined_call_operand.vmem [shape: f32[4,64,64], index: 12, kind: input, shape index: {}]   ;;  %s13280_s13 = inlined_call_operand.vmem [shape: f32[2,65,256], index: 13, kind: input, shape index: {}]   ;;  %s13281_s14 = inlined_call_operand.vmem [shape: f32[2,257,64], index: 14, kind: input, shape index: {}]   ;;  %s13282_s15 = inlined_call_operand.vmem [shape: f32[2,64], index: 15, kind: input, shape index: {}]   ;;  %s13283_s16 = inlined_call_operand.vmem [shape: f32[65,128], index: 16, kind: input, shape index: {}]   ;;  %s13284_s17 = inlined_call_operand.hbm [shape: f32[16,128], index: 17, kind: output, shape index: {0}]   ;;  %s13285_s18 = inlined_call_operand.hbm [shape: f32[1], index: 18, kind: output, shape index: {1}]  }
   0x1   :  { %13293 = sst [smem:[#allocation8_spill]] %s13267_s0 }
   0x2   :  { %13294 = sst [smem:[#allocation9_spill]] %s13268_s1 }
   0x3   :  { %13295 = sst [smem:[#allocation10_spill]] %s13269_s2 }
   0x4   :  { %24 = vsyncpa [#allocation3], 0  ;;  %s13296_s29 = sld [smem:[#allocation8_spill]]  ;;  %s13297_s19 = sld [smem:[#allocation10_spill]]  ;;  %v60_v2 = vlaneseq  ;;  %v10911_v3 = vmov 0   ;;  %v96_v5 = vld [vmem:[%s13271_s4] sm:$0xff] }
   0x5   :  { %10411 = vset.pattern.permute.xlu0 %v10911_v3  ;;  %v97_v6 = vld [vmem:[%s13271_s4 + $0x8] sm:$0x3]  ;;  %vm125_vm0 = vcmask 1041408   ;;  %10412 = vset.pattern.permute.xlu1 %v10911_v3  ;;  %vm10912_vm1 = vmmov 1  }
   0x6   :  { %v9707_v8 = vpack.c.bf16 %v97_v6, %v96_v5  ;;  %vm9708_vm2 = vmpackc.low %vm125_vm0, %vm10912_vm1  ;;  %v11037_v9 = vshrl.u32 %v60_v2, 7  ;;  %v11039_v10 = vand.u32 127, %v60_v2 }
   0xa   :  { %v98_v0 = vld [vmem:[%s13296_s29] sm:$0xff]  ;;  %v91_v4 = vld [vmem:[%s13297_s19 + $0x8] sm:$0xff] }
   0xb   :  { %v90_v1 = vld [vmem:[%s13297_s19] sm:$0xff]  ;;  %101 = vperm.xlu0 %10411, %v98_v0   ;;  %v99_v11 = vld [vmem:[%s13296_s29 + $0x8] sm:$0xff] }
   0xc   :  { %v9713_v7 = vpack.c.bf16 %v91_v4, %v90_v1 }
   0xd   :  { %25 = vsyncpa [#allocation4], 0  ;;  %9709 = vmatprep.subr.msk.bf16.mxu0 %vm9708_vm2, %v9707_v8  ;;  %v63_v12 = vcvt.s32.f32 %v11037_v9  ;;  %v62_v13 = vadd.s32 8, %v11037_v9  ;;  %v67_v14 = vcvt.s32.f32 %v11039_v10  ;;  %v92_v15 = vld [vmem:[%s13297_s19 + $0x10] sm:$0xf]  ;;  %vm211_vm3 = vcmask 1043456  }
   0xe   :  { %9714 = vmatprep.subr.bf16.mxu1 %v9713_v7  ;;  %9712 = vmatpush3.bf16.msk.msra.mxu0 %vm9708_vm2, %v9707_v8  ;;  %vm118_vm6 = vcmask 80896   ;;  %v10913_v31 = vmov 0.0   ;;  %v10914_v33 = vmov -1e+09   ;;  %vm204_vm13 = vcmask 162816   ;;  %v428_v59 = vld [vmem:[%s13273_s6 + $0x8] sm:$0xff] }
   0xf   :  { %9716 = vmatpush3.bf16.msra.mxu1 %v9713_v7  ;;  %104 = vperm.xlu0 %10411, %v99_v11   ;;  %v68_v16 = vmul.f32 0.125, %v63_v12  ;;  %v64_v17 = vcvt.s32.f32 %v62_v13  ;;  %v72_v18 = vmul.f32 0.125, %v67_v14  ;;  %vm387_vm0 = vcmask 523264   ;;  %v430_v60 = vld [vmem:[%s13273_s6 + $0x18] sm:$0xff]  ;;  %v427_v62 = vld [vmem:[%s13273_s6] sm:$0xff]  ;;  %v429_v63 = vld [vmem:[%s13273_s6 + $0x10] sm:$0xff] }
  0x10   :  { %9148 = vmatprep.subr.msk.mxu1 %vm211_vm3, %v92_v15  ;;  %v9721_v61 = vpack.c.bf16 %v430_v60, %v428_v59  ;;  %s13302_s2 = sld [smem:[#allocation9_spill]]  ;;  %v9723_v1 = vpack.c.bf16 %v429_v63, %v427_v62  ;;  %v93_v2 = vld [vmem:[%s13270_s3] sm:$0xff]  ;;  %v94_v3 = vld [vmem:[%s13270_s3 + $0x8] sm:$0xff]  ;;  %v434_v6 = vld [vmem:[%s13273_s6 + $0x38] sm:$0xff]  ;;  %vm304_vm1 = vcmask 195584   ;;  %s10915_s4 = smov 64  }
  0x11   :  { %v70_v19 = vfloor.f32 %v68_v16  ;;  %v69_v20 = vmul.f32 0.125, %v64_v17  ;;  %v73_v21 = vfloor.f32 %v72_v18  ;;  %v9717_v4 = vpack.c.bf16 %v94_v3, %v93_v2  ;;  %v432_v5 = vld [vmem:[%s13273_s6 + $0x28] sm:$0xff]  ;;  %v431_v8 = vld [vmem:[%s13273_s6 + $0x20] sm:$0xff]  ;;  %v433_v11 = vld [vmem:[%s13273_s6 + $0x30] sm:$0xff]  ;;  %s10916_s26 = smov 112   ;;  %s13289_s27 = smov 80  }
  0x12   :  { %v9725_v7 = vpack.c.bf16 %v434_v6, %v432_v5  ;;  %v9727_v13 = vpack.c.bf16 %v433_v11, %v431_v8  ;;  %v95_v16 = vld [vmem:[%s13270_s3 + $0x10] sm:$0xff]  ;;  %v435_v18 = vld [vmem:[%s13273_s6 + $0x40] sm:$0xff]  ;;  %s10918_s28 = smov 48   ;;  %s10919_s29 = smov 32  }
  0x13   :  { %9149 = vmatpush3.msk.msra.mxu1 %vm211_vm3, %v92_v15  ;;  %v80_v22 = vmul.f32 8.0, %v70_v19  ;;  %v71_v23 = vfloor.f32 %v69_v20  ;;  %vm11050_vm4 = vcmp.eq.f32.partialorder %v70_v19, %v73_v21  ;;  %v78_v25 = vmul.f32 8.0, %v73_v21  ;;  %9718 = vmatprep.subr.bf16.mxu0 %v9717_v4  ;;  %v438_v15 = vld [vmem:[%s13273_s6 + $0x58] sm:$0xff]  ;;  %v437_v19 = vld [vmem:[%s13273_s6 + $0x50] sm:$0xff]  ;;  %s13291_s30 = smov 16   ;;  %s10921_s0 = smov 96  }
  0x14   :  { %9722 = vmatprep.subr.bf16.mxu1 %v9721_v61  ;;  %v9731_v20 = vpack.c.bf16 %v437_v19, %v435_v18 }
  0x15   :  { %v82_v26 = vsub.f32 %v63_v12, %v80_v22  ;;  %vm11054_vm5 = vcmp.eq.f32.partialorder %v71_v23, %v73_v21  ;;  %v81_v28 = vmul.f32 8.0, %v71_v23  ;;  %v79_v29 = vsub.f32 %v67_v14, %v78_v25  ;;  %v440_v21 = vld [vmem:[%s13273_s6 + $0x68] sm:$0xff]  ;;  %v442_v22 = vld [vmem:[%s13273_s6 + $0x78] sm:$0xff]  ;;  %v439_v25 = vld [vmem:[%s13273_s6 + $0x60] sm:$0xff] }
  0x16   :  { %v290_v0 = vld [vmem:[%s13302_s2] sm:$0xff]  ;;  %v291_v12 = vld [vmem:[%s13302_s2 + $0x8] sm:$0xff]  ;;  %v9733_v23 = vpack.c.bf16 %v442_v22, %v440_v21 }
  0x17   :  { %vm112_vm7 = vcmp.eq.f32.partialorder %v67_v14, %v82_v26  ;;  %v83_v30 = vsub.f32 %v64_v17, %v81_v28  ;;  %vm84_vm8 = vcmp.le.f32.partialorder %v79_v29, %v82_v26  ;;  %v441_v26 = vld [vmem:[%s13273_s6 + $0x70] sm:$0xff] }
  0x18   :  { %v8261_v32 = vsel %vm112_vm7, 1.0, %v10913_v31  ;;  %vm86_vm9 = vmand %vm11050_vm4, %vm84_vm8  ;;  %v9735_v28 = vpack.c.bf16 %v441_v26, %v439_v25 }
  0x19   :  { %9141 = vmatprep.mubr.msk.f32.mxu0 %vm118_vm6, %v8261_v32  ;;  %vm85_vm10 = vcmp.le.f32.partialorder %v79_v29, %v83_v30  ;;  %vm113_vm11 = vcmp.eq.f32.partialorder %v67_v14, %v83_v30  ;;  %v11062_v34 = vsel %vm86_vm9, 0.0, %v10914_v33  ;;  %v436_v14 = vld [vmem:[%s13273_s6 + $0x48] sm:$0xff] }
  0x1a   :  { %vm87_vm12 = vmand %vm11054_vm5, %vm85_vm10  ;;  %v8262_v35 = vsel %vm113_vm11, 1.0, %v10913_v31  ;;  %v9729_v17 = vpack.c.bf16 %v438_v15, %v436_v14  ;;  %v11212_v14 = vsel %vm11054_vm5, 0.0, %v10914_v33  ;;  %v11217_v15 = vsel %vm11050_vm4, 0.0, %v10914_v33 }
  0x1b   :  { %v11068_v36 = vsel %vm87_vm12, 0.0, %v10914_v33  ;;  %9142 = vmatmul.mubr.msk.f32.vlgmr.msra.gmra.mrb[0].mxu0 %vm118_vm6, %v8262_v35  ;;  %vm542_vm6 = vcmask 130048   ;;  %vm1359_vm4 = vcmask 261120   ;;  %vm1362_vm5 = vcmask 392192  }
  0x1c   :  { %9720 = vmatpush3.bf16.msra.mxu0 %v9717_v4  ;;  %vm11200_vm7 = vmpackc.low %vm542_vm6, %vm542_vm6  ;;  %vm8212_vm10 = vcmask 7168  }
  0x1d   :  { %9157 = vmatprep.subr.mxu0 %v95_v16 }
  0x20   :  { %9158 = vmatpush3.msra.mxu0 %v95_v16 }
  0x8a   :  { %v102_v37 = vpop.permute.xlu0 %101 }
  0x8b   :  { %vm106_vm14 = vcmp.eq.s32.totalorder %v11039_v10, %v102_v37 }
  0x8c   :  { %v8259_v38 = vsel %vm106_vm14, 1.0, %v10913_v31 }
  0x8d   :  { %9150 = vmatprep.mubr.msk.f32.mxu1 %vm204_vm13, %v8259_v38 }
  0x8e   :  { %v105_v39 = vpop.permute.xlu0 %104 }
  0x8f   :  { %vm107_vm15 = vcmp.eq.s32.totalorder %v11039_v10, %v105_v39 }
  0x90   :  { %v8260_v40 = vsel %vm107_vm15, 1.0, %v10913_v31 }
  0x91   :  { %9151 = vmatmul.mubr.msk.f32.vlgmr.msra.gmra.mrb[0].mxu1 %vm204_vm13, %v8260_v40 }
  0x92   :  { %521 = vmatprep.mubr.f32.mxu1 %v10913_v31  ;;  %9724 = vmatpush1.bf16.msra.mxu1 %v9723_v1 }
  0x93   :  { %9726 = vmatprep.subr.bf16.mxu1 %v9725_v7 }
  0x96   :  { %9728 = vmatpush1.bf16.msra.mxu1 %v9727_v13 }
  0x97   :  { %9730 = vmatprep.subr.bf16.mxu1 %v9729_v17 }
  0x9a   :  { %9732 = vmatpush1.bf16.msra.mxu1 %v9731_v20 }
  0x9b   :  { %9734 = vmatprep.subr.bf16.mxu1 %v9733_v23 }
  0x9e   :  { %9736 = vmatpush1.bf16.msra.mxu1 %v9735_v28 }
  0xee   :  { %v11075_v41 = vpop.f32.mrb[0].mxu0 }
  0xef   :  { %v11077_v42 = vpop.f32.mrb[1].mxu0 }
 0x164   :  { %v9152_v43 = vpop.f32.mrb[0].mxu1 }
 0x165   :  { %v11080_v44 = vadd.f32 %v9152_v43, %v11075_v41  ;;  %v281_v45 = vpop.f32.mrb[1].mxu1  ;;  %v11167_v43 = vsub.s32 0, %v11037_v9 }
 0x166   :  { %v11083_v46 = vadd.f32 %v281_v45, %v11077_v42  ;;  %v11172_v45 = vld [vmem:[%s13272_s5] sm:$0x1f] }
 0x167   :  { %v391_v48 = vsel %vm387_vm0, %v11080_v44, 0.0 }
 0x168   :  { %v388_v47 = vsel %vm387_vm0, %v11083_v46, 0.0 }
 0x169   :  { %389 = vadd.xlane.f32.xlu1 %v388_v47 }
 0x16d   :  { %392 = vadd.xlane.f32.xlu1 %v391_v48  ;;  %v11175_v48 = vsub.s32 1, %v11037_v9 }
 0x1f6   :  { %v390_v49 = vpop.xlane.xlu1 %389 }
 0x1f7   :  { %v395_v50 = vmul.f32 0.015625, %v390_v49 }
 0x1f9   :  { %v11090_v51 = vsub.f32 %v11083_v46, %v395_v50  ;;  %v418_v50 = vrot.slane %v11172_v45, %v11167_v43 }
 0x1fa   :  { %v393_v52 = vpop.xlane.xlu1 %392 }
 0x1fb   :  { %v396_v53 = vmul.f32 0.015625, %v393_v52  ;;  %v399_v54 = vmul.f32 %v11090_v51, %v11090_v51 }
 0x1fd   :  { %v11095_v55 = vsub.f32 %v11080_v44, %v396_v53  ;;  %v401_v56 = vsel %vm387_vm0, %v399_v54, 0.0  ;;  %v424_v54 = vrot.slane %v11172_v45, %v11175_v48 }
 0x1fe   :  { %402 = vadd.xlane.f32.xlu0 %v401_v56 }
 0x1ff   :  { %v400_v57 = vmul.f32 %v11095_v55, %v11095_v55 }
 0x201   :  { %v404_v58 = vsel %vm387_vm0, %v400_v57, 0.0 }
 0x202   :  { %405 = vadd.xlane.f32.xlu1 %v404_v58 }
 0x213   :  { %293 = vperm.xlu1 %10412, %v290_v0  }
 0x217   :  { %296 = vperm.xlu1 %10412, %v291_v12  }
 0x28b   :  { %v403_v29 = vpop.xlane.xlu0 %402 }
 0x28c   :  { %v407_v30 = vmul.f32 0.015625, %v403_v29 }
 0x28e   :  { %v409_v32 = vadd.f32 1e-05, %v407_v30 }
 0x28f   :  { %v406_v35 = vpop.xlane.xlu1 %405 }
 0x290   :  { %10625 = vrsqrt.f32 %v409_v32  ;;  %v408_v37 = vmul.f32 0.015625, %v406_v35 }
 0x292   :  { %v410_v38 = vadd.f32 1e-05, %v408_v37 }
 0x293   :  { %v294_v39 = vpop.permute.xlu1 %293 }
 0x294   :  { %10627 = vrsqrt.f32 %v410_v38  ;;  %vm298_vm2 = vcmp.eq.s32.totalorder %v11039_v10, %v294_v39 }
 0x295   :  { %v8269_v40 = vsel %vm298_vm2, 1.0, %v10913_v31 }
 0x296   :  { %9159 = vmatprep.mubr.msk.f32.mxu0 %vm304_vm1, %v8269_v40 }
 0x297   :  { %v297_v47 = vpop.permute.xlu1 %296 }
 0x298   :  { %vm299_vm3 = vcmp.eq.s32.totalorder %v11039_v10, %v297_v47 }
 0x299   :  { %v8270_v49 = vsel %vm299_vm3, 1.0, %v10913_v31 }
 0x29a   :  { %v10626_v52 = vpop.eup %10625  ;;  %9160 = vmatmul.mubr.msk.f32.vlgmr.msra.gmra.mrb[2].mxu0 %vm304_vm1, %v8270_v49 }
 0x29b   :  { %v413_v53 = vmul.f32 %v10626_v52, %v11090_v51 }
 0x29d   :  { %v419_v56 = vmul.f32 %v418_v50, %v413_v53 }
 0x29e   :  { %v10628_v57 = vpop.eup %10627 }
 0x29f   :  { %v425_v58 = vadd.f32 %v424_v54, %v419_v56  ;;  %v414_v59 = vmul.f32 %v10628_v57, %v11095_v55 }
 0x2a1   :  { %8273 = vmatmul.mubr.msk.f32.vlgmr.msra.gmra.mrb[2].mxu1 %vm387_vm0, %v425_v58  ;;  %v420_v60 = vmul.f32 %v418_v50, %v414_v59 }
 0x2a2   :  { %527 = vmatprep.mubr.f32.mxu1 %v10913_v31 }
 0x2a3   :  { %v426_v61 = vadd.f32 %v424_v54, %v420_v60 }
 0x2a5   :  { %8274 = vmatmul.mubr.msk.f32.gmra.mrb[4].mxu1 %vm387_vm0, %v426_v61 }
 0x36d   :  { %v9161_v62 = vpop.f32.mrb[2].mxu0 }
 0x36e   :  { %v11189_v63 = vadd.f32 %v9161_v62, %v11075_v41  ;;  %v377_v51 = vpop.f32.mrb[3].mxu0 }
 0x36f   :  { %v11192_v0 = vadd.f32 %v377_v51, %v11077_v42 }
 0x374   :  { %v523_v1 = vpop.f32.mrb[2].mxu1 }
 0x375   :  { %v525_v2 = vpop.f32.mrb[3].mxu1  ;;  %v534_v55 = vmul.f32 0.125, %v523_v1 }
 0x377   :  { %9166 = vmatprep.mubr.msk.f32.mxu0 %vm542_vm6, %v534_v55 }
 0x378   :  { %v529_v3 = vpop.f32.mrb[4].mxu1 }
 0x379   :  { %v531_v4 = vpop.f32.mrb[5].mxu1  ;;  %v10413_v5 = vpack.i.bf16 %v529_v3, %v523_v1  ;;  %v535_v13 = vmul.f32 0.125, %v529_v3 }
 0x37a   :  { %v9743_v6 = vpack.c.bf16 %v531_v4, %v525_v2  ;;  %v11195_v7 = vpack.i.bf16 %v531_v4, %v525_v2 }
 0x37b   :  { %10414 = vrot.lane.b32.xlu1 %v10413_v5, %s10915_s4 }
 0x3ed   :  { %v10415_v41 = vpop.permute.xlu1 %10414 }
 0x3ee   :  { %v10417_v8 = vunpack.i.h.bf16 %v10415_v41  ;;  %v10416_v11 = vunpack.i.l.bf16 %v10415_v41 }
 0x3f0   :  { %v9737_v12 = vpack.c.bf16 %v10417_v8, %v10416_v11 }
 0x3f2   :  { %9739 = vmatprep.subr.msk.bf16.mxu0 %vm11200_vm7, %v9737_v12 }
 0x3f3   :  { %9742 = vmatpush3.bf16.xpose.msk.msra.mxu0 %vm11200_vm7, %v9737_v12 }
 0x3f4   :  { %9744 = vmatprep.subr.bf16.mxu0 %v9743_v6 }
 0x3fa   :  { %9167 = vmatmul.mubr.msk.f32.vlgmr.msra.gmra.mrb[4].mxu0 %vm542_vm6, %v535_v13 }
 0x3fb   :  { %9746 = vmatpush3.bf16.msra.mxu0 %v9743_v6 }
 0x4cd   :  { %v9168_v16 = vpop.f32.mrb[4].mxu0 }
 0x4ce   :  { %v625_v17 = vadd.f32 %v9168_v16, %v11212_v14  ;;  %v619_v18 = vpop.f32.mrb[5].mxu0 }
 0x4cf   :  { %v620_v19 = vadd.f32 %v619_v18, %v11217_v15 }
 0x4d0   :  { %v631_v20 = vsel %vm542_vm6, %v625_v17, -inf }
 0x4d1   :  { %632 = vmax.xlane.f32.xlu0 %v631_v20  ;;  %v628_v21 = vsel %vm542_vm6, %v620_v19, -inf }
 0x4d2   :  { %629 = vmax.xlane.f32.xlu1 %v628_v21 }
 0x4e3   :  { %731 = vrot.lane.b32.xlu1 %v534_v55, %s10916_s26 }
 0x4e7   :  { %1133 = vrot.lane.b32.xlu1 %v534_v55, %s13289_s27  ;;  %10419 = vrot.lane.b32.xlu0 %v10413_v5, %s10918_s28 }
 0x55e   :  { %v633_v24 = vpop.xlane.xlu0 %632 }
 0x55f   :  { %v635_v27 = vsub.f32 %v625_v17, %v633_v24  ;;  %v630_v33 = vpop.xlane.xlu1 %629 }
 0x560   :  { %v634_v22 = vsub.f32 %v620_v19, %v630_v33 }
 0x561   :  { %v638_v23 = vmul.f32 1.442695, %v635_v27 }
 0x562   :  { %v636_v25 = vmul.f32 1.442695, %v634_v22  ;;  %v10420_v26 = vpop.permute.xlu0 %10419 }
 0x563   :  { %10629 = vpow2.f32 %v638_v23  ;;  %v10422_v28 = vunpack.i.h.bf16 %v10420_v26  ;;  %v10421_v29 = vunpack.i.l.bf16 %v10420_v26  ;;  %v732_v58 = vpop.permute.xlu1 %731 }
 0x564   :  { %10631 = vpow2.f32 %v636_v25 }
 0x565   :  { %v9747_v30 = vpack.c.bf16 %v10422_v28, %v10421_v29 }
 0x567   :  { %9749 = vmatprep.subr.msk.bf16.mxu0 %vm11200_vm7, %v9747_v30 }
 0x56d   :  { %v10630_v32 = vpop.eup %10629 }
 0x56e   :  { %v643_v35 = vsel %vm542_vm6, %v10630_v32, 0.0  ;;  %v10632_v37 = vpop.eup %10631 }
 0x56f   :  { %644 = vadd.xlane.f32.xlu0 %v643_v35  ;;  %v640_v38 = vsel %vm542_vm6, %v10632_v37, 0.0 }
 0x573   :  { %641 = vadd.xlane.f32.xlu0 %v640_v38 }
 0x589   :  { %10424 = vrot.lane.b32.xlu0 %v10413_v5, %s10919_s29 }
 0x58d   :  { %733 = vrot.lane.b32.xlu0 %v535_v13, %s10916_s26 }
 0x591   :  { %10429 = vrot.lane.b32.xlu0 %v10413_v5, %s13291_s30 }
 0x595   :  { %933 = vrot.lane.b32.xlu0 %v534_v55, %s10921_s0  ;;  %v1134_v55 = vpop.permute.xlu1 %1133 }
 0x599   :  { %935 = vrot.lane.b32.xlu0 %v535_v13, %s10921_s0 }
 0x59d   :  { %1135 = vrot.lane.b32.xlu0 %v535_v13, %s13289_s27 }
 0x5fc   :  { %v645_v39 = vpop.xlane.xlu0 %644 }
 0x5fd   :  { %10633 = vrcp.f32 %v645_v39 }
 0x600   :  { %v642_v40 = vpop.xlane.xlu0 %641 }
 0x601   :  { %10635 = vrcp.f32 %v642_v40 }
 0x604   :  { %v10425_v47 = vpop.permute.xlu0 %10424 }
 0x605   :  { %v10427_v53 = vunpack.i.h.bf16 %v10425_v47  ;;  %v10426_v54 = vunpack.i.l.bf16 %v10425_v47 }
 0x607   :  { %v10634_v49 = vpop.eup %10633  ;;  %v9757_v59 = vpack.c.bf16 %v10427_v53, %v10426_v54 }
 0x608   :  { %v734_v50 = vpop.permute.xlu0 %733  ;;  %v649_v57 = vmul.f32 %v10634_v49, %v10630_v32 }
 0x60b   :  { %v10636_v52 = vpop.eup %10635 }
 0x60c   :  { %v648_v56 = vmul.f32 %v10636_v52, %v10632_v37  ;;  %v10430_v60 = vpop.permute.xlu0 %10429 }
 0x60d   :  { %v10432_v61 = vunpack.i.h.bf16 %v10430_v60  ;;  %v10431_v62 = vunpack.i.l.bf16 %v10430_v60 }
 0x60e   :  { %9173 = vmatprep.mubr.msk.f32.mxu0 %vm542_vm6, %v648_v56 }
 0x60f   :  { %9174 = vmatmul.mubr.msk.f32.vlgmr.msra.gmra.mrb[6].mxu0 %vm542_vm6, %v649_v57  ;;  %v9767_v51 = vpack.c.bf16 %v10432_v61, %v10431_v62 }
 0x610   :  { %9752 = vmatpush3.bf16.xpose.msk.msra.mxu0 %vm11200_vm7, %v9747_v30  ;;  %9180 = vmatprep.mubr.msk.f32.mxu0 %vm542_vm6, %v732_v58  ;;  %v934_v1 = vpop.permute.xlu0 %933 }
 0x611   :  { %9759 = vmatprep.subr.msk.bf16.mxu0 %vm11200_vm7, %v9757_v59 }
 0x614   :  { %v936_v2 = vpop.permute.xlu0 %935 }
 0x617   :  { %9181 = vmatmul.mubr.msk.f32.vlgmr.msra.gmra.mrb[8].mxu0 %vm542_vm6, %v734_v50 }
 0x618   :  { %9762 = vmatpush3.bf16.xpose.msk.msra.mxu0 %vm11200_vm7, %v9757_v59  ;;  %9194 = vmatprep.mubr.msk.f32.mxu0 %vm542_vm6, %v934_v1  ;;  %v1136_v3 = vpop.permute.xlu0 %1135 }
 0x619   :  { %9769 = vmatprep.subr.msk.bf16.mxu0 %vm11200_vm7, %v9767_v51 }
 0x61f   :  { %9195 = vmatmul.mubr.msk.f32.vlgmr.msra.gmra.mrb[10].mxu0 %vm542_vm6, %v936_v2 }
 0x620   :  { %9772 = vmatpush3.bf16.xpose.msk.msra.mxu0 %vm11200_vm7, %v9767_v51  ;;  %9208 = vmatprep.mubr.msk.f32.mxu0 %vm542_vm6, %v1134_v55 }
 0x627   :  { %9209 = vmatmul.mubr.msk.f32.vlgmr.msra.gmra.mrb[12].mxu0 %vm542_vm6, %v1136_v3 }
 0x6e2   :  { %v11254_v4 = vpop.f32.mrb[6].mxu0 }
 0x6e3   :  { %v11256_v5 = vpop.f32.mrb[7].mxu0 }
 0x6ea   :  { %v9182_v6 = vpop.f32.mrb[8].mxu0 }
 0x6eb   :  { %v819_v41 = vadd.f32 %v9182_v6, %v11212_v14  ;;  %v813_v8 = vpop.f32.mrb[9].mxu0 }
 0x6ec   :  { %v814_v11 = vadd.f32 %v813_v8, %v11217_v15 }
 0x6ed   :  { %v825_v12 = vsel %vm542_vm6, %v819_v41, -inf }
 0x6ee   :  { %826 = vmax.xlane.f32.xlu0 %v825_v12  ;;  %v822_v13 = vsel %vm542_vm6, %v814_v11, -inf }
 0x6ef   :  { %823 = vmax.xlane.f32.xlu1 %v822_v13 }
 0x6f2   :  { %v9196_v16 = vpop.f32.mrb[10].mxu0 }
 0x6f3   :  { %v1021_v17 = vadd.f32 %v9196_v16, %v11212_v14  ;;  %v1015_v18 = vpop.f32.mrb[11].mxu0 }
 0x6f4   :  { %v1016_v19 = vadd.f32 %v1015_v18, %v11217_v15 }
 0x6f5   :  { %v1027_v20 = vsel %vm542_vm6, %v1021_v17, -inf }
 0x6f6   :  { %1028 = vmax.xlane.f32.xlu1 %v1027_v20  ;;  %v1024_v21 = vsel %vm542_vm6, %v1016_v19, -inf }
 0x6f7   :  { %1025 = vmax.xlane.f32.xlu0 %v1024_v21 }
 0x6fa   :  { %v9210_v24 = vpop.f32.mrb[12].mxu0 }
 0x6fb   :  { %v1221_v27 = vadd.f32 %v9210_v24, %v11212_v14  ;;  %v1215_v33 = vpop.f32.mrb[13].mxu0 }
 0x6fc   :  { %v1216_v22 = vadd.f32 %v1215_v33, %v11217_v15 }
 0x6fd   :  { %v1227_v23 = vsel %vm542_vm6, %v1221_v27, -inf }
 0x6fe   :  { %1228 = vmax.xlane.f32.xlu1 %v1227_v23  ;;  %v1224_v25 = vsel %vm542_vm6, %v1216_v22, -inf }
 0x6ff   :  { %1225 = vmax.xlane.f32.xlu0 %v1224_v25 }
 0x77b   :  { %v827_v26 = vpop.xlane.xlu0 %826 }
 0x77c   :  { %v829_v28 = vsub.f32 %v819_v41, %v827_v26  ;;  %v824_v29 = vpop.xlane.xlu1 %823 }
 0x77d   :  { %v828_v30 = vsub.f32 %v814_v11, %v824_v29 }
 0x77e   :  { %v832_v32 = vmul.f32 1.442695, %v829_v28 }
 0x77f   :  { %v830_v35 = vmul.f32 1.442695, %v828_v30 }
 0x780   :  { %10637 = vpow2.f32 %v832_v32 }
 0x781   :  { %10639 = vpow2.f32 %v830_v35 }
 0x783   :  { %v1029_v37 = vpop.xlane.xlu1 %1028 }
 0x784   :  { %v1031_v38 = vsub.f32 %v1021_v17, %v1029_v37  ;;  %v1026_v39 = vpop.xlane.xlu0 %1025 }
 0x785   :  { %v1030_v40 = vsub.f32 %v1016_v19, %v1026_v39 }
 0x786   :  { %v1034_v47 = vmul.f32 1.442695, %v1031_v38 }
 0x787   :  { %v1032_v49 = vmul.f32 1.442695, %v1030_v40 }
 0x788   :  { %10641 = vpow2.f32 %v1034_v47 }
 0x789   :  { %10643 = vpow2.f32 %v1032_v49 }
 0x78a   :  { %v10638_v50 = vpop.eup %10637 }
 0x78b   :  { %v10640_v52 = vpop.eup %10639  ;;  %v1229_v53 = vpop.xlane.xlu1 %1228  ;;  %v837_v54 = vsel %vm542_vm6, %v10638_v50, 0.0 }
 0x78c   :  { %v1231_v56 = vsub.f32 %v1221_v27, %v1229_v53  ;;  %v1226_v57 = vpop.xlane.xlu0 %1225  ;;  %838 = vadd.xlane.f32.xlu1 %v837_v54  ;;  %v834_v58 = vsel %vm542_vm6, %v10640_v52, 0.0  ;;  %v444_v53 = vld [vmem:[%s13274_s7 + $0x8] sm:$0xff] }
 0x78d   :  { %v1230_v59 = vsub.f32 %v1216_v22, %v1226_v57  ;;  %835 = vadd.xlane.f32.xlu0 %v834_v58  ;;  %v446_v57 = vld [vmem:[%s13274_s7 + $0x18] sm:$0xff] }
 0x78e   :  { %v1234_v60 = vmul.f32 1.442695, %v1231_v56  ;;  %v445_v56 = vld [vmem:[%s13274_s7 + $0x10] sm:$0xff] }
 0x78f   :  { %v1232_v61 = vmul.f32 1.442695, %v1230_v59  ;;  %v9781_v58 = vpack.c.bf16 %v446_v57, %v445_v56  ;;  %v447_v59 = vld [vmem:[%s13274_s7 + $0x20] sm:$0xff]  ;;  %v1492_v56 = vld [vmem:[%s13275_s8 + $0x10] sm:$0xff] }
 0x790   :  { %10645 = vpow2.f32 %v1234_v60  ;;  %v448_v60 = vld [vmem:[%s13274_s7 + $0x28] sm:$0xff] }
 0x791   :  { %10647 = vpow2.f32 %v1232_v61  ;;  %v9785_v61 = vpack.c.bf16 %v448_v60, %v447_v59  ;;  %v1497_v59 = vld [vmem:[%s13275_s8 + $0x38] sm:$0xff] }
 0x792   :  { %v10642_v62 = vpop.eup %10641 }
 0x793   :  { %v10644_v51 = vpop.eup %10643  ;;  %v1039_v1 = vsel %vm542_vm6, %v10642_v62, 0.0 }
 0x794   :  { %1040 = vadd.xlane.f32.xlu1 %v1039_v1  ;;  %v1036_v2 = vsel %vm542_vm6, %v10644_v51, 0.0 }
 0x795   :  { %1037 = vadd.xlane.f32.xlu0 %v1036_v2 }
 0x79a   :  { %v10646_v55 = vpop.eup %10645 }
 0x79b   :  { %v10648_v3 = vpop.eup %10647  ;;  %v1239_v6 = vsel %vm542_vm6, %v10646_v55, 0.0 }
 0x79c   :  { %1240 = vadd.xlane.f32.xlu1 %v1239_v6  ;;  %v1236_v41 = vsel %vm542_vm6, %v10648_v3, 0.0 }
 0x79d   :  { %1237 = vadd.xlane.f32.xlu0 %v1236_v41 }
 0x7ad   :  { %10439 = vrot.lane.b32.xlu1 %v11195_v7, %s10921_s0 }
 0x7b1   :  { %10444 = vrot.lane.b32.xlu1 %v11195_v7, %s13289_s27 }
 0x7b3   :  { %10434 = vrot.lane.b32.xlu0 %v11195_v7, %s10916_s26 }
 0x819   :  { %v839_v11 = vpop.xlane.xlu1 %838 }
 0x81a   :  { %v836_v8 = vpop.xlane.xlu0 %835 }
 0x81b   :  { %10649 = vrcp.f32 %v836_v8 }
 0x81c   :  { %10651 = vrcp.f32 %v839_v11 }
 0x821   :  { %v1041_v13 = vpop.xlane.xlu1 %1040 }
 0x822   :  { %v1038_v16 = vpop.xlane.xlu0 %1037 }
 0x823   :  { %10653 = vrcp.f32 %v1038_v16 }
 0x825   :  { %v10650_v12 = vpop.eup %10649 }
 0x826   :  { %v842_v17 = vmul.f32 %v10650_v12, %v10640_v52  ;;  %v10652_v25 = vpop.eup %10651 }
 0x827   :  { %v843_v38 = vmul.f32 %v10652_v25, %v10638_v50  ;;  %v443_v50 = vld [vmem:[%s13274_s7] sm:$0xff] }
 0x828   :  { %9187 = vmatprep.mubr.msk.f32.mxu1 %vm542_vm6, %v842_v17  ;;  %v9777_v54 = vpack.c.bf16 %v444_v53, %v443_v50  ;;  %v1493_v50 = vld [vmem:[%s13275_s8 + $0x18] sm:$0xff] }
 0x829   :  { %v1241_v18 = vpop.xlane.xlu1 %1240 }
 0x82a   :  { %10655 = vrcp.f32 %v1241_v18  ;;  %v1238_v19 = vpop.xlane.xlu0 %1237 }
 0x82b   :  { %10657 = vrcp.f32 %v1238_v19 }
 0x82c   :  { %10659 = vrcp.f32 %v1041_v13 }
 0x82d   :  { %v10440_v20 = vpop.permute.xlu1 %10439  ;;  %v10654_v29 = vpop.eup %10653 }
 0x82e   :  { %v10435_v21 = vpop.permute.xlu0 %10434  ;;  %v10442_v24 = vunpack.i.h.bf16 %v10440_v20  ;;  %v10441_v7 = vunpack.i.l.bf16 %v10440_v20  ;;  %v1044_v40 = vmul.f32 %v10654_v29, %v10644_v51  ;;  %v450_v51 = vld [vmem:[%s13274_s7 + $0x38] sm:$0xff] }
 0x82f   :  { %v10437_v27 = vunpack.i.h.bf16 %v10435_v21  ;;  %v10436_v33 = vunpack.i.l.bf16 %v10435_v21 }
 0x830   :  { %v9763_v30 = vpack.c.bf16 %v10442_v24, %v10441_v7 }
 0x831   :  { %v10445_v22 = vpop.permute.xlu1 %10444  ;;  %v9753_v23 = vpack.c.bf16 %v10437_v27, %v10436_v33  ;;  %v11330_v33 = vsub.s32 4, %v11037_v9 }
 0x832   :  { %v10447_v26 = vunpack.i.h.bf16 %v10445_v22  ;;  %v10446_v28 = vunpack.i.l.bf16 %v10445_v22 }
 0x833   :  { %9754 = vmatprep.subr.bf16.mxu1 %v9753_v23 }
 0x834   :  { %v10656_v32 = vpop.eup %10655  ;;  %9756 = vmatpush3.bf16.msra.mxu1 %v9753_v23  ;;  %v9773_v35 = vpack.c.bf16 %v10447_v26, %v10446_v28 }
 0x835   :  { %v10658_v37 = vpop.eup %10657  ;;  %9764 = vmatprep.subr.bf16.mxu1 %v9763_v30  ;;  %v1245_v49 = vmul.f32 %v10656_v32, %v10646_v55 }
 0x836   :  { %v10660_v39 = vpop.eup %10659  ;;  %9774 = vmatprep.subr.bf16.mxu0 %v9773_v35  ;;  %v1244_v47 = vmul.f32 %v10658_v37, %v10648_v3 }
 0x837   :  { %9188 = vmatmul.mubr.msk.f32.vlgmr.msra.gmra.mrb[6].mxu1 %vm542_vm6, %v843_v38  ;;  %9776 = vmatpush3.bf16.msra.mxu0 %v9773_v35  ;;  %v1045_v52 = vmul.f32 %v10660_v39, %v10642_v62  ;;  %v449_v62 = vld [vmem:[%s13274_s7 + $0x30] sm:$0xff] }
 0x838   :  { %9766 = vmatpush3.bf16.msra.mxu1 %v9763_v30  ;;  %9201 = vmatprep.mubr.msk.f32.mxu1 %vm542_vm6, %v1044_v40  ;;  %v9789_v1 = vpack.c.bf16 %v450_v51, %v449_v62  ;;  %v1496_v62 = vld [vmem:[%s13275_s8 + $0x30] sm:$0xff] }
 0x839   :  { %9215 = vmatprep.mubr.msk.f32.mxu0 %vm542_vm6, %v1244_v47  ;;  %9778 = vmatprep.subr.bf16.mxu0 %v9777_v54 }
 0x83a   :  { %9216 = vmatmul.mubr.msk.f32.vlgmr.msra.gmra.mrb[14].mxu0 %vm542_vm6, %v1245_v49 }
 0x83b   :  { %9202 = vmatmul.mubr.msk.f32.vlgmr.msra.gmra.mrb[8].mxu1 %vm542_vm6, %v1045_v52  ;;  %9780 = vmatpush3.bf16.msra.mxu0 %v9777_v54  ;;  %v1491_v52 = vld [vmem:[%s13275_s8 + $0x8] sm:$0xff]  ;;  %v1490_v54 = vld [vmem:[%s13275_s8] sm:$0xff] }
 0x83c   :  { %1619 = vmatprep.mubr.f32.mxu1 %v10913_v31  ;;  %9782 = vmatprep.subr.bf16.mxu0 %v9781_v58  ;;  %v9793_v53 = vpack.c.bf16 %v1493_v50, %v1491_v52  ;;  %v9795_v57 = vpack.c.bf16 %v1492_v56, %v1490_v54  ;;  %v1515_v52 = vld [vmem:[%s13276_s9 + $0x38] sm:$0xff]  ;;  %v1532_v50 = vld [vmem:[%s13276_s9 + $0xc0] sm:$0xff] }
 0x83e   :  { %9794 = vmatprep.subr.bf16.mxu1 %v9793_v53  ;;  %v1533_v53 = vld [vmem:[%s13276_s9 + $0xc8] sm:$0xff] }
 0x83f   :  { %9784 = vmatpush3.bf16.msra.mxu0 %v9781_v58  ;;  %9796 = vmatpush1.bf16.msra.mxu1 %v9795_v57  ;;  %v1495_v58 = vld [vmem:[%s13275_s8 + $0x28] sm:$0xff]  ;;  %v9825_v56 = vpack.c.bf16 %v1533_v53, %v1532_v50  ;;  %v1516_v57 = vld [vmem:[%s13276_s9 + $0x40] sm:$0xff] }
 0x840   :  { %9786 = vmatprep.subr.bf16.mxu0 %v9785_v61  ;;  %v9797_v60 = vpack.c.bf16 %v1497_v59, %v1495_v58  ;;  %v1517_v58 = vld [vmem:[%s13276_s9 + $0x48] sm:$0xff]  ;;  %v1534_v59 = vld [vmem:[%s13276_s9 + $0xd0] sm:$0xff] }
 0x842   :  { %9798 = vmatprep.subr.bf16.mxu1 %v9797_v60  ;;  %v1535_v60 = vld [vmem:[%s13276_s9 + $0xd8] sm:$0xff] }
 0x843   :  { %9788 = vmatpush3.bf16.msra.mxu0 %v9785_v61  ;;  %v1494_v61 = vld [vmem:[%s13275_s8 + $0x20] sm:$0xff] }
 0x844   :  { %9790 = vmatprep.subr.bf16.mxu0 %v9789_v1  ;;  %v9799_v51 = vpack.c.bf16 %v1496_v62, %v1494_v61  ;;  %v9827_v61 = vpack.c.bf16 %v1517_v58, %v1516_v57  ;;  %v9829_v62 = vpack.c.bf16 %v1535_v60, %v1534_v59 }
 0x846   :  { %9800 = vmatpush1.bf16.msra.mxu1 %v9799_v51  ;;  %v1518_v51 = vld [vmem:[%s13276_s9 + $0x50] sm:$0xff] }
 0x847   :  { %9792 = vmatpush3.bf16.msra.mxu0 %v9789_v1  ;;  %v1499_v1 = vld [vmem:[%s13275_s8 + $0x48] sm:$0xff] }
 0x90a   :  { %v9189_v2 = vpop.f32.mrb[6].mxu1 }
 0x90b   :  { %1337 = vrot.lane.b32.xlu1 %v9189_v2, %s13291_s30  ;;  %v924_v55 = vpop.f32.mrb[7].mxu1  ;;  %v1501_v2 = vld [vmem:[%s13275_s8 + $0x58] sm:$0xff] }
 0x90c   :  { %1335 = vrot.lane.b32.xlu0 %v924_v55, %s13291_s30  ;;  %v9801_v55 = vpack.c.bf16 %v1501_v2, %v1499_v1  ;;  %v1519_v1 = vld [vmem:[%s13276_s9 + $0x58] sm:$0xff]  ;;  %v1536_v2 = vld [vmem:[%s13276_s9 + $0xe0] sm:$0xff] }
 0x90d   :  { %v9217_v3 = vpop.f32.mrb[14].mxu0 }
 0x90e   :  { %v9203_v6 = vpop.f32.mrb[8].mxu1  ;;  %v1324_v41 = vpop.f32.mrb[15].mxu0  ;;  %9802 = vmatprep.subr.bf16.mxu1 %v9801_v55  ;;  %v1537_v55 = vld [vmem:[%s13276_s9 + $0xe8] sm:$0xff] }
 0x90f   :  { %1345 = vrot.lane.b32.xlu1 %v9203_v6, %s10919_s29  ;;  %v1124_v8 = vpop.f32.mrb[9].mxu1  ;;  %v1500_v6 = vld [vmem:[%s13275_s8 + $0x50] sm:$0xff] }
 0x910   :  { %1343 = vrot.lane.b32.xlu0 %v1124_v8, %s10919_s29  ;;  %v1503_v8 = vld [vmem:[%s13275_s8 + $0x68] sm:$0xff] }
 0x913   :  { %1353 = vrot.lane.b32.xlu1 %v9217_v3, %s10918_s28  ;;  %v1498_v3 = vld [vmem:[%s13275_s8 + $0x40] sm:$0xff] }
 0x914   :  { %1351 = vrot.lane.b32.xlu0 %v1324_v41, %s10918_s28  ;;  %v9803_v41 = vpack.c.bf16 %v1500_v6, %v1498_v3  ;;  %v9831_v3 = vpack.c.bf16 %v1519_v1, %v1518_v51  ;;  %v9833_v6 = vpack.c.bf16 %v1537_v55, %v1536_v2 }
 0x916   :  { %9804 = vmatpush1.bf16.msra.mxu1 %v9803_v41 }
 0x97d   :  { %v1338_v11 = vpop.permute.xlu1 %1337 }
 0x97e   :  { %v1336_v12 = vpop.permute.xlu0 %1335  ;;  %v1358_v19 = vsel %vm542_vm6, %v11254_v4, %v1338_v11  ;;  %v1505_v11 = vld [vmem:[%s13275_s8 + $0x78] sm:$0xff] }
 0x97f   :  { %v1357_v17 = vsel %vm542_vm6, %v11256_v5, %v1336_v12  ;;  %v1368_v5 = vrot.slane %v11172_v45, %v11330_v33  ;;  %v1502_v12 = vld [vmem:[%s13275_s8 + $0x60] sm:$0xff] }
 0x981   :  { %v1346_v13 = vpop.permute.xlu1 %1345 }
 0x982   :  { %v1344_v16 = vpop.permute.xlu0 %1343  ;;  %v1361_v24 = vsel %vm1359_vm4, %v1358_v19, %v1346_v13  ;;  %v9805_v13 = vpack.c.bf16 %v1505_v11, %v1503_v8  ;;  %v1525_v19 = vld [vmem:[%s13276_s9 + $0x88] sm:$0xff] }
 0x983   :  { %v1360_v20 = vsel %vm1359_vm4, %v1357_v17, %v1344_v16  ;;  %v1504_v16 = vld [vmem:[%s13275_s8 + $0x70] sm:$0xff] }
 0x984   :  { %v9807_v17 = vpack.c.bf16 %v1504_v16, %v1502_v12  ;;  %9806 = vmatprep.subr.bf16.mxu1 %v9805_v13 }
 0x985   :  { %v1354_v18 = vpop.permute.xlu1 %1353 }
 0x986   :  { %v1352_v21 = vpop.permute.xlu0 %1351  ;;  %v1364_v27 = vsel %vm1362_vm5, %v1361_v24, %v1354_v18  ;;  %9808 = vmatpush1.bf16.msra.mxu1 %v9807_v17  ;;  %v1524_v18 = vld [vmem:[%s13276_s9 + $0x80] sm:$0xff]  ;;  %v1509_v24 = vld [vmem:[%s13276_s9 + $0x8] sm:$0xff]  ;;  %v11483_v17 = vsub.s32 2, %v11037_v9 }
 0x987   :  { %v1363_v7 = vsel %vm1362_vm5, %v1360_v20, %v1352_v21  ;;  %v1508_v20 = vld [vmem:[%s13276_s9] sm:$0xff]  ;;  %v9809_v21 = vpack.c.bf16 %v1525_v19, %v1524_v18  ;;  %v11486_v18 = vsub.s32 3, %v11037_v9 }
 0x988   :  { %9234 = vmatprep.mubr.msk.f32.mxu0 %vm387_vm0, %v1363_v7  ;;  %v1526_v7 = vld [vmem:[%s13276_s9 + $0x90] sm:$0xff]  ;;  %v1481_v19 = vrot.slane %v11172_v45, %v11483_v17 }
 0x989   :  { %9235 = vmatmul.mubr.msk.f32.vlgmr.msra.gmra.mrb[16].mxu0 %vm387_vm0, %v1364_v27  ;;  %v1527_v27 = vld [vmem:[%s13276_s9 + $0x98] sm:$0xff]  ;;  %9810 = vmatprep.subr.bf16.mxu0 %v9809_v21 }
 0xa5c   :  { %v9236_v4 = vpop.f32.mrb[16].mxu0 }
 0xa5d   :  { %v1447_v22 = vadd.f32 %v9236_v4, %v1368_v5  ;;  %v1441_v23 = vpop.f32.mrb[17].mxu0  ;;  %v9813_v4 = vpack.c.bf16 %v1527_v27, %v1526_v7 }
 0xa5e   :  { %v1442_v25 = vadd.f32 %v1441_v23, %v1368_v5  ;;  %v9811_v5 = vpack.c.bf16 %v1509_v24, %v1508_v20  ;;  %v1511_v23 = vld [vmem:[%s13276_s9 + $0x18] sm:$0xff]  ;;  %v1487_v24 = vrot.slane %v11172_v45, %v11486_v18  ;;  %v1521_v45 = vld [vmem:[%s13276_s9 + $0x68] sm:$0xff] }
 0xa5f   :  { %v11335_v26 = vadd.f32 %v1447_v22, %v11080_v44  ;;  %v1510_v22 = vld [vmem:[%s13276_s9 + $0x10] sm:$0xff] }
 0xa60   :  { %v11338_v28 = vadd.f32 %v1442_v25, %v11083_v46  ;;  %v1528_v25 = vld [vmem:[%s13276_s9 + $0xa0] sm:$0xff]  ;;  %9812 = vmatpush3.bf16.msra.mxu0 %v9811_v5 }
 0xa61   :  { %v1455_v29 = vsel %vm387_vm0, %v11335_v26, 0.0  ;;  %9814 = vmatprep.subr.bf16.mxu0 %v9813_v4 }
 0xa62   :  { %1456 = vadd.xlane.f32.xlu1 %v1455_v29  ;;  %v1452_v30 = vsel %vm387_vm0, %v11338_v28, 0.0  ;;  %v1529_v29 = vld [vmem:[%s13276_s9 + $0xa8] sm:$0xff] }
 0xa63   :  { %1453 = vadd.xlane.f32.xlu0 %v1452_v30  ;;  %v9815_v30 = vpack.c.bf16 %v1511_v23, %v1510_v22 }
 0xa65   :  { %9816 = vmatpush3.bf16.msra.mxu0 %v9815_v30 }
 0xaef   :  { %v1457_v32 = vpop.xlane.xlu1 %1456 }
 0xaf0   :  { %v1459_v35 = vmul.f32 0.015625, %v1457_v32  ;;  %v1454_v37 = vpop.xlane.xlu0 %1453  ;;  %v9817_v32 = vpack.c.bf16 %v1529_v29, %v1528_v25  ;;  %v1539_v29 = vld [vmem:[%s13276_s9 + $0xf8] sm:$0xff] }
 0xaf1   :  { %v1458_v38 = vmul.f32 0.015625, %v1454_v37  ;;  %v1513_v37 = vld [vmem:[%s13276_s9 + $0x28] sm:$0xff] }
 0xaf2   :  { %v11345_v39 = vsub.f32 %v11335_v26, %v1459_v35  ;;  %v1512_v35 = vld [vmem:[%s13276_s9 + $0x20] sm:$0xff]  ;;  %9818 = vmatprep.subr.bf16.mxu0 %v9817_v32  ;;  %v1522_v32 = vld [vmem:[%s13276_s9 + $0x70] sm:$0xff] }
 0xaf3   :  { %v11348_v44 = vsub.f32 %v11338_v28, %v1458_v38  ;;  %v1530_v38 = vld [vmem:[%s13276_s9 + $0xb0] sm:$0xff] }
 0xaf4   :  { %v1463_v47 = vmul.f32 %v11345_v39, %v11345_v39 }
 0xaf5   :  { %v1462_v46 = vmul.f32 %v11348_v44, %v11348_v44 }
 0xaf6   :  { %v1467_v49 = vsel %vm387_vm0, %v1463_v47, 0.0 }
 0xaf7   :  { %v1464_v40 = vsel %vm387_vm0, %v1462_v46, 0.0  ;;  %v1531_v46 = vld [vmem:[%s13276_s9 + $0xb8] sm:$0xff] }
 0xaf8   :  { %1465 = vadd.xlane.f32.xlu0 %v1464_v40  ;;  %v9819_v40 = vpack.c.bf16 %v1513_v37, %v1512_v35  ;;  %v9821_v47 = vpack.c.bf16 %v1531_v46, %v1530_v38  ;;  %v1523_v35 = vld [vmem:[%s13276_s9 + $0x78] sm:$0xff]  ;;  %v8301_v38 = vld [vmem:[%s13275_s8 + $0x80] ss:$0 sm:$0xff]  ;;  %v8302_v46 = vld [vmem:[%s13275_s8 + $0x88] ss:$0 sm:$0xff] }
 0xaf9   :  { %v9839_v37 = vpack.c.bf16 %v1523_v35, %v1522_v32  ;;  %v8311_v32 = vld [vmem:[%s13273_s6 + $0xa0] sm:$0xff]  ;;  %v8313_v35 = vld [vmem:[%s13273_s6 + $0xb0] sm:$0xff] }
 0xafa   :  { %9820 = vmatpush3.bf16.msra.mxu0 %v9819_v40 }
 0xafb   :  { %9822 = vmatprep.subr.bf16.mxu0 %v9821_v47 }
 0xafc   :  { %1468 = vadd.xlane.f32.xlu0 %v1467_v49  ;;  %v1514_v49 = vld [vmem:[%s13276_s9 + $0x30] sm:$0xff] }
 0xafd   :  { %v9823_v54 = vpack.c.bf16 %v1515_v52, %v1514_v49 }
 0xaff   :  { %9824 = vmatpush3.bf16.msra.mxu0 %v9823_v54 }
 0xb00   :  { %9826 = vmatprep.subr.bf16.mxu0 %v9825_v56 }
 0xb03   :  { %9828 = vmatpush3.bf16.msra.mxu0 %v9827_v61 }
 0xb04   :  { %9830 = vmatprep.subr.bf16.mxu0 %v9829_v62  ;;  %v8305_v62 = vld [vmem:[%s13276_s9 + $0x100] ss:$0 sm:$0xff] }
 0xb07   :  { %9832 = vmatpush3.bf16.msra.mxu0 %v9831_v3 }
 0xb08   :  { %9834 = vmatprep.subr.bf16.mxu0 %v9833_v6 }
 0xb85   :  { %v1466_v41 = vpop.xlane.xlu0 %1465 }
 0xb86   :  { %v1470_v8 = vmul.f32 0.015625, %v1466_v41 }
 0xb88   :  { %v1472_v11 = vadd.f32 1e-05, %v1470_v8 }
 0xb89   :  { %v1469_v12 = vpop.xlane.xlu0 %1468 }
 0xb8a   :  { %10661 = vrsqrt.f32 %v1472_v11  ;;  %v1471_v13 = vmul.f32 0.015625, %v1469_v12 }
 0xb8c   :  { %v1473_v16 = vadd.f32 1e-05, %v1471_v13 }
 0xb8e   :  { %10663 = vrsqrt.f32 %v1473_v16 }
 0xb94   :  { %v10662_v20 = vpop.eup %10661 }
 0xb95   :  { %v1476_v21 = vmul.f32 %v10662_v20, %v11348_v44  ;;  %v1520_v44 = vld [vmem:[%s13276_s9 + $0x60] sm:$0xff] }
 0xb96   :  { %v9835_v25 = vpack.c.bf16 %v1521_v45, %v1520_v44  ;;  %v8307_v44 = vld [vmem:[%s13273_s6 + $0x80] sm:$0xff]  ;;  %v8309_v45 = vld [vmem:[%s13273_s6 + $0x90] sm:$0xff] }
 0xb97   :  { %v1482_v7 = vmul.f32 %v1481_v19, %v1476_v21 }
 0xb98   :  { %v10664_v27 = vpop.eup %10663  ;;  %9836 = vmatpush3.bf16.msra.mxu0 %v9835_v25  ;;  %v9843_v25 = vpack.c.bf16 %v8309_v45, %v8307_v44 }
 0xb99   :  { %v1488_v5 = vadd.f32 %v1487_v24, %v1482_v7  ;;  %v1477_v4 = vmul.f32 %v10664_v27, %v11345_v39  ;;  %v1538_v39 = vld [vmem:[%s13276_s9 + $0xf0] sm:$0xff] }
 0xb9a   :  { %v9837_v30 = vpack.c.bf16 %v1539_v29, %v1538_v39  ;;  %v8312_v39 = vld [vmem:[%s13273_s6 + $0xa8] sm:$0xff]  ;;  %v8314_v29 = vld [vmem:[%s13273_s6 + $0xb8] sm:$0xff] }
 0xb9b   :  { %8303 = vmatmul.mubr.msk.f32.vlgmr.msra.gmra.mrb[10].mxu1 %vm387_vm0, %v1488_v5  ;;  %v1483_v22 = vmul.f32 %v1481_v19, %v1477_v4  ;;  %v8308_v4 = vld [vmem:[%s13273_s6 + $0x88] sm:$0xff] }
 0xb9c   :  { %1625 = vmatprep.mubr.f32.mxu1 %v10913_v31  ;;  %9838 = vmatprep.subr.bf16.mxu0 %v9837_v30  ;;  %v9845_v30 = vpack.c.bf16 %v8314_v29, %v8312_v39 }
 0xb9d   :  { %v1489_v23 = vadd.f32 %v1487_v24, %v1483_v22  ;;  %9840 = vmatpush3.bf16.msra.mxu0 %v9839_v37  ;;  %v8310_v22 = vld [vmem:[%s13273_s6 + $0x98] sm:$0xff]  ;;  %v9847_v37 = vpack.c.bf16 %v8313_v35, %v8311_v32 }
 0xb9f   :  { %8304 = vmatmul.mubr.msk.f32.gmra.mrb[12].mxu1 %vm387_vm0, %v1489_v23  ;;  %v9841_v23 = vpack.c.bf16 %v8310_v22, %v8308_v4 }
 0xba0   :  { %1853 = vmatprep.mubr.f32.mxu1 %v10913_v31 }
 0xba1   :  { %9842 = vmatprep.subr.bf16.mxu1 %v9841_v23 }
 0xba2   :  { %9844 = vmatpush1.bf16.msra.mxu1 %v9843_v25 }
 0xba3   :  { %9846 = vmatprep.subr.bf16.mxu1 %v9845_v30 }
 0xba6   :  { %9848 = vmatpush1.bf16.msra.mxu1 %v9847_v37 }
 0xc6e   :  { %v1621_v40 = vpop.f32.mrb[10].mxu1 }
 0xc6f   :  { %v1622_v47 = vadd.f32 %v8301_v38, %v1621_v40  ;;  %v1623_v49 = vpop.f32.mrb[11].mxu1 }
 0xc70   :  { %v1624_v52 = vadd.f32 %v8302_v46, %v1623_v49  ;;  %v8317_v49 = vld [vmem:[%s13273_s6 + $0xd0] sm:$0xff] }
 0xc71   :  { %v1632_v54 = vmax.f32 %v1622_v47, 0.0  ;;  %v8315_v47 = vld [vmem:[%s13273_s6 + $0xc0] sm:$0xff] }
 0xc72   :  { %v1633_v50 = vmax.f32 %v1624_v52, 0.0  ;;  %v1627_v53 = vpop.f32.mrb[12].mxu1  ;;  %v9851_v52 = vpack.c.bf16 %v8317_v49, %v8315_v47 }
 0xc73   :  { %v1628_v56 = vadd.f32 %v8301_v38, %v1627_v53  ;;  %v1629_v57 = vpop.f32.mrb[13].mxu1  ;;  %v8316_v38 = vld [vmem:[%s13273_s6 + $0xc8] sm:$0xff]  ;;  %v8322_v53 = vld [vmem:[%s13273_s6 + $0xf8] sm:$0xff] }
 0xc74   :  { %v1630_v58 = vadd.f32 %v8302_v46, %v1629_v57  ;;  %1704 = vmatprep.mubr.f32.mxu0 %v1633_v50  ;;  %v8318_v46 = vld [vmem:[%s13273_s6 + $0xd8] sm:$0xff]  ;;  %v8320_v50 = vld [vmem:[%s13273_s6 + $0xe8] sm:$0xff]  ;;  %v8321_v57 = vld [vmem:[%s13273_s6 + $0xf0] sm:$0xff] }
 0xc75   :  { %1705 = vmatmul.mubr.f32.vlgmr.msra.gmra.mrb[18].mxu0 %v1632_v54  ;;  %v1634_v60 = vmax.f32 %v1628_v56, 0.0  ;;  %v9849_v40 = vpack.c.bf16 %v8318_v46, %v8316_v38  ;;  %v9853_v54 = vpack.c.bf16 %v8322_v53, %v8320_v50  ;;  %v8319_v56 = vld [vmem:[%s13273_s6 + $0xe0] sm:$0xff]  ;;  %s13306_s6 = smov 80  }
 0xc76   :  { %v1635_v59 = vmax.f32 %v1630_v58, 0.0  ;;  %v9855_v58 = vpack.c.bf16 %v8321_v57, %v8319_v56 }
 0xc77   :  { %9850 = vmatprep.subr.bf16.mxu1 %v9849_v40 }
 0xc78   :  { %1709 = vmatprep.mubr.f32.mxu0 %v1635_v59  ;;  %9852 = vmatpush1.bf16.msra.mxu1 %v9851_v52 }
 0xc79   :  { %1710 = vmatmul.mubr.f32.gmra.mrb[20].mxu0 %v1634_v60  ;;  %9854 = vmatprep.subr.bf16.mxu1 %v9853_v54 }
 0xc7c   :  { %9856 = vmatpush1.bf16.msra.mxu1 %v9855_v58 }
 0xd48   :  { %v8757_v61 = vpop.f32.mrb[18].mxu0 }
 0xd49   :  { %v8758_v51 = vpop.f32.mrb[19].mxu0 }
 0xd4a   :  { %v8759_v1 = vadd.f32 %v8758_v51, %v8757_v61 }
 0xd4c   :  { %v1707_v2 = vadd.f32 %v8759_v1, %v8305_v62  ;;  %v8760_v55 = vpop.f32.mrb[20].mxu0 }
 0xd4d   :  { %v8761_v3 = vpop.f32.mrb[21].mxu0 }
 0xd4e   :  { %v11526_v6 = vadd.f32 %v1707_v2, %v11338_v28  ;;  %v8762_v41 = vadd.f32 %v8761_v3, %v8760_v55  ;;  %v11590_v2 = vld [vmem:[%s13272_s5 + $0x8] sm:$0x1f]  ;;  %s13305_s5 = smov 16  }
 0xd4f   :  { %v1748_v55 = vrot.slane %v11590_v2, %v11167_v43 }
 0xd50   :  { %v1712_v8 = vadd.f32 %v8762_v41, %v8305_v62  ;;  %v1719_v11 = vsel %vm387_vm0, %v11526_v6, 0.0 }
 0xd51   :  { %1720 = vadd.xlane.f32.xlu1 %v1719_v11 }
 0xd52   :  { %v11531_v12 = vadd.f32 %v1712_v8, %v11335_v26  ;;  %v1754_v8 = vrot.slane %v11590_v2, %v11175_v48 }
 0xd54   :  { %v1722_v13 = vsel %vm387_vm0, %v11531_v12, 0.0 }
 0xd55   :  { %1723 = vadd.xlane.f32.xlu0 %v1722_v13 }
 0xdde   :  { %v1721_v16 = vpop.xlane.xlu1 %1720 }
 0xddf   :  { %v1725_v19 = vmul.f32 0.015625, %v1721_v16 }
 0xde1   :  { %v1727_v20 = vsub.f32 %v11526_v6, %v1725_v19 }
 0xde2   :  { %v1724_v21 = vpop.xlane.xlu0 %1723 }
 0xde3   :  { %v1726_v28 = vmul.f32 0.015625, %v1724_v21  ;;  %v1729_v24 = vmul.f32 %v1727_v20, %v1727_v20 }
 0xde5   :  { %v1728_v7 = vsub.f32 %v11531_v12, %v1726_v28  ;;  %v1731_v27 = vsel %vm387_vm0, %v1729_v24, 0.0 }
 0xde6   :  { %1732 = vadd.xlane.f32.xlu1 %v1731_v27 }
 0xde7   :  { %v1730_v5 = vmul.f32 %v1728_v7, %v1728_v7 }
 0xde9   :  { %v1734_v26 = vsel %vm387_vm0, %v1730_v5, 0.0 }
 0xdea   :  { %1735 = vadd.xlane.f32.xlu0 %v1734_v26 }
 0xe73   :  { %v1733_v59 = vpop.xlane.xlu1 %1732 }
 0xe74   :  { %v1737_v60 = vmul.f32 0.015625, %v1733_v59 }
 0xe76   :  { %v1739_v61 = vadd.f32 1e-05, %v1737_v60 }
 0xe77   :  { %v1736_v62 = vpop.xlane.xlu0 %1735 }
 0xe78   :  { %10665 = vrsqrt.f32 %v1739_v61  ;;  %v1738_v51 = vmul.f32 0.015625, %v1736_v62 }
 0xe7a   :  { %v1740_v1 = vadd.f32 1e-05, %v1738_v51 }
 0xe7c   :  { %10667 = vrsqrt.f32 %v1740_v1 }
 0xe82   :  { %v10666_v3 = vpop.eup %10665 }
 0xe83   :  { %v1743_v41 = vmul.f32 %v10666_v3, %v1727_v20 }
 0xe85   :  { %v1749_v11 = vmul.f32 %v1748_v55, %v1743_v41 }
 0xe86   :  { %v10668_v13 = vpop.eup %10667 }
 0xe87   :  { %v1755_v16 = vadd.f32 %v1754_v8, %v1749_v11  ;;  %v1744_v19 = vmul.f32 %v10668_v13, %v1728_v7 }
 0xe89   :  { %8331 = vmatmul.mubr.msk.f32.vlgmr.msra.gmra.mrb[14].mxu1 %vm387_vm0, %v1755_v16  ;;  %v1750_v21 = vmul.f32 %v1748_v55, %v1744_v19 }
 0xe8a   :  { %1859 = vmatprep.mubr.f32.mxu1 %v10913_v31 }
 0xe8b   :  { %v1756_v28 = vadd.f32 %v1754_v8, %v1750_v21 }
 0xe8d   :  { %8332 = vmatmul.mubr.msk.f32.gmra.mrb[16].mxu1 %vm387_vm0, %v1756_v28 }
 0xf5c   :  { %v1855_v24 = vpop.f32.mrb[14].mxu1 }
 0xf5d   :  { %v1857_v27 = vpop.f32.mrb[15].mxu1  ;;  %v11599_v5 = vmul.f32 0.125, %v1855_v24 }
 0xf5f   :  { %9241 = vmatprep.mubr.msk.f32.mxu1 %vm542_vm6, %v11599_v5 }
 0xf60   :  { %v1861_v20 = vpop.f32.mrb[16].mxu1 }
 0xf61   :  { %v1863_v26 = vpop.f32.mrb[17].mxu1  ;;  %v11603_v4 = vpack.i.bf16 %v1861_v20, %v1855_v24  ;;  %v11613_v23 = vmul.f32 0.125, %v1861_v20 }
 0xf62   :  { %v9863_v7 = vpack.c.bf16 %v1863_v26, %v1857_v27  ;;  %v11605_v22 = vpack.i.bf16 %v1863_v26, %v1857_v27 }
 0xf63   :  { %10449 = vrot.lane.b32.xlu1 %v11603_v4, %s10915_s4 }
 0xf67   :  { %10454 = vrot.lane.b32.xlu1 %v11603_v4, %s10918_s28 }
 0xf6b   :  { %10459 = vrot.lane.b32.xlu1 %v11603_v4, %s10919_s29 }
 0xf6f   :  { %2064 = vrot.lane.b32.xlu1 %v11613_v23, %s10916_s26 }
 0xf73   :  { %2264 = vrot.lane.b32.xlu1 %v11599_v5, %s10921_s0 }
 0xf77   :  { %2266 = vrot.lane.b32.xlu1 %v11613_v23, %s10921_s0 }
 0xfd5   :  { %v10450_v44 = vpop.permute.xlu1 %10449 }
 0xfd6   :  { %v10452_v45 = vunpack.i.h.bf16 %v10450_v44  ;;  %v10451_v25 = vunpack.i.l.bf16 %v10450_v44 }
 0xfd8   :  { %v9857_v39 = vpack.c.bf16 %v10452_v45, %v10451_v25 }
 0xfd9   :  { %v10455_v29 = vpop.permute.xlu1 %10454 }
 0xfda   :  { %9859 = vmatprep.subr.msk.bf16.mxu1 %vm11200_vm7, %v9857_v39  ;;  %v10457_v30 = vunpack.i.h.bf16 %v10455_v29  ;;  %v10456_v32 = vunpack.i.l.bf16 %v10455_v29 }
 0xfdb   :  { %9862 = vmatpush3.bf16.xpose.msk.msra.mxu1 %vm11200_vm7, %v9857_v39 }
 0xfdc   :  { %9864 = vmatprep.subr.bf16.mxu1 %v9863_v7  ;;  %v9867_v35 = vpack.c.bf16 %v10457_v30, %v10456_v32 }
 0xfdd   :  { %v10460_v55 = vpop.permute.xlu1 %10459 }
 0xfde   :  { %v10462_v41 = vunpack.i.h.bf16 %v10460_v55  ;;  %v10461_v8 = vunpack.i.l.bf16 %v10460_v55 }
 0xfe0   :  { %v9877_v16 = vpack.c.bf16 %v10462_v41, %v10461_v8 }
 0xfe1   :  { %v2065_v21 = vpop.permute.xlu1 %2064 }
 0xfe2   :  { %9242 = vmatmul.mubr.msk.f32.vlgmr.msra.gmra.mrb[18].mxu1 %vm542_vm6, %v11613_v23 }
 0xfe3   :  { %9866 = vmatpush3.bf16.msra.mxu1 %v9863_v7 }
 0xfe4   :  { %9869 = vmatprep.subr.msk.bf16.mxu1 %vm11200_vm7, %v9867_v35 }
 0xfe5   :  { %v2265_v28 = vpop.permute.xlu1 %2264 }
 0xfe9   :  { %v2267_v24 = vpop.permute.xlu1 %2266 }
0x10b5   :  { %v9243_v37 = vpop.f32.mrb[18].mxu1 }
0x10b6   :  { %v1950_v38 = vpop.f32.mrb[19].mxu1  ;;  %v1956_v40 = vadd.f32 %v9243_v37, %v11212_v14 }
0x10b7   :  { %v1951_v46 = vadd.f32 %v1950_v38, %v11217_v15 }
0x10b8   :  { %v1962_v49 = vsel %vm542_vm6, %v1956_v40, -inf }
0x10b9   :  { %v1959_v47 = vsel %vm542_vm6, %v1951_v46, -inf }
0x10ba   :  { %1960 = vmax.xlane.f32.xlu0 %v1959_v47 }
0x10be   :  { %1963 = vmax.xlane.f32.xlu0 %v1962_v49 }
0x1147   :  { %v1961_v52 = vpop.xlane.xlu0 %1960 }
0x1148   :  { %v1965_v50 = vsub.f32 %v1951_v46, %v1961_v52 }
0x114a   :  { %v1967_v53 = vmul.f32 1.442695, %v1965_v50 }
0x114b   :  { %v1964_v54 = vpop.xlane.xlu0 %1963 }
0x114c   :  { %10669 = vpow2.f32 %v1967_v53  ;;  %v1966_v56 = vsub.f32 %v1956_v40, %v1964_v54 }
0x114e   :  { %v1969_v57 = vmul.f32 1.442695, %v1966_v56 }
0x1150   :  { %10671 = vpow2.f32 %v1969_v57 }
0x1156   :  { %v10670_v58 = vpop.eup %10669 }
0x1157   :  { %v1971_v59 = vsel %vm542_vm6, %v10670_v58, 0.0 }
0x1158   :  { %1972 = vadd.xlane.f32.xlu0 %v1971_v59 }
0x115a   :  { %v10672_v60 = vpop.eup %10671 }
0x115b   :  { %v1974_v61 = vsel %vm542_vm6, %v10672_v60, 0.0 }
0x115c   :  { %1975 = vadd.xlane.f32.xlu0 %v1974_v61 }
0x1172   :  { %2062 = vrot.lane.b32.xlu0 %v11599_v5, %s10916_s26 }
0x11e5   :  { %v1973_v62 = vpop.xlane.xlu0 %1972 }
0x11e6   :  { %10673 = vrcp.f32 %v1973_v62 }
0x11e9   :  { %v1976_v51 = vpop.xlane.xlu0 %1975 }
0x11ea   :  { %10675 = vrcp.f32 %v1976_v51 }
0x11ed   :  { %v2063_v19 = vpop.permute.xlu0 %2062 }
0x11f0   :  { %v10674_v1 = vpop.eup %10673 }
0x11f1   :  { %v1979_v3 = vmul.f32 %v10674_v1, %v10670_v58 }
0x11f3   :  { %9248 = vmatprep.mubr.msk.f32.mxu1 %vm542_vm6, %v1979_v3 }
0x11f4   :  { %v10676_v11 = vpop.eup %10675 }
0x11f5   :  { %v1980_v13 = vmul.f32 %v10676_v11, %v10672_v60 }
0x11f7   :  { %9249 = vmatmul.mubr.msk.f32.vlgmr.msra.gmra.mrb[20].mxu1 %vm542_vm6, %v1980_v13 }
0x11f8   :  { %9872 = vmatpush3.bf16.xpose.msk.msra.mxu1 %vm11200_vm7, %v9867_v35  ;;  %9255 = vmatprep.mubr.msk.f32.mxu1 %vm542_vm6, %v2063_v19 }
0x11f9   :  { %9879 = vmatprep.subr.msk.bf16.mxu1 %vm11200_vm7, %v9877_v16 }
0x11ff   :  { %9256 = vmatmul.mubr.msk.f32.vlgmr.msra.gmra.mrb[22].mxu1 %vm542_vm6, %v2065_v21 }
0x1200   :  { %9882 = vmatpush3.bf16.xpose.msk.msra.mxu1 %vm11200_vm7, %v9877_v16  ;;  %9269 = vmatprep.mubr.msk.f32.mxu1 %vm542_vm6, %v2265_v28 }
0x1207   :  { %9270 = vmatmul.mubr.msk.f32.vlgmr.msra.gmra.mrb[24].mxu1 %vm542_vm6, %v2267_v24 }
0x12ca   :  { %v11649_v27 = vpop.f32.mrb[20].mxu1 }
0x12cb   :  { %v11651_v20 = vpop.f32.mrb[21].mxu1 }
0x12d2   :  { %v9257_v26 = vpop.f32.mrb[22].mxu1 }
0x12d3   :  { %v2150_v7 = vadd.f32 %v9257_v26, %v11212_v14  ;;  %v2144_v44 = vpop.f32.mrb[23].mxu1 }
0x12d4   :  { %v2145_v45 = vadd.f32 %v2144_v44, %v11217_v15 }
0x12d5   :  { %v2156_v25 = vsel %vm542_vm6, %v2150_v7, -inf }
0x12d6   :  { %2157 = vmax.xlane.f32.xlu0 %v2156_v25  ;;  %v2153_v39 = vsel %vm542_vm6, %v2145_v45, -inf }
0x12d7   :  { %2154 = vmax.xlane.f32.xlu1 %v2153_v39 }
0x12da   :  { %v9271_v29 = vpop.f32.mrb[24].mxu1 }
0x12db   :  { %v2352_v30 = vadd.f32 %v9271_v29, %v11212_v14  ;;  %v2346_v32 = vpop.f32.mrb[25].mxu1 }
0x12dc   :  { %v2347_v35 = vadd.f32 %v2346_v32, %v11217_v15 }
0x12dd   :  { %v2358_v37 = vsel %vm542_vm6, %v2352_v30, -inf }
0x12de   :  { %2359 = vmax.xlane.f32.xlu1 %v2358_v37  ;;  %v2355_v38 = vsel %vm542_vm6, %v2347_v35, -inf }
0x12df   :  { %2356 = vmax.xlane.f32.xlu0 %v2355_v38 }
0x1363   :  { %v2158_v46 = vpop.xlane.xlu0 %2157 }
0x1364   :  { %v2160_v40 = vsub.f32 %v2150_v7, %v2158_v46  ;;  %v2155_v47 = vpop.xlane.xlu1 %2154 }
0x1365   :  { %v2159_v49 = vsub.f32 %v2145_v45, %v2155_v47 }
0x1366   :  { %v2163_v52 = vmul.f32 1.442695, %v2160_v40 }
0x1367   :  { %v2161_v50 = vmul.f32 1.442695, %v2159_v49 }
0x1368   :  { %10677 = vpow2.f32 %v2163_v52 }
0x1369   :  { %10679 = vpow2.f32 %v2161_v50 }
0x136b   :  { %v2360_v53 = vpop.xlane.xlu1 %2359 }
0x136c   :  { %v2362_v54 = vsub.f32 %v2352_v30, %v2360_v53  ;;  %v2357_v56 = vpop.xlane.xlu0 %2356 }
0x136d   :  { %v2361_v57 = vsub.f32 %v2347_v35, %v2357_v56 }
0x136e   :  { %v2365_v58 = vmul.f32 1.442695, %v2362_v54 }
0x136f   :  { %v2363_v59 = vmul.f32 1.442695, %v2361_v57 }
0x1370   :  { %10681 = vpow2.f32 %v2365_v58 }
0x1371   :  { %10683 = vpow2.f32 %v2363_v59 }
0x1372   :  { %v10678_v60 = vpop.eup %10677 }
0x1373   :  { %v10680_v61 = vpop.eup %10679  ;;  %v2168_v62 = vsel %vm542_vm6, %v10678_v60, 0.0 }
0x1374   :  { %2169 = vadd.xlane.f32.xlu1 %v2168_v62  ;;  %v2165_v51 = vsel %vm542_vm6, %v10680_v61, 0.0 }
0x1375   :  { %2166 = vadd.xlane.f32.xlu0 %v2165_v51 }
0x137a   :  { %v10682_v1 = vpop.eup %10681 }
0x137b   :  { %v10684_v55 = vpop.eup %10683  ;;  %v2370_v3 = vsel %vm542_vm6, %v10682_v1, 0.0 }
0x137c   :  { %2371 = vadd.xlane.f32.xlu1 %v2370_v3  ;;  %v2367_v41 = vsel %vm542_vm6, %v10684_v55, 0.0 }
0x137d   :  { %2368 = vadd.xlane.f32.xlu0 %v2367_v41 }
0x138d   :  { %10469 = vrot.lane.b32.xlu1 %v11605_v22, %s10921_s0 }
0x1391   :  { %10474 = vrot.lane.b32.xlu1 %v11603_v4, %s13305_s5 }
0x1393   :  { %10464 = vrot.lane.b32.xlu0 %v11605_v22, %s10916_s26 }
0x1395   :  { %2466 = vrot.lane.b32.xlu1 %v11613_v23, %s13306_s6 }
0x1397   :  { %2464 = vrot.lane.b32.xlu0 %v11599_v5, %s13306_s6 }
0x1401   :  { %v2170_v11 = vpop.xlane.xlu1 %2169 }
0x1402   :  { %v2167_v8 = vpop.xlane.xlu0 %2166 }
0x1403   :  { %10685 = vrcp.f32 %v2167_v8 }
0x1404   :  { %10687 = vrcp.f32 %v2170_v11 }
0x1409   :  { %v2372_v13 = vpop.xlane.xlu1 %2371 }
0x140a   :  { %v2369_v16 = vpop.xlane.xlu0 %2368 }
0x140b   :  { %10689 = vrcp.f32 %v2369_v16 }
0x140c   :  { %10691 = vrcp.f32 %v2372_v13 }
0x140d   :  { %v10686_v19 = vpop.eup %10685  ;;  %v10470_v21 = vpop.permute.xlu1 %10469 }
0x140e   :  { %v10465_v4 = vpop.permute.xlu0 %10464  ;;  %v2173_v28 = vmul.f32 %v10686_v19, %v10680_v61  ;;  %v10472_v24 = vunpack.i.h.bf16 %v10470_v21  ;;  %v10471_v26 = vunpack.i.l.bf16 %v10470_v21  ;;  %v10688_v45 = vpop.eup %10687 }
0x140f   :  { %v10467_v7 = vunpack.i.h.bf16 %v10465_v4  ;;  %v10466_v44 = vunpack.i.l.bf16 %v10465_v4  ;;  %v2174_v32 = vmul.f32 %v10688_v45, %v10678_v60  ;;  %v8325_v45 = vld [vmem:[%s13274_s7 + $0x50] sm:$0xff] }
0x1410   :  { %9262 = vmatprep.mubr.msk.f32.mxu0 %vm542_vm6, %v2173_v28  ;;  %v9883_v29 = vpack.c.bf16 %v10472_v24, %v10471_v26 }
0x1411   :  { %v10475_v23 = vpop.permute.xlu1 %10474  ;;  %v9873_v5 = vpack.c.bf16 %v10467_v7, %v10466_v44 }
0x1412   :  { %v10477_v25 = vunpack.i.h.bf16 %v10475_v23  ;;  %v10476_v39 = vunpack.i.l.bf16 %v10475_v23  ;;  %v2465_v40 = vpop.permute.xlu0 %2464  ;;  %v8323_v23 = vld [vmem:[%s13274_s7 + $0x40] sm:$0xff] }
0x1413   :  { %9874 = vmatprep.subr.bf16.mxu0 %v9873_v5 }
0x1414   :  { %9876 = vmatpush3.bf16.msra.mxu0 %v9873_v5  ;;  %v9887_v38 = vpack.c.bf16 %v10477_v25, %v10476_v39  ;;  %v8324_v5 = vld [vmem:[%s13274_s7 + $0x48] sm:$0xff]  ;;  %v8326_v39 = vld [vmem:[%s13274_s7 + $0x58] sm:$0xff] }
0x1415   :  { %v10690_v30 = vpop.eup %10689  ;;  %9884 = vmatprep.subr.bf16.mxu0 %v9883_v29  ;;  %v2467_v47 = vpop.permute.xlu1 %2466  ;;  %v9897_v25 = vpack.c.bf16 %v8324_v5, %v8323_v23 }
0x1416   :  { %v10692_v35 = vpop.eup %10691  ;;  %v2375_v37 = vmul.f32 %v10690_v30, %v10684_v55  ;;  %v8327_v30 = vld [vmem:[%s13274_s7 + $0x60] sm:$0xff] }
0x1417   :  { %9263 = vmatmul.mubr.msk.f32.vlgmr.msra.gmra.mrb[22].mxu0 %vm542_vm6, %v2174_v32  ;;  %v2376_v46 = vmul.f32 %v10692_v35, %v10682_v1  ;;  %v8328_v32 = vld [vmem:[%s13274_s7 + $0x68] sm:$0xff] }
0x1418   :  { %9886 = vmatpush3.bf16.msra.mxu0 %v9883_v29  ;;  %9276 = vmatprep.mubr.msk.f32.mxu0 %vm542_vm6, %v2375_v37  ;;  %v9901_v29 = vpack.c.bf16 %v8326_v39, %v8325_v45  ;;  %v9905_v35 = vpack.c.bf16 %v8328_v32, %v8327_v30  ;;  %v8329_v37 = vld [vmem:[%s13274_s7 + $0x70] sm:$0xff] }
0x1419   :  { %9889 = vmatprep.subr.msk.bf16.mxu0 %vm11200_vm7, %v9887_v38 }
0x141b   :  { %9277 = vmatmul.mubr.msk.f32.vlgmr.msra.gmra.mrb[24].mxu0 %vm542_vm6, %v2376_v46 }
0x141c   :  { %9283 = vmatprep.mubr.msk.f32.mxu0 %vm542_vm6, %v2465_v40 }
0x1421   :  { %9892 = vmatpush3.bf16.xpose.msk.msra.mxu0 %vm11200_vm7, %v9887_v38  ;;  %v8330_v38 = vld [vmem:[%s13274_s7 + $0x78] sm:$0xff] }
0x1422   :  { %v9909_v46 = vpack.c.bf16 %v8330_v38, %v8329_v37  ;;  %v8360_v37 = vld [vmem:[%s13275_s8 + $0x98] sm:$0xff]  ;;  %v8362_v38 = vld [vmem:[%s13275_s8 + $0xa8] sm:$0xff] }
0x1428   :  { %9284 = vmatmul.mubr.msk.f32.vlgmr.msra.gmra.mrb[26].mxu0 %vm542_vm6, %v2467_v47 }
0x1429   :  { %2950 = vmatprep.mubr.f32.mxu0 %v10913_v31 }
0x14ea   :  { %v9264_v49 = vpop.f32.mrb[22].mxu0 }
0x14eb   :  { %v2255_v52 = vpop.f32.mrb[23].mxu0 }
0x14ee   :  { %v9278_v50 = vpop.f32.mrb[24].mxu0 }
0x14ef   :  { %v2455_v53 = vpop.f32.mrb[25].mxu0 }
0x14fb   :  { %v9285_v54 = vpop.f32.mrb[26].mxu0 }
0x14fc   :  { %v2552_v56 = vadd.f32 %v9285_v54, %v11212_v14  ;;  %v2546_v57 = vpop.f32.mrb[27].mxu0 }
0x14fd   :  { %v2547_v58 = vadd.f32 %v2546_v57, %v11217_v15 }
0x14fe   :  { %v2558_v59 = vsel %vm542_vm6, %v2552_v56, -inf }
0x14ff   :  { %2559 = vmax.xlane.f32.xlu1 %v2558_v59  ;;  %v2555_v60 = vsel %vm542_vm6, %v2547_v58, -inf }
0x1500   :  { %2556 = vmax.xlane.f32.xlu0 %v2555_v60 }
0x1510   :  { %10479 = vrot.lane.b32.xlu1 %v11605_v22, %s13306_s6 }
0x1514   :  { %2668 = vrot.lane.b32.xlu1 %v9264_v49, %s13305_s5 }
0x1518   :  { %2674 = vrot.lane.b32.xlu1 %v2455_v53, %s10919_s29 }
0x158c   :  { %v2560_v61 = vpop.xlane.xlu1 %2559 }
0x158d   :  { %v2562_v62 = vsub.f32 %v2552_v56, %v2560_v61  ;;  %v2557_v51 = vpop.xlane.xlu0 %2556 }
0x158e   :  { %v2561_v1 = vsub.f32 %v2547_v58, %v2557_v51 }
0x158f   :  { %v2565_v55 = vmul.f32 1.442695, %v2562_v62 }
0x1590   :  { %v2563_v3 = vmul.f32 1.442695, %v2561_v1  ;;  %v10480_v41 = vpop.permute.xlu1 %10479 }
0x1591   :  { %v10482_v8 = vunpack.i.h.bf16 %v10480_v41  ;;  %v10481_v11 = vunpack.i.l.bf16 %v10480_v41 }
0x1592   :  { %10693 = vpow2.f32 %v2563_v3 }
0x1593   :  { %v9893_v13 = vpack.c.bf16 %v10482_v8, %v10481_v11  ;;  %10695 = vpow2.f32 %v2565_v55 }
0x1595   :  { %9894 = vmatprep.subr.bf16.mxu1 %v9893_v13 }
0x1596   :  { %9896 = vmatpush3.bf16.msra.mxu1 %v9893_v13  ;;  %v3050_v13 = vsel %vm387_vm0, %v11192_v0, 0.0 }
0x1597   :  { %9898 = vmatprep.subr.bf16.mxu1 %v9897_v25 }
0x159c   :  { %v10694_v16 = vpop.eup %10693 }
0x159d   :  { %v2567_v22 = vsel %vm542_vm6, %v10694_v16, 0.0  ;;  %v10696_v19 = vpop.eup %10695 }
0x159e   :  { %2568 = vadd.xlane.f32.xlu0 %v2567_v22  ;;  %v2570_v21 = vsel %vm542_vm6, %v10696_v19, 0.0 }
0x15a2   :  { %2571 = vadd.xlane.f32.xlu0 %v2570_v21 }
0x15b8   :  { %2666 = vrot.lane.b32.xlu0 %v2255_v52, %s13305_s5  ;;  %v2669_v52 = vpop.permute.xlu1 %2668 }
0x15b9   :  { %v2689_v57 = vsel %vm542_vm6, %v11649_v27, %v2669_v52  ;;  %v8364_v52 = vld [vmem:[%s13275_s8 + $0xb8] sm:$0xff] }
0x15bc   :  { %2676 = vrot.lane.b32.xlu0 %v9278_v50, %s10919_s29  ;;  %v2675_v53 = vpop.permute.xlu1 %2674 }
0x162b   :  { %v2569_v4 = vpop.xlane.xlu0 %2568 }
0x162c   :  { %10697 = vrcp.f32 %v2569_v4 }
0x162f   :  { %v2572_v28 = vpop.xlane.xlu0 %2571 }
0x1630   :  { %10699 = vrcp.f32 %v2572_v28 }
0x1633   :  { %v2667_v49 = vpop.permute.xlu0 %2666 }
0x1634   :  { %v2688_v54 = vsel %vm542_vm6, %v11651_v20, %v2667_v49  ;;  %v2697_v20 = vrot.slane %v11590_v2, %v11330_v33 }
0x1635   :  { %v2690_v59 = vsel %vm1359_vm4, %v2688_v54, %v2675_v53  ;;  %v8363_v54 = vld [vmem:[%s13275_s8 + $0xb0] sm:$0xff] }
0x1636   :  { %v10698_v24 = vpop.eup %10697 }
0x1637   :  { %v2575_v26 = vmul.f32 %v10698_v24, %v10694_v16  ;;  %v2677_v50 = vpop.permute.xlu0 %2676  ;;  %v3053_v16 = vsel %vm387_vm0, %v11189_v63, 0.0 }
0x1638   :  { %v2691_v60 = vsel %vm1359_vm4, %v2689_v57, %v2677_v50  ;;  %v8366_v50 = vld [vmem:[%s13275_s8 + $0xc8] sm:$0xff] }
0x1639   :  { %9290 = vmatprep.mubr.msk.f32.mxu1 %vm542_vm6, %v2575_v26  ;;  %v9917_v53 = vpack.c.bf16 %v8366_v50, %v8364_v52  ;;  %v8383_v52 = vld [vmem:[%s13276_s9 + $0x138] sm:$0xff]  ;;  %v8384_v50 = vld [vmem:[%s13276_s9 + $0x140] sm:$0xff] }
0x163a   :  { %v10700_v7 = vpop.eup %10699 }
0x163b   :  { %v2576_v44 = vmul.f32 %v10700_v7, %v10696_v19 }
0x163d   :  { %9291 = vmatmul.mubr.msk.f32.vlgmr.msra.gmra.mrb[26].mxu1 %vm542_vm6, %v2576_v44 }
0x163e   :  { %9900 = vmatpush3.bf16.msra.mxu1 %v9897_v25 }
0x163f   :  { %9902 = vmatprep.subr.bf16.mxu1 %v9901_v29 }
0x1642   :  { %9904 = vmatpush3.bf16.msra.mxu1 %v9901_v29 }
0x1643   :  { %9906 = vmatprep.subr.bf16.mxu1 %v9905_v35 }
0x1646   :  { %9908 = vmatpush3.bf16.msra.mxu1 %v9905_v35 }
0x1647   :  { %9910 = vmatprep.subr.bf16.mxu1 %v9909_v46 }
0x164a   :  { %9912 = vmatpush3.bf16.msra.mxu1 %v9909_v46  ;;  %v9913_v46 = vpack.c.bf16 %v8362_v38, %v8360_v37  ;;  %v8381_v37 = vld [vmem:[%s13276_s9 + $0x128] sm:$0xff]  ;;  %v8382_v38 = vld [vmem:[%s13276_s9 + $0x130] sm:$0xff] }
0x164c   :  { %9914 = vmatprep.subr.bf16.mxu0 %v9913_v46  ;;  %v8399_v46 = vld [vmem:[%s13276_s9 + $0x1b8] sm:$0xff] }
0x1710   :  { %v9292_v40 = vpop.f32.mrb[26].mxu1 }
0x1711   :  { %2684 = vrot.lane.b32.xlu0 %v9292_v40, %s10918_s28  ;;  %v2655_v47 = vpop.f32.mrb[27].mxu1  ;;  %v8359_v40 = vld [vmem:[%s13275_s8 + $0x90] sm:$0xff] }
0x1712   :  { %2682 = vrot.lane.b32.xlu1 %v2655_v47, %s10918_s28  ;;  %v8361_v47 = vld [vmem:[%s13275_s8 + $0xa0] sm:$0xff] }
0x1713   :  { %v9915_v49 = vpack.c.bf16 %v8361_v47, %v8359_v40  ;;  %v8400_v40 = vld [vmem:[%s13276_s9 + $0x1c0] sm:$0xff]  ;;  %v9939_v47 = vpack.c.bf16 %v8382_v38, %v8381_v37  ;;  %v3090_v37 = vld [vmem:[%s13278_s11 + $0x10] sm:$0xff] }
0x1715   :  { %9916 = vmatpush1.bf16.msra.mxu0 %v9915_v49  ;;  %v9941_v49 = vpack.c.bf16 %v8400_v40, %v8399_v46  ;;  %v3093_v46 = vld [vmem:[%s13278_s11 + $0x28] sm:$0xff] }
0x1716   :  { %9918 = vmatprep.subr.bf16.mxu0 %v9917_v53  ;;  %v8401_v53 = vld [vmem:[%s13276_s9 + $0x1c8] sm:$0xff] }
0x1783   :  { %v2685_v56 = vpop.permute.xlu0 %2684 }
0x1784   :  { %v2683_v58 = vpop.permute.xlu1 %2682  ;;  %v2693_v62 = vsel %vm1362_vm5, %v2691_v60, %v2685_v56  ;;  %v8365_v56 = vld [vmem:[%s13275_s8 + $0xc0] sm:$0xff] }
0x1785   :  { %v2692_v61 = vsel %vm1362_vm5, %v2690_v59, %v2683_v58  ;;  %v9919_v57 = vpack.c.bf16 %v8365_v56, %v8363_v54  ;;  %v8368_v58 = vld [vmem:[%s13275_s8 + $0xd8] sm:$0xff]  ;;  %v8370_v59 = vld [vmem:[%s13275_s8 + $0xe8] sm:$0xff]  ;;  %v8402_v54 = vld [vmem:[%s13276_s9 + $0x1d0] sm:$0xff]  ;;  %v9943_v56 = vpack.c.bf16 %v8384_v50, %v8383_v52 }
0x1786   :  { %9309 = vmatprep.mubr.msk.f32.mxu1 %vm387_vm0, %v2692_v61  ;;  %v9921_v60 = vpack.c.bf16 %v8370_v59, %v8368_v58  ;;  %v8367_v61 = vld [vmem:[%s13275_s8 + $0xd0] sm:$0xff]  ;;  %v8385_v58 = vld [vmem:[%s13276_s9 + $0x148] sm:$0xff]  ;;  %v3092_v50 = vld [vmem:[%s13278_s11 + $0x20] sm:$0xff] }
0x1787   :  { %9310 = vmatmul.mubr.msk.f32.vlgmr.msra.gmra.mrb[28].mxu1 %vm387_vm0, %v2693_v62  ;;  %9920 = vmatpush1.bf16.msra.mxu0 %v9919_v57  ;;  %v8369_v62 = vld [vmem:[%s13275_s8 + $0xe0] sm:$0xff]  ;;  %v9945_v57 = vpack.c.bf16 %v8402_v54, %v8401_v53  ;;  %v8386_v59 = vld [vmem:[%s13276_s9 + $0x150] sm:$0xff]  ;;  %v3097_v53 = vld [vmem:[%s13278_s11 + $0x48] sm:$0xff] }
0x1788   :  { %9922 = vmatprep.subr.bf16.mxu0 %v9921_v60  ;;  %v8403_v60 = vld [vmem:[%s13276_s9 + $0x1d8] sm:$0xff] }
0x1789   :  { %v3099_v54 = vld [vmem:[%s13278_s11 + $0x58] sm:$0xff] }
0x185a   :  { %v9311_v51 = vpop.f32.mrb[28].mxu1 }
0x185b   :  { %v2776_v1 = vadd.f32 %v9311_v51, %v2697_v20  ;;  %v2770_v55 = vpop.f32.mrb[29].mxu1  ;;  %v8372_v51 = vld [vmem:[%s13275_s8 + $0xf8] sm:$0xff] }
0x185c   :  { %v2771_v27 = vadd.f32 %v2770_v55, %v2697_v20  ;;  %v9923_v20 = vpack.c.bf16 %v8369_v62, %v8367_v61  ;;  %v8404_v61 = vld [vmem:[%s13276_s9 + $0x1e0] sm:$0xff]  ;;  %v9947_v62 = vpack.c.bf16 %v8386_v59, %v8385_v58  ;;  %v9969_v58 = vpack.c.bf16 %v3099_v54, %v3097_v53 }
0x185d   :  { %v11739_v3 = vadd.f32 %v2776_v1, %v11531_v12  ;;  %v8374_v1 = vld [vmem:[%s13275_s8 + $0x108] sm:$0xff]  ;;  %v3096_v59 = vld [vmem:[%s13278_s11 + $0x40] sm:$0xff] }
0x185e   :  { %v11742_v41 = vadd.f32 %v2771_v27, %v11526_v6  ;;  %9924 = vmatpush1.bf16.msra.mxu0 %v9923_v20  ;;  %v9925_v55 = vpack.c.bf16 %v8374_v1, %v8372_v51  ;;  %v8371_v27 = vld [vmem:[%s13275_s8 + $0xf0] sm:$0xff]  ;;  %v9949_v20 = vpack.c.bf16 %v8404_v61, %v8403_v60  ;;  %v8387_v51 = vld [vmem:[%s13276_s9 + $0x158] sm:$0xff]  ;;  %v8388_v1 = vld [vmem:[%s13276_s9 + $0x160] sm:$0xff] }
0x185f   :  { %v2784_v8 = vsel %vm387_vm0, %v11739_v3, 0.0  ;;  %v3098_v60 = vld [vmem:[%s13278_s11 + $0x50] sm:$0xff] }
0x1860   :  { %2785 = vadd.xlane.f32.xlu0 %v2784_v8  ;;  %v2781_v11 = vsel %vm387_vm0, %v11742_v41, 0.0  ;;  %v8373_v8 = vld [vmem:[%s13275_s8 + $0x100] sm:$0xff]  ;;  %9926 = vmatprep.subr.bf16.mxu0 %v9925_v55  ;;  %v8405_v55 = vld [vmem:[%s13276_s9 + $0x1e8] sm:$0xff] }
0x1861   :  { %2782 = vadd.xlane.f32.xlu1 %v2781_v11  ;;  %v9927_v11 = vpack.c.bf16 %v8373_v8, %v8371_v27  ;;  %v8406_v27 = vld [vmem:[%s13276_s9 + $0x1f0] sm:$0xff]  ;;  %v9951_v8 = vpack.c.bf16 %v8388_v1, %v8387_v51  ;;  %v3103_v51 = vld [vmem:[%s13278_s11 + $0x78] sm:$0xff]  ;;  %v9971_v1 = vpack.c.bf16 %v3098_v60, %v3096_v59 }
0x1863   :  { %9928 = vmatpush1.bf16.msra.mxu0 %v9927_v11  ;;  %v9953_v11 = vpack.c.bf16 %v8406_v27, %v8405_v55 }
0x1864   :  { %3051 = vadd.xlane.f32.xlu0 %v3050_v13  ;;  %v3089_v13 = vld [vmem:[%s13278_s11 + $0x8] sm:$0xff] }
0x1865   :  { %3054 = vadd.xlane.f32.xlu1 %v3053_v16  ;;  %v3091_v16 = vld [vmem:[%s13278_s11 + $0x18] sm:$0xff] }
0x18ed   :  { %v2786_v12 = vpop.xlane.xlu0 %2785 }
0x18ee   :  { %v2788_v22 = vmul.f32 0.015625, %v2786_v12  ;;  %v2783_v6 = vpop.xlane.xlu1 %2782  ;;  %v9961_v12 = vpack.c.bf16 %v3091_v16, %v3089_v13 }
0x18ef   :  { %v2787_v19 = vmul.f32 0.015625, %v2783_v6  ;;  %v8394_v6 = vld [vmem:[%s13276_s9 + $0x190] sm:$0xff] }
0x18f0   :  { %v11753_v21 = vsub.f32 %v11739_v3, %v2788_v22  ;;  %9962 = vmatprep.subr.bf16.mxu0 %v9961_v12  ;;  %v8393_v22 = vld [vmem:[%s13276_s9 + $0x188] sm:$0xff] }
0x18f1   :  { %v11756_v4 = vsub.f32 %v11742_v41, %v2787_v19  ;;  %v3052_v28 = vpop.xlane.xlu0 %3051  ;;  %v8377_v19 = vld [vmem:[%s13276_s9 + $0x108] sm:$0xff] }
0x18f2   :  { %v3056_v24 = vmul.f32 0.015625, %v3052_v28  ;;  %v3055_v26 = vpop.xlane.xlu1 %3054  ;;  %v2792_v7 = vmul.f32 %v11753_v21, %v11753_v21  ;;  %v9929_v28 = vpack.c.bf16 %v8394_v6, %v8393_v22 }
0x18f3   :  { %v3057_v44 = vmul.f32 0.015625, %v3055_v26  ;;  %v2791_v23 = vmul.f32 %v11756_v4, %v11756_v4  ;;  %v8395_v26 = vld [vmem:[%s13276_s9 + $0x198] sm:$0xff] }
0x18f4   :  { %v11763_v5 = vsub.f32 %v11192_v0, %v3056_v24  ;;  %v2796_v45 = vsel %vm387_vm0, %v2792_v7, 0.0  ;;  %v8378_v24 = vld [vmem:[%s13276_s9 + $0x110] sm:$0xff]  ;;  %v8396_v7 = vld [vmem:[%s13276_s9 + $0x1a0] sm:$0xff]  ;;  %9930 = vmatprep.subr.bf16.mxu1 %v9929_v28 }
0x18f5   :  { %v11767_v25 = vsub.f32 %v11189_v63, %v3057_v44  ;;  %2797 = vadd.xlane.f32.xlu1 %v2796_v45  ;;  %v2793_v39 = vsel %vm387_vm0, %v2791_v23, 0.0  ;;  %v9931_v44 = vpack.c.bf16 %v8378_v24, %v8377_v19  ;;  %v9933_v23 = vpack.c.bf16 %v8396_v7, %v8395_v26  ;;  %v8379_v45 = vld [vmem:[%s13276_s9 + $0x118] sm:$0xff] }
0x18f6   :  { %2794 = vadd.xlane.f32.xlu0 %v2793_v39  ;;  %v3060_v29 = vmul.f32 %v11763_v5, %v11763_v5  ;;  %v8380_v39 = vld [vmem:[%s13276_s9 + $0x120] sm:$0xff] }
0x18f7   :  { %v3061_v30 = vmul.f32 %v11767_v25, %v11767_v25  ;;  %9932 = vmatpush3.bf16.msra.mxu1 %v9931_v44 }
0x18f8   :  { %v3062_v32 = vsel %vm387_vm0, %v3060_v29, 0.0  ;;  %v8397_v29 = vld [vmem:[%s13276_s9 + $0x1a8] sm:$0xff]  ;;  %9934 = vmatprep.subr.bf16.mxu1 %v9933_v23 }
0x18f9   :  { %v3065_v35 = vsel %vm387_vm0, %v3061_v30, 0.0  ;;  %v8398_v30 = vld [vmem:[%s13276_s9 + $0x1b0] sm:$0xff] }
0x18fa   :  { %3063 = vadd.xlane.f32.xlu0 %v3062_v32  ;;  %3066 = vadd.xlane.f32.xlu1 %v3065_v35  ;;  %v9935_v32 = vpack.c.bf16 %v8380_v39, %v8379_v45  ;;  %v9937_v35 = vpack.c.bf16 %v8398_v30, %v8397_v29  ;;  %v2810_v45 = vrot.slane %v11590_v2, %v11483_v17 }
0x18fc   :  { %9936 = vmatpush3.bf16.msra.mxu1 %v9935_v32  ;;  %v2816_v32 = vrot.slane %v11590_v2, %v11486_v18 }
0x18fd   :  { %9938 = vmatprep.subr.bf16.mxu1 %v9937_v35  ;;  %v3088_v35 = vld [vmem:[%s13278_s11] sm:$0xff] }
0x18fe   :  { %v9963_v2 = vpack.c.bf16 %v3090_v37, %v3088_v35  ;;  %v8411_v35 = vld [vmem:[%s13275_s8 + $0x118] ss:$0 sm:$0xff] }
0x1900   :  { %9940 = vmatpush3.bf16.msra.mxu1 %v9939_v47 }
0x1901   :  { %9942 = vmatprep.subr.bf16.mxu1 %v9941_v49 }
0x1904   :  { %9944 = vmatpush3.bf16.msra.mxu1 %v9943_v56 }
0x1905   :  { %9946 = vmatprep.subr.bf16.mxu1 %v9945_v57 }
0x1908   :  { %9948 = vmatpush3.bf16.msra.mxu1 %v9947_v62  ;;  %v11949_v62 = vld [vmem:[%s13277_s10] sm:$0xff] }
0x1909   :  { %9950 = vmatprep.subr.bf16.mxu1 %v9949_v20  ;;  %v3101_v20 = vld [vmem:[%s13278_s11 + $0x68] sm:$0xff]  ;;  %v3079_v55 = vrot.slane %v11949_v62, %v11167_v43 }
0x190c   :  { %9952 = vmatpush3.bf16.msra.mxu1 %v9951_v8  ;;  %v9973_v8 = vpack.c.bf16 %v3103_v51, %v3101_v20 }
0x190d   :  { %9954 = vmatprep.subr.bf16.mxu1 %v9953_v11  ;;  %v3100_v11 = vld [vmem:[%s13278_s11 + $0x60] sm:$0xff] }
0x1982   :  { %v2798_v13 = vpop.xlane.xlu1 %2797 }
0x1983   :  { %v2800_v16 = vmul.f32 0.015625, %v2798_v13  ;;  %v2795_v12 = vpop.xlane.xlu0 %2794  ;;  %v3102_v13 = vld [vmem:[%s13278_s11 + $0x70] sm:$0xff] }
0x1984   :  { %v2799_v22 = vmul.f32 0.015625, %v2795_v12  ;;  %v9975_v12 = vpack.c.bf16 %v3102_v13, %v3100_v11 }
0x1985   :  { %v2802_v6 = vadd.f32 1e-05, %v2800_v16 }
0x1986   :  { %v2801_v19 = vadd.f32 1e-05, %v2799_v22 }
0x1987   :  { %10701 = vrsqrt.f32 %v2802_v6  ;;  %v3064_v28 = vpop.xlane.xlu0 %3063  ;;  %v3067_v26 = vpop.xlane.xlu1 %3066  ;;  %v3085_v6 = vrot.slane %v11949_v62, %v11175_v48 }
0x1988   :  { %10703 = vrsqrt.f32 %v2801_v19  ;;  %v3068_v24 = vmul.f32 0.015625, %v3064_v28  ;;  %v3069_v44 = vmul.f32 0.015625, %v3067_v26  ;;  %v8389_v26 = vld [vmem:[%s13276_s9 + $0x168] sm:$0xff] }
0x198a   :  { %v3070_v7 = vadd.f32 1e-05, %v3068_v24  ;;  %v3071_v29 = vadd.f32 1e-05, %v3069_v44 }
0x198c   :  { %10705 = vrsqrt.f32 %v3070_v7  ;;  %v8390_v7 = vld [vmem:[%s13276_s9 + $0x170] sm:$0xff] }
0x198d   :  { %10707 = vrsqrt.f32 %v3071_v29  ;;  %v9955_v44 = vpack.c.bf16 %v8390_v7, %v8389_v26  ;;  %v8392_v29 = vld [vmem:[%s13276_s9 + $0x180] sm:$0xff] }
0x198f   :  { %9956 = vmatpush3.bf16.msra.mxu1 %v9955_v44 }
0x1991   :  { %v10702_v23 = vpop.eup %10701 }
0x1992   :  { %v10704_v39 = vpop.eup %10703  ;;  %v2806_v38 = vmul.f32 %v10702_v23, %v11753_v21  ;;  %v3094_v21 = vld [vmem:[%s13278_s11 + $0x30] sm:$0xff]  ;;  %v8408_v23 = vld [vmem:[%s13276_s9 + $0x200] sm:$0xff] }
0x1993   :  { %v2805_v30 = vmul.f32 %v10704_v39, %v11756_v4  ;;  %v3095_v4 = vld [vmem:[%s13278_s11 + $0x38] sm:$0xff]  ;;  %v9967_v56 = vpack.c.bf16 %v3094_v21, %v3092_v50 }
0x1994   :  { %v9965_v49 = vpack.c.bf16 %v3095_v4, %v3093_v46  ;;  %v2812_v52 = vmul.f32 %v2810_v45, %v2806_v38  ;;  %v8391_v39 = vld [vmem:[%s13276_s9 + $0x178] sm:$0xff] }
0x1995   :  { %v2811_v40 = vmul.f32 %v2810_v45, %v2805_v30  ;;  %v9959_v30 = vpack.c.bf16 %v8392_v29, %v8391_v39 }
0x1996   :  { %v2818_v57 = vadd.f32 %v2816_v32, %v2812_v52  ;;  %v10706_v61 = vpop.eup %10705 }
0x1997   :  { %v2817_v47 = vadd.f32 %v2816_v32, %v2811_v40  ;;  %v3074_v27 = vmul.f32 %v10706_v61, %v11763_v5  ;;  %v10708_v16 = vpop.eup %10707  ;;  %v8410_v32 = vld [vmem:[%s13275_s8 + $0x110] ss:$0 sm:$0xff] }
0x1998   :  { %v3075_v5 = vmul.f32 %v10708_v16, %v11767_v25  ;;  %v8407_v25 = vld [vmem:[%s13276_s9 + $0x1f8] sm:$0xff] }
0x1999   :  { %8412 = vmatmul.mubr.msk.f32.vlgmr.msra.gmra.mrb[28].mxu0 %vm387_vm0, %v2817_v47  ;;  %v3080_v22 = vmul.f32 %v3079_v55, %v3074_v27  ;;  %v9957_v45 = vpack.c.bf16 %v8408_v23, %v8407_v25 }
0x199a   :  { %9964 = vmatpush1.bf16.msra.mxu0 %v9963_v2  ;;  %2956 = vmatprep.mubr.f32.mxu0 %v10913_v31  ;;  %v3081_v28 = vmul.f32 %v3079_v55, %v3075_v5 }
0x199b   :  { %9966 = vmatprep.subr.bf16.mxu0 %v9965_v49  ;;  %v3086_v19 = vadd.f32 %v3085_v6, %v3080_v22  ;;  %9958 = vmatprep.subr.bf16.mxu1 %v9957_v45 }
0x199c   :  { %v3087_v24 = vadd.f32 %v3085_v6, %v3081_v28  ;;  %9960 = vmatpush3.bf16.msra.mxu1 %v9959_v30 }
0x199d   :  { %8413 = vmatmul.mubr.msk.f32.gmra.mrb[30].mxu0 %vm387_vm0, %v2818_v57 }
0x199e   :  { %9968 = vmatpush1.bf16.msra.mxu0 %v9967_v56  ;;  %3182 = vmatprep.mubr.f32.mxu0 %v10913_v31 }
0x199f   :  { %9970 = vmatprep.subr.bf16.mxu0 %v9969_v58 }
0x19a2   :  { %9972 = vmatpush1.bf16.msra.mxu0 %v9971_v1 }
0x19a3   :  { %9974 = vmatprep.subr.bf16.mxu0 %v9973_v8 }
0x19a6   :  { %9976 = vmatpush1.bf16.msra.mxu0 %v9975_v12 }
0x19a9   :  { %8415 = vmatmul.mubr.msk.f32.vlgmr.msra.gmra.mrb[32].mxu0 %vm387_vm0, %v3086_v19 }
0x19aa   :  { %3188 = vmatprep.mubr.f32.mxu0 %v10913_v31 }
0x19ad   :  { %8416 = vmatmul.mubr.msk.f32.gmra.mrb[34].mxu0 %vm387_vm0, %v3087_v24 }
0x1a6c   :  { %v2952_v37 = vpop.f32.mrb[28].mxu0 }
0x1a6d   :  { %v2953_v38 = vadd.f32 %v8410_v32, %v2952_v37  ;;  %v2954_v46 = vpop.f32.mrb[29].mxu0 }
0x1a6e   :  { %v2955_v4 = vadd.f32 %v8411_v35, %v2954_v46 }
0x1a6f   :  { %v2963_v47 = vmax.f32 %v2953_v38, 0.0 }
0x1a70   :  { %v2964_v40 = vmax.f32 %v2955_v4, 0.0  ;;  %v2958_v2 = vpop.f32.mrb[30].mxu0 }
0x1a71   :  { %v2959_v49 = vadd.f32 %v8410_v32, %v2958_v2  ;;  %v2960_v52 = vpop.f32.mrb[31].mxu0 }
0x1a72   :  { %v2961_v50 = vadd.f32 %v8411_v35, %v2960_v52  ;;  %3035 = vmatprep.mubr.f32.mxu1 %v2964_v40 }
0x1a73   :  { %3036 = vmatmul.mubr.f32.vlgmr.msra.gmra.mrb[30].mxu1 %v2963_v47  ;;  %v2965_v53 = vmax.f32 %v2959_v49, 0.0 }
0x1a74   :  { %v2966_v21 = vmax.f32 %v2961_v50, 0.0 }
0x1a76   :  { %3040 = vmatprep.mubr.f32.mxu1 %v2966_v21 }
0x1a77   :  { %3041 = vmatmul.mubr.f32.gmra.mrb[32].mxu1 %v2965_v53 }
0x1a7c   :  { %v3184_v54 = vpop.f32.mrb[32].mxu0 }
0x1a7d   :  { %v3186_v56 = vpop.f32.mrb[33].mxu0  ;;  %v11998_v57 = vmul.f32 0.125, %v3184_v54 }
0x1a7f   :  { %9316 = vmatprep.mubr.msk.f32.mxu0 %vm542_vm6, %v11998_v57 }
0x1a80   :  { %v3190_v58 = vpop.f32.mrb[34].mxu0 }
0x1a81   :  { %v3192_v59 = vpop.f32.mrb[35].mxu0  ;;  %v12002_v60 = vpack.i.bf16 %v3190_v58, %v3184_v54  ;;  %v12012_v51 = vmul.f32 0.125, %v3190_v58 }
0x1a82   :  { %v12004_v61 = vpack.i.bf16 %v3192_v59, %v3186_v56  ;;  %v9983_v20 = vpack.c.bf16 %v3192_v59, %v3186_v56 }
0x1a83   :  { %10484 = vrot.lane.b32.xlu0 %v12002_v60, %s10915_s4 }
0x1a87   :  { %3391 = vrot.lane.b32.xlu0 %v11998_v57, %s10916_s26 }
0x1a8b   :  { %10494 = vrot.lane.b32.xlu0 %v12002_v60, %s10919_s29 }
0x1a8f   :  { %3393 = vrot.lane.b32.xlu0 %v12012_v51, %s10916_s26 }
0x1a93   :  { %3593 = vrot.lane.b32.xlu0 %v11998_v57, %s10921_s0 }
0x1af5   :  { %v10485_v1 = vpop.permute.xlu0 %10484 }
0x1af6   :  { %v10487_v55 = vunpack.i.h.bf16 %v10485_v1  ;;  %v10486_v27 = vunpack.i.l.bf16 %v10485_v1 }
0x1af8   :  { %v9977_v8 = vpack.c.bf16 %v10487_v55, %v10486_v27 }
0x1af9   :  { %v3392_v4 = vpop.permute.xlu0 %3391 }
0x1afa   :  { %9979 = vmatprep.subr.msk.bf16.mxu0 %vm11200_vm7, %v9977_v8 }
0x1afb   :  { %9982 = vmatpush3.bf16.xpose.msk.msra.mxu0 %vm11200_vm7, %v9977_v8 }
0x1afc   :  { %9984 = vmatprep.subr.bf16.mxu0 %v9983_v20 }
0x1afd   :  { %v10495_v52 = vpop.permute.xlu0 %10494 }
0x1afe   :  { %v10497_v53 = vunpack.i.h.bf16 %v10495_v52  ;;  %v10496_v54 = vunpack.i.l.bf16 %v10495_v52 }
0x1b00   :  { %v9997_v59 = vpack.c.bf16 %v10497_v53, %v10496_v54 }
0x1b02   :  { %9317 = vmatmul.mubr.msk.f32.vlgmr.msra.gmra.mrb[36].mxu0 %vm542_vm6, %v12012_v51 }
0x1b03   :  { %9986 = vmatpush3.bf16.msra.mxu0 %v9983_v20  ;;  %v3394_v20 = vpop.permute.xlu0 %3393 }
0x1b07   :  { %v3594_v1 = vpop.permute.xlu0 %3593 }
0x1b46   :  { %v8837_v11 = vpop.f32.mrb[30].mxu1 }
0x1b47   :  { %v8838_v13 = vpop.f32.mrb[31].mxu1 }
0x1b48   :  { %v12024_v16 = vadd.f32 %v8838_v13, %v8837_v11 }
0x1b4a   :  { %v8840_v12 = vpop.f32.mrb[32].mxu1 }
0x1b4b   :  { %v8841_v22 = vpop.f32.mrb[33].mxu1 }
0x1b4c   :  { %v12026_v6 = vadd.f32 %v8841_v22, %v8840_v12 }
0x1bd5   :  { %v9318_v5 = vpop.f32.mrb[36].mxu0 }
0x1bd6   :  { %v3279_v19 = vpop.f32.mrb[37].mxu0  ;;  %v3285_v24 = vadd.f32 %v9318_v5, %v11068_v36 }
0x1bd7   :  { %v3280_v28 = vadd.f32 %v3279_v19, %v11062_v34 }
0x1bd8   :  { %v3291_v7 = vsel %vm542_vm6, %v3285_v24, -inf }
0x1bd9   :  { %v3288_v26 = vsel %vm542_vm6, %v3280_v28, -inf }
0x1bda   :  { %3289 = vmax.xlane.f32.xlu1 %v3288_v26 }
0x1bde   :  { %3292 = vmax.xlane.f32.xlu1 %v3291_v7 }
0x1c67   :  { %v3290_v44 = vpop.xlane.xlu1 %3289 }
0x1c68   :  { %v3294_v25 = vsub.f32 %v3280_v28, %v3290_v44 }
0x1c6a   :  { %v3296_v39 = vmul.f32 1.442695, %v3294_v25 }
0x1c6b   :  { %v3293_v23 = vpop.xlane.xlu1 %3292 }
0x1c6c   :  { %v3295_v45 = vsub.f32 %v3285_v24, %v3293_v23 }
0x1c6e   :  { %v3298_v29 = vmul.f32 1.442695, %v3295_v45 }
0x1c70   :  { %10709 = vpow2.f32 %v3298_v29 }
0x1c71   :  { %10711 = vpow2.f32 %v3296_v39 }
0x1c7a   :  { %v10710_v30 = vpop.eup %10709 }
0x1c7b   :  { %v3303_v32 = vsel %vm542_vm6, %v10710_v30, 0.0  ;;  %v10712_v35 = vpop.eup %10711 }
0x1c7c   :  { %3304 = vadd.xlane.f32.xlu1 %v3303_v32  ;;  %v3300_v37 = vsel %vm542_vm6, %v10712_v35, 0.0 }
0x1c80   :  { %3301 = vadd.xlane.f32.xlu1 %v3300_v37 }
0x1c91   :  { %10489 = vrot.lane.b32.xlu1 %v12002_v60, %s10918_s28 }
0x1c95   :  { %3595 = vrot.lane.b32.xlu1 %v12012_v51, %s10921_s0 }
0x1d09   :  { %v3305_v38 = vpop.xlane.xlu1 %3304 }
0x1d0a   :  { %10713 = vrcp.f32 %v3305_v38 }
0x1d0d   :  { %v3302_v46 = vpop.xlane.xlu1 %3301 }
0x1d0e   :  { %10715 = vrcp.f32 %v3302_v46 }
0x1d11   :  { %v10490_v40 = vpop.permute.xlu1 %10489 }
0x1d12   :  { %v10492_v2 = vunpack.i.h.bf16 %v10490_v40  ;;  %v10491_v47 = vunpack.i.l.bf16 %v10490_v40 }
0x1d14   :  { %v9987_v49 = vpack.c.bf16 %v10492_v2, %v10491_v47  ;;  %v10714_v50 = vpop.eup %10713 }
0x1d15   :  { %v3309_v58 = vmul.f32 %v10714_v50, %v10710_v30  ;;  %v3596_v55 = vpop.permute.xlu1 %3595 }
0x1d16   :  { %9989 = vmatprep.subr.msk.bf16.mxu0 %vm11200_vm7, %v9987_v49 }
0x1d18   :  { %v10716_v21 = vpop.eup %10715 }
0x1d19   :  { %v3308_v56 = vmul.f32 %v10716_v21, %v10712_v35 }
0x1d1b   :  { %9323 = vmatprep.mubr.msk.f32.mxu0 %vm542_vm6, %v3308_v56 }
0x1d1c   :  { %9324 = vmatmul.mubr.msk.f32.vlgmr.msra.gmra.mrb[38].mxu0 %vm542_vm6, %v3309_v58 }
0x1d1d   :  { %9992 = vmatpush3.bf16.xpose.msk.msra.mxu0 %vm11200_vm7, %v9987_v49  ;;  %9330 = vmatprep.mubr.msk.f32.mxu0 %vm542_vm6, %v3392_v4 }
0x1d1e   :  { %9999 = vmatprep.subr.msk.bf16.mxu0 %vm11200_vm7, %v9997_v59 }
0x1d24   :  { %9331 = vmatmul.mubr.msk.f32.vlgmr.msra.gmra.mrb[40].mxu0 %vm542_vm6, %v3394_v20 }
0x1d25   :  { %10002 = vmatpush3.bf16.xpose.msk.msra.mxu0 %vm11200_vm7, %v9997_v59  ;;  %9344 = vmatprep.mubr.msk.f32.mxu0 %vm542_vm6, %v3594_v1 }
0x1d2c   :  { %9345 = vmatmul.mubr.msk.f32.vlgmr.msra.gmra.mrb[42].mxu0 %vm542_vm6, %v3596_v55 }
0x1def   :  { %v12052_v27 = vpop.f32.mrb[38].mxu0 }
0x1df0   :  { %v12054_v8 = vpop.f32.mrb[39].mxu0 }
0x1df7   :  { %v9332_v11 = vpop.f32.mrb[40].mxu0 }
0x1df8   :  { %v3479_v13 = vadd.f32 %v9332_v11, %v11068_v36  ;;  %v3473_v12 = vpop.f32.mrb[41].mxu0 }
0x1df9   :  { %v3474_v22 = vadd.f32 %v3473_v12, %v11062_v34 }
0x1dfa   :  { %v3485_v5 = vsel %vm542_vm6, %v3479_v13, -inf }
0x1dfb   :  { %3486 = vmax.xlane.f32.xlu1 %v3485_v5  ;;  %v3482_v19 = vsel %vm542_vm6, %v3474_v22, -inf }
0x1dfc   :  { %3483 = vmax.xlane.f32.xlu0 %v3482_v19 }
0x1dff   :  { %v9346_v28 = vpop.f32.mrb[42].mxu0 }
0x1e00   :  { %v3675_v24 = vpop.f32.mrb[43].mxu0  ;;  %v3681_v7 = vadd.f32 %v9346_v28, %v11068_v36 }
0x1e01   :  { %v3676_v26 = vadd.f32 %v3675_v24, %v11062_v34 }
0x1e02   :  { %v3687_v25 = vsel %vm542_vm6, %v3681_v7, -inf }
0x1e03   :  { %v3684_v44 = vsel %vm542_vm6, %v3676_v26, -inf }
0x1e04   :  { %3685 = vmax.xlane.f32.xlu0 %v3684_v44 }
0x1e08   :  { %3688 = vmax.xlane.f32.xlu0 %v3687_v25 }
0x1e0c   :  { %10499 = vrot.lane.b32.xlu1 %v12004_v61, %s10916_s26 }
0x1e88   :  { %v3487_v23 = vpop.xlane.xlu1 %3486 }
0x1e89   :  { %v3489_v45 = vsub.f32 %v3479_v13, %v3487_v23  ;;  %v3484_v39 = vpop.xlane.xlu0 %3483 }
0x1e8a   :  { %v3488_v29 = vsub.f32 %v3474_v22, %v3484_v39 }
0x1e8b   :  { %v3492_v30 = vmul.f32 1.442695, %v3489_v45 }
0x1e8c   :  { %v3490_v32 = vmul.f32 1.442695, %v3488_v29  ;;  %v10500_v35 = vpop.permute.xlu1 %10499 }
0x1e8d   :  { %10717 = vpow2.f32 %v3492_v30  ;;  %v10502_v37 = vunpack.i.h.bf16 %v10500_v35  ;;  %v10501_v38 = vunpack.i.l.bf16 %v10500_v35 }
0x1e8e   :  { %10719 = vpow2.f32 %v3490_v32 }
0x1e8f   :  { %v9993_v46 = vpack.c.bf16 %v10502_v37, %v10501_v38 }
0x1e91   :  { %9994 = vmatprep.subr.bf16.mxu1 %v9993_v46  ;;  %v3686_v4 = vpop.xlane.xlu0 %3685 }
0x1e92   :  { %9996 = vmatpush3.bf16.msra.mxu1 %v9993_v46  ;;  %v3690_v56 = vsub.f32 %v3676_v26, %v3686_v4 }
0x1e94   :  { %v3692_v58 = vmul.f32 1.442695, %v3690_v56 }
0x1e95   :  { %v3689_v40 = vpop.xlane.xlu0 %3688 }
0x1e96   :  { %v3691_v2 = vsub.f32 %v3681_v7, %v3689_v40 }
0x1e97   :  { %v10718_v47 = vpop.eup %10717 }
0x1e98   :  { %v10720_v49 = vpop.eup %10719  ;;  %v3694_v52 = vmul.f32 1.442695, %v3691_v2  ;;  %v3497_v50 = vsel %vm542_vm6, %v10718_v47, 0.0 }
0x1e99   :  { %3498 = vadd.xlane.f32.xlu0 %v3497_v50  ;;  %v3494_v21 = vsel %vm542_vm6, %v10720_v49, 0.0 }
0x1e9a   :  { %10721 = vpow2.f32 %v3694_v52  ;;  %3495 = vadd.xlane.f32.xlu1 %v3494_v21 }
0x1e9b   :  { %10723 = vpow2.f32 %v3692_v58 }
0x1ea4   :  { %v10722_v53 = vpop.eup %10721 }
0x1ea5   :  { %v3699_v54 = vsel %vm542_vm6, %v10722_v53, 0.0  ;;  %v10724_v59 = vpop.eup %10723 }
0x1ea6   :  { %3700 = vadd.xlane.f32.xlu0 %v3699_v54  ;;  %v3696_v20 = vsel %vm542_vm6, %v10724_v59, 0.0 }
0x1eab   :  { %10509 = vrot.lane.b32.xlu1 %v12002_v60, %s13305_s5 }
0x1ebc   :  { %10504 = vrot.lane.b32.xlu0 %v12004_v61, %s10921_s0 }
0x1ec0   :  { %3795 = vrot.lane.b32.xlu0 %v12012_v51, %s13306_s6 }
0x1ecf   :  { %3697 = vadd.xlane.f32.xlu1 %v3696_v20 }
0x1ee0   :  { %3793 = vrot.lane.b32.xlu1 %v11998_v57, %s13306_s6 }
0x1f26   :  { %v3499_v1 = vpop.xlane.xlu0 %3498 }
0x1f27   :  { %10725 = vrcp.f32 %v3499_v1  ;;  %v3496_v55 = vpop.xlane.xlu1 %3495 }
0x1f28   :  { %10727 = vrcp.f32 %v3496_v55 }
0x1f2b   :  { %v10510_v5 = vpop.permute.xlu1 %10509 }
0x1f2c   :  { %v10512_v19 = vunpack.i.h.bf16 %v10510_v5  ;;  %v10511_v28 = vunpack.i.l.bf16 %v10510_v5 }
0x1f2e   :  { %v10007_v7 = vpack.c.bf16 %v10512_v19, %v10511_v28 }
0x1f31   :  { %v10726_v60 = vpop.eup %10725 }
0x1f32   :  { %v10728_v11 = vpop.eup %10727  ;;  %v3503_v22 = vmul.f32 %v10726_v60, %v10718_v47 }
0x1f33   :  { %v3701_v13 = vpop.xlane.xlu0 %3700  ;;  %v3502_v12 = vmul.f32 %v10728_v11, %v10720_v49 }
0x1f34   :  { %10729 = vrcp.f32 %v3701_v13 }
0x1f35   :  { %9337 = vmatprep.mubr.msk.f32.mxu1 %vm542_vm6, %v3502_v12 }
0x1f36   :  { %9338 = vmatmul.mubr.msk.f32.vlgmr.msra.gmra.mrb[34].mxu1 %vm542_vm6, %v3503_v22 }
0x1f37   :  { %v10505_v51 = vpop.permute.xlu0 %10504 }
0x1f38   :  { %v10507_v24 = vunpack.i.h.bf16 %v10505_v51  ;;  %v10506_v26 = vunpack.i.l.bf16 %v10505_v51 }
0x1f3a   :  { %v10003_v57 = vpack.c.bf16 %v10507_v24, %v10506_v26  ;;  %v3105_v24 = vld [vmem:[%s13279_s12 + $0x8] sm:$0xff]  ;;  %v3106_v26 = vld [vmem:[%s13279_s12 + $0x10] sm:$0xff] }
0x1f3b   :  { %v3796_v30 = vpop.permute.xlu0 %3795 }
0x1f3c   :  { %10004 = vmatprep.subr.bf16.mxu1 %v10003_v57 }
0x1f3d   :  { %10006 = vmatpush3.bf16.msra.mxu1 %v10003_v57 }
0x1f3e   :  { %10009 = vmatprep.subr.msk.bf16.mxu1 %vm11200_vm7, %v10007_v7  ;;  %v10730_v25 = vpop.eup %10729 }
0x1f3f   :  { %v3705_v39 = vmul.f32 %v10730_v25, %v10722_v53  ;;  %v3108_v25 = vld [vmem:[%s13279_s12 + $0x20] sm:$0xff] }
0x1f5c   :  { %v3698_v44 = vpop.xlane.xlu1 %3697 }
0x1f5d   :  { %10731 = vrcp.f32 %v3698_v44 }
0x1f60   :  { %v3794_v29 = vpop.permute.xlu1 %3793 }
0x1f67   :  { %v10732_v23 = vpop.eup %10731 }
0x1f68   :  { %v3704_v45 = vmul.f32 %v10732_v23, %v10724_v59  ;;  %v3109_v23 = vld [vmem:[%s13279_s12 + $0x28] sm:$0xff] }
0x1f6a   :  { %9351 = vmatprep.mubr.msk.f32.mxu1 %vm542_vm6, %v3704_v45  ;;  %v10025_v45 = vpack.c.bf16 %v3109_v23, %v3108_v25 }
0x1f6b   :  { %9352 = vmatmul.mubr.msk.f32.vlgmr.msra.gmra.mrb[36].mxu1 %vm542_vm6, %v3705_v39  ;;  %v3110_v39 = vld [vmem:[%s13279_s12 + $0x30] sm:$0xff] }
0x1f6c   :  { %10012 = vmatpush3.bf16.xpose.msk.msra.mxu1 %vm11200_vm7, %v10007_v7  ;;  %9358 = vmatprep.mubr.msk.f32.mxu1 %vm542_vm6, %v3794_v29  ;;  %v3107_v7 = vld [vmem:[%s13279_s12 + $0x18] sm:$0xff] }
0x1f6d   :  { %v10021_v44 = vpack.c.bf16 %v3107_v7, %v3106_v26  ;;  %v3111_v29 = vld [vmem:[%s13279_s12 + $0x38] sm:$0xff] }
0x1f73   :  { %9359 = vmatmul.mubr.msk.f32.vlgmr.msra.gmra.mrb[38].mxu1 %vm542_vm6, %v3796_v30  ;;  %v10029_v30 = vpack.c.bf16 %v3111_v29, %v3110_v39 }
0x2009   :  { %v9339_v32 = vpop.f32.mrb[34].mxu1 }
0x200a   :  { %v3584_v35 = vpop.f32.mrb[35].mxu1 }
0x203e   :  { %v9353_v37 = vpop.f32.mrb[36].mxu1 }
0x203f   :  { %v3784_v38 = vpop.f32.mrb[37].mxu1 }
0x2046   :  { %v9360_v46 = vpop.f32.mrb[38].mxu1 }
0x2047   :  { %v3881_v4 = vadd.f32 %v9360_v46, %v11068_v36  ;;  %v3875_v40 = vpop.f32.mrb[39].mxu1 }
0x2048   :  { %v3876_v2 = vadd.f32 %v3875_v40, %v11062_v34 }
0x2049   :  { %v3887_v47 = vsel %vm542_vm6, %v3881_v4, -inf }
0x204a   :  { %3888 = vmax.xlane.f32.xlu0 %v3887_v47  ;;  %v3884_v49 = vsel %vm542_vm6, %v3876_v2, -inf }
0x204b   :  { %3885 = vmax.xlane.f32.xlu1 %v3884_v49 }
0x20d7   :  { %v3889_v52 = vpop.xlane.xlu0 %3888 }
0x20d8   :  { %v3891_v50 = vsub.f32 %v3881_v4, %v3889_v52  ;;  %v3886_v21 = vpop.xlane.xlu1 %3885 }
0x20d9   :  { %v3890_v53 = vsub.f32 %v3876_v2, %v3886_v21 }
0x20da   :  { %v3894_v54 = vmul.f32 1.442695, %v3891_v50 }
0x20db   :  { %v3892_v56 = vmul.f32 1.442695, %v3890_v53 }
0x20dc   :  { %10733 = vpow2.f32 %v3894_v54 }
0x20dd   :  { %10735 = vpow2.f32 %v3892_v56 }
0x20e6   :  { %v10734_v58 = vpop.eup %10733 }
0x20e7   :  { %v10736_v59 = vpop.eup %10735  ;;  %v3899_v20 = vsel %vm542_vm6, %v10734_v58, 0.0 }
0x20e8   :  { %3900 = vadd.xlane.f32.xlu1 %v3899_v20  ;;  %v3896_v1 = vsel %vm542_vm6, %v10736_v59, 0.0 }
0x20e9   :  { %3897 = vadd.xlane.f32.xlu0 %v3896_v1 }
0x20f9   :  { %3995 = vrot.lane.b32.xlu1 %v3584_v35, %s13305_s5 }
0x20fd   :  { %3997 = vrot.lane.b32.xlu1 %v9339_v32, %s13305_s5 }
0x20ff   :  { %10514 = vrot.lane.b32.xlu0 %v12004_v61, %s13306_s6  ;;  %v3104_v61 = vld [vmem:[%s13279_s12] sm:$0xff] }
0x2100   :  { %v10017_v57 = vpack.c.bf16 %v3105_v24, %v3104_v61 }
0x2101   :  { %4005 = vrot.lane.b32.xlu1 %v9353_v37, %s10919_s29  ;;  %v8414_v37 = vld [vmem:[%s13276_s9 + $0x208] ss:$0 sm:$0xff] }
0x2102   :  { %v3043_v46 = vadd.f32 %v12026_v6, %v8414_v37 }
0x2103   :  { %4003 = vrot.lane.b32.xlu0 %v3784_v38, %s10919_s29  ;;  %v3038_v38 = vadd.f32 %v12024_v16, %v8414_v37 }
0x2104   :  { %v3047_v2 = vadd.f32 %v3043_v46, %v11739_v3  ;;  %v8449_v46 = vld [vmem:[%s13278_s11 + $0xb0] sm:$0xff] }
0x2105   :  { %v3046_v4 = vadd.f32 %v3038_v38, %v11742_v41  ;;  %v8447_v38 = vld [vmem:[%s13278_s11 + $0xa0] sm:$0xff] }
0x2106   :  { %v4151_v47 = vsel %vm387_vm0, %v3047_v2, 0.0 }
0x2107   :  { %v4148_v40 = vsel %vm387_vm0, %v3046_v4, 0.0 }
0x2175   :  { %v3901_v55 = vpop.xlane.xlu1 %3900 }
0x2176   :  { %10737 = vrcp.f32 %v3901_v55  ;;  %v3898_v60 = vpop.xlane.xlu0 %3897 }
0x2177   :  { %10739 = vrcp.f32 %v3898_v60 }
0x2179   :  { %v3996_v49 = vpop.permute.xlu1 %3995 }
0x217a   :  { %v10515_v11 = vpop.permute.xlu0 %10514  ;;  %v4017_v53 = vsel %vm542_vm6, %v12054_v8, %v3996_v49  ;;  %v8455_v49 = vld [vmem:[%s13278_s11 + $0xe0] sm:$0xff] }
0x217b   :  { %v10517_v13 = vunpack.i.h.bf16 %v10515_v11  ;;  %v10516_v12 = vunpack.i.l.bf16 %v10515_v11 }
0x217d   :  { %v10013_v22 = vpack.c.bf16 %v10517_v13, %v10516_v12  ;;  %v3998_v52 = vpop.permute.xlu1 %3997  ;;  %v12151_v13 = vld [vmem:[%s13277_s10 + $0x8] sm:$0x3] }
0x217e   :  { %v4004_v21 = vpop.permute.xlu0 %4003  ;;  %v4018_v6 = vsel %vm542_vm6, %v12052_v27, %v3998_v52  ;;  %v8457_v52 = vld [vmem:[%s13278_s11 + $0xf0] sm:$0xff] }
0x217f   :  { %10014 = vmatprep.subr.bf16.mxu0 %v10013_v22  ;;  %v4019_v41 = vsel %vm1359_vm4, %v4017_v53, %v4004_v21 }
0x2180   :  { %v10738_v5 = vpop.eup %10737  ;;  %10016 = vmatpush3.bf16.msra.mxu0 %v10013_v22  ;;  %v4026_v22 = vrot.slane %v12151_v13, %v11167_v43 }
0x2181   :  { %v10740_v51 = vpop.eup %10739  ;;  %v3905_v28 = vmul.f32 %v10738_v5, %v10734_v58  ;;  %10018 = vmatprep.subr.bf16.mxu0 %v10017_v57  ;;  %v4006_v50 = vpop.permute.xlu1 %4005 }
0x2182   :  { %v3904_v19 = vmul.f32 %v10740_v51, %v10736_v59  ;;  %v4020_v3 = vsel %vm1359_vm4, %v4018_v6, %v4006_v50  ;;  %v10045_v50 = vpack.c.bf16 %v8457_v52, %v8455_v49 }
0x2184   :  { %9365 = vmatprep.mubr.msk.f32.mxu0 %vm542_vm6, %v3904_v19 }
0x2185   :  { %9366 = vmatmul.mubr.msk.f32.vlgmr.msra.gmra.mrb[44].mxu0 %vm542_vm6, %v3905_v28 }
0x2186   :  { %10020 = vmatpush3.bf16.msra.mxu0 %v10017_v57 }
0x2187   :  { %10022 = vmatprep.subr.bf16.mxu0 %v10021_v44 }
0x218a   :  { %10024 = vmatpush3.bf16.msra.mxu0 %v10021_v44  ;;  %v4177_v44 = vrot.slane %v11949_v62, %v11483_v17 }
0x218b   :  { %10026 = vmatprep.subr.bf16.mxu0 %v10025_v45 }
0x218e   :  { %10028 = vmatpush3.bf16.msra.mxu0 %v10025_v45  ;;  %v4183_v45 = vrot.slane %v11949_v62, %v11486_v18 }
0x218f   :  { %10030 = vmatprep.subr.bf16.mxu0 %v10029_v30 }
0x2192   :  { %10032 = vmatpush3.bf16.msra.mxu0 %v10029_v30 }
0x2258   :  { %v9367_v32 = vpop.f32.mrb[44].mxu0 }
0x2259   :  { %4013 = vrot.lane.b32.xlu1 %v9367_v32, %s10918_s28  ;;  %v3984_v35 = vpop.f32.mrb[45].mxu0  ;;  %v8443_v32 = vld [vmem:[%s13278_s11 + $0x80] sm:$0xff] }
0x225a   :  { %4011 = vrot.lane.b32.xlu0 %v3984_v35, %s10918_s28  ;;  %v8445_v35 = vld [vmem:[%s13278_s11 + $0x90] sm:$0xff] }
0x225b   :  { %v10033_v37 = vpack.c.bf16 %v8445_v35, %v8443_v32  ;;  %v4144_v35 = vsub.s32 5, %v11037_v9 }
0x225d   :  { %10034 = vmatprep.subr.bf16.mxu1 %v10033_v37 }
0x225e   :  { %10036 = vmatpush3.bf16.msra.mxu1 %v10033_v37  ;;  %v4139_v37 = vrot.slane %v11949_v62, %v11330_v33 }
0x2279   :  { %4149 = vadd.xlane.f32.xlu0 %v4148_v40  ;;  %v8451_v40 = vld [vmem:[%s13278_s11 + $0xc0] sm:$0xff] }
0x227d   :  { %4152 = vadd.xlane.f32.xlu1 %v4151_v47 }
0x22cb   :  { %v4014_v16 = vpop.permute.xlu1 %4013 }
0x22cc   :  { %v4012_v54 = vpop.permute.xlu0 %4011  ;;  %v4022_v58 = vsel %vm1362_vm5, %v4020_v3, %v4014_v16 }
0x22cd   :  { %v4021_v56 = vsel %vm1362_vm5, %v4019_v41, %v4012_v54 }
0x22ce   :  { %9384 = vmatprep.mubr.msk.f32.mxu0 %vm387_vm0, %v4021_v56 }
0x22cf   :  { %9385 = vmatmul.mubr.msk.f32.vlgmr.msra.gmra.mrb[46].mxu0 %vm387_vm0, %v4022_v58 }
0x2306   :  { %v4150_v59 = vpop.xlane.xlu0 %4149 }
0x2307   :  { %v4154_v20 = vmul.f32 0.015625, %v4150_v59 }
0x2309   :  { %v4156_v8 = vsub.f32 %v3046_v4, %v4154_v20  ;;  %v10037_v4 = vpack.c.bf16 %v8449_v46, %v8447_v38 }
0x230a   :  { %v4153_v27 = vpop.xlane.xlu1 %4152 }
0x230b   :  { %v4158_v1 = vmul.f32 %v4156_v8, %v4156_v8  ;;  %v4155_v19 = vmul.f32 0.015625, %v4153_v27  ;;  %10038 = vmatprep.subr.bf16.mxu1 %v10037_v4 }
0x230c   :  { %10040 = vmatpush3.bf16.msra.mxu1 %v10037_v4  ;;  %v4145_v4 = vrot.slane %v11949_v62, %v4144_v35 }
0x230d   :  { %v4160_v55 = vsel %vm387_vm0, %v4158_v1, 0.0  ;;  %v4157_v26 = vsub.f32 %v3047_v2, %v4155_v19  ;;  %v8453_v2 = vld [vmem:[%s13278_s11 + $0xd0] sm:$0xff]  ;;  %v8450_v19 = vld [vmem:[%s13278_s11 + $0xb8] sm:$0xff] }
0x230e   :  { %4161 = vadd.xlane.f32.xlu1 %v4160_v55  ;;  %v10041_v47 = vpack.c.bf16 %v8453_v2, %v8451_v40 }
0x230f   :  { %v4159_v39 = vmul.f32 %v4157_v26, %v4157_v26 }
0x2310   :  { %10042 = vmatprep.subr.bf16.mxu1 %v10041_v47 }
0x2311   :  { %v4163_v30 = vsel %vm387_vm0, %v4159_v39, 0.0  ;;  %10044 = vmatpush3.bf16.msra.mxu1 %v10041_v47 }
0x2312   :  { %10046 = vmatprep.subr.bf16.mxu1 %v10045_v50 }
0x2315   :  { %10048 = vmatpush3.bf16.msra.mxu1 %v10045_v50 }
0x239b   :  { %v4162_v60 = vpop.xlane.xlu1 %4161 }
0x239c   :  { %v4166_v11 = vmul.f32 0.015625, %v4162_v60 }
0x239e   :  { %v4168_v12 = vadd.f32 1e-05, %v4166_v11 }
0x23a0   :  { %10741 = vrsqrt.f32 %v4168_v12  ;;  %v8444_v12 = vld [vmem:[%s13278_s11 + $0x88] sm:$0xff] }
0x23a2   :  { %v9386_v5 = vpop.f32.mrb[46].mxu0 }
0x23a3   :  { %v4099_v51 = vpop.f32.mrb[47].mxu0  ;;  %v4105_v28 = vadd.f32 %v9386_v5, %v4026_v22 }
0x23a4   :  { %v4100_v61 = vadd.f32 %v4099_v51, %v4026_v22  ;;  %v8446_v22 = vld [vmem:[%s13278_s11 + $0x98] sm:$0xff]  ;;  %v8448_v51 = vld [vmem:[%s13278_s11 + $0xa8] sm:$0xff] }
0x23a5   :  { %v12159_v57 = vadd.f32 %v4105_v28, %v11189_v63  ;;  %v10049_v5 = vpack.c.bf16 %v8446_v22, %v8444_v12  ;;  %v10053_v28 = vpack.c.bf16 %v8450_v19, %v8448_v51 }
0x23a6   :  { %v12156_v24 = vadd.f32 %v4100_v61, %v11192_v0  ;;  %v8452_v61 = vld [vmem:[%s13278_s11 + $0xc8] sm:$0xff] }
0x23a7   :  { %v4113_v0 = vsel %vm387_vm0, %v12159_v57, 0.0  ;;  %10050 = vmatprep.subr.bf16.mxu0 %v10049_v5 }
0x23a8   :  { %v4110_v7 = vsel %vm387_vm0, %v12156_v24, 0.0  ;;  %10052 = vmatpush3.bf16.msra.mxu0 %v10049_v5 }
0x23a9   :  { %4111 = vadd.xlane.f32.xlu0 %v4110_v7  ;;  %10054 = vmatprep.subr.bf16.mxu0 %v10053_v28 }
0x23aa   :  { %v10742_v25 = vpop.eup %10741 }
0x23ab   :  { %v12165_v23 = vmul.f32 %v10742_v25, %v4156_v8  ;;  %v8458_v25 = vld [vmem:[%s13278_s11 + $0xf8] sm:$0xff] }
0x23ac   :  { %10056 = vmatpush3.bf16.msra.mxu0 %v10053_v28 }
0x23ad   :  { %4114 = vadd.xlane.f32.xlu0 %v4113_v0  ;;  %v4178_v63 = vmul.f32 %v4177_v44, %v12165_v23 }
0x23af   :  { %v4184_v29 = vadd.f32 %v4183_v45, %v4178_v63 }
0x23b1   :  { %4164 = vadd.xlane.f32.xlu0 %v4163_v30  ;;  %9403 = vmatprep.mubr.msk.f32.mxu1 %vm387_vm0, %v4184_v29 }
0x2436   :  { %v4112_v21 = vpop.xlane.xlu0 %4111 }
0x2437   :  { %v4116_v53 = vmul.f32 0.015625, %v4112_v21 }
0x2439   :  { %v4118_v16 = vsub.f32 %v12156_v24, %v4116_v53 }
0x243a   :  { %v4115_v6 = vpop.xlane.xlu0 %4114 }
0x243b   :  { %v4117_v41 = vmul.f32 0.015625, %v4115_v6  ;;  %v4120_v54 = vmul.f32 %v4118_v16, %v4118_v16 }
0x243d   :  { %v4119_v3 = vsub.f32 %v12159_v57, %v4117_v41  ;;  %v4122_v56 = vsel %vm387_vm0, %v4120_v54, 0.0 }
0x243e   :  { %4123 = vadd.xlane.f32.xlu1 %v4122_v56  ;;  %v4165_v58 = vpop.xlane.xlu0 %4164 }
0x243f   :  { %v4167_v59 = vmul.f32 0.015625, %v4165_v58  ;;  %v4121_v20 = vmul.f32 %v4119_v3, %v4119_v3 }
0x2441   :  { %v4169_v8 = vadd.f32 1e-05, %v4167_v59  ;;  %v4125_v1 = vsel %vm387_vm0, %v4121_v20, 0.0 }
0x2442   :  { %4126 = vadd.xlane.f32.xlu0 %v4125_v1 }
0x2443   :  { %10743 = vrsqrt.f32 %v4169_v8 }
0x244d   :  { %v10744_v55 = vpop.eup %10743 }
0x244e   :  { %v12202_v27 = vmul.f32 %v10744_v55, %v4157_v26  ;;  %v8454_v26 = vld [vmem:[%s13278_s11 + $0xd8] sm:$0xff] }
0x244f   :  { %v10057_v7 = vpack.c.bf16 %v8454_v26, %v8452_v61 }
0x2450   :  { %v4179_v60 = vmul.f32 %v4177_v44, %v12202_v27  ;;  %v8456_v44 = vld [vmem:[%s13278_s11 + $0xe8] sm:$0xff] }
0x2451   :  { %10058 = vmatprep.subr.bf16.mxu0 %v10057_v7 }
0x2452   :  { %v4185_v11 = vadd.f32 %v4183_v45, %v4179_v60  ;;  %10060 = vmatpush3.bf16.msra.mxu0 %v10057_v7  ;;  %v10061_v45 = vpack.c.bf16 %v8458_v25, %v8456_v44 }
0x2454   :  { %9404 = vmatmul.mubr.msk.f32.vlgmr.msra.gmra.mrb[40].mxu1 %vm387_vm0, %v4185_v11  ;;  %10062 = vmatprep.subr.bf16.mxu0 %v10061_v45 }
0x2456   :  { %10064 = vmatpush3.bf16.msra.mxu0 %v10061_v45 }
0x24cb   :  { %v4124_v0 = vpop.xlane.xlu1 %4123 }
0x24cc   :  { %v4128_v39 = vmul.f32 0.015625, %v4124_v0 }
0x24ce   :  { %v4130_v63 = vadd.f32 1e-05, %v4128_v39 }
0x24cf   :  { %v4127_v29 = vpop.xlane.xlu0 %4126 }
0x24d0   :  { %10745 = vrsqrt.f32 %v4130_v63  ;;  %v4129_v30 = vmul.f32 0.015625, %v4127_v29 }
0x24d2   :  { %v4131_v32 = vadd.f32 1e-05, %v4129_v30 }
0x24d4   :  { %10747 = vrsqrt.f32 %v4131_v32 }
0x24da   :  { %v10746_v38 = vpop.eup %10745 }
0x24db   :  { %v4134_v46 = vmul.f32 %v10746_v38, %v4118_v16 }
0x24dd   :  { %v4140_v40 = vmul.f32 %v4139_v37, %v4134_v46 }
0x24de   :  { %v10748_v2 = vpop.eup %10747 }
0x24df   :  { %v4135_v47 = vmul.f32 %v10748_v2, %v4119_v3  ;;  %v4146_v49 = vadd.f32 %v4145_v4, %v4140_v40 }
0x24e1   :  { %v4141_v52 = vmul.f32 %v4139_v37, %v4135_v47  ;;  %9422 = vmatprep.mubr.msk.f32.mxu0 %vm387_vm0, %v4146_v49 }
0x24e3   :  { %v4147_v50 = vadd.f32 %v4145_v4, %v4141_v52 }
0x24e5   :  { %9423 = vmatmul.mubr.msk.f32.vlgmr.msra.gmra.mrb[48].mxu0 %vm387_vm0, %v4147_v50 }
0x2527   :  { %v9405_v21 = vpop.f32.mrb[40].mxu1 }
0x2528   :  { %v4284_v53 = vpop.f32.mrb[41].mxu1 }
0x2529   :  { %v10065_v6 = vpack.c.bf16 %v9405_v21, %v4284_v53  ;;  %v12238_v41 = vpack.i.bf16 %v9405_v21, %v4284_v53 }
0x252b   :  { %10067 = vmatprep.subr.msk.bf16.mxu1 %vm11200_vm7, %v10065_v6 }
0x252c   :  { %10070 = vmatpush3.bf16.xpose.msk.msra.mxu1 %vm11200_vm7, %v10065_v6 }
0x25b8   :  { %v9424_v62 = vpop.f32.mrb[48].mxu0 }
0x25b9   :  { %v4365_v16 = vpop.f32.mrb[49].mxu0  ;;  %v12246_v3 = vmul.f32 0.125, %v9424_v62 }
0x25ba   :  { %v12244_v54 = vmul.f32 0.125, %v4365_v16 }
0x25bc   :  { %9429 = vmatprep.mubr.msk.f32.mxu1 %vm542_vm6, %v12244_v54 }
0x25bd   :  { %9430 = vmatmul.mubr.msk.f32.vlgmr.msra.gmra.mrb[42].mxu1 %vm542_vm6, %v12246_v3 }
0x2690   :  { %v9431_v56 = vpop.f32.mrb[42].mxu1 }
0x2691   :  { %v4460_v58 = vadd.f32 %v9431_v56, %v11212_v14  ;;  %v4454_v59 = vpop.f32.mrb[43].mxu1 }
0x2692   :  { %v4455_v20 = vadd.f32 %v4454_v59, %v11217_v15 }
0x2693   :  { %v4466_v8 = vsel %vm542_vm6, %v4460_v58, -inf }
0x2694   :  { %4467 = vmax.xlane.f32.xlu0 %v4466_v8  ;;  %v4463_v1 = vsel %vm542_vm6, %v4455_v20, -inf }
0x2695   :  { %4464 = vmax.xlane.f32.xlu1 %v4463_v1 }
0x26a6   :  { %10519 = vrot.lane.b32.xlu1 %v12238_v41, %s10915_s4 }
0x26aa   :  { %4572 = vrot.lane.b32.xlu1 %v12244_v54, %s10916_s26 }
0x2721   :  { %v4468_v55 = vpop.xlane.xlu0 %4467 }
0x2722   :  { %v4470_v60 = vsub.f32 %v4460_v58, %v4468_v55  ;;  %v4465_v11 = vpop.xlane.xlu1 %4464 }
0x2723   :  { %v4469_v12 = vsub.f32 %v4455_v20, %v4465_v11 }
0x2724   :  { %v4473_v22 = vmul.f32 1.442695, %v4470_v60 }
0x2725   :  { %v4471_v5 = vmul.f32 1.442695, %v4469_v12 }
0x2726   :  { %10749 = vpow2.f32 %v4473_v22  ;;  %v10520_v51 = vpop.permute.xlu1 %10519 }
0x2727   :  { %10751 = vpow2.f32 %v4471_v5  ;;  %v10522_v19 = vunpack.i.h.bf16 %v10520_v51  ;;  %v10521_v28 = vunpack.i.l.bf16 %v10520_v51 }
0x2729   :  { %v10071_v61 = vpack.c.bf16 %v10522_v19, %v10521_v28 }
0x272a   :  { %v4573_v45 = vpop.permute.xlu1 %4572 }
0x272b   :  { %10072 = vmatprep.subr.bf16.mxu1 %v10071_v61 }
0x272c   :  { %10074 = vmatpush3.bf16.msra.mxu1 %v10071_v61 }
0x2730   :  { %v10750_v26 = vpop.eup %10749 }
0x2731   :  { %v10752_v7 = vpop.eup %10751  ;;  %v4478_v44 = vsel %vm542_vm6, %v10750_v26, 0.0 }
0x2732   :  { %4479 = vadd.xlane.f32.xlu0 %v4478_v44  ;;  %v4475_v25 = vsel %vm542_vm6, %v10752_v7, 0.0 }
0x2733   :  { %4476 = vadd.xlane.f32.xlu1 %v4475_v25 }
0x2744   :  { %4574 = vrot.lane.b32.xlu1 %v12246_v3, %s10916_s26 }
0x2748   :  { %10524 = vrot.lane.b32.xlu0 %v12238_v41, %s10916_s26 }
0x27bf   :  { %v4480_v0 = vpop.xlane.xlu0 %4479 }
0x27c0   :  { %10753 = vrcp.f32 %v4480_v0  ;;  %v4477_v39 = vpop.xlane.xlu1 %4476 }
0x27c1   :  { %10755 = vrcp.f32 %v4477_v39 }
0x27c3   :  { %v10525_v63 = vpop.permute.xlu0 %10524 }
0x27c4   :  { %v10527_v29 = vunpack.i.h.bf16 %v10525_v63  ;;  %v10526_v30 = vunpack.i.l.bf16 %v10525_v63  ;;  %v4575_v40 = vpop.permute.xlu1 %4574 }
0x27c6   :  { %v10075_v32 = vpack.c.bf16 %v10527_v29, %v10526_v30 }
0x27c8   :  { %10077 = vmatprep.subr.msk.bf16.mxu1 %vm11200_vm7, %v10075_v32 }
0x27ca   :  { %v10754_v37 = vpop.eup %10753 }
0x27cb   :  { %v10756_v38 = vpop.eup %10755  ;;  %v4484_v4 = vmul.f32 %v10754_v37, %v10750_v26 }
0x27cc   :  { %v4483_v46 = vmul.f32 %v10756_v38, %v10752_v7 }
0x27ce   :  { %9436 = vmatprep.mubr.msk.f32.mxu1 %vm542_vm6, %v4483_v46 }
0x27cf   :  { %9437 = vmatmul.mubr.msk.f32.vlgmr.msra.gmra.mrb[44].mxu1 %vm542_vm6, %v4484_v4 }
0x27d0   :  { %10080 = vmatpush3.bf16.xpose.msk.msra.mxu1 %vm11200_vm7, %v10075_v32  ;;  %9443 = vmatprep.mubr.msk.f32.mxu1 %vm542_vm6, %v4573_v45 }
0x27d7   :  { %9444 = vmatmul.mubr.msk.f32.vlgmr.msra.gmra.mrb[46].mxu1 %vm542_vm6, %v4575_v40 }
0x28a2   :  { %v12274_v2 = vpop.f32.mrb[44].mxu1 }
0x28a3   :  { %v12276_v47 = vpop.f32.mrb[45].mxu1 }
0x28aa   :  { %v9445_v49 = vpop.f32.mrb[46].mxu1 }
0x28ab   :  { %v4660_v52 = vadd.f32 %v9445_v49, %v11212_v14  ;;  %v4654_v50 = vpop.f32.mrb[47].mxu1 }
0x28ac   :  { %v4655_v21 = vadd.f32 %v4654_v50, %v11217_v15 }
0x28ad   :  { %v4666_v53 = vsel %vm542_vm6, %v4660_v52, -inf }
0x28ae   :  { %4667 = vmax.xlane.f32.xlu1 %v4666_v53  ;;  %v4663_v6 = vsel %vm542_vm6, %v4655_v21, -inf }
0x28af   :  { %4664 = vmax.xlane.f32.xlu0 %v4663_v6 }
0x28bf   :  { %10529 = vrot.lane.b32.xlu1 %v12238_v41, %s10918_s28 }
0x28c3   :  { %4772 = vrot.lane.b32.xlu1 %v12244_v54, %s10921_s0 }
0x28c7   :  { %4774 = vrot.lane.b32.xlu1 %v12246_v3, %s10921_s0 }
0x293b   :  { %v4668_v62 = vpop.xlane.xlu1 %4667 }
0x293c   :  { %v4670_v16 = vsub.f32 %v4660_v52, %v4668_v62  ;;  %v4665_v56 = vpop.xlane.xlu0 %4664 }
0x293d   :  { %v4669_v58 = vsub.f32 %v4655_v21, %v4665_v56 }
0x293e   :  { %v4673_v59 = vmul.f32 1.442695, %v4670_v16 }
0x293f   :  { %v4671_v20 = vmul.f32 1.442695, %v4669_v58  ;;  %v10530_v8 = vpop.permute.xlu1 %10529 }
0x2940   :  { %10757 = vpow2.f32 %v4673_v59  ;;  %v10532_v1 = vunpack.i.h.bf16 %v10530_v8  ;;  %v10531_v55 = vunpack.i.l.bf16 %v10530_v8 }
0x2941   :  { %10759 = vpow2.f32 %v4671_v20 }
0x2942   :  { %v10081_v60 = vpack.c.bf16 %v10532_v1, %v10531_v55 }
0x2943   :  { %v4773_v39 = vpop.permute.xlu1 %4772 }
0x2944   :  { %10082 = vmatprep.subr.bf16.mxu0 %v10081_v60 }
0x2945   :  { %10084 = vmatpush3.bf16.msra.mxu0 %v10081_v60 }
0x2947   :  { %v4775_v63 = vpop.permute.xlu1 %4774 }
0x294a   :  { %v10758_v11 = vpop.eup %10757 }
0x294b   :  { %v4678_v12 = vsel %vm542_vm6, %v10758_v11, 0.0  ;;  %v10760_v22 = vpop.eup %10759 }
0x294c   :  { %4679 = vadd.xlane.f32.xlu0 %v4678_v12  ;;  %v4675_v5 = vsel %vm542_vm6, %v10760_v22, 0.0 }
0x2950   :  { %4676 = vadd.xlane.f32.xlu0 %v4675_v5 }
0x2966   :  { %10534 = vrot.lane.b32.xlu0 %v12238_v41, %s10921_s0 }
0x29d9   :  { %v4680_v51 = vpop.xlane.xlu0 %4679 }
0x29da   :  { %10761 = vrcp.f32 %v4680_v51 }
0x29dd   :  { %v4677_v19 = vpop.xlane.xlu0 %4676 }
0x29de   :  { %10763 = vrcp.f32 %v4677_v19 }
0x29e1   :  { %v10535_v28 = vpop.permute.xlu0 %10534 }
0x29e2   :  { %v10537_v61 = vunpack.i.h.bf16 %v10535_v28  ;;  %v10536_v26 = vunpack.i.l.bf16 %v10535_v28 }
0x29e4   :  { %v10085_v7 = vpack.c.bf16 %v10537_v61, %v10536_v26  ;;  %v10762_v44 = vpop.eup %10761 }
0x29e5   :  { %v4684_v0 = vmul.f32 %v10762_v44, %v10758_v11 }
0x29e6   :  { %10087 = vmatprep.subr.msk.bf16.mxu0 %vm11200_vm7, %v10085_v7 }
0x29e8   :  { %v10764_v25 = vpop.eup %10763 }
0x29e9   :  { %v4683_v45 = vmul.f32 %v10764_v25, %v10760_v22 }
0x29eb   :  { %9450 = vmatprep.mubr.msk.f32.mxu0 %vm542_vm6, %v4683_v45 }
0x29ec   :  { %9451 = vmatmul.mubr.msk.f32.vlgmr.msra.gmra.mrb[50].mxu0 %vm542_vm6, %v4684_v0 }
0x29ed   :  { %10090 = vmatpush3.bf16.xpose.msk.msra.mxu0 %vm11200_vm7, %v10085_v7  ;;  %9457 = vmatprep.mubr.msk.f32.mxu0 %vm542_vm6, %v4773_v39 }
0x29f4   :  { %9458 = vmatmul.mubr.msk.f32.vlgmr.msra.gmra.mrb[52].mxu0 %vm542_vm6, %v4775_v63 }
0x2abf   :  { %v12300_v29 = vpop.f32.mrb[50].mxu0 }
0x2ac0   :  { %v12302_v30 = vpop.f32.mrb[51].mxu0 }
0x2ac7   :  { %v9459_v32 = vpop.f32.mrb[52].mxu0 }
0x2ac8   :  { %v4860_v37 = vadd.f32 %v9459_v32, %v11212_v14  ;;  %v4854_v38 = vpop.f32.mrb[53].mxu0 }
0x2ac9   :  { %v4855_v46 = vadd.f32 %v4854_v38, %v11217_v15 }
0x2aca   :  { %v4866_v4 = vsel %vm542_vm6, %v4860_v37, -inf }
0x2acb   :  { %4867 = vmax.xlane.f32.xlu1 %v4866_v4  ;;  %v4863_v40 = vsel %vm542_vm6, %v4855_v46, -inf }
0x2acc   :  { %4864 = vmax.xlane.f32.xlu0 %v4863_v40 }
0x2adc   :  { %10539 = vrot.lane.b32.xlu1 %v12238_v41, %s10919_s29 }
0x2ae0   :  { %4972 = vrot.lane.b32.xlu1 %v12244_v54, %s13306_s6 }
0x2ae4   :  { %4974 = vrot.lane.b32.xlu1 %v12246_v3, %s13306_s6 }
0x2b58   :  { %v4868_v49 = vpop.xlane.xlu1 %4867 }
0x2b59   :  { %v4870_v52 = vsub.f32 %v4860_v37, %v4868_v49  ;;  %v4865_v50 = vpop.xlane.xlu0 %4864 }
0x2b5a   :  { %v4869_v21 = vsub.f32 %v4855_v46, %v4865_v50 }
0x2b5b   :  { %v4873_v53 = vmul.f32 1.442695, %v4870_v52 }
0x2b5c   :  { %v4871_v6 = vmul.f32 1.442695, %v4869_v21  ;;  %v10540_v62 = vpop.permute.xlu1 %10539 }
0x2b5d   :  { %10765 = vpow2.f32 %v4873_v53  ;;  %v10542_v16 = vunpack.i.h.bf16 %v10540_v62  ;;  %v10541_v56 = vunpack.i.l.bf16 %v10540_v62 }
0x2b5e   :  { %10767 = vpow2.f32 %v4871_v6 }
0x2b5f   :  { %v10091_v58 = vpack.c.bf16 %v10542_v16, %v10541_v56 }
0x2b60   :  { %v4973_v28 = vpop.permute.xlu1 %4972 }
0x2b61   :  { %10092 = vmatprep.subr.bf16.mxu1 %v10091_v58 }
0x2b62   :  { %10094 = vmatpush3.bf16.msra.mxu1 %v10091_v58 }
0x2b64   :  { %v4975_v61 = vpop.permute.xlu1 %4974 }
0x2b67   :  { %v10766_v59 = vpop.eup %10765 }
0x2b68   :  { %v4878_v54 = vsel %vm542_vm6, %v10766_v59, 0.0  ;;  %v10768_v20 = vpop.eup %10767 }
0x2b69   :  { %4879 = vadd.xlane.f32.xlu0 %v4878_v54  ;;  %v4875_v3 = vsel %vm542_vm6, %v10768_v20, 0.0 }
0x2b6d   :  { %4876 = vadd.xlane.f32.xlu0 %v4875_v3  ;;  %v8461_v3 = vld [vmem:[%s13279_s12 + $0x50] sm:$0xff] }
0x2b83   :  { %10544 = vrot.lane.b32.xlu0 %v12238_v41, %s13306_s6 }
0x2bf6   :  { %v4880_v8 = vpop.xlane.xlu0 %4879 }
0x2bf7   :  { %10769 = vrcp.f32 %v4880_v8 }
0x2bfa   :  { %v4877_v1 = vpop.xlane.xlu0 %4876 }
0x2bfb   :  { %10771 = vrcp.f32 %v4877_v1  ;;  %v8462_v1 = vld [vmem:[%s13279_s12 + $0x58] sm:$0xff] }
0x2bfe   :  { %v10545_v55 = vpop.permute.xlu0 %10544 }
0x2bff   :  { %v10547_v60 = vunpack.i.h.bf16 %v10545_v55  ;;  %v10546_v11 = vunpack.i.l.bf16 %v10545_v55  ;;  %v10109_v55 = vpack.c.bf16 %v8462_v1, %v8461_v3  ;;  %v5334_v1 = vld [vmem:[%s13280_s13 + $0x38] sm:$0xff] }
0x2c01   :  { %v10095_v12 = vpack.c.bf16 %v10547_v60, %v10546_v11  ;;  %v10770_v22 = vpop.eup %10769  ;;  %v8463_v60 = vld [vmem:[%s13279_s12 + $0x60] sm:$0xff]  ;;  %v8464_v11 = vld [vmem:[%s13279_s12 + $0x68] sm:$0xff] }
0x2c02   :  { %v4884_v19 = vmul.f32 %v10770_v22, %v10766_v59  ;;  %v8465_v22 = vld [vmem:[%s13279_s12 + $0x70] sm:$0xff] }
0x2c03   :  { %10097 = vmatprep.subr.msk.bf16.mxu1 %vm11200_vm7, %v10095_v12 }
0x2c05   :  { %v10772_v5 = vpop.eup %10771 }
0x2c06   :  { %v4883_v51 = vmul.f32 %v10772_v5, %v10768_v20  ;;  %v8459_v20 = vld [vmem:[%s13279_s12 + $0x40] sm:$0xff]  ;;  %v8466_v5 = vld [vmem:[%s13279_s12 + $0x78] sm:$0xff] }
0x2c08   :  { %9464 = vmatprep.mubr.msk.f32.mxu1 %vm542_vm6, %v4883_v51  ;;  %v10117_v51 = vpack.c.bf16 %v8466_v5, %v8465_v22  ;;  %v5336_v22 = vld [vmem:[%s13280_s13 + $0x48] sm:$0xff]  ;;  %v5338_v5 = vld [vmem:[%s13280_s13 + $0x58] sm:$0xff] }
0x2c09   :  { %9465 = vmatmul.mubr.msk.f32.vlgmr.msra.gmra.mrb[48].mxu1 %vm542_vm6, %v4884_v19 }
0x2c0a   :  { %10100 = vmatpush3.bf16.xpose.msk.msra.mxu1 %vm11200_vm7, %v10095_v12  ;;  %9471 = vmatprep.mubr.msk.f32.mxu1 %vm542_vm6, %v4973_v28  ;;  %v10113_v12 = vpack.c.bf16 %v8464_v11, %v8463_v60  ;;  %v5331_v60 = vld [vmem:[%s13280_s13 + $0x20] sm:$0xff]  ;;  %v5333_v11 = vld [vmem:[%s13280_s13 + $0x30] sm:$0xff] }
0x2c11   :  { %9472 = vmatmul.mubr.msk.f32.vlgmr.msra.gmra.mrb[50].mxu1 %vm542_vm6, %v4975_v61 }
0x2c12   :  { %5456 = vmatprep.mubr.f32.mxu1 %v10913_v31 }
0x2cdc   :  { %v9466_v26 = vpop.f32.mrb[48].mxu1 }
0x2cdd   :  { %v4963_v7 = vpop.f32.mrb[49].mxu1 }
0x2ce4   :  { %v9473_v44 = vpop.f32.mrb[50].mxu1 }
0x2ce5   :  { %v5060_v25 = vadd.f32 %v9473_v44, %v11212_v14  ;;  %v5054_v45 = vpop.f32.mrb[51].mxu1 }
0x2ce6   :  { %v5055_v0 = vadd.f32 %v5054_v45, %v11217_v15 }
0x2ce7   :  { %v5066_v39 = vsel %vm542_vm6, %v5060_v25, -inf }
0x2ce8   :  { %5067 = vmax.xlane.f32.xlu1 %v5066_v39  ;;  %v5063_v63 = vsel %vm542_vm6, %v5055_v0, -inf }
0x2ce9   :  { %5064 = vmax.xlane.f32.xlu0 %v5063_v63 }
0x2cf9   :  { %10549 = vrot.lane.b32.xlu1 %v12238_v41, %s13305_s5 }
0x2cfd   :  { %5176 = vrot.lane.b32.xlu1 %v12300_v29, %s13305_s5 }
0x2d01   :  { %5182 = vrot.lane.b32.xlu1 %v4963_v7, %s10919_s29 }
0x2d75   :  { %v5068_v32 = vpop.xlane.xlu1 %5067 }
0x2d76   :  { %v5070_v37 = vsub.f32 %v5060_v25, %v5068_v32  ;;  %v5065_v38 = vpop.xlane.xlu0 %5064 }
0x2d77   :  { %v5069_v46 = vsub.f32 %v5055_v0, %v5065_v38 }
0x2d78   :  { %v5073_v4 = vmul.f32 1.442695, %v5070_v37 }
0x2d79   :  { %v5071_v40 = vmul.f32 1.442695, %v5069_v46  ;;  %v10550_v49 = vpop.permute.xlu1 %10549 }
0x2d7a   :  { %v10552_v52 = vunpack.i.h.bf16 %v10550_v49  ;;  %v10551_v50 = vunpack.i.l.bf16 %v10550_v49 }
0x2d7b   :  { %10773 = vpow2.f32 %v5071_v40 }
0x2d7c   :  { %v10101_v21 = vpack.c.bf16 %v10552_v52, %v10551_v50  ;;  %10775 = vpow2.f32 %v5073_v4 }
0x2d7e   :  { %10102 = vmatprep.subr.bf16.mxu0 %v10101_v21 }
0x2d7f   :  { %10104 = vmatpush3.bf16.msra.mxu0 %v10101_v21 }
0x2d85   :  { %v10774_v41 = vpop.eup %10773 }
0x2d86   :  { %v5075_v53 = vsel %vm542_vm6, %v10774_v41, 0.0  ;;  %v10776_v29 = vpop.eup %10775 }
0x2d87   :  { %5076 = vadd.xlane.f32.xlu0 %v5075_v53  ;;  %v5078_v6 = vsel %vm542_vm6, %v10776_v29, 0.0 }
0x2d8b   :  { %5079 = vadd.xlane.f32.xlu0 %v5078_v6 }
0x2da1   :  { %5174 = vrot.lane.b32.xlu0 %v12302_v30, %s13305_s5  ;;  %v8460_v30 = vld [vmem:[%s13279_s12 + $0x48] sm:$0xff] }
0x2da2   :  { %v10105_v8 = vpack.c.bf16 %v8460_v30, %v8459_v20  ;;  %v5327_v20 = vld [vmem:[%s13280_s13] sm:$0xff]  ;;  %v5329_v30 = vld [vmem:[%s13280_s13 + $0x10] sm:$0xff] }
0x2da3   :  { %v10123_v3 = vpack.c.bf16 %v5329_v30, %v5327_v20  ;;  %v5369_v20 = vld [vmem:[%s13281_s14 + $0xc0] sm:$0xff]  ;;  %v5370_v30 = vld [vmem:[%s13281_s14 + $0xc8] sm:$0xff] }
0x2da4   :  { %10106 = vmatprep.subr.bf16.mxu0 %v10105_v8 }
0x2da5   :  { %5184 = vrot.lane.b32.xlu0 %v9466_v26, %s10919_s29  ;;  %v5177_v26 = vpop.permute.xlu1 %5176 }
0x2da6   :  { %v5197_v0 = vsel %vm542_vm6, %v12274_v2, %v5177_v26  ;;  %v5340_v26 = vld [vmem:[%s13280_s13 + $0x68] sm:$0xff] }
0x2da9   :  { %v5183_v44 = vpop.permute.xlu1 %5182 }
0x2e14   :  { %v5077_v62 = vpop.xlane.xlu0 %5076 }
0x2e15   :  { %10777 = vrcp.f32 %v5077_v62 }
0x2e18   :  { %v5080_v16 = vpop.xlane.xlu0 %5079 }
0x2e19   :  { %10779 = vrcp.f32 %v5080_v16 }
0x2e1c   :  { %v5175_v61 = vpop.permute.xlu0 %5174 }
0x2e1d   :  { %v5196_v25 = vsel %vm542_vm6, %v12276_v47, %v5175_v61  ;;  %v5205_v47 = vrot.slane %v12151_v13, %v11175_v48 }
0x2e1e   :  { %v5198_v63 = vsel %vm1359_vm4, %v5196_v25, %v5183_v44  ;;  %v5339_v25 = vld [vmem:[%s13280_s13 + $0x60] sm:$0xff] }
0x2e1f   :  { %v10778_v56 = vpop.eup %10777 }
0x2e20   :  { %v5083_v58 = vmul.f32 %v10778_v56, %v10774_v41  ;;  %v5185_v7 = vpop.permute.xlu0 %5184 }
0x2e21   :  { %v5199_v32 = vsel %vm1359_vm4, %v5197_v0, %v5185_v7  ;;  %v5342_v7 = vld [vmem:[%s13280_s13 + $0x78] sm:$0xff] }
0x2e22   :  { %9478 = vmatprep.mubr.msk.f32.mxu0 %vm542_vm6, %v5083_v58  ;;  %v5328_v58 = vld [vmem:[%s13280_s13 + $0x8] sm:$0xff]  ;;  %v10133_v44 = vpack.c.bf16 %v5342_v7, %v5340_v26 }
0x2e23   :  { %v10780_v59 = vpop.eup %10779 }
0x2e24   :  { %v5084_v54 = vmul.f32 %v10780_v59, %v10776_v29  ;;  %v5330_v59 = vld [vmem:[%s13280_s13 + $0x18] sm:$0xff] }
0x2e26   :  { %9479 = vmatmul.mubr.msk.f32.vlgmr.msra.gmra.mrb[54].mxu0 %vm542_vm6, %v5084_v54  ;;  %v10121_v54 = vpack.c.bf16 %v5330_v59, %v5328_v58  ;;  %v5351_v59 = vld [vmem:[%s13281_s14 + $0x30] sm:$0xff] }
0x2e27   :  { %10108 = vmatpush3.bf16.msra.mxu0 %v10105_v8  ;;  %v5332_v8 = vld [vmem:[%s13280_s13 + $0x28] sm:$0xff] }
0x2e28   :  { %10110 = vmatprep.subr.bf16.mxu0 %v10109_v55  ;;  %10122 = vmatprep.subr.bf16.mxu1 %v10121_v54  ;;  %v5352_v54 = vld [vmem:[%s13281_s14 + $0x38] sm:$0xff] }
0x2e29   :  { %10124 = vmatpush1.bf16.msra.mxu1 %v10123_v3  ;;  %v10151_v3 = vpack.c.bf16 %v5352_v54, %v5351_v59  ;;  %v8497_v59 = vld [vmem:[%s13280_s13 + $0x80] ss:$0 sm:$0xff]  ;;  %v8498_v54 = vld [vmem:[%s13280_s13 + $0x88] ss:$0 sm:$0xff] }
0x2e2b   :  { %10112 = vmatpush3.bf16.msra.mxu0 %v10109_v55  ;;  %v10125_v55 = vpack.c.bf16 %v5334_v1, %v5332_v8  ;;  %v10153_v8 = vpack.c.bf16 %v5370_v30, %v5369_v20  ;;  %v5353_v1 = vld [vmem:[%s13281_s14 + $0x40] sm:$0xff] }
0x2e2c   :  { %10114 = vmatprep.subr.bf16.mxu0 %v10113_v12 }
0x2e2d   :  { %10126 = vmatprep.subr.bf16.mxu1 %v10125_v55  ;;  %v5354_v55 = vld [vmem:[%s13281_s14 + $0x48] sm:$0xff] }
0x2e2f   :  { %10116 = vmatpush3.bf16.msra.mxu0 %v10113_v12  ;;  %v10127_v12 = vpack.c.bf16 %v5333_v11, %v5331_v60  ;;  %v5371_v60 = vld [vmem:[%s13281_s14 + $0xd0] sm:$0xff]  ;;  %v5372_v11 = vld [vmem:[%s13281_s14 + $0xd8] sm:$0xff] }
0x2e30   :  { %10118 = vmatprep.subr.bf16.mxu0 %v10117_v51 }
0x2e31   :  { %10128 = vmatpush1.bf16.msra.mxu1 %v10127_v12  ;;  %v10155_v12 = vpack.c.bf16 %v5354_v55, %v5353_v1 }
0x2e33   :  { %10120 = vmatpush3.bf16.msra.mxu0 %v10117_v51  ;;  %v10129_v51 = vpack.c.bf16 %v5338_v5, %v5336_v22  ;;  %v10157_v22 = vpack.c.bf16 %v5372_v11, %v5371_v60  ;;  %v5355_v5 = vld [vmem:[%s13281_s14 + $0x50] sm:$0xff] }
0x2e35   :  { %10130 = vmatprep.subr.bf16.mxu1 %v10129_v51  ;;  %v5356_v51 = vld [vmem:[%s13281_s14 + $0x58] sm:$0xff] }
0x2ef9   :  { %v9480_v19 = vpop.f32.mrb[54].mxu0 }
0x2efa   :  { %5192 = vrot.lane.b32.xlu0 %v9480_v19, %s10918_s28  ;;  %v5163_v28 = vpop.f32.mrb[55].mxu0  ;;  %v5335_v19 = vld [vmem:[%s13280_s13 + $0x40] sm:$0xff] }
0x2efb   :  { %5190 = vrot.lane.b32.xlu1 %v5163_v28, %s10918_s28  ;;  %v5337_v28 = vld [vmem:[%s13280_s13 + $0x50] sm:$0xff] }
0x2efc   :  { %v10131_v61 = vpack.c.bf16 %v5337_v28, %v5335_v19  ;;  %v5373_v19 = vld [vmem:[%s13281_s14 + $0xe0] sm:$0xff]  ;;  %v5374_v28 = vld [vmem:[%s13281_s14 + $0xe8] sm:$0xff] }
0x2efd   :  { %v10161_v26 = vpack.c.bf16 %v5374_v28, %v5373_v19  ;;  %v8501_v28 = vld [vmem:[%s13281_s14 + $0x100] ss:$0 sm:$0xff] }
0x2efe   :  { %10132 = vmatpush1.bf16.msra.mxu1 %v10131_v61  ;;  %v10159_v61 = vpack.c.bf16 %v5356_v51, %v5355_v5 }
0x2eff   :  { %10134 = vmatprep.subr.bf16.mxu1 %v10133_v44 }
0x2f6c   :  { %v5193_v45 = vpop.permute.xlu0 %5192 }
0x2f6d   :  { %v5191_v39 = vpop.permute.xlu1 %5190  ;;  %v5201_v38 = vsel %vm1362_vm5, %v5199_v32, %v5193_v45  ;;  %v5341_v45 = vld [vmem:[%s13280_s13 + $0x70] sm:$0xff]  ;;  %v5345_v32 = vld [vmem:[%s13281_s14] sm:$0xff] }
0x2f6e   :  { %v5200_v37 = vsel %vm1362_vm5, %v5198_v63, %v5191_v39  ;;  %v10135_v0 = vpack.c.bf16 %v5341_v45, %v5339_v25  ;;  %v5361_v39 = vld [vmem:[%s13281_s14 + $0x80] sm:$0xff]  ;;  %v5362_v63 = vld [vmem:[%s13281_s14 + $0x88] sm:$0xff] }
0x2f6f   :  { %9497 = vmatprep.mubr.msk.f32.mxu0 %vm387_vm0, %v5200_v37  ;;  %v10137_v37 = vpack.c.bf16 %v5362_v63, %v5361_v39  ;;  %v5317_v63 = vsub.s32 6, %v11037_v9 }
0x2f70   :  { %9498 = vmatmul.mubr.msk.f32.vlgmr.msra.gmra.mrb[56].mxu0 %vm387_vm0, %v5201_v38  ;;  %10136 = vmatpush1.bf16.msra.mxu1 %v10135_v0  ;;  %v5346_v38 = vld [vmem:[%s13281_s14 + $0x8] sm:$0xff] }
0x2f71   :  { %10138 = vmatprep.subr.bf16.mxu0 %v10137_v37 }
0x3043   :  { %v9499_v46 = vpop.f32.mrb[56].mxu0 }
0x3044   :  { %v5284_v4 = vadd.f32 %v9499_v46, %v5205_v47  ;;  %v5278_v40 = vpop.f32.mrb[57].mxu0  ;;  %v5364_v46 = vld [vmem:[%s13281_s14 + $0x98] sm:$0xff] }
0x3045   :  { %v5279_v2 = vadd.f32 %v5278_v40, %v5205_v47  ;;  %v5363_v47 = vld [vmem:[%s13281_s14 + $0x90] sm:$0xff] }
0x3046   :  { %v12382_v49 = vadd.f32 %v5284_v4, %v12159_v57  ;;  %v10139_v4 = vpack.c.bf16 %v5346_v38, %v5345_v32  ;;  %v10141_v40 = vpack.c.bf16 %v5364_v46, %v5363_v47  ;;  %v5323_v32 = vsub.s32 7, %v11037_v9  ;;  %v10873_v38 = vld [vmem:[%s13277_s10] sm:$0xff]  ;;  %v8641_v9 = vld [vmem:[%s13281_s14 + $0x170] sm:$0xff] }
0x3047   :  { %v12385_v52 = vadd.f32 %v5279_v2, %v12156_v24  ;;  %v5347_v2 = vld [vmem:[%s13281_s14 + $0x10] sm:$0xff]  ;;  %v5318_v47 = vrot.slane %v10873_v38, %v5317_v63 }
0x3048   :  { %v5292_v50 = vsel %vm387_vm0, %v12382_v49, 0.0  ;;  %10140 = vmatpush3.bf16.msra.mxu0 %v10139_v4 }
0x3049   :  { %5293 = vadd.xlane.f32.xlu0 %v5292_v50  ;;  %v5289_v21 = vsel %vm387_vm0, %v12385_v52, 0.0  ;;  %v5348_v50 = vld [vmem:[%s13281_s14 + $0x18] sm:$0xff]  ;;  %10142 = vmatprep.subr.bf16.mxu0 %v10141_v40  ;;  %v5324_v40 = vrot.slane %v10873_v38, %v5323_v32 }
0x304a   :  { %5290 = vadd.xlane.f32.xlu1 %v5289_v21  ;;  %v5365_v21 = vld [vmem:[%s13281_s14 + $0xa0] sm:$0xff] }
0x30d6   :  { %v5294_v41 = vpop.xlane.xlu0 %5293 }
0x30d7   :  { %v5296_v13 = vmul.f32 0.015625, %v5294_v41  ;;  %v5291_v53 = vpop.xlane.xlu1 %5290  ;;  %v5366_v41 = vld [vmem:[%s13281_s14 + $0xa8] sm:$0xff] }
0x30d8   :  { %v5295_v29 = vmul.f32 0.015625, %v5291_v53  ;;  %v10145_v53 = vpack.c.bf16 %v5366_v41, %v5365_v21 }
0x30d9   :  { %v12392_v6 = vsub.f32 %v12382_v49, %v5296_v13  ;;  %v10143_v13 = vpack.c.bf16 %v5348_v50, %v5347_v2 }
0x30da   :  { %v12395_v57 = vsub.f32 %v12385_v52, %v5295_v29  ;;  %v5349_v29 = vld [vmem:[%s13281_s14 + $0x20] sm:$0xff] }
0x30db   :  { %v5300_v24 = vmul.f32 %v12392_v6, %v12392_v6  ;;  %10144 = vmatpush3.bf16.msra.mxu0 %v10143_v13 }
0x30dc   :  { %v5299_v62 = vmul.f32 %v12395_v57, %v12395_v57  ;;  %10146 = vmatprep.subr.bf16.mxu0 %v10145_v53 }
0x30dd   :  { %v5304_v16 = vsel %vm387_vm0, %v5300_v24, 0.0  ;;  %v5350_v24 = vld [vmem:[%s13281_s14 + $0x28] sm:$0xff] }
0x30de   :  { %5305 = vadd.xlane.f32.xlu1 %v5304_v16  ;;  %v5301_v56 = vsel %vm387_vm0, %v5299_v62, 0.0  ;;  %v5367_v62 = vld [vmem:[%s13281_s14 + $0xb0] sm:$0xff]  ;;  %v5368_v16 = vld [vmem:[%s13281_s14 + $0xb8] sm:$0xff] }
0x30df   :  { %5302 = vadd.xlane.f32.xlu0 %v5301_v56  ;;  %v10147_v56 = vpack.c.bf16 %v5350_v24, %v5349_v29  ;;  %v10149_v58 = vpack.c.bf16 %v5368_v16, %v5367_v62  ;;  %v5375_v29 = vld [vmem:[%s13281_s14 + $0xf0] sm:$0xff]  ;;  %v5376_v24 = vld [vmem:[%s13281_s14 + $0xf8] sm:$0xff] }
0x30e0   :  { %v10165_v62 = vpack.c.bf16 %v5376_v24, %v5375_v29  ;;  %v5359_v16 = vld [vmem:[%s13281_s14 + $0x70] sm:$0xff]  ;;  %v8504_v29 = vld [vmem:[%s13278_s11 + $0x100] sm:$0xff] }
0x30e1   :  { %10148 = vmatpush3.bf16.msra.mxu0 %v10147_v56  ;;  %v5360_v56 = vld [vmem:[%s13281_s14 + $0x78] sm:$0xff]  ;;  %v8506_v24 = vld [vmem:[%s13278_s11 + $0x110] sm:$0xff] }
0x30e2   :  { %10150 = vmatprep.subr.bf16.mxu0 %v10149_v58  ;;  %v10167_v58 = vpack.c.bf16 %v5360_v56, %v5359_v16  ;;  %v8509_v16 = vld [vmem:[%s13278_s11 + $0x128] sm:$0xff]  ;;  %v8511_v56 = vld [vmem:[%s13278_s11 + $0x138] sm:$0xff] }
0x30e5   :  { %10152 = vmatpush3.bf16.msra.mxu0 %v10151_v3 }
0x30e6   :  { %10154 = vmatprep.subr.bf16.mxu0 %v10153_v8 }
0x30e9   :  { %10156 = vmatpush3.bf16.msra.mxu0 %v10155_v12 }
0x30ea   :  { %10158 = vmatprep.subr.bf16.mxu0 %v10157_v22 }
0x30ed   :  { %10160 = vmatpush3.bf16.msra.mxu0 %v10159_v61 }
0x30ee   :  { %10162 = vmatprep.subr.bf16.mxu0 %v10161_v26 }
0x316b   :  { %v5306_v7 = vpop.xlane.xlu1 %5305 }
0x316c   :  { %v5308_v44 = vmul.f32 0.015625, %v5306_v7  ;;  %v5303_v25 = vpop.xlane.xlu0 %5302 }
0x316d   :  { %v5307_v45 = vmul.f32 0.015625, %v5303_v25 }
0x316e   :  { %v5310_v0 = vadd.f32 1e-05, %v5308_v44 }
0x316f   :  { %v5309_v39 = vadd.f32 1e-05, %v5307_v45 }
0x3170   :  { %10781 = vrsqrt.f32 %v5310_v0 }
0x3171   :  { %10783 = vrsqrt.f32 %v5309_v39 }
0x317a   :  { %v10782_v37 = vpop.eup %10781 }
0x317b   :  { %v10784_v46 = vpop.eup %10783  ;;  %v5314_v2 = vmul.f32 %v10782_v37, %v12392_v6  ;;  %v5358_v6 = vld [vmem:[%s13281_s14 + $0x68] sm:$0xff] }
0x317c   :  { %v5313_v4 = vmul.f32 %v10784_v46, %v12395_v57  ;;  %v5357_v57 = vld [vmem:[%s13281_s14 + $0x60] sm:$0xff] }
0x317d   :  { %v5320_v41 = vmul.f32 %v5318_v47, %v5314_v2  ;;  %v10163_v53 = vpack.c.bf16 %v5358_v6, %v5357_v57  ;;  %v8505_v57 = vld [vmem:[%s13278_s11 + $0x108] sm:$0xff]  ;;  %v8507_v6 = vld [vmem:[%s13278_s11 + $0x118] sm:$0xff] }
0x317e   :  { %v5319_v50 = vmul.f32 %v5318_v47, %v5313_v4 }
0x317f   :  { %v5326_v13 = vadd.f32 %v5324_v40, %v5320_v41  ;;  %10164 = vmatpush3.bf16.msra.mxu0 %v10163_v53  ;;  %v10169_v53 = vpack.c.bf16 %v8507_v6, %v8505_v57 }
0x3180   :  { %v5325_v21 = vadd.f32 %v5324_v40, %v5319_v50  ;;  %10166 = vmatprep.subr.bf16.mxu0 %v10165_v62  ;;  %v10171_v62 = vpack.c.bf16 %v8506_v24, %v8504_v29 }
0x3181   :  { %10170 = vmatprep.subr.bf16.mxu1 %v10169_v53 }
0x3182   :  { %8499 = vmatmul.mubr.msk.f32.vlgmr.msra.gmra.mrb[52].mxu1 %vm387_vm0, %v5325_v21 }
0x3183   :  { %5462 = vmatprep.mubr.f32.mxu1 %v10913_v31  ;;  %10168 = vmatpush3.bf16.msra.mxu0 %v10167_v58  ;;  %v10173_v58 = vpack.c.bf16 %v8511_v56, %v8509_v16 }
0x3184   :  { %10172 = vmatpush1.bf16.msra.mxu1 %v10171_v62 }
0x3185   :  { %10174 = vmatprep.subr.bf16.mxu1 %v10173_v58 }
0x3186   :  { %8500 = vmatmul.mubr.msk.f32.gmra.mrb[54].mxu1 %vm387_vm0, %v5326_v13 }
0x3187   :  { %5691 = vmatprep.mubr.f32.mxu1 %v10913_v31 }
0x3255   :  { %v5458_v20 = vpop.f32.mrb[52].mxu1 }
0x3256   :  { %v5459_v30 = vadd.f32 %v8497_v59, %v5458_v20  ;;  %v5460_v3 = vpop.f32.mrb[53].mxu1 }
0x3257   :  { %v5461_v8 = vadd.f32 %v8498_v54, %v5460_v3  ;;  %v8515_v3 = vld [vmem:[%s13278_s11 + $0x158] sm:$0xff] }
0x3258   :  { %v5469_v60 = vmax.f32 %v5459_v30, 0.0  ;;  %v8513_v30 = vld [vmem:[%s13278_s11 + $0x148] sm:$0xff] }
0x3259   :  { %v5470_v1 = vmax.f32 %v5461_v8, 0.0  ;;  %v5464_v55 = vpop.f32.mrb[54].mxu1  ;;  %v10177_v8 = vpack.c.bf16 %v8515_v3, %v8513_v30 }
0x325a   :  { %v5465_v11 = vadd.f32 %v8497_v59, %v5464_v55  ;;  %v5466_v12 = vpop.f32.mrb[55].mxu1  ;;  %v8508_v59 = vld [vmem:[%s13278_s11 + $0x120] sm:$0xff]  ;;  %v8514_v55 = vld [vmem:[%s13278_s11 + $0x150] sm:$0xff] }
0x325b   :  { %v5467_v22 = vadd.f32 %v8498_v54, %v5466_v12  ;;  %5541 = vmatprep.mubr.f32.mxu0 %v5470_v1  ;;  %v8510_v54 = vld [vmem:[%s13278_s11 + $0x130] sm:$0xff]  ;;  %v8512_v1 = vld [vmem:[%s13278_s11 + $0x140] sm:$0xff]  ;;  %v8519_v12 = vld [vmem:[%s13278_s11 + $0x178] sm:$0xff] }
0x325c   :  { %5542 = vmatmul.mubr.f32.vlgmr.msra.gmra.mrb[58].mxu0 %v5469_v60  ;;  %v5471_v51 = vmax.f32 %v5465_v11, 0.0  ;;  %v10175_v20 = vpack.c.bf16 %v8510_v54, %v8508_v59  ;;  %v10179_v60 = vpack.c.bf16 %v8514_v55, %v8512_v1  ;;  %v8517_v11 = vld [vmem:[%s13278_s11 + $0x168] sm:$0xff] }
0x325d   :  { %v5472_v5 = vmax.f32 %v5467_v22, 0.0  ;;  %v10181_v22 = vpack.c.bf16 %v8519_v12, %v8517_v11 }
0x325e   :  { %10176 = vmatpush1.bf16.msra.mxu1 %v10175_v20 }
0x325f   :  { %5546 = vmatprep.mubr.f32.mxu0 %v5472_v5  ;;  %10178 = vmatprep.subr.bf16.mxu1 %v10177_v8  ;;  %v8516_v5 = vld [vmem:[%s13278_s11 + $0x160] sm:$0xff] }
0x3260   :  { %5547 = vmatmul.mubr.f32.gmra.mrb[60].mxu0 %v5471_v51  ;;  %v8518_v51 = vld [vmem:[%s13278_s11 + $0x170] sm:$0xff] }
0x3262   :  { %10180 = vmatpush1.bf16.msra.mxu1 %v10179_v60 }
0x3263   :  { %10182 = vmatprep.subr.bf16.mxu1 %v10181_v22 }
0x332f   :  { %v8979_v19 = vpop.f32.mrb[58].mxu0 }
0x3330   :  { %v8980_v61 = vpop.f32.mrb[59].mxu0 }
0x3331   :  { %v8981_v26 = vadd.f32 %v8980_v61, %v8979_v19  ;;  %v10183_v19 = vpack.c.bf16 %v8518_v51, %v8516_v5 }
0x3333   :  { %v5544_v7 = vadd.f32 %v8981_v26, %v8501_v28  ;;  %v8982_v44 = vpop.f32.mrb[60].mxu0  ;;  %10184 = vmatpush1.bf16.msra.mxu1 %v10183_v19 }
0x3334   :  { %v8983_v25 = vpop.f32.mrb[61].mxu0 }
0x3335   :  { %v12572_v45 = vadd.f32 %v5544_v7, %v12385_v52  ;;  %v8984_v0 = vadd.f32 %v8983_v25, %v8982_v44 }
0x3337   :  { %v5549_v39 = vadd.f32 %v8984_v0, %v8501_v28  ;;  %v5557_v37 = vsel %vm387_vm0, %v12572_v45, 0.0  ;;  %v12636_v0 = vld [vmem:[%s13277_s10 + $0x10] sm:$0xff] }
0x3338   :  { %5558 = vadd.xlane.f32.xlu0 %v5557_v37 }
0x3339   :  { %v12577_v38 = vadd.f32 %v5549_v39, %v12382_v49  ;;  %v5586_v39 = vrot.slane %v12636_v0, %v11167_v43 }
0x333b   :  { %v5560_v47 = vsel %vm387_vm0, %v12577_v38, 0.0 }
0x333c   :  { %5561 = vadd.xlane.f32.xlu1 %v5560_v47  ;;  %v5592_v47 = vrot.slane %v12636_v0, %v11175_v48 }
0x33c5   :  { %v5559_v46 = vpop.xlane.xlu0 %5558 }
0x33c6   :  { %v5563_v4 = vmul.f32 0.015625, %v5559_v46 }
0x33c8   :  { %v5565_v40 = vsub.f32 %v12572_v45, %v5563_v4 }
0x33c9   :  { %v5562_v2 = vpop.xlane.xlu1 %5561 }
0x33ca   :  { %v5564_v52 = vmul.f32 0.015625, %v5562_v2  ;;  %v5567_v50 = vmul.f32 %v5565_v40, %v5565_v40 }
0x33cc   :  { %v5566_v21 = vsub.f32 %v12577_v38, %v5564_v52  ;;  %v5569_v41 = vsel %vm387_vm0, %v5567_v50, 0.0 }
0x33cd   :  { %5570 = vadd.xlane.f32.xlu0 %v5569_v41 }
0x33ce   :  { %v5568_v13 = vmul.f32 %v5566_v21, %v5566_v21 }
0x33d0   :  { %v5572_v49 = vsel %vm387_vm0, %v5568_v13, 0.0 }
0x33d1   :  { %5573 = vadd.xlane.f32.xlu1 %v5572_v49 }
0x345a   :  { %v5571_v28 = vpop.xlane.xlu0 %5570 }
0x345b   :  { %v5575_v61 = vmul.f32 0.015625, %v5571_v28 }
0x345d   :  { %v5577_v26 = vadd.f32 1e-05, %v5575_v61 }
0x345e   :  { %v5574_v7 = vpop.xlane.xlu1 %5573 }
0x345f   :  { %10785 = vrsqrt.f32 %v5577_v26  ;;  %v5576_v44 = vmul.f32 0.015625, %v5574_v7 }
0x3461   :  { %v5578_v25 = vadd.f32 1e-05, %v5576_v44 }
0x3463   :  { %10787 = vrsqrt.f32 %v5578_v25 }
0x3469   :  { %v10786_v37 = vpop.eup %10785 }
0x346a   :  { %v5581_v46 = vmul.f32 %v10786_v37, %v5565_v40 }
0x346c   :  { %v5587_v4 = vmul.f32 %v5586_v39, %v5581_v46 }
0x346d   :  { %v10788_v2 = vpop.eup %10787 }
0x346e   :  { %v5593_v52 = vadd.f32 %v5592_v47, %v5587_v4  ;;  %v5582_v50 = vmul.f32 %v10788_v2, %v5566_v21 }
0x3470   :  { %8528 = vmatmul.mubr.msk.f32.vlgmr.msra.gmra.mrb[56].mxu1 %vm387_vm0, %v5593_v52  ;;  %v5588_v41 = vmul.f32 %v5586_v39, %v5582_v50 }
0x3471   :  { %5697 = vmatprep.mubr.f32.mxu1 %v10913_v31 }
0x3472   :  { %v5594_v13 = vadd.f32 %v5592_v47, %v5588_v41 }
0x3474   :  { %8529 = vmatmul.mubr.msk.f32.gmra.mrb[58].mxu1 %vm387_vm0, %v5594_v13 }
0x3543   :  { %v5693_v49 = vpop.f32.mrb[56].mxu1 }
0x3544   :  { %v5695_v57 = vpop.f32.mrb[57].mxu1  ;;  %v12645_v6 = vmul.f32 0.125, %v5693_v49 }
0x3546   :  { %9504 = vmatprep.mubr.msk.f32.mxu1 %vm542_vm6, %v12645_v6 }
0x3547   :  { %v5699_v40 = vpop.f32.mrb[58].mxu1 }
0x3548   :  { %v5701_v53 = vpop.f32.mrb[59].mxu1  ;;  %v12649_v29 = vpack.i.bf16 %v5699_v40, %v5693_v49  ;;  %v12659_v62 = vmul.f32 0.125, %v5699_v40 }
0x3549   :  { %v12651_v21 = vpack.i.bf16 %v5701_v53, %v5695_v57  ;;  %v10191_v24 = vpack.c.bf16 %v5701_v53, %v5695_v57 }
0x354a   :  { %10554 = vrot.lane.b32.xlu0 %v12649_v29, %s10915_s4 }
0x354e   :  { %5900 = vrot.lane.b32.xlu0 %v12645_v6, %s10916_s26 }
0x3552   :  { %10564 = vrot.lane.b32.xlu0 %v12649_v29, %s10919_s29 }
0x3556   :  { %5902 = vrot.lane.b32.xlu0 %v12659_v62, %s10916_s26 }
0x355a   :  { %6102 = vrot.lane.b32.xlu0 %v12645_v6, %s10921_s0 }
0x35bc   :  { %v10555_v16 = vpop.permute.xlu0 %10554 }
0x35bd   :  { %v10557_v56 = vunpack.i.h.bf16 %v10555_v16  ;;  %v10556_v58 = vunpack.i.l.bf16 %v10555_v16 }
0x35bf   :  { %v10185_v59 = vpack.c.bf16 %v10557_v56, %v10556_v58 }
0x35c0   :  { %v5901_v44 = vpop.permute.xlu0 %5900 }
0x35c1   :  { %10187 = vmatprep.subr.msk.bf16.mxu1 %vm11200_vm7, %v10185_v59 }
0x35c2   :  { %10190 = vmatpush3.bf16.xpose.msk.msra.mxu1 %vm11200_vm7, %v10185_v59 }
0x35c3   :  { %10192 = vmatprep.subr.bf16.mxu1 %v10191_v24 }
0x35c4   :  { %v10565_v46 = vpop.permute.xlu0 %10564 }
0x35c5   :  { %v10567_v52 = vunpack.i.h.bf16 %v10565_v46  ;;  %v10566_v50 = vunpack.i.l.bf16 %v10565_v46 }
0x35c7   :  { %v10205_v49 = vpack.c.bf16 %v10567_v52, %v10566_v50 }
0x35c8   :  { %v5903_v57 = vpop.permute.xlu0 %5902 }
0x35c9   :  { %9505 = vmatmul.mubr.msk.f32.vlgmr.msra.gmra.mrb[60].mxu1 %vm542_vm6, %v12659_v62 }
0x35ca   :  { %10194 = vmatpush3.bf16.msra.mxu1 %v10191_v24 }
0x35cc   :  { %v6103_v40 = vpop.permute.xlu0 %6102 }
0x369c   :  { %v9506_v54 = vpop.f32.mrb[60].mxu1 }
0x369d   :  { %v5788_v20 = vpop.f32.mrb[61].mxu1  ;;  %v5794_v3 = vadd.f32 %v9506_v54, %v11068_v36 }
0x369e   :  { %v5789_v30 = vadd.f32 %v5788_v20, %v11062_v34 }
0x369f   :  { %v5800_v1 = vsel %vm542_vm6, %v5794_v3, -inf }
0x36a0   :  { %v5797_v8 = vsel %vm542_vm6, %v5789_v30, -inf }
0x36a1   :  { %5798 = vmax.xlane.f32.xlu1 %v5797_v8 }
0x36a5   :  { %5801 = vmax.xlane.f32.xlu1 %v5800_v1 }
0x372e   :  { %v5799_v55 = vpop.xlane.xlu1 %5798 }
0x372f   :  { %v5803_v60 = vsub.f32 %v5789_v30, %v5799_v55 }
0x3731   :  { %v5805_v22 = vmul.f32 1.442695, %v5803_v60 }
0x3732   :  { %v5802_v11 = vpop.xlane.xlu1 %5801 }
0x3733   :  { %v5804_v12 = vsub.f32 %v5794_v3, %v5802_v11 }
0x3735   :  { %v5807_v5 = vmul.f32 1.442695, %v5804_v12 }
0x3737   :  { %10789 = vpow2.f32 %v5807_v5 }
0x3738   :  { %10791 = vpow2.f32 %v5805_v22 }
0x3741   :  { %v10790_v51 = vpop.eup %10789 }
0x3742   :  { %v5812_v19 = vsel %vm542_vm6, %v10790_v51, 0.0  ;;  %v10792_v28 = vpop.eup %10791 }
0x3743   :  { %5813 = vadd.xlane.f32.xlu1 %v5812_v19  ;;  %v5809_v61 = vsel %vm542_vm6, %v10792_v28, 0.0 }
0x3747   :  { %5810 = vadd.xlane.f32.xlu1 %v5809_v61 }
0x3758   :  { %10559 = vrot.lane.b32.xlu1 %v12649_v29, %s10918_s28 }
0x375c   :  { %6104 = vrot.lane.b32.xlu1 %v12659_v62, %s10921_s0 }
0x37d0   :  { %v5814_v26 = vpop.xlane.xlu1 %5813 }
0x37d1   :  { %10793 = vrcp.f32 %v5814_v26 }
0x37d4   :  { %v5811_v7 = vpop.xlane.xlu1 %5810 }
0x37d5   :  { %10795 = vrcp.f32 %v5811_v7 }
0x37d8   :  { %v10560_v25 = vpop.permute.xlu1 %10559 }
0x37d9   :  { %v10562_v39 = vunpack.i.h.bf16 %v10560_v25  ;;  %v10561_v37 = vunpack.i.l.bf16 %v10560_v25 }
0x37db   :  { %v10195_v47 = vpack.c.bf16 %v10562_v39, %v10561_v37  ;;  %v10794_v4 = vpop.eup %10793 }
0x37dc   :  { %v5818_v13 = vmul.f32 %v10794_v4, %v10790_v51  ;;  %v6105_v53 = vpop.permute.xlu1 %6104 }
0x37dd   :  { %10197 = vmatprep.subr.msk.bf16.mxu1 %vm11200_vm7, %v10195_v47 }
0x37df   :  { %v10796_v2 = vpop.eup %10795 }
0x37e0   :  { %v5817_v41 = vmul.f32 %v10796_v2, %v10792_v28 }
0x37e2   :  { %9511 = vmatprep.mubr.msk.f32.mxu1 %vm542_vm6, %v5817_v41 }
0x37e3   :  { %9512 = vmatmul.mubr.msk.f32.vlgmr.msra.gmra.mrb[62].mxu1 %vm542_vm6, %v5818_v13 }
0x37e4   :  { %10200 = vmatpush3.bf16.xpose.msk.msra.mxu1 %vm11200_vm7, %v10195_v47  ;;  %9518 = vmatprep.mubr.msk.f32.mxu1 %vm542_vm6, %v5901_v44 }
0x37e5   :  { %10207 = vmatprep.subr.msk.bf16.mxu1 %vm11200_vm7, %v10205_v49 }
0x37eb   :  { %9519 = vmatmul.mubr.msk.f32.vlgmr.msra.gmra.mrb[64].mxu1 %vm542_vm6, %v5903_v57 }
0x37ec   :  { %10210 = vmatpush3.bf16.xpose.msk.msra.mxu1 %vm11200_vm7, %v10205_v49  ;;  %9532 = vmatprep.mubr.msk.f32.mxu1 %vm542_vm6, %v6103_v40 }
0x37f3   :  { %9533 = vmatmul.mubr.msk.f32.vlgmr.msra.gmra.mrb[66].mxu1 %vm542_vm6, %v6105_v53 }
0x38b6   :  { %v12695_v24 = vpop.f32.mrb[62].mxu1 }
0x38b7   :  { %v12697_v16 = vpop.f32.mrb[63].mxu1 }
0x38be   :  { %v9520_v56 = vpop.f32.mrb[64].mxu1 }
0x38bf   :  { %v5988_v58 = vadd.f32 %v9520_v56, %v11068_v36  ;;  %v5982_v59 = vpop.f32.mrb[65].mxu1 }
0x38c0   :  { %v5983_v54 = vadd.f32 %v5982_v59, %v11062_v34 }
0x38c1   :  { %v5994_v20 = vsel %vm542_vm6, %v5988_v58, -inf }
0x38c2   :  { %5995 = vmax.xlane.f32.xlu1 %v5994_v20  ;;  %v5991_v30 = vsel %vm542_vm6, %v5983_v54, -inf }
0x38c3   :  { %5992 = vmax.xlane.f32.xlu0 %v5991_v30 }
0x38c6   :  { %v9534_v3 = vpop.f32.mrb[66].mxu1 }
0x38c7   :  { %v6184_v8 = vpop.f32.mrb[67].mxu1  ;;  %v6190_v55 = vadd.f32 %v9534_v3, %v11068_v36 }
0x38c8   :  { %v6185_v1 = vadd.f32 %v6184_v8, %v11062_v34 }
0x38c9   :  { %v6196_v11 = vsel %vm542_vm6, %v6190_v55, -inf }
0x38ca   :  { %v6193_v60 = vsel %vm542_vm6, %v6185_v1, -inf }
0x38cb   :  { %6194 = vmax.xlane.f32.xlu0 %v6193_v60 }
0x38cf   :  { %6197 = vmax.xlane.f32.xlu0 %v6196_v11 }
0x38d3   :  { %10569 = vrot.lane.b32.xlu1 %v12651_v21, %s10916_s26 }
0x394f   :  { %v5996_v12 = vpop.xlane.xlu1 %5995 }
0x3950   :  { %v5998_v22 = vsub.f32 %v5988_v58, %v5996_v12  ;;  %v5993_v5 = vpop.xlane.xlu0 %5992 }
0x3951   :  { %v5997_v51 = vsub.f32 %v5983_v54, %v5993_v5  ;;  %v8558_v5 = vld [vmem:[%s13278_s11 + $0x190] sm:$0xff] }
0x3952   :  { %v6001_v19 = vmul.f32 1.442695, %v5998_v22  ;;  %v8556_v22 = vld [vmem:[%s13278_s11 + $0x180] sm:$0xff] }
0x3953   :  { %v5999_v28 = vmul.f32 1.442695, %v5997_v51  ;;  %v10570_v61 = vpop.permute.xlu1 %10569 }
0x3954   :  { %10797 = vpow2.f32 %v6001_v19  ;;  %v10572_v26 = vunpack.i.h.bf16 %v10570_v61  ;;  %v10571_v7 = vunpack.i.l.bf16 %v10570_v61  ;;  %v10241_v61 = vpack.c.bf16 %v8558_v5, %v8556_v22 }
0x3955   :  { %10799 = vpow2.f32 %v5999_v28 }
0x3956   :  { %v10201_v44 = vpack.c.bf16 %v10572_v26, %v10571_v7  ;;  %v6660_v26 = vrot.slane %v12636_v0, %v11483_v17  ;;  %v8562_v17 = vld [vmem:[%s13278_s11 + $0x1b0] sm:$0xff] }
0x3958   :  { %10202 = vmatprep.subr.bf16.mxu0 %v10201_v44  ;;  %v6195_v25 = vpop.xlane.xlu0 %6194 }
0x3959   :  { %10204 = vmatpush3.bf16.msra.mxu0 %v10201_v44  ;;  %v6199_v13 = vsub.f32 %v6185_v1, %v6195_v25  ;;  %v6661_v44 = vmul.f32 %v6660_v26, %v12165_v23  ;;  %v6666_v25 = vrot.slane %v12636_v0, %v11486_v18  ;;  %v8566_v23 = vld [vmem:[%s13278_s11 + $0x1d0] sm:$0xff] }
0x395b   :  { %v6201_v49 = vmul.f32 1.442695, %v6199_v13 }
0x395c   :  { %v6198_v39 = vpop.xlane.xlu0 %6197 }
0x395d   :  { %v6200_v37 = vsub.f32 %v6190_v55, %v6198_v39  ;;  %v8560_v39 = vld [vmem:[%s13278_s11 + $0x1a0] sm:$0xff] }
0x395e   :  { %v10798_v47 = vpop.eup %10797 }
0x395f   :  { %v10800_v46 = vpop.eup %10799  ;;  %v6203_v4 = vmul.f32 1.442695, %v6200_v37  ;;  %v6006_v2 = vsel %vm542_vm6, %v10798_v47, 0.0  ;;  %v10245_v37 = vpack.c.bf16 %v8562_v17, %v8560_v39  ;;  %v8521_v17 = vld [vmem:[%s13279_s12 + $0x88] sm:$0xff] }
0x3960   :  { %6007 = vadd.xlane.f32.xlu0 %v6006_v2  ;;  %v6003_v52 = vsel %vm542_vm6, %v10800_v46, 0.0  ;;  %v8568_v2 = vld [vmem:[%s13278_s11 + $0x1e0] sm:$0xff] }
0x3961   :  { %10801 = vpow2.f32 %v6203_v4  ;;  %6004 = vadd.xlane.f32.xlu1 %v6003_v52  ;;  %v8564_v4 = vld [vmem:[%s13278_s11 + $0x1c0] sm:$0xff]  ;;  %v8570_v52 = vld [vmem:[%s13278_s11 + $0x1f0] sm:$0xff] }
0x3962   :  { %10803 = vpow2.f32 %v6201_v49  ;;  %v10249_v18 = vpack.c.bf16 %v8566_v23, %v8564_v4  ;;  %v8524_v23 = vld [vmem:[%s13279_s12 + $0xa0] sm:$0xff] }
0x396b   :  { %v10802_v50 = vpop.eup %10801 }
0x396c   :  { %v6208_v41 = vsel %vm542_vm6, %v10802_v50, 0.0  ;;  %v10804_v57 = vpop.eup %10803 }
0x396d   :  { %6209 = vadd.xlane.f32.xlu0 %v6208_v41  ;;  %v6205_v40 = vsel %vm542_vm6, %v10804_v57, 0.0  ;;  %v6662_v41 = vmul.f32 %v6660_v26, %v12202_v27 }
0x396f   :  { %v6668_v13 = vadd.f32 %v6666_v25, %v6662_v41 }
0x3972   :  { %10579 = vrot.lane.b32.xlu1 %v12649_v29, %s13305_s5 }
0x3983   :  { %10574 = vrot.lane.b32.xlu0 %v12651_v21, %s10921_s0 }
0x3987   :  { %6304 = vrot.lane.b32.xlu0 %v12659_v62, %s13306_s6 }
0x3996   :  { %6206 = vadd.xlane.f32.xlu1 %v6205_v40 }
0x39a7   :  { %6302 = vrot.lane.b32.xlu1 %v12645_v6, %s13306_s6 }
0x39ed   :  { %v6008_v53 = vpop.xlane.xlu0 %6007 }
0x39ee   :  { %10805 = vrcp.f32 %v6008_v53  ;;  %v6005_v56 = vpop.xlane.xlu1 %6004 }
0x39ef   :  { %10807 = vrcp.f32 %v6005_v56 }
0x39f2   :  { %v10580_v30 = vpop.permute.xlu1 %10579 }
0x39f3   :  { %v10582_v3 = vunpack.i.h.bf16 %v10580_v30  ;;  %v10581_v8 = vunpack.i.l.bf16 %v10580_v30 }
0x39f5   :  { %v10215_v60 = vpack.c.bf16 %v10582_v3, %v10581_v8 }
0x39f8   :  { %v10806_v29 = vpop.eup %10805 }
0x39f9   :  { %v10808_v58 = vpop.eup %10807  ;;  %v6012_v20 = vmul.f32 %v10806_v29, %v10798_v47 }
0x39fa   :  { %v6210_v59 = vpop.xlane.xlu0 %6209  ;;  %v6011_v54 = vmul.f32 %v10808_v58, %v10800_v46  ;;  %v6667_v46 = vadd.f32 %v6666_v25, %v6661_v44 }
0x39fb   :  { %10809 = vrcp.f32 %v6210_v59 }
0x39fc   :  { %9525 = vmatprep.mubr.msk.f32.mxu0 %vm542_vm6, %v6011_v54 }
0x39fd   :  { %9526 = vmatmul.mubr.msk.f32.vlgmr.msra.gmra.mrb[62].mxu0 %vm542_vm6, %v6012_v20 }
0x39fe   :  { %v10575_v62 = vpop.permute.xlu0 %10574 }
0x39ff   :  { %v10577_v1 = vunpack.i.h.bf16 %v10575_v62  ;;  %v10576_v55 = vunpack.i.l.bf16 %v10575_v62 }
0x3a01   :  { %v10211_v6 = vpack.c.bf16 %v10577_v1, %v10576_v55 }
0x3a02   :  { %v6305_v47 = vpop.permute.xlu0 %6304 }
0x3a03   :  { %10212 = vmatprep.subr.bf16.mxu0 %v10211_v6 }
0x3a04   :  { %10214 = vmatpush3.bf16.msra.mxu0 %v10211_v6 }
0x3a05   :  { %10217 = vmatprep.subr.msk.bf16.mxu0 %vm11200_vm7, %v10215_v60  ;;  %v10810_v12 = vpop.eup %10809 }
0x3a06   :  { %v6214_v28 = vmul.f32 %v10810_v12, %v10802_v50  ;;  %v10253_v50 = vpack.c.bf16 %v8570_v52, %v8568_v2  ;;  %v8526_v52 = vld [vmem:[%s13279_s12 + $0xb0] sm:$0xff] }
0x3a23   :  { %v6207_v11 = vpop.xlane.xlu1 %6206 }
0x3a24   :  { %10811 = vrcp.f32 %v6207_v11 }
0x3a27   :  { %v6303_v7 = vpop.permute.xlu1 %6302 }
0x3a2e   :  { %v10812_v51 = vpop.eup %10811 }
0x3a2f   :  { %v6213_v19 = vmul.f32 %v10812_v51, %v10804_v57 }
0x3a31   :  { %9539 = vmatprep.mubr.msk.f32.mxu0 %vm542_vm6, %v6213_v19 }
0x3a32   :  { %9540 = vmatmul.mubr.msk.f32.vlgmr.msra.gmra.mrb[64].mxu0 %vm542_vm6, %v6214_v28 }
0x3a33   :  { %10220 = vmatpush3.bf16.xpose.msk.msra.mxu0 %vm11200_vm7, %v10215_v60  ;;  %9546 = vmatprep.mubr.msk.f32.mxu0 %vm542_vm6, %v6303_v7 }
0x3a34   :  { %10242 = vmatprep.subr.bf16.mxu0 %v10241_v61 }
0x3a3a   :  { %9547 = vmatmul.mubr.msk.f32.vlgmr.msra.gmra.mrb[66].mxu0 %vm542_vm6, %v6305_v47 }
0x3a3b   :  { %10244 = vmatpush3.bf16.msra.mxu0 %v10241_v61  ;;  %9591 = vmatprep.mubr.msk.f32.mxu0 %vm387_vm0, %v6667_v46  ;;  %v8523_v46 = vld [vmem:[%s13279_s12 + $0x98] sm:$0xff] }
0x3a3c   :  { %10246 = vmatprep.subr.bf16.mxu0 %v10245_v37 }
0x3a3f   :  { %10248 = vmatpush3.bf16.msra.mxu0 %v10245_v37  ;;  %v8522_v37 = vld [vmem:[%s13279_s12 + $0x90] sm:$0xff] }
0x3a40   :  { %10250 = vmatprep.subr.bf16.mxu0 %v10249_v18  ;;  %v10229_v4 = vpack.c.bf16 %v8523_v46, %v8522_v37  ;;  %v8565_v37 = vld [vmem:[%s13278_s11 + $0x1c8] sm:$0xff] }
0x3a43   :  { %10252 = vmatpush3.bf16.msra.mxu0 %v10249_v18  ;;  %v8525_v18 = vld [vmem:[%s13279_s12 + $0xa8] sm:$0xff] }
0x3a44   :  { %10254 = vmatprep.subr.bf16.mxu0 %v10253_v50  ;;  %v10233_v2 = vpack.c.bf16 %v8525_v18, %v8524_v23  ;;  %v8571_v23 = vld [vmem:[%s13278_s11 + $0x1f8] sm:$0xff] }
0x3a47   :  { %10256 = vmatpush3.bf16.msra.mxu0 %v10253_v50  ;;  %v8527_v50 = vld [vmem:[%s13279_s12 + $0xb8] sm:$0xff] }
0x3a48   :  { %v10237_v41 = vpack.c.bf16 %v8527_v50, %v8526_v52 }
0x3a4a   :  { %9592 = vmatmul.mubr.msk.f32.vlgmr.msra.gmra.mrb[68].mxu0 %vm387_vm0, %v6668_v13 }
0x3ad0   :  { %v9527_v49 = vpop.f32.mrb[62].mxu0 }
0x3ad1   :  { %v6093_v57 = vpop.f32.mrb[63].mxu0 }
0x3b05   :  { %v9541_v40 = vpop.f32.mrb[64].mxu0 }
0x3b06   :  { %v6293_v53 = vpop.f32.mrb[65].mxu0 }
0x3b0d   :  { %v9548_v56 = vpop.f32.mrb[66].mxu0 }
0x3b0e   :  { %v6390_v29 = vadd.f32 %v9548_v56, %v11068_v36  ;;  %v6384_v58 = vpop.f32.mrb[67].mxu0 }
0x3b0f   :  { %v6385_v59 = vadd.f32 %v6384_v58, %v11062_v34 }
0x3b10   :  { %v6396_v54 = vsel %vm542_vm6, %v6390_v29, -inf }
0x3b11   :  { %6397 = vmax.xlane.f32.xlu0 %v6396_v54  ;;  %v6393_v27 = vsel %vm542_vm6, %v6385_v59, -inf }
0x3b12   :  { %6394 = vmax.xlane.f32.xlu1 %v6393_v27 }
0x3b1d   :  { %v9593_v20 = vpop.f32.mrb[68].mxu0 }
0x3b1e   :  { %v6767_v30 = vpop.f32.mrb[69].mxu0 }
0x3b1f   :  { %v10273_v62 = vpack.c.bf16 %v9593_v20, %v6767_v30  ;;  %v12767_v3 = vpack.i.bf16 %v9593_v20, %v6767_v30 }
0x3b21   :  { %10275 = vmatprep.subr.msk.bf16.mxu0 %vm11200_vm7, %v10273_v62 }
0x3b22   :  { %10278 = vmatpush3.bf16.xpose.msk.msra.mxu0 %vm11200_vm7, %v10273_v62 }
0x3b9e   :  { %v6398_v36 = vpop.xlane.xlu0 %6397 }
0x3b9f   :  { %v6400_v8 = vsub.f32 %v6390_v29, %v6398_v36  ;;  %v6395_v34 = vpop.xlane.xlu1 %6394 }
0x3ba0   :  { %v6399_v1 = vsub.f32 %v6385_v59, %v6395_v34 }
0x3ba1   :  { %v6403_v55 = vmul.f32 1.442695, %v6400_v8 }
0x3ba2   :  { %v6401_v6 = vmul.f32 1.442695, %v6399_v1 }
0x3ba3   :  { %10813 = vpow2.f32 %v6403_v55 }
0x3ba4   :  { %10815 = vpow2.f32 %v6401_v6 }
0x3bad   :  { %v10814_v60 = vpop.eup %10813 }
0x3bae   :  { %v10816_v11 = vpop.eup %10815  ;;  %v6408_v12 = vsel %vm542_vm6, %v10814_v60, 0.0 }
0x3baf   :  { %6409 = vadd.xlane.f32.xlu1 %v6408_v12  ;;  %v6405_v22 = vsel %vm542_vm6, %v10816_v11, 0.0 }
0x3bb0   :  { %6406 = vadd.xlane.f32.xlu0 %v6405_v22 }
0x3bc0   :  { %6504 = vrot.lane.b32.xlu1 %v6093_v57, %s13305_s5 }
0x3bc4   :  { %6506 = vrot.lane.b32.xlu1 %v9527_v49, %s13305_s5 }
0x3bc6   :  { %10584 = vrot.lane.b32.xlu0 %v12651_v21, %s13306_s6  ;;  %v8520_v21 = vld [vmem:[%s13279_s12 + $0x80] sm:$0xff] }
0x3bc7   :  { %v10225_v47 = vpack.c.bf16 %v8521_v17, %v8520_v21  ;;  %v8563_v21 = vld [vmem:[%s13278_s11 + $0x1b8] sm:$0xff] }
0x3bc8   :  { %6514 = vrot.lane.b32.xlu1 %v9541_v40, %s10919_s29 }
0x3bca   :  { %6512 = vrot.lane.b32.xlu0 %v6293_v53, %s10919_s29 }
0x3c3c   :  { %v6410_v5 = vpop.xlane.xlu1 %6409 }
0x3c3d   :  { %10817 = vrcp.f32 %v6410_v5  ;;  %v6407_v51 = vpop.xlane.xlu0 %6406 }
0x3c3e   :  { %10819 = vrcp.f32 %v6407_v51 }
0x3c40   :  { %v6505_v57 = vpop.permute.xlu1 %6504 }
0x3c41   :  { %v10585_v19 = vpop.permute.xlu0 %10584  ;;  %v6526_v29 = vsel %vm542_vm6, %v12697_v16, %v6505_v57  ;;  %v12822_v16 = vld [vmem:[%s13277_s10 + $0x18] sm:$0x3]  ;;  %v6648_v57 = vrot.slane %v12636_v0, %v11330_v33 }
0x3c42   :  { %v10587_v28 = vunpack.i.h.bf16 %v10585_v19  ;;  %v10586_v61 = vunpack.i.l.bf16 %v10585_v19 }
0x3c44   :  { %v10221_v26 = vpack.c.bf16 %v10587_v28, %v10586_v61  ;;  %v6507_v40 = vpop.permute.xlu1 %6506 }
0x3c45   :  { %v6513_v56 = vpop.permute.xlu0 %6512  ;;  %v6527_v59 = vsel %vm542_vm6, %v12695_v24, %v6507_v40  ;;  %v6535_v24 = vrot.slane %v12822_v16, %v11167_v43 }
0x3c46   :  { %10222 = vmatprep.subr.bf16.mxu1 %v10221_v26  ;;  %v6528_v54 = vsel %vm1359_vm4, %v6526_v29, %v6513_v56  ;;  %v6654_v56 = vrot.slane %v12636_v0, %v4144_v35 }
0x3c47   :  { %v10818_v7 = vpop.eup %10817  ;;  %10224 = vmatpush3.bf16.msra.mxu1 %v10221_v26 }
0x3c48   :  { %v10820_v44 = vpop.eup %10819  ;;  %v6414_v39 = vmul.f32 %v10818_v7, %v10814_v60  ;;  %10226 = vmatprep.subr.bf16.mxu1 %v10225_v47  ;;  %v6515_v53 = vpop.permute.xlu1 %6514  ;;  %v8557_v7 = vld [vmem:[%s13278_s11 + $0x188] sm:$0xff] }
0x3c49   :  { %v6413_v25 = vmul.f32 %v10820_v44, %v10816_v11  ;;  %v6529_v20 = vsel %vm1359_vm4, %v6527_v59, %v6515_v53  ;;  %v8559_v44 = vld [vmem:[%s13278_s11 + $0x198] sm:$0xff] }
0x3c4b   :  { %9553 = vmatprep.mubr.msk.f32.mxu1 %vm542_vm6, %v6413_v25  ;;  %v10257_v25 = vpack.c.bf16 %v8559_v44, %v8557_v7 }
0x3c4c   :  { %9554 = vmatmul.mubr.msk.f32.vlgmr.msra.gmra.mrb[68].mxu1 %vm542_vm6, %v6414_v39  ;;  %v8561_v39 = vld [vmem:[%s13278_s11 + $0x1a8] sm:$0xff] }
0x3c4d   :  { %10228 = vmatpush3.bf16.msra.mxu1 %v10225_v47  ;;  %v10261_v17 = vpack.c.bf16 %v8563_v21, %v8561_v39  ;;  %v8567_v47 = vld [vmem:[%s13278_s11 + $0x1d8] sm:$0xff] }
0x3c4e   :  { %10230 = vmatprep.subr.bf16.mxu1 %v10229_v4  ;;  %v10265_v46 = vpack.c.bf16 %v8567_v47, %v8565_v37 }
0x3c51   :  { %10232 = vmatpush3.bf16.msra.mxu1 %v10229_v4  ;;  %v8569_v4 = vld [vmem:[%s13278_s11 + $0x1e8] sm:$0xff] }
0x3c52   :  { %10234 = vmatprep.subr.bf16.mxu1 %v10233_v2  ;;  %v10269_v18 = vpack.c.bf16 %v8571_v23, %v8569_v4 }
0x3c55   :  { %10236 = vmatpush3.bf16.msra.mxu1 %v10233_v2 }
0x3c56   :  { %10238 = vmatprep.subr.bf16.mxu1 %v10237_v41 }
0x3c59   :  { %10240 = vmatpush3.bf16.msra.mxu1 %v10237_v41 }
0x3c5a   :  { %10258 = vmatprep.subr.bf16.mxu1 %v10257_v25 }
0x3d1f   :  { %v9555_v13 = vpop.f32.mrb[68].mxu1 }
0x3d20   :  { %6522 = vrot.lane.b32.xlu1 %v9555_v13, %s10918_s28  ;;  %v6493_v49 = vpop.f32.mrb[69].mxu1 }
0x3d21   :  { %6520 = vrot.lane.b32.xlu0 %v6493_v49, %s10918_s28 }
0x3d92   :  { %v6523_v58 = vpop.permute.xlu1 %6522 }
0x3d93   :  { %v6521_v27 = vpop.permute.xlu0 %6520  ;;  %v6531_v62 = vsel %vm1362_vm5, %v6529_v20, %v6523_v58 }
0x3d94   :  { %v6530_v30 = vsel %vm1362_vm5, %v6528_v54, %v6521_v27 }
0x3d95   :  { %9572 = vmatprep.mubr.msk.f32.mxu1 %vm387_vm0, %v6530_v30 }
0x3d96   :  { %9573 = vmatmul.mubr.msk.f32.vlgmr.msra.gmra.mrb[70].mxu1 %vm387_vm0, %v6531_v62 }
0x3d97   :  { %10260 = vmatpush3.bf16.msra.mxu1 %v10257_v25 }
0x3d98   :  { %10262 = vmatprep.subr.bf16.mxu1 %v10261_v17 }
0x3d9b   :  { %10264 = vmatpush3.bf16.msra.mxu1 %v10261_v17 }
0x3d9c   :  { %10266 = vmatprep.subr.bf16.mxu1 %v10265_v46 }
0x3d9f   :  { %10268 = vmatpush3.bf16.msra.mxu1 %v10265_v46 }
0x3da0   :  { %10270 = vmatprep.subr.bf16.mxu1 %v10269_v18 }
0x3da3   :  { %10272 = vmatpush3.bf16.msra.mxu1 %v10269_v18 }
0x3e69   :  { %v9574_v36 = vpop.f32.mrb[70].mxu1 }
0x3e6a   :  { %v6614_v8 = vadd.f32 %v9574_v36, %v6535_v24  ;;  %v6608_v34 = vpop.f32.mrb[71].mxu1 }
0x3e6b   :  { %v6609_v1 = vadd.f32 %v6608_v34, %v6535_v24 }
0x3e6c   :  { %v12827_v55 = vadd.f32 %v6614_v8, %v12577_v38 }
0x3e6d   :  { %v12830_v6 = vadd.f32 %v6609_v1, %v12572_v45 }
0x3e6e   :  { %v6622_v60 = vsel %vm387_vm0, %v12827_v55, 0.0 }
0x3e6f   :  { %6623 = vadd.xlane.f32.xlu1 %v6622_v60  ;;  %v6619_v11 = vsel %vm387_vm0, %v12830_v6, 0.0 }
0x3e70   :  { %6620 = vadd.xlane.f32.xlu0 %v6619_v11 }
0x3efc   :  { %v6624_v12 = vpop.xlane.xlu1 %6623 }
0x3efd   :  { %v6626_v22 = vmul.f32 0.015625, %v6624_v12  ;;  %v6621_v5 = vpop.xlane.xlu0 %6620 }
0x3efe   :  { %v6625_v51 = vmul.f32 0.015625, %v6621_v5 }
0x3eff   :  { %v6628_v19 = vsub.f32 %v12827_v55, %v6626_v22 }
0x3f00   :  { %v6627_v38 = vsub.f32 %v12830_v6, %v6625_v51 }
0x3f01   :  { %v6630_v61 = vmul.f32 %v6628_v19, %v6628_v19 }
0x3f02   :  { %v6629_v28 = vmul.f32 %v6627_v38, %v6627_v38 }
0x3f03   :  { %v6634_v26 = vsel %vm387_vm0, %v6630_v61, 0.0 }
0x3f04   :  { %v6631_v45 = vsel %vm387_vm0, %v6629_v28, 0.0 }
0x3f05   :  { %6632 = vadd.xlane.f32.xlu0 %v6631_v45 }
0x3f09   :  { %6635 = vadd.xlane.f32.xlu0 %v6634_v26 }
0x3f92   :  { %v6633_v2 = vpop.xlane.xlu0 %6632 }
0x3f93   :  { %v6637_v52 = vmul.f32 0.015625, %v6633_v2 }
0x3f95   :  { %v6639_v50 = vadd.f32 1e-05, %v6637_v52 }
0x3f96   :  { %v6636_v41 = vpop.xlane.xlu0 %6635 }
0x3f97   :  { %10821 = vrsqrt.f32 %v6639_v50  ;;  %v6638_v13 = vmul.f32 0.015625, %v6636_v41 }
0x3f99   :  { %v6640_v49 = vadd.f32 1e-05, %v6638_v13 }
0x3f9b   :  { %10823 = vrsqrt.f32 %v6640_v49 }
0x3fa1   :  { %v10822_v40 = vpop.eup %10821 }
0x3fa2   :  { %v6643_v53 = vmul.f32 %v10822_v40, %v6627_v38 }
0x3fa4   :  { %v6649_v29 = vmul.f32 %v6648_v57, %v6643_v53 }
0x3fa5   :  { %v10824_v58 = vpop.eup %10823 }
0x3fa6   :  { %v6644_v59 = vmul.f32 %v10824_v58, %v6628_v19  ;;  %v6655_v54 = vadd.f32 %v6654_v56, %v6649_v29 }
0x3fa8   :  { %v6650_v27 = vmul.f32 %v6648_v57, %v6644_v59  ;;  %9610 = vmatprep.mubr.msk.f32.mxu1 %vm387_vm0, %v6655_v54 }
0x3faa   :  { %v6656_v20 = vadd.f32 %v6654_v56, %v6650_v27 }
0x3fac   :  { %9611 = vmatmul.mubr.msk.f32.vlgmr.msra.gmra.mrb[72].mxu1 %vm387_vm0, %v6656_v20 }
0x407f   :  { %v9612_v30 = vpop.f32.mrb[72].mxu1 }
0x4080   :  { %v6848_v62 = vpop.f32.mrb[73].mxu1  ;;  %v12873_v33 = vmul.f32 0.125, %v9612_v30 }
0x4081   :  { %v12871_v24 = vmul.f32 0.125, %v6848_v62 }
0x4083   :  { %9617 = vmatprep.mubr.msk.f32.mxu0 %vm542_vm6, %v12871_v24 }
0x4084   :  { %9618 = vmatmul.mubr.msk.f32.vlgmr.msra.gmra.mrb[70].mxu0 %vm542_vm6, %v12873_v33 }
0x4157   :  { %v9619_v35 = vpop.f32.mrb[70].mxu0 }
0x4158   :  { %v6943_v0 = vadd.f32 %v9619_v35, %v11212_v14  ;;  %v6937_v36 = vpop.f32.mrb[71].mxu0 }
0x4159   :  { %v6938_v8 = vadd.f32 %v6937_v36, %v11217_v15 }
0x415a   :  { %v6949_v34 = vsel %vm542_vm6, %v6943_v0, -inf }
0x415b   :  { %6950 = vmax.xlane.f32.xlu0 %v6949_v34  ;;  %v6946_v1 = vsel %vm542_vm6, %v6938_v8, -inf }
0x415c   :  { %6947 = vmax.xlane.f32.xlu1 %v6946_v1 }
0x416d   :  { %10589 = vrot.lane.b32.xlu1 %v12767_v3, %s10915_s4 }
0x4171   :  { %7055 = vrot.lane.b32.xlu1 %v12871_v24, %s10916_s26 }
0x41e8   :  { %v6951_v60 = vpop.xlane.xlu0 %6950 }
0x41e9   :  { %v6953_v11 = vsub.f32 %v6943_v0, %v6951_v60  ;;  %v6948_v12 = vpop.xlane.xlu1 %6947 }
0x41ea   :  { %v6952_v22 = vsub.f32 %v6938_v8, %v6948_v12 }
0x41eb   :  { %v6956_v5 = vmul.f32 1.442695, %v6953_v11 }
0x41ec   :  { %v6954_v51 = vmul.f32 1.442695, %v6952_v22 }
0x41ed   :  { %10825 = vpow2.f32 %v6956_v5  ;;  %v10590_v19 = vpop.permute.xlu1 %10589 }
0x41ee   :  { %10827 = vpow2.f32 %v6954_v51  ;;  %v10592_v38 = vunpack.i.h.bf16 %v10590_v19  ;;  %v10591_v28 = vunpack.i.l.bf16 %v10590_v19 }
0x41f0   :  { %v10279_v45 = vpack.c.bf16 %v10592_v38, %v10591_v28 }
0x41f1   :  { %v7056_v25 = vpop.permute.xlu1 %7055 }
0x41f2   :  { %10280 = vmatprep.subr.bf16.mxu0 %v10279_v45 }
0x41f3   :  { %10282 = vmatpush3.bf16.msra.mxu0 %v10279_v45 }
0x41f7   :  { %v10826_v61 = vpop.eup %10825 }
0x41f8   :  { %v10828_v26 = vpop.eup %10827  ;;  %v6961_v7 = vsel %vm542_vm6, %v10826_v61, 0.0 }
0x41f9   :  { %6962 = vadd.xlane.f32.xlu0 %v6961_v7  ;;  %v6958_v44 = vsel %vm542_vm6, %v10828_v26, 0.0 }
0x41fa   :  { %6959 = vadd.xlane.f32.xlu1 %v6958_v44 }
0x420b   :  { %7057 = vrot.lane.b32.xlu1 %v12873_v33, %s10916_s26 }
0x420f   :  { %10594 = vrot.lane.b32.xlu0 %v12767_v3, %s10916_s26 }
0x4286   :  { %v6963_v39 = vpop.xlane.xlu0 %6962 }
0x4287   :  { %10829 = vrcp.f32 %v6963_v39  ;;  %v6960_v21 = vpop.xlane.xlu1 %6959 }
0x4288   :  { %10831 = vrcp.f32 %v6960_v21 }
0x428a   :  { %v10595_v17 = vpop.permute.xlu0 %10594 }
0x428b   :  { %v10597_v37 = vunpack.i.h.bf16 %v10595_v17  ;;  %v10596_v47 = vunpack.i.l.bf16 %v10595_v17  ;;  %v7058_v52 = vpop.permute.xlu1 %7057 }
0x428d   :  { %v10283_v46 = vpack.c.bf16 %v10597_v37, %v10596_v47 }
0x428f   :  { %10285 = vmatprep.subr.msk.bf16.mxu0 %vm11200_vm7, %v10283_v46 }
0x4291   :  { %v10830_v4 = vpop.eup %10829 }
0x4292   :  { %v10832_v23 = vpop.eup %10831  ;;  %v6967_v2 = vmul.f32 %v10830_v4, %v10826_v61 }
0x4293   :  { %v6966_v18 = vmul.f32 %v10832_v23, %v10828_v26 }
0x4295   :  { %9624 = vmatprep.mubr.msk.f32.mxu0 %vm542_vm6, %v6966_v18 }
0x4296   :  { %9625 = vmatmul.mubr.msk.f32.vlgmr.msra.gmra.mrb[72].mxu0 %vm542_vm6, %v6967_v2 }
0x4297   :  { %10288 = vmatpush3.bf16.xpose.msk.msra.mxu0 %vm11200_vm7, %v10283_v46  ;;  %9631 = vmatprep.mubr.msk.f32.mxu0 %vm542_vm6, %v7056_v25 }
0x429e   :  { %9632 = vmatmul.mubr.msk.f32.vlgmr.msra.gmra.mrb[74].mxu0 %vm542_vm6, %v7058_v52 }
0x4369   :  { %v12901_v50 = vpop.f32.mrb[72].mxu0 }
0x436a   :  { %v12903_v41 = vpop.f32.mrb[73].mxu0 }
0x4371   :  { %v9633_v13 = vpop.f32.mrb[74].mxu0 }
0x4372   :  { %v7143_v49 = vadd.f32 %v9633_v13, %v11212_v14  ;;  %v7137_v57 = vpop.f32.mrb[75].mxu0 }
0x4373   :  { %v7138_v40 = vadd.f32 %v7137_v57, %v11217_v15 }
0x4374   :  { %v7149_v53 = vsel %vm542_vm6, %v7143_v49, -inf }
0x4375   :  { %7150 = vmax.xlane.f32.xlu1 %v7149_v53  ;;  %v7146_v56 = vsel %vm542_vm6, %v7138_v40, -inf }
0x4376   :  { %7147 = vmax.xlane.f32.xlu0 %v7146_v56 }
0x4386   :  { %10599 = vrot.lane.b32.xlu1 %v12767_v3, %s10918_s28 }
0x438a   :  { %7255 = vrot.lane.b32.xlu1 %v12871_v24, %s10921_s0 }
0x438e   :  { %7257 = vrot.lane.b32.xlu1 %v12873_v33, %s10921_s0 }
0x4402   :  { %v7151_v29 = vpop.xlane.xlu1 %7150 }
0x4403   :  { %v7153_v58 = vsub.f32 %v7143_v49, %v7151_v29  ;;  %v7148_v59 = vpop.xlane.xlu0 %7147 }
0x4404   :  { %v7152_v54 = vsub.f32 %v7138_v40, %v7148_v59 }
0x4405   :  { %v7156_v27 = vmul.f32 1.442695, %v7153_v58 }
0x4406   :  { %v7154_v20 = vmul.f32 1.442695, %v7152_v54  ;;  %v10600_v30 = vpop.permute.xlu1 %10599 }
0x4407   :  { %10833 = vpow2.f32 %v7156_v27  ;;  %v10602_v62 = vunpack.i.h.bf16 %v10600_v30  ;;  %v10601_v35 = vunpack.i.l.bf16 %v10600_v30 }
0x4408   :  { %10835 = vpow2.f32 %v7154_v20 }
0x4409   :  { %v10289_v0 = vpack.c.bf16 %v10602_v62, %v10601_v35 }
0x440a   :  { %v7256_v61 = vpop.permute.xlu1 %7255 }
0x440b   :  { %10290 = vmatprep.subr.bf16.mxu1 %v10289_v0 }
0x440c   :  { %10292 = vmatpush3.bf16.msra.mxu1 %v10289_v0 }
0x440e   :  { %v7258_v26 = vpop.permute.xlu1 %7257 }
0x4411   :  { %v10834_v36 = vpop.eup %10833 }
0x4412   :  { %v7161_v8 = vsel %vm542_vm6, %v10834_v36, 0.0  ;;  %v10836_v34 = vpop.eup %10835 }
0x4413   :  { %7162 = vadd.xlane.f32.xlu0 %v7161_v8  ;;  %v7158_v1 = vsel %vm542_vm6, %v10836_v34, 0.0 }
0x4417   :  { %7159 = vadd.xlane.f32.xlu0 %v7158_v1 }
0x442d   :  { %10604 = vrot.lane.b32.xlu0 %v12767_v3, %s10921_s0 }
0x44a0   :  { %v7163_v60 = vpop.xlane.xlu0 %7162 }
0x44a1   :  { %10837 = vrcp.f32 %v7163_v60 }
0x44a4   :  { %v7160_v11 = vpop.xlane.xlu0 %7159 }
0x44a5   :  { %10839 = vrcp.f32 %v7160_v11 }
0x44a8   :  { %v10605_v12 = vpop.permute.xlu0 %10604 }
0x44a9   :  { %v10607_v22 = vunpack.i.h.bf16 %v10605_v12  ;;  %v10606_v5 = vunpack.i.l.bf16 %v10605_v12 }
0x44ab   :  { %v10293_v51 = vpack.c.bf16 %v10607_v22, %v10606_v5  ;;  %v10838_v19 = vpop.eup %10837 }
0x44ac   :  { %v7167_v45 = vmul.f32 %v10838_v19, %v10834_v36 }
0x44ad   :  { %10295 = vmatprep.subr.msk.bf16.mxu1 %vm11200_vm7, %v10293_v51 }
0x44af   :  { %v10840_v38 = vpop.eup %10839 }
0x44b0   :  { %v7166_v28 = vmul.f32 %v10840_v38, %v10836_v34 }
0x44b2   :  { %9638 = vmatprep.mubr.msk.f32.mxu1 %vm542_vm6, %v7166_v28 }
0x44b3   :  { %9639 = vmatmul.mubr.msk.f32.vlgmr.msra.gmra.mrb[74].mxu1 %vm542_vm6, %v7167_v45 }
0x44b4   :  { %10298 = vmatpush3.bf16.xpose.msk.msra.mxu1 %vm11200_vm7, %v10293_v51  ;;  %9645 = vmatprep.mubr.msk.f32.mxu1 %vm542_vm6, %v7256_v61 }
0x44bb   :  { %9646 = vmatmul.mubr.msk.f32.vlgmr.msra.gmra.mrb[76].mxu1 %vm542_vm6, %v7258_v26 }
0x4586   :  { %v12927_v7 = vpop.f32.mrb[74].mxu1 }
0x4587   :  { %v12929_v44 = vpop.f32.mrb[75].mxu1 }
0x458e   :  { %v9647_v25 = vpop.f32.mrb[76].mxu1 }
0x458f   :  { %v7343_v39 = vadd.f32 %v9647_v25, %v11212_v14  ;;  %v7337_v21 = vpop.f32.mrb[77].mxu1 }
0x4590   :  { %v7338_v17 = vadd.f32 %v7337_v21, %v11217_v15 }
0x4591   :  { %v7349_v37 = vsel %vm542_vm6, %v7343_v39, -inf }
0x4592   :  { %7350 = vmax.xlane.f32.xlu1 %v7349_v37  ;;  %v7346_v47 = vsel %vm542_vm6, %v7338_v17, -inf }
0x4593   :  { %7347 = vmax.xlane.f32.xlu0 %v7346_v47 }
0x45a3   :  { %10609 = vrot.lane.b32.xlu1 %v12767_v3, %s10919_s29 }
0x45a7   :  { %7455 = vrot.lane.b32.xlu1 %v12871_v24, %s13306_s6 }
0x45ab   :  { %7457 = vrot.lane.b32.xlu1 %v12873_v33, %s13306_s6 }
0x461f   :  { %v7351_v46 = vpop.xlane.xlu1 %7350 }
0x4620   :  { %v7353_v4 = vsub.f32 %v7343_v39, %v7351_v46  ;;  %v7348_v23 = vpop.xlane.xlu0 %7347 }
0x4621   :  { %v7352_v18 = vsub.f32 %v7338_v17, %v7348_v23 }
0x4622   :  { %v7356_v2 = vmul.f32 1.442695, %v7353_v4 }
0x4623   :  { %v7354_v52 = vmul.f32 1.442695, %v7352_v18  ;;  %v10610_v13 = vpop.permute.xlu1 %10609  ;;  %v8572_v18 = vld [vmem:[%s13279_s12 + $0xc0] sm:$0xff] }
0x4624   :  { %10841 = vpow2.f32 %v7356_v2  ;;  %v10612_v49 = vunpack.i.h.bf16 %v10610_v13  ;;  %v10611_v57 = vunpack.i.l.bf16 %v10610_v13  ;;  %v8574_v2 = vld [vmem:[%s13279_s12 + $0xd0] sm:$0xff]  ;;  %v8575_v13 = vld [vmem:[%s13279_s12 + $0xd8] sm:$0xff] }
0x4625   :  { %10843 = vpow2.f32 %v7354_v52 }
0x4626   :  { %v10299_v40 = vpack.c.bf16 %v10612_v49, %v10611_v57  ;;  %v10317_v49 = vpack.c.bf16 %v8575_v13, %v8574_v2  ;;  %v8576_v57 = vld [vmem:[%s13279_s12 + $0xe0] sm:$0xff] }
0x4627   :  { %v7456_v36 = vpop.permute.xlu1 %7455  ;;  %v8620_v13 = vld [vmem:[%s13280_s13 + $0xe0] sm:$0xff] }
0x4628   :  { %10300 = vmatprep.subr.bf16.mxu0 %v10299_v40 }
0x4629   :  { %10302 = vmatpush3.bf16.msra.mxu0 %v10299_v40  ;;  %v8577_v40 = vld [vmem:[%s13279_s12 + $0xe8] sm:$0xff] }
0x462b   :  { %v7458_v8 = vpop.permute.xlu1 %7457 }
0x462e   :  { %v10842_v53 = vpop.eup %10841 }
0x462f   :  { %v7361_v24 = vsel %vm542_vm6, %v10842_v53, 0.0  ;;  %v10844_v56 = vpop.eup %10843 }
0x4630   :  { %7362 = vadd.xlane.f32.xlu0 %v7361_v24  ;;  %v7358_v33 = vsel %vm542_vm6, %v10844_v56, 0.0  ;;  %v8578_v24 = vld [vmem:[%s13279_s12 + $0xf0] sm:$0xff] }
0x4634   :  { %7359 = vadd.xlane.f32.xlu0 %v7358_v33 }
0x464a   :  { %10614 = vrot.lane.b32.xlu0 %v12767_v3, %s13306_s6 }
0x46bd   :  { %v7363_v29 = vpop.xlane.xlu0 %7362 }
0x46be   :  { %10845 = vrcp.f32 %v7363_v29 }
0x46c1   :  { %v7360_v58 = vpop.xlane.xlu0 %7359 }
0x46c2   :  { %10847 = vrcp.f32 %v7360_v58 }
0x46c5   :  { %v10615_v59 = vpop.permute.xlu0 %10614 }
0x46c6   :  { %v10617_v54 = vunpack.i.h.bf16 %v10615_v59  ;;  %v10616_v27 = vunpack.i.l.bf16 %v10615_v59 }
0x46c8   :  { %v10303_v20 = vpack.c.bf16 %v10617_v54, %v10616_v27  ;;  %v10846_v30 = vpop.eup %10845 }
0x46c9   :  { %v7367_v0 = vmul.f32 %v10846_v30, %v10842_v53  ;;  %v10321_v53 = vpack.c.bf16 %v8577_v40, %v8576_v57  ;;  %v8623_v57 = vld [vmem:[%s13280_s13 + $0xf8] sm:$0xff]  ;;  %v8625_v40 = vld [vmem:[%s13280_s13 + $0x108] sm:$0xff] }
0x46ca   :  { %10305 = vmatprep.subr.msk.bf16.mxu0 %vm11200_vm7, %v10303_v20 }
0x46cc   :  { %v10848_v62 = vpop.eup %10847 }
0x46cd   :  { %v7366_v35 = vmul.f32 %v10848_v62, %v10844_v56  ;;  %v8579_v56 = vld [vmem:[%s13279_s12 + $0xf8] sm:$0xff] }
0x46ce   :  { %v10325_v33 = vpack.c.bf16 %v8579_v56, %v8578_v24  ;;  %v8622_v24 = vld [vmem:[%s13280_s13 + $0xf0] sm:$0xff]  ;;  %v8624_v56 = vld [vmem:[%s13280_s13 + $0x100] sm:$0xff] }
0x46cf   :  { %9652 = vmatprep.mubr.msk.f32.mxu0 %vm542_vm6, %v7366_v35 }
0x46d0   :  { %9653 = vmatmul.mubr.msk.f32.vlgmr.msra.gmra.mrb[76].mxu0 %vm542_vm6, %v7367_v0 }
0x46d1   :  { %10308 = vmatpush3.bf16.xpose.msk.msra.mxu0 %vm11200_vm7, %v10303_v20  ;;  %9659 = vmatprep.mubr.msk.f32.mxu0 %vm542_vm6, %v7456_v36 }
0x46d8   :  { %9660 = vmatmul.mubr.msk.f32.vlgmr.msra.gmra.mrb[78].mxu0 %vm542_vm6, %v7458_v8 }
0x46d9   :  { %7941 = vmatprep.mubr.f32.mxu0 %v10913_v31 }
0x47a3   :  { %v9654_v34 = vpop.f32.mrb[76].mxu0 }
0x47a4   :  { %v7446_v1 = vpop.f32.mrb[77].mxu0 }
0x47ab   :  { %v9661_v60 = vpop.f32.mrb[78].mxu0 }
0x47ac   :  { %v7543_v11 = vadd.f32 %v9661_v60, %v11212_v14  ;;  %v7537_v12 = vpop.f32.mrb[79].mxu0 }
0x47ad   :  { %v7538_v22 = vadd.f32 %v7537_v12, %v11217_v15 }
0x47ae   :  { %v7549_v5 = vsel %vm542_vm6, %v7543_v11, -inf }
0x47af   :  { %7550 = vmax.xlane.f32.xlu1 %v7549_v5  ;;  %v7546_v42 = vsel %vm542_vm6, %v7538_v22, -inf }
0x47b0   :  { %7547 = vmax.xlane.f32.xlu0 %v7546_v42 }
0x47c0   :  { %10619 = vrot.lane.b32.xlu1 %v12767_v3, %s13305_s5 }
0x47c4   :  { %7659 = vrot.lane.b32.xlu1 %v12927_v7, %s13305_s5 }
0x47c8   :  { %7665 = vrot.lane.b32.xlu1 %v7446_v1, %s10919_s29 }
0x483c   :  { %v7551_v51 = vpop.xlane.xlu1 %7550 }
0x483d   :  { %v7553_v19 = vsub.f32 %v7543_v11, %v7551_v51  ;;  %v7548_v14 = vpop.xlane.xlu0 %7547 }
0x483e   :  { %v7552_v38 = vsub.f32 %v7538_v22, %v7548_v14 }
0x483f   :  { %v7556_v28 = vmul.f32 1.442695, %v7553_v19 }
0x4840   :  { %v7554_v15 = vmul.f32 1.442695, %v7552_v38  ;;  %v10620_v45 = vpop.permute.xlu1 %10619 }
0x4841   :  { %v10622_v61 = vunpack.i.h.bf16 %v10620_v45  ;;  %v10621_v26 = vunpack.i.l.bf16 %v10620_v45 }
0x4842   :  { %10849 = vpow2.f32 %v7554_v15 }
0x4843   :  { %v10309_v25 = vpack.c.bf16 %v10622_v61, %v10621_v26  ;;  %10851 = vpow2.f32 %v7556_v28  ;;  %v8611_v26 = vld [vmem:[%s13280_s13 + $0x98] sm:$0xff] }
0x4844   :  { %v7660_v54 = vpop.permute.xlu1 %7659 }
0x4845   :  { %10310 = vmatprep.subr.bf16.mxu1 %v10309_v25  ;;  %v7680_v35 = vsel %vm542_vm6, %v12901_v50, %v7660_v54 }
0x4846   :  { %10312 = vmatpush3.bf16.msra.mxu1 %v10309_v25  ;;  %v8613_v25 = vld [vmem:[%s13280_s13 + $0xa8] sm:$0xff] }
0x4848   :  { %v7666_v20 = vpop.permute.xlu1 %7665 }
0x484c   :  { %v10850_v3 = vpop.eup %10849 }
0x484d   :  { %v7558_v39 = vsel %vm542_vm6, %v10850_v3, 0.0  ;;  %v10852_v7 = vpop.eup %10851 }
0x484e   :  { %7559 = vadd.xlane.f32.xlu0 %v7558_v39  ;;  %v7561_v21 = vsel %vm542_vm6, %v10852_v7, 0.0  ;;  %v8610_v39 = vld [vmem:[%s13280_s13 + $0x90] sm:$0xff] }
0x4852   :  { %7562 = vadd.xlane.f32.xlu0 %v7561_v21 }
0x4868   :  { %7657 = vrot.lane.b32.xlu0 %v12929_v44, %s13305_s5  ;;  %v8573_v44 = vld [vmem:[%s13279_s12 + $0xc8] sm:$0xff] }
0x4869   :  { %v10313_v52 = vpack.c.bf16 %v8573_v44, %v8572_v18  ;;  %v8619_v18 = vld [vmem:[%s13280_s13 + $0xd8] sm:$0xff]  ;;  %v8621_v44 = vld [vmem:[%s13280_s13 + $0xe8] sm:$0xff] }
0x486a   :  { %v10337_v2 = vpack.c.bf16 %v8621_v44, %v8619_v18 }
0x486b   :  { %10314 = vmatprep.subr.bf16.mxu1 %v10313_v52 }
0x486c   :  { %7667 = vrot.lane.b32.xlu0 %v9654_v34, %s10919_s29 }
0x48db   :  { %v7560_v17 = vpop.xlane.xlu0 %7559 }
0x48dc   :  { %10853 = vrcp.f32 %v7560_v17  ;;  %v8615_v17 = vld [vmem:[%s13280_s13 + $0xb8] sm:$0xff] }
0x48df   :  { %v7563_v37 = vpop.xlane.xlu0 %7562 }
0x48e0   :  { %10855 = vrcp.f32 %v7563_v37  ;;  %v8617_v37 = vld [vmem:[%s13280_s13 + $0xc8] sm:$0xff] }
0x48e3   :  { %v7658_v59 = vpop.permute.xlu0 %7657 }
0x48e4   :  { %v7679_v30 = vsel %vm542_vm6, %v12903_v41, %v7658_v59  ;;  %v7688_v41 = vrot.slane %v12822_v16, %v11175_v48  ;;  %v8628_v59 = vld [vmem:[%s13281_s14 + $0x108] sm:$0xff] }
0x48e5   :  { %v7681_v36 = vsel %vm1359_vm4, %v7679_v30, %v7666_v20  ;;  %v8646_v20 = vld [vmem:[%s13281_s14 + $0x198] sm:$0xff]  ;;  %v8647_v30 = vld [vmem:[%s13281_s14 + $0x1a0] sm:$0xff] }
0x48e6   :  { %v10854_v47 = vpop.eup %10853 }
0x48e7   :  { %v7566_v46 = vmul.f32 %v10854_v47, %v10850_v3  ;;  %v7668_v27 = vpop.permute.xlu0 %7667  ;;  %v10329_v3 = vpack.c.bf16 %v8613_v25, %v8611_v26  ;;  %v10333_v47 = vpack.c.bf16 %v8617_v37, %v8615_v17  ;;  %v8654_v26 = vld [vmem:[%s13281_s14 + $0x1d8] sm:$0xff]  ;;  %v8655_v25 = vld [vmem:[%s13281_s14 + $0x1e0] sm:$0xff]  ;;  %v8656_v17 = vld [vmem:[%s13281_s14 + $0x1e8] sm:$0xff] }
0x48e8   :  { %v7682_v8 = vsel %vm1359_vm4, %v7680_v35, %v7668_v27  ;;  %v8629_v27 = vld [vmem:[%s13281_s14 + $0x110] sm:$0xff]  ;;  %v10349_v35 = vpack.c.bf16 %v8647_v30, %v8646_v20 }
0x48e9   :  { %9666 = vmatprep.mubr.msk.f32.mxu1 %vm542_vm6, %v7566_v46  ;;  %10330 = vmatprep.subr.bf16.mxu0 %v10329_v3  ;;  %v8614_v46 = vld [vmem:[%s13280_s13 + $0xb0] sm:$0xff] }
0x48ea   :  { %v10856_v4 = vpop.eup %10855  ;;  %v8657_v37 = vld [vmem:[%s13281_s14 + $0x1f0] sm:$0xff] }
0x48eb   :  { %v7567_v23 = vmul.f32 %v10856_v4, %v10852_v7  ;;  %v8612_v7 = vld [vmem:[%s13280_s13 + $0xa0] sm:$0xff]  ;;  %v8661_v30 = vld [vmem:[%s13280_s13 + $0x110] ss:$0 sm:$0xff] }
0x48ec   :  { %v10331_v21 = vpack.c.bf16 %v8612_v7, %v8610_v39  ;;  %v8616_v4 = vld [vmem:[%s13280_s13 + $0xc0] sm:$0xff]  ;;  %v10365_v39 = vpack.c.bf16 %v8655_v25, %v8654_v26  ;;  %v8638_v7 = vld [vmem:[%s13281_s14 + $0x158] sm:$0xff] }
0x48ed   :  { %9667 = vmatmul.mubr.msk.f32.vlgmr.msra.gmra.mrb[78].mxu1 %vm542_vm6, %v7567_v23  ;;  %v10335_v23 = vpack.c.bf16 %v8616_v4, %v8614_v46  ;;  %v10369_v46 = vpack.c.bf16 %v8657_v37, %v8656_v17 }
0x48ee   :  { %10316 = vmatpush3.bf16.msra.mxu1 %v10313_v52  ;;  %10332 = vmatpush1.bf16.msra.mxu0 %v10331_v21  ;;  %v8618_v52 = vld [vmem:[%s13280_s13 + $0xd0] sm:$0xff]  ;;  %v8639_v21 = vld [vmem:[%s13281_s14 + $0x160] sm:$0xff] }
0x48ef   :  { %10318 = vmatprep.subr.bf16.mxu1 %v10317_v49  ;;  %10334 = vmatprep.subr.bf16.mxu0 %v10333_v47  ;;  %v10367_v47 = vpack.c.bf16 %v8639_v21, %v8638_v7 }
0x48f2   :  { %10320 = vmatpush3.bf16.msra.mxu1 %v10317_v49  ;;  %10336 = vmatpush1.bf16.msra.mxu0 %v10335_v23  ;;  %v10339_v49 = vpack.c.bf16 %v8620_v13, %v8618_v52 }
0x48f3   :  { %10322 = vmatprep.subr.bf16.mxu1 %v10321_v53  ;;  %10338 = vmatprep.subr.bf16.mxu0 %v10337_v2 }
0x48f6   :  { %10324 = vmatpush3.bf16.msra.mxu1 %v10321_v53  ;;  %10340 = vmatpush1.bf16.msra.mxu0 %v10339_v49  ;;  %v10341_v53 = vpack.c.bf16 %v8625_v40, %v8623_v57  ;;  %v10874_v49 = vld [vmem:[%s13277_s10 + $0x10] sm:$0xff] }
0x48f7   :  { %10326 = vmatprep.subr.bf16.mxu1 %v10325_v33  ;;  %v7801_v57 = vrot.slane %v10874_v49, %v5317_v63  ;;  %v8640_v63 = vld [vmem:[%s13281_s14 + $0x168] sm:$0xff] }
0x48f8   :  { %10342 = vmatprep.subr.bf16.mxu0 %v10341_v53 }
0x48fa   :  { %10328 = vmatpush3.bf16.msra.mxu1 %v10325_v33  ;;  %v10343_v33 = vpack.c.bf16 %v8624_v56, %v8622_v24  ;;  %v7807_v24 = vrot.slane %v10874_v49, %v5323_v32  ;;  %v10371_v32 = vpack.c.bf16 %v8641_v9, %v8640_v63 }
0x48fc   :  { %10344 = vmatpush1.bf16.msra.mxu0 %v10343_v33 }
0x49c0   :  { %v9668_v29 = vpop.f32.mrb[78].mxu1 }
0x49c1   :  { %7675 = vrot.lane.b32.xlu0 %v9668_v29, %s10918_s28  ;;  %v7646_v58 = vpop.f32.mrb[79].mxu1  ;;  %v8644_v29 = vld [vmem:[%s13281_s14 + $0x188] sm:$0xff] }
0x49c2   :  { %7673 = vrot.lane.b32.xlu1 %v7646_v58, %s10918_s28  ;;  %v8645_v58 = vld [vmem:[%s13281_s14 + $0x190] sm:$0xff] }
0x49c3   :  { %v10345_v54 = vpack.c.bf16 %v8645_v58, %v8644_v29 }
0x49c5   :  { %10346 = vmatprep.subr.bf16.mxu1 %v10345_v54  ;;  %v8642_v54 = vld [vmem:[%s13281_s14 + $0x178] sm:$0xff] }
0x4a33   :  { %v7676_v62 = vpop.permute.xlu0 %7675 }
0x4a34   :  { %v7674_v0 = vpop.permute.xlu1 %7673  ;;  %v7684_v1 = vsel %vm1362_vm5, %v7682_v8, %v7676_v62  ;;  %v10347_v62 = vpack.c.bf16 %v8629_v27, %v8628_v59  ;;  %v8648_v8 = vld [vmem:[%s13281_s14 + $0x1a8] sm:$0xff]  ;;  %v8643_v27 = vld [vmem:[%s13281_s14 + $0x180] sm:$0xff] }
0x4a35   :  { %v7683_v34 = vsel %vm1362_vm5, %v7681_v36, %v7674_v0  ;;  %v8630_v0 = vld [vmem:[%s13281_s14 + $0x118] sm:$0xff]  ;;  %v8631_v36 = vld [vmem:[%s13281_s14 + $0x120] sm:$0xff]  ;;  %v10375_v20 = vpack.c.bf16 %v8643_v27, %v8642_v54 }
0x4a36   :  { %9685 = vmatprep.mubr.msk.f32.mxu1 %vm387_vm0, %v7683_v34  ;;  %v8649_v34 = vld [vmem:[%s13281_s14 + $0x1b0] sm:$0xff] }
0x4a37   :  { %9686 = vmatmul.mubr.msk.f32.vlgmr.msra.gmra.mrb[80].mxu1 %vm387_vm0, %v7684_v1  ;;  %v10351_v1 = vpack.c.bf16 %v8631_v36, %v8630_v0 }
0x4a38   :  { %10348 = vmatpush3.bf16.msra.mxu1 %v10347_v62  ;;  %v8662_v62 = vld [vmem:[%s13280_s13 + $0x118] ss:$0 sm:$0xff] }
0x4a39   :  { %10350 = vmatprep.subr.bf16.mxu1 %v10349_v35 }
0x4a3c   :  { %10352 = vmatpush3.bf16.msra.mxu1 %v10351_v1 }
0x4b0a   :  { %v9687_v60 = vpop.f32.mrb[80].mxu1 }
0x4b0b   :  { %v7767_v11 = vadd.f32 %v9687_v60, %v7688_v41  ;;  %v7761_v12 = vpop.f32.mrb[81].mxu1  ;;  %v8632_v60 = vld [vmem:[%s13281_s14 + $0x128] sm:$0xff] }
0x4b0c   :  { %v7762_v50 = vadd.f32 %v7761_v12, %v7688_v41  ;;  %v10353_v41 = vpack.c.bf16 %v8649_v34, %v8648_v8  ;;  %v8650_v12 = vld [vmem:[%s13281_s14 + $0x1b8] sm:$0xff] }
0x4b0d   :  { %v13009_v22 = vadd.f32 %v7767_v11, %v12827_v55  ;;  %v8633_v11 = vld [vmem:[%s13281_s14 + $0x130] sm:$0xff] }
0x4b0e   :  { %v13012_v5 = vadd.f32 %v7762_v50, %v12830_v6  ;;  %v8651_v50 = vld [vmem:[%s13281_s14 + $0x1c0] sm:$0xff]  ;;  %10354 = vmatprep.subr.bf16.mxu1 %v10353_v41 }
0x4b0f   :  { %v7775_v42 = vsel %vm387_vm0, %v13009_v22, 0.0 }
0x4b10   :  { %7776 = vadd.xlane.f32.xlu0 %v7775_v42  ;;  %v7772_v51 = vsel %vm387_vm0, %v13012_v5, 0.0  ;;  %v10355_v42 = vpack.c.bf16 %v8633_v11, %v8632_v60 }
0x4b11   :  { %7773 = vadd.xlane.f32.xlu1 %v7772_v51  ;;  %v10357_v51 = vpack.c.bf16 %v8651_v50, %v8650_v12 }
0x4b12   :  { %10356 = vmatpush3.bf16.msra.mxu1 %v10355_v42 }
0x4b13   :  { %10358 = vmatprep.subr.bf16.mxu1 %v10357_v51 }
0x4b9d   :  { %v7777_v19 = vpop.xlane.xlu0 %7776 }
0x4b9e   :  { %v7779_v16 = vmul.f32 0.015625, %v7777_v19  ;;  %v7774_v14 = vpop.xlane.xlu1 %7773  ;;  %v8634_v19 = vld [vmem:[%s13281_s14 + $0x138] sm:$0xff] }
0x4b9f   :  { %v7778_v38 = vmul.f32 0.015625, %v7774_v14  ;;  %v8652_v14 = vld [vmem:[%s13281_s14 + $0x1c8] sm:$0xff] }
0x4ba0   :  { %v13019_v28 = vsub.f32 %v13009_v22, %v7779_v16  ;;  %v8635_v16 = vld [vmem:[%s13281_s14 + $0x140] sm:$0xff] }
0x4ba1   :  { %v13022_v55 = vsub.f32 %v13012_v5, %v7778_v38  ;;  %v8653_v38 = vld [vmem:[%s13281_s14 + $0x1d0] sm:$0xff] }
0x4ba2   :  { %v7783_v6 = vmul.f32 %v13019_v28, %v13019_v28 }
0x4ba3   :  { %v7782_v15 = vmul.f32 %v13022_v55, %v13022_v55 }
0x4ba4   :  { %v7787_v45 = vsel %vm387_vm0, %v7783_v6, 0.0  ;;  %v10359_v6 = vpack.c.bf16 %v8635_v16, %v8634_v19  ;;  %v8665_v19 = vld [vmem:[%s13281_s14 + $0x208] ss:$0 sm:$0xff] }
0x4ba5   :  { %7788 = vadd.xlane.f32.xlu1 %v7787_v45  ;;  %v7784_v61 = vsel %vm387_vm0, %v7782_v15, 0.0  ;;  %v10361_v15 = vpack.c.bf16 %v8653_v38, %v8652_v14  ;;  %v8636_v45 = vld [vmem:[%s13281_s14 + $0x148] sm:$0xff] }
0x4ba6   :  { %7785 = vadd.xlane.f32.xlu0 %v7784_v61  ;;  %v8637_v61 = vld [vmem:[%s13281_s14 + $0x150] sm:$0xff]  ;;  %10360 = vmatpush3.bf16.msra.mxu1 %v10359_v6 }
0x4ba7   :  { %v10363_v3 = vpack.c.bf16 %v8637_v61, %v8636_v45  ;;  %10362 = vmatprep.subr.bf16.mxu1 %v10361_v15 }
0x4baa   :  { %10364 = vmatpush3.bf16.msra.mxu1 %v10363_v3 }
0x4bab   :  { %10366 = vmatprep.subr.bf16.mxu1 %v10365_v39 }
0x4bae   :  { %10368 = vmatpush3.bf16.msra.mxu1 %v10367_v47 }
0x4baf   :  { %10370 = vmatprep.subr.bf16.mxu1 %v10369_v46 }
0x4bb2   :  { %10372 = vmatpush3.bf16.msra.mxu1 %v10371_v32 }
0x4c32   :  { %v7789_v4 = vpop.xlane.xlu1 %7788 }
0x4c33   :  { %v7791_v23 = vmul.f32 0.015625, %v7789_v4  ;;  %v7786_v18 = vpop.xlane.xlu0 %7785 }
0x4c34   :  { %v7790_v44 = vmul.f32 0.015625, %v7786_v18 }
0x4c35   :  { %v7793_v2 = vadd.f32 1e-05, %v7791_v23 }
0x4c36   :  { %v7792_v52 = vadd.f32 1e-05, %v7790_v44  ;;  %v8079_v44 = vld [vmem:[%s13283_s16 + $0x8] sm:$0xff] }
0x4c37   :  { %10857 = vrsqrt.f32 %v7793_v2 }
0x4c38   :  { %10859 = vrsqrt.f32 %v7792_v52  ;;  %v8080_v52 = vld [vmem:[%s13283_s16 + $0x10] sm:$0xff] }
0x4c41   :  { %v10858_v13 = vpop.eup %10857 }
0x4c42   :  { %v10860_v40 = vpop.eup %10859  ;;  %v7797_v56 = vmul.f32 %v10858_v13, %v13019_v28  ;;  %v8658_v28 = vld [vmem:[%s13281_s14 + $0x1f8] sm:$0xff] }
0x4c43   :  { %v7796_v53 = vmul.f32 %v10860_v40, %v13022_v55  ;;  %v8081_v13 = vld [vmem:[%s13283_s16 + $0x18] sm:$0xff]  ;;  %v8083_v40 = vld [vmem:[%s13283_s16 + $0x28] sm:$0xff] }
0x4c44   :  { %v7803_v58 = vmul.f32 %v7801_v57, %v7797_v56  ;;  %v10381_v49 = vpack.c.bf16 %v8081_v13, %v8080_v52  ;;  %v8085_v56 = vld [vmem:[%s13283_s16 + $0x38] sm:$0xff] }
0x4c45   :  { %v7802_v33 = vmul.f32 %v7801_v57, %v7796_v53  ;;  %v8082_v57 = vld [vmem:[%s13283_s16 + $0x20] sm:$0xff] }
0x4c46   :  { %v7809_v59 = vadd.f32 %v7807_v24, %v7803_v58  ;;  %v10385_v53 = vpack.c.bf16 %v8083_v40, %v8082_v57 }
0x4c47   :  { %v7808_v29 = vadd.f32 %v7807_v24, %v7802_v33  ;;  %v8084_v24 = vld [vmem:[%s13283_s16 + $0x30] sm:$0xff] }
0x4c48   :  { %v10389_v33 = vpack.c.bf16 %v8085_v56, %v8084_v24 }
0x4c49   :  { %8663 = vmatmul.mubr.msk.f32.vlgmr.msra.gmra.mrb[80].mxu0 %vm387_vm0, %v7808_v29 }
0x4c4a   :  { %7947 = vmatprep.mubr.f32.mxu0 %v10913_v31  ;;  %v8659_v31 = vld [vmem:[%s13281_s14 + $0x200] sm:$0xff] }
0x4c4b   :  { %v10373_v55 = vpack.c.bf16 %v8659_v31, %v8658_v28  ;;  %v8039_v28 = vld [vmem:[%s13282_s15] sm:$0x3] }
0x4c4c   :  { %v8069_v31 = vrot.slane %v8039_v28, %v11167_v43  ;;  %v8075_v27 = vrot.slane %v8039_v28, %v11175_v48  ;;  %v8666_v43 = vld [vmem:[%s13283_s16 + $0x40] ss:$0 sm:$0xff] }
0x4c4d   :  { %8664 = vmatmul.mubr.msk.f32.gmra.mrb[82].mxu0 %vm387_vm0, %v7809_v59  ;;  %10374 = vmatprep.subr.bf16.mxu1 %v10373_v55 }
0x4c4e   :  { %10376 = vmatpush3.bf16.msra.mxu1 %v10375_v20 }
0x4d1c   :  { %v7943_v35 = vpop.f32.mrb[80].mxu0 }
0x4d1d   :  { %v7944_v0 = vadd.f32 %v8661_v30, %v7943_v35  ;;  %v7945_v36 = vpop.f32.mrb[81].mxu0 }
0x4d1e   :  { %v7946_v8 = vadd.f32 %v8662_v62, %v7945_v36 }
0x4d1f   :  { %v7954_v41 = vmax.f32 %v7944_v0, 0.0 }
0x4d20   :  { %v7955_v34 = vmax.f32 %v7946_v8, 0.0  ;;  %v7949_v1 = vpop.f32.mrb[82].mxu0  ;;  %v10922_v8 = vmov 1  }
0x4d21   :  { %v7950_v60 = vadd.f32 %v8661_v30, %v7949_v1  ;;  %v7951_v11 = vpop.f32.mrb[83].mxu0  ;;  %10624 = vset.pattern.permute.xlu1 %v10922_v8  ;;  %10623 = vset.pattern.permute.xlu0 %v10922_v8 }
0x4d22   :  { %v7952_v12 = vadd.f32 %v8662_v62, %v7951_v11  ;;  %8026 = vmatprep.mubr.f32.mxu1 %v7955_v34  ;;  %v8194_v11 = vld [vmem:[%s13302_s2] sm:$0xff] }
0x4d23   :  { %8027 = vmatmul.mubr.f32.vlgmr.msra.gmra.mrb[82].mxu1 %v7954_v41  ;;  %v7956_v42 = vmax.f32 %v7950_v60, 0.0  ;;  %v8195_v60 = vld [vmem:[%s13302_s2 + $0x8] sm:$0xff] }
0x4d24   :  { %v7957_v50 = vmax.f32 %v7952_v12, 0.0 }
0x4d26   :  { %8031 = vmatprep.mubr.f32.mxu1 %v7957_v50 }
0x4d27   :  { %8032 = vmatmul.mubr.f32.gmra.mrb[84].mxu1 %v7956_v42 }
0x4df6   :  { %v9121_v51 = vpop.f32.mrb[82].mxu1 }
0x4df7   :  { %v9122_v16 = vpop.f32.mrb[83].mxu1 }
0x4df8   :  { %v9123_v14 = vadd.f32 %v9122_v16, %v9121_v51 }
0x4dfa   :  { %v8029_v38 = vadd.f32 %v9123_v14, %v8665_v19  ;;  %v9124_v6 = vpop.f32.mrb[84].mxu1 }
0x4dfb   :  { %v9125_v15 = vpop.f32.mrb[85].mxu1 }
0x4dfc   :  { %v9126_v45 = vadd.f32 %v9125_v15, %v9124_v6  ;;  %v8037_v61 = vadd.f32 %v8029_v38, %v13012_v5 }
0x4dfe   :  { %v8034_v26 = vadd.f32 %v9126_v45, %v8665_v19  ;;  %v8040_v25 = vsel %vm387_vm0, %v8037_v61, 0.0 }
0x4dff   :  { %8041 = vadd.xlane.f32.xlu0 %v8040_v25 }
0x4e00   :  { %v8038_v3 = vadd.f32 %v8034_v26, %v13009_v22  ;;  %v8078_v22 = vld [vmem:[%s13283_s16] sm:$0xff]  ;;  %s10923_s16 = smov [#allocation2]  }
0x4e01   :  { %v10377_v2 = vpack.c.bf16 %v8079_v44, %v8078_v22  ;;  %s8235_s2 = sshll.u32 %s10923_s16, 4  ;;  %s8236_s2 = int_to_ptr.vmem [resolvable:$true] %s8235_s2 }
0x4e02   :  { %v8043_v39 = vsel %vm387_vm0, %v8038_v3, 0.0  ;;  %s10875_s4 = scalar_lea.vmem %s8236_s2, 256  ;;  %p10880_p1 = scmp.lt.s32.totalorder %s8236_s2, %s8236_s2 }
0x4e03   :  { %8044 = vadd.xlane.f32.xlu1 %v8043_v39  ;;  %10378 = vmatprep.subr.bf16.mxu0 %v10377_v2  ;;  %p10876_p0 = scmp.ne.s32.totalorder %s8236_s2, %s10875_s4  ;;  %p10881_p2 = scmp.lt.s32.totalorder %s10875_s4, %s10875_s4 }
0x4e04   :  { %10380 = vmatpush3.bf16.msra.mxu0 %v10377_v2 }
0x4e05   :  { %10382 = vmatprep.subr.bf16.mxu0 %v10381_v49  ;;  %p10882_p3 = por %p10881_p2, %p10880_p1 }
0x4e07   :  { %p10883_p4 = pnand %p10882_p3, %p10876_p0 }
0x4e08   :  { %10384 = vmatpush3.bf16.msra.mxu0 %v10381_v49 }
0x4e09   :  { %10386 = vmatprep.subr.bf16.mxu0 %v10385_v53 }
0x4e0c   :  { %10388 = vmatpush3.bf16.msra.mxu0 %v10385_v53 }
0x4e0d   :  { %10390 = vmatprep.subr.bf16.mxu0 %v10389_v33 }
0x4e10   :  { %10392 = vmatpush3.bf16.msra.mxu0 %v10389_v33 }
0x4e8c   :  { %v8042_v7 = vpop.xlane.xlu0 %8041 }
0x4e8d   :  { %v8046_v21 = vmul.f32 0.015625, %v8042_v7 }
0x4e8f   :  { %v8048_v17 = vsub.f32 %v8037_v61, %v8046_v21 }
0x4e90   :  { %v8045_v37 = vpop.xlane.xlu1 %8044 }
0x4e91   :  { %v8047_v47 = vmul.f32 0.015625, %v8045_v37  ;;  %v8050_v46 = vmul.f32 %v8048_v17, %v8048_v17 }
0x4e93   :  { %v8049_v4 = vsub.f32 %v8038_v3, %v8047_v47  ;;  %v8052_v23 = vsel %vm387_vm0, %v8050_v46, 0.0 }
0x4e94   :  { %8053 = vadd.xlane.f32.xlu0 %v8052_v23 }
0x4e95   :  { %v8051_v5 = vmul.f32 %v8049_v4, %v8049_v4 }
0x4e97   :  { %v8055_v18 = vsel %vm387_vm0, %v8051_v5, 0.0 }
0x4e98   :  { %8056 = vadd.xlane.f32.xlu1 %v8055_v18 }
0x4f21   :  { %v8054_v29 = vpop.xlane.xlu0 %8053 }
0x4f22   :  { %v8058_v58 = vmul.f32 0.015625, %v8054_v29 }
0x4f24   :  { %v8060_v59 = vadd.f32 1e-05, %v8058_v58 }
0x4f25   :  { %v8057_v63 = vpop.xlane.xlu1 %8056 }
0x4f26   :  { %10861 = vrsqrt.f32 %v8060_v59  ;;  %v8059_v9 = vmul.f32 0.015625, %v8057_v63 }
0x4f28   :  { %v8061_v32 = vadd.f32 1e-05, %v8059_v9 }
0x4f2a   :  { %10863 = vrsqrt.f32 %v8061_v32 }
0x4f30   :  { %v10862_v55 = vpop.eup %10861 }
0x4f31   :  { %v8064_v54 = vmul.f32 %v10862_v55, %v8048_v17 }
0x4f33   :  { %v8070_v20 = vmul.f32 %v8069_v31, %v8064_v54 }
0x4f34   :  { %v10864_v30 = vpop.eup %10863 }
0x4f35   :  { %v8065_v62 = vmul.f32 %v10864_v30, %v8049_v4  ;;  %v8076_v35 = vadd.f32 %v8075_v27, %v8070_v20 }
0x4f37   :  { %v8071_v0 = vmul.f32 %v8069_v31, %v8065_v62  ;;  %9704 = vmatprep.mubr.msk.f32.mxu0 %vm387_vm0, %v8076_v35 }
0x4f39   :  { %v8077_v36 = vadd.f32 %v8075_v27, %v8071_v0 }
0x4f3b   :  { %9705 = vmatmul.mubr.msk.f32.vlgmr.msra.gmra.mrb[84].mxu0 %vm387_vm0, %v8077_v36 }
0x500e   :  { %v9706_v34 = vpop.f32.mrb[84].mxu0 }
0x500f   :  { %v8169_v1 = vadd.f32 %v9706_v34, %v8666_v43  ;;  %v8163_v48 = vpop.f32.mrb[85].mxu0 }
0x5010   :  { %v8164_v41 = vadd.f32 %v8666_v43, %v8163_v48 }
0x5011   :  { %8173 = vst [vmem:[#allocation2 + $0x8] sm:$0xff] %v8169_v1  ;;  %8176 = vmax.xlane.f32.xlu1 %v8169_v1 }
0x5012   :  { %8172 = vst [vmem:[#allocation2] sm:$0xff] %v8164_v41  ;;  %8174 = vmax.xlane.f32.xlu0 %v8164_v41 }
0x5022   :  { %8200 = vperm.xlu1 %10624, %v8195_v60  }
0x5028   :  { %8197 = vperm.xlu0 %10623, %v8194_v11  }
0x509e   :  { %v8177_v12 = vpop.xlane.xlu1 %8176 }
0x509f   :  { %v8179_v50 = vsub.f32 %v8169_v1, %v8177_v12  ;;  %v8175_v42 = vpop.xlane.xlu0 %8174 }
0x50a0   :  { %v8178_v51 = vsub.f32 %v8164_v41, %v8175_v42 }
0x50a1   :  { %v8182_v19 = vmul.f32 1.442695, %v8179_v50 }
0x50a2   :  { %v8180_v16 = vmul.f32 1.442695, %v8178_v51  ;;  %v8201_v15 = vpop.permute.xlu1 %8200 }
0x50a3   :  { %10865 = vpow2.f32 %v8182_v19  ;;  %vm8203_vm9 = vcmp.eq.s32.totalorder %v11039_v10, %v8201_v15 }
0x50a4   :  { %10867 = vpow2.f32 %v8180_v16  ;;  %v8205_v61 = vsel %vm8203_vm9, %v8169_v1, 0.0 }
0x50a7   :  { %v8198_v14 = vpop.permute.xlu0 %8197 }
0x50a8   :  { %vm8202_vm8 = vcmp.eq.s32.totalorder %v11039_v10, %v8198_v14 }
0x50a9   :  { %v8204_v45 = vsel %vm8202_vm8, %v8164_v41, 0.0 }
0x50ad   :  { %v10866_v38 = vpop.eup %10865 }
0x50ae   :  { %v10868_v6 = vpop.eup %10867  ;;  %8186 = vadd.xlane.f32.xlu0 %v10866_v38 }
0x50af   :  { %8184 = vadd.xlane.f32.xlu1 %v10868_v6 }
0x50b3   :  { %8206 = vadd.xlane.f32.xlu1 %v8204_v45 }
0x50b7   :  { %8208 = vadd.xlane.f32.xlu1 %v8205_v61 }
0x513b   :  { %v8187_v26 = vpop.xlane.xlu0 %8186 }
0x513c   :  { %10869 = vlog2.f32 %v8187_v26  ;;  %v8185_v25 = vpop.xlane.xlu1 %8184 }
0x513d   :  { %10871 = vlog2.f32 %v8185_v25 }
0x5140   :  { %v8207_v3 = vpop.xlane.xlu1 %8206 }
0x5144   :  { %v8209_v46 = vpop.xlane.xlu1 %8208 }
0x5146   :  { %v10870_v39 = vpop.eup %10869 }
0x5147   :  { %v10872_v7 = vpop.eup %10871  ;;  %v8191_v21 = vmul.f32 0.6931472, %v10870_v39 }
0x5148   :  { %v8189_v17 = vmul.f32 0.6931472, %v10872_v7 }
0x5149   :  { %v8193_v37 = vadd.f32 %v8191_v21, %v8177_v12 }
0x514a   :  { %v8192_v47 = vadd.f32 %v8189_v17, %v8175_v42 }
0x514b   :  { %v8211_v4 = vsub.f32 %v8193_v37, %v8209_v46 }
0x514c   :  { %v8210_v23 = vsub.f32 %v8192_v47, %v8207_v3 }
0x514d   :  { %v8214_v5 = vsel %vm8212_vm10, %v8211_v4, 0.0 }
0x514e   :  { %v8213_v10 = vsel %vm8212_vm10, %v8210_v23, 0.0 }
0x514f   :  { %v8215_v18 = vadd.f32 %v8214_v5, %v8213_v10 }
0x5151   :  { %8216 = vadd.xlane.f32.xlu1 %v8215_v18 }
0x5152   :  { %10886 = shalt.err (!%p10883_p4)
}
0x5153   :  { %s10887_s13 = scalar_lea.hbm %s13284_s17, 256 }
0x5154   :  { %p10888_p5 = scmp.ne.s32.totalorder %s13284_s17, %s10887_s13  ;;  %p10891_p6 = scmp.lt.u32.totalorder %s10887_s13, %s13284_s17 }
0x5156   :  { %p10893_p7 = pnand %p10891_p6, %p10888_p5 }
0x5158   :  { %10896 = shalt.err (!%p10893_p7)
}
0x5159   :  { %s10924_s9 = smov 128   ;;  %s10925_s21 = smov 8  }
0x515a   :  { %8241 = dma.vmem_to_hbm [thread:$0]  %s8236_s2, 256, %s13284_s17, [#allocation3], %s10924_s9, %s10924_s9, %s10925_s21  }
0x515b   :  { %s10897_s7 = scalar_lea.hbm %s13285_s18, 16 }
0x515c   :  { %p10898_p8 = scmp.ne.s32.totalorder %s13285_s18, %s10897_s7  ;;  %p10901_p9 = scmp.lt.u32.totalorder %s10897_s7, %s13285_s18 }
0x515e   :  { %p10903_p10 = pnand %p10901_p9, %p10898_p8 }
0x51de   :  { %v8217_v22 = vpop.xlane.xlu1 %8216 }
0x51df   :  { %v8218_v44 = vrot.slane %v8217_v22, 4 }
0x51e1   :  { %v8219_v2 = vadd.f32 %v8218_v44, %v8217_v22 }
0x51e3   :  { %v8220_v52 = vrot.slane %v8219_v2, 2 }
0x51e5   :  { %v8221_v13 = vadd.f32 %v8220_v52, %v8219_v2 }
0x51e7   :  { %v8222_v49 = vrot.slane %v8221_v13, 1 }
0x51e9   :  { %v8223_v57 = vadd.f32 %v8222_v49, %v8221_v13 }
0x51eb   :  { %10393 = vpush %v8223_v57 }
0x521c   :  { %s10394_s27 = spop %10393 }
0x521d   :  { %s8227_s23 = smul.f32 0.0625, %s10394_s27 }
0x521f   :  { %8229 = sst [smem:[#allocation5]] %s8227_s23 }
0x5220   :  { %10906 = shalt.err (!%p10903_p10)
}
0x5221   :  { %s10926_s8 = smov [#allocation5]  }
0x5222   :  { %8249 = dma.smem_to_hbm %s10926_s8, 16, %s13285_s18, [#allocation4]  }
0x5223   :  { %10907 = dma.done.wait [#allocation3], 256  }
0x5224   :  { %10908 = vsyncadd [#allocation3], 4294967040 }
0x5225   :  { %10909 = dma.done.wait [#allocation4], 16  }
0x5226   :  { %10910 = vsyncadd [#allocation4], 4294967280 }
0x5227   :  { %8256 = sfence }
0x5228   :  { %8257 = vsyncpa [#allocation3], 1 }
0x5229   :  { %8258 = vsyncpa [#allocation4], 1 }

</bundles_post_ra>
